<compile_context>
chip_gen: v7x
topology: tpu7x:2x2x1
jax: 0.10.0
libtpu: 0.0.40
codegen_flags: <defaults>
</compile_context>

<pallas_src>
import functools

import jax
import jax.numpy as jnp
import numpy as np
from jax.experimental import pallas as pl
from jax.experimental.pallas import tpu as pltpu

BN_EPS = 1e-5


# ---------------------------------------------------------------------------
# Kernels
# ---------------------------------------------------------------------------
def _matmul_bn_act_kernel(x_ref, w_ref, gamma_ref, beta_ref, *rest,
                          relu: bool, has_residual: bool):
  """(im2col'd) conv as one matmul + folded BN (+residual) (+ReLU).

  Grid is over Cout tiles ("parallel"); BN statistics are per-channel so each
  grid step owns a disjoint channel slice and is fully independent.

  x_ref     : (P, K)   bf16   im2col slab (K = 9*Cin for 3x3, Cin for 1x1)
  w_ref     : (K, Tc)  bf16   weight tile
  gamma_ref : (1, Tc)  f32
  beta_ref  : (1, Tc)  f32
  res_ref   : (P, Tc)  (optional) residual tile
  out_ref   : (P, Tc)
  """
  if has_residual:
    res_ref, out_ref = rest
  else:
    (out_ref,) = rest

  p = x_ref.shape[0]
  # Single long-K MXU matmul: bf16 operands, f32 accumulation.
  acc = jnp.dot(x_ref[...], w_ref[...], preferred_element_type=jnp.float32)

  # Folded training-mode BatchNorm: one sum/sumsq pass, then y = acc*scale+shift.
  inv_p = jnp.float32(1.0 / p)
  s1 = jnp.sum(acc, axis=0, keepdims=True)                  # (1, Tc)
  s2 = jnp.sum(acc * acc, axis=0, keepdims=True)            # (1, Tc)
  mean = s1 * inv_p
  var = jnp.maximum(s2 * inv_p - mean * mean, 0.0)          # clamp cancellation
  scale = gamma_ref[...] * jax.lax.rsqrt(var + jnp.float32(BN_EPS))
  shift = beta_ref[...] - mean * scale
  y = acc * scale + shift

  if has_residual:
    y = y + res_ref[...].astype(jnp.float32)
  if relu:
    y = jnp.maximum(y, 0.0)
  out_ref[...] = y.astype(out_ref.dtype)


def _dense_logsoftmax_kernel(x_ref, w_ref, b_ref, out_ref):
  """PolicyHead tail: dense + log_softmax (over the action axis)."""
  logits = jnp.dot(x_ref[...], w_ref[...],
                   preferred_element_type=jnp.float32) + b_ref[...]
  z = logits - jnp.max(logits, axis=-1, keepdims=True)
  lse = jnp.log(jnp.sum(jnp.exp(z), axis=-1, keepdims=True))
  out_ref[...] = (z - lse).astype(out_ref.dtype)


def _dense_relu_dense_tanh_kernel(x_ref, w1_ref, b1_ref, w2_ref, b2_ref, out_ref):
  """ValueHead tail: dense -> clamp(min=0) -> dense -> tanh."""
  h = jnp.dot(x_ref[...], w1_ref[...],
              preferred_element_type=jnp.float32) + b1_ref[...]
  h = jnp.maximum(h, 0.0)
  v = jnp.dot(h, w2_ref[...], preferred_element_type=jnp.float32) + b2_ref[...]
  out_ref[...] = jnp.tanh(v).astype(out_ref.dtype)


# ---------------------------------------------------------------------------
# Wrappers
# ---------------------------------------------------------------------------
def _im2col_3x3_slab(x_nhwc):
  """(N, H, W, C) -> (N*H*W, 9*C) bf16 slab for a stride-1 'same' 3x3 conv.

  Column ordering is tap-major (t = 3*dy + dx), matching the (9*Cin, Cout)
  weight layout produced by init_params.
  """
  n, h, w, c = x_nhwc.shape
  xp = jnp.pad(x_nhwc.astype(jnp.bfloat16), ((0, 0), (1, 1), (1, 1), (0, 0)))
  taps = [xp[:, dy:dy + h, dx:dx + w, :] for dy in range(3) for dx in range(3)]
  return jnp.concatenate(taps, axis=-1).reshape(n * h * w, 9 * c)


def _conv_bn_act(x_slab, w, gamma, beta, *, relu, residual=None,
                 out_dtype=jnp.bfloat16):
  """conv (matmul over an im2col slab) + BN(+residual)(+ReLU) via one pallas_call."""
  p, k = x_slab.shape
  cout = w.shape[1]
  tc = 128 if cout % 128 == 0 else cout            # lane-dense output tiles
  n_tiles = cout // tc

  gamma2 = gamma.reshape(1, cout).astype(jnp.float32)
  beta2 = beta.reshape(1, cout).astype(jnp.float32)

  args = [x_slab, w, gamma2, beta2]
  in_specs = [
      pl.BlockSpec((p, k), lambda j: (0, 0)),      # slab resident across tiles
      pl.BlockSpec((k, tc), lambda j: (0, j)),     # weight tile streams per step
      pl.BlockSpec((1, tc), lambda j: (0, j)),
      pl.BlockSpec((1, tc), lambda j: (0, j)),
  ]
  has_residual = residual is not None
  if has_residual:
    args.append(residual)
    in_specs.append(pl.BlockSpec((p, tc), lambda j: (0, j)))

  out_itemsize = np.dtype(out_dtype).itemsize
  block_bytes = (p * k * x_slab.dtype.itemsize + k * tc * w.dtype.itemsize
                 + 2 * tc * 4 + p * tc * out_itemsize
                 + (p * tc * residual.dtype.itemsize if has_residual else 0))
  vmem_limit = int(min(max(4 * block_bytes + (8 << 20), 32 << 20), 64 << 20))
  flops = 2 * p * k * cout + 8 * p * cout
  bytes_accessed = int(sum(a.size * a.dtype.itemsize for a in args)
                       + p * cout * out_itemsize)

  kernel = functools.partial(_matmul_bn_act_kernel, relu=relu,
                             has_residual=has_residual)
  return pl.pallas_call(
      kernel,
      out_shape=jax.ShapeDtypeStruct((p, cout), out_dtype),
      grid=(n_tiles,),
      in_specs=in_specs,
      out_specs=pl.BlockSpec((p, tc), lambda j: (0, j)),
      compiler_params=pltpu.CompilerParams(
          dimension_semantics=("parallel",),
          vmem_limit_bytes=vmem_limit),
      cost_estimate=pl.CostEstimate(flops=int(flops), transcendentals=int(cout),
                                    bytes_accessed=bytes_accessed),
  )(*args)


def _policy_head_dense(x_flat, w, b):
  n, d = x_flat.shape
  a = w.shape[1]
  return pl.pallas_call(
      _dense_logsoftmax_kernel,
      out_shape=jax.ShapeDtypeStruct((n, a), jnp.float32),
      in_specs=[pl.BlockSpec(memory_space=pltpu.MemorySpace.VMEM)] * 3,
      out_specs=pl.BlockSpec(memory_space=pltpu.MemorySpace.VMEM),
      cost_estimate=pl.CostEstimate(flops=2 * n * d * a,
                                    transcendentals=2 * n * a,
                                    bytes_accessed=4 * (n * d + d * a + a + n * a)),
  )(x_flat, w, b.reshape(1, a))


def _value_head_dense(x_flat, w1, b1, w2, b2):
  n, d = x_flat.shape
  hdim = w1.shape[1]
  o = w2.shape[1]
  return pl.pallas_call(
      _dense_relu_dense_tanh_kernel,
      out_shape=jax.ShapeDtypeStruct((n, o), jnp.float32),
      in_specs=[pl.BlockSpec(memory_space=pltpu.MemorySpace.VMEM)] * 5,
      out_specs=pl.BlockSpec(memory_space=pltpu.MemorySpace.VMEM),
      cost_estimate=pl.CostEstimate(
          flops=2 * n * d * hdim + 2 * n * hdim * o, transcendentals=n * o,
          bytes_accessed=4 * (n * d + d * hdim + hdim + hdim * o + o + n * o)),
  )(x_flat, w1, b1.reshape(1, hdim), w2, b2.reshape(1, o))


# ---------------------------------------------------------------------------
# Model forward
# ---------------------------------------------------------------------------
def policy_value_forward(x_nhwc, params):
  """PolicyValueModel.forward.

  x_nhwc: (N, H, W, Cin) — same layout as the numpy input of the PyTorch
  forward (which permutes NHWC -> NCHW internally).
  Returns (policy_log_probs (N, action_space), value (N, output_dim)).
  """
  n, h, w, _ = x_nhwc.shape
  tower = params["tower"]
  filters = tower["inner"]["w"].shape[1]

  x = x_nhwc.astype(jnp.float32)

  # ---- ResidualTower: InnerConvBlock + depth * OuterConvBlock ------------
  act = _conv_bn_act(_im2col_3x3_slab(x), tower["inner"]["w"],
                     tower["inner"]["gamma"], tower["inner"]["beta"], relu=True)
  act4 = act.reshape(n, h, w, filters)

  for block in tower["blocks"]:
    mid = _conv_bn_act(_im2col_3x3_slab(act4), block["conv1"]["w"],
                       block["conv1"]["gamma"], block["conv1"]["beta"],
                       relu=True)
    act = _conv_bn_act(_im2col_3x3_slab(mid.reshape(n, h, w, filters)),
                       block["conv2"]["w"], block["conv2"]["gamma"],
                       block["conv2"]["beta"], relu=True, residual=act)
    act4 = act.reshape(n, h, w, filters)

  # ---- PolicyHead: 1x1 conv+BN+ReLU -> flatten(NCHW) -> dense -> log_softmax
  ph = params["policy"]
  pconv = _conv_bn_act(act, ph["conv"]["w"], ph["conv"]["gamma"],
                       ph["conv"]["beta"], relu=True, out_dtype=jnp.float32)
  pf = pconv.shape[1]
  pflat = pconv.reshape(n, h, w, pf).transpose(0, 3, 1, 2).reshape(n, pf * h * w)
  policy = _policy_head_dense(pflat, ph["dense_w"], ph["dense_b"])

  # ---- ValueHead: 1x1 conv+BN+ReLU -> flatten -> dense -> relu -> dense -> tanh
  vh = params["value"]
  vconv = _conv_bn_act(act, vh["conv"]["w"], vh["conv"]["gamma"],
                       vh["conv"]["beta"], relu=True, out_dtype=jnp.float32)
  vf = vconv.shape[1]
  vflat = vconv.reshape(n, h, w, vf).transpose(0, 3, 1, 2).reshape(n, vf * h * w)
  value = _value_head_dense(vflat, vh["w1"], vh["b1"], vh["w2"], vh["b2"])

  return policy, value


# ---------------------------------------------------------------------------
# Parameter init (deterministic; BN gamma=1, beta=0 like PyTorch defaults)
# ---------------------------------------------------------------------------
def init_params(key, input_channels, board_h, board_w, *, filters, depth,
                policy_filters, value_filters, value_hidden_dim, action_space,
                output_dim):
  keys = iter(jax.random.split(key, 64))

  def conv3x3(c_in, c_out):
    w = jax.random.normal(next(keys), (9, c_in, c_out), jnp.float32)
    w = w * float(np.sqrt(2.0 / (9 * c_in)))
    return {"w": w.reshape(9 * c_in, c_out).astype(jnp.bfloat16),
            "gamma": jnp.ones((c_out,), jnp.float32),
            "beta": jnp.zeros((c_out,), jnp.float32)}

  def conv1x1(c_in, c_out):
    w = jax.random.normal(next(keys), (c_in, c_out), jnp.float32)
    w = w * float(np.sqrt(2.0 / c_in))
    return {"w": w.astype(jnp.bfloat16),
            "gamma": jnp.ones((c_out,), jnp.float32),
            "beta": jnp.zeros((c_out,), jnp.float32)}

  def dense(d_in, d_out):
    w = jax.random.normal(next(keys), (d_in, d_out), jnp.float32)
    w = w * float(np.sqrt(1.0 / d_in))
    return w, jnp.zeros((d_out,), jnp.float32)

  tower = {"inner": conv3x3(input_channels, filters), "blocks": []}
  for _ in range(depth):
    tower["blocks"].append({"conv1": conv3x3(filters, filters),
                            "conv2": conv3x3(filters, filters)})

  pdw, pdb = dense(policy_filters * board_h * board_w, action_space)
  policy = {"conv": conv1x1(filters, policy_filters),
            "dense_w": pdw, "dense_b": pdb}

  v1w, v1b = dense(value_filters * board_h * board_w, value_hidden_dim)
  v2w, v2b = dense(value_hidden_dim, output_dim)
  value = {"conv": conv1x1(filters, value_filters),
           "w1": v1w, "b1": v1b, "w2": v2w, "b2": v2b}

  return {"tower": tower, "policy": policy, "value": value}


if __name__ == "__main__":
  # Small, module-consistent shapes: 8x8 board, 4 input planes, batch=2,
  # base_filters=256 (module default, keeps the Cout grid non-trivial and
  # lane-dense), shallow depth=2 for a quick demo.
  batch, height, width, in_channels = 2, 8, 8, 4
  base_filters, depth = 256, 2
  policy_filters, value_filters = 2, 1
  value_hidden_dim, output_dim = 64, 1
  action_space = height * width + 1

  key = jax.random.PRNGKey(0)
  pkey, xkey = jax.random.split(key)
  params = init_params(pkey, in_channels, height, width,
                       filters=base_filters, depth=depth,
                       policy_filters=policy_filters,
                       value_filters=value_filters,
                       value_hidden_dim=value_hidden_dim,
                       action_space=action_space, output_dim=output_dim)
  x = jax.random.normal(xkey, (batch, height, width, in_channels), jnp.float32)

  fwd = jax.jit(policy_value_forward)
  policy_logp, value = fwd(x, params)
  jax.block_until_ready((policy_logp, value))

  assert policy_logp.shape == (batch, action_space), policy_logp.shape
  assert value.shape == (batch, output_dim), value.shape
  assert bool(jnp.all(jnp.isfinite(policy_logp)))
  assert bool(jnp.all(jnp.isfinite(value)))
  # log_softmax rows must normalize; tanh output must be bounded.
  assert bool(jnp.all(jnp.abs(jnp.sum(jnp.exp(policy_logp), axis=-1) - 1.0) < 1e-3))
  assert bool(jnp.all(jnp.abs(value) <= 1.0))
  print("KERNEL_OK")
</pallas_src>

<mosaic_0001>
module attributes {stable_mosaic.version = 11 : i64} {
  func.func @_matmul_bn_act_kernel(%arg0: i32, %arg1: memref<128x36xbf16, #tpu.memory_space<vmem>>, %arg2: memref<36x128xbf16, #tpu.memory_space<vmem>>, %arg3: memref<1x128xf32, #tpu.memory_space<vmem>>, %arg4: memref<1x128xf32, #tpu.memory_space<vmem>>, %arg5: memref<128x128xbf16, #tpu.memory_space<vmem>>) attributes {dimension_semantics = [#tpu.dimension_semantics<parallel>], iteration_bounds = array<i64: 2>, scalar_prefetch = 0 : i64, scratch_operands = 0 : i64, tpu.core_type = #tpu.core_type<tc>, window_params = [{pipeline_mode = #tpu.pipeline_mode<synchronous>, transform_indices = @transform_0, window_bounds = array<i64: 128, 36>}, {transform_indices = @transform_1, window_bounds = array<i64: 36, 128>}, {transform_indices = @transform_2, window_bounds = array<i64: 1, 128>}, {transform_indices = @transform_3, window_bounds = array<i64: 1, 128>}, {transform_indices = @transform_4, window_bounds = array<i64: 128, 128>}]} {
    %c0 = arith.constant 0 : index
    %c0_0 = arith.constant 0 : index
    %0 = vector.load %arg1[%c0, %c0_0] : memref<128x36xbf16, #tpu.memory_space<vmem>>, vector<128x36xbf16>
    %c0_1 = arith.constant 0 : index
    %c0_2 = arith.constant 0 : index
    %1 = vector.load %arg2[%c0_1, %c0_2] : memref<36x128xbf16, #tpu.memory_space<vmem>>, vector<36x128xbf16>
    %cst = arith.constant dense<0.000000e+00> : vector<128x128xf32>
    %2 = tpu.matmul %0, %1, %cst {dimension_numbers = #tpu.dot_dimension_numbers<[1], [0], [0], [1], [0, 0, 1, 1], [], []>} : vector<128x36xbf16>, vector<36x128xbf16>, vector<128x128xf32> -> vector<128x128xf32>
    %cst_3 = arith.constant dense<0.000000e+00> : vector<128xf32>
    %3 = vector.multi_reduction <add>, %2, %cst_3 [0] : vector<128x128xf32> to vector<128xf32>
    %4 = vector.shape_cast %3 : vector<128xf32> to vector<1x128xf32>
    %5 = arith.mulf %2, %2 : vector<128x128xf32>
    %cst_4 = arith.constant dense<0.000000e+00> : vector<128xf32>
    %6 = vector.multi_reduction <add>, %5, %cst_4 [0] : vector<128x128xf32> to vector<128xf32>
    %7 = vector.shape_cast %6 : vector<128xf32> to vector<1x128xf32>
    %cst_5 = arith.constant 7.812500e-03 : f32
    %8 = vector.broadcast %cst_5 : f32 to vector<1x128xf32>
    %9 = arith.mulf %4, %8 : vector<1x128xf32>
    %cst_6 = arith.constant 7.812500e-03 : f32
    %10 = vector.broadcast %cst_6 : f32 to vector<1x128xf32>
    %11 = arith.mulf %7, %10 : vector<1x128xf32>
    %12 = arith.mulf %9, %9 : vector<1x128xf32>
    %13 = arith.subf %11, %12 : vector<1x128xf32>
    %cst_7 = arith.constant 0.000000e+00 : f32
    %14 = vector.broadcast %cst_7 : f32 to vector<1x128xf32>
    %15 = arith.maximumf %13, %14 : vector<1x128xf32>
    %c0_8 = arith.constant 0 : index
    %c0_9 = arith.constant 0 : index
    %16 = vector.load %arg3[%c0_8, %c0_9] : memref<1x128xf32, #tpu.memory_space<vmem>>, vector<1x128xf32>
    %cst_10 = arith.constant 9.99999974E-6 : f32
    %17 = vector.broadcast %cst_10 : f32 to vector<1x128xf32>
    %18 = arith.addf %15, %17 : vector<1x128xf32>
    %19 = math.rsqrt %18 : vector<1x128xf32>
    %20 = arith.mulf %16, %19 : vector<1x128xf32>
    %c0_11 = arith.constant 0 : index
    %c0_12 = arith.constant 0 : index
    %21 = vector.load %arg4[%c0_11, %c0_12] : memref<1x128xf32, #tpu.memory_space<vmem>>, vector<1x128xf32>
    %22 = arith.mulf %9, %20 : vector<1x128xf32>
    %23 = arith.subf %21, %22 : vector<1x128xf32>
    %24 = vector.broadcast %20 : vector<1x128xf32> to vector<128x128xf32>
    %25 = arith.mulf %2, %24 : vector<128x128xf32>
    %26 = vector.broadcast %23 : vector<1x128xf32> to vector<128x128xf32>
    %27 = arith.addf %25, %26 : vector<128x128xf32>
    %cst_13 = arith.constant 0.000000e+00 : f32
    %28 = vector.broadcast %cst_13 : f32 to vector<128x128xf32>
    %29 = arith.maximumf %27, %28 : vector<128x128xf32>
    %30 = arith.truncf %29 : vector<128x128xf32> to vector<128x128xbf16>
    %c0_14 = arith.constant 0 : index
    %c0_15 = arith.constant 0 : index
    %31 = vector.load %arg5[%c0_14, %c0_15] : memref<128x128xbf16, #tpu.memory_space<vmem>>, vector<128x128xbf16>
    tpu.vector_store %arg5[%c0_14, %c0_15], %30 {strides = array<i32>} : memref<128x128xbf16, #tpu.memory_space<vmem>>, vector<128x128xbf16>,
    return
  }
  func.func @transform_0(%arg0: i32) -> (i32, i32) {
    %c0_i32 = arith.constant 0 : i32
    %c0_i32_0 = arith.constant 0 : i32
    %c0_i32_1 = arith.constant 0 : i32
    return %c0_i32, %c0_i32_0 : i32, i32
  }
  func.func @transform_1(%arg0: i32) -> (i32, i32) {
    %c0_i32 = arith.constant 0 : i32
    %c0_i32_0 = arith.constant 0 : i32
    return %c0_i32, %arg0 : i32, i32
  }
  func.func @transform_2(%arg0: i32) -> (i32, i32) {
    %c0_i32 = arith.constant 0 : i32
    %c0_i32_0 = arith.constant 0 : i32
    return %c0_i32, %arg0 : i32, i32
  }
  func.func @transform_3(%arg0: i32) -> (i32, i32) {
    %c0_i32 = arith.constant 0 : i32
    %c0_i32_0 = arith.constant 0 : i32
    return %c0_i32, %arg0 : i32, i32
  }
  func.func @transform_4(%arg0: i32) -> (i32, i32) {
    %c0_i32 = arith.constant 0 : i32
    %c0_i32_0 = arith.constant 0 : i32
    return %c0_i32, %arg0 : i32, i32
  }
}

module attributes {stable_mosaic.version = 11 : i64} {
  func.func @_matmul_bn_act_kernel(%arg0: i32, %arg1: memref<128x2304xbf16, #tpu.memory_space<vmem>>, %arg2: memref<2304x128xbf16, #tpu.memory_space<vmem>>, %arg3: memref<1x128xf32, #tpu.memory_space<vmem>>, %arg4: memref<1x128xf32, #tpu.memory_space<vmem>>, %arg5: memref<128x128xbf16, #tpu.memory_space<vmem>>) attributes {dimension_semantics = [#tpu.dimension_semantics<parallel>], iteration_bounds = array<i64: 2>, scalar_prefetch = 0 : i64, scratch_operands = 0 : i64, tpu.core_type = #tpu.core_type<tc>, window_params = [{pipeline_mode = #tpu.pipeline_mode<synchronous>, transform_indices = @transform_0, window_bounds = array<i64: 128, 2304>}, {transform_indices = @transform_1, window_bounds = array<i64: 2304, 128>}, {transform_indices = @transform_2, window_bounds = array<i64: 1, 128>}, {transform_indices = @transform_3, window_bounds = array<i64: 1, 128>}, {transform_indices = @transform_4, window_bounds = array<i64: 128, 128>}]} {
    %c0 = arith.constant 0 : index
    %c0_0 = arith.constant 0 : index
    %0 = vector.load %arg1[%c0, %c0_0] : memref<128x2304xbf16, #tpu.memory_space<vmem>>, vector<128x2304xbf16>
    %c0_1 = arith.constant 0 : index
    %c0_2 = arith.constant 0 : index
    %1 = vector.load %arg2[%c0_1, %c0_2] : memref<2304x128xbf16, #tpu.memory_space<vmem>>, vector<2304x128xbf16>
    %cst = arith.constant dense<0.000000e+00> : vector<128x128xf32>
    %2 = tpu.matmul %0, %1, %cst {dimension_numbers = #tpu.dot_dimension_numbers<[1], [0], [0], [1], [0, 0, 1, 1], [], []>} : vector<128x2304xbf16>, vector<2304x128xbf16>, vector<128x128xf32> -> vector<128x128xf32>
    %cst_3 = arith.constant dense<0.000000e+00> : vector<128xf32>
    %3 = vector.multi_reduction <add>, %2, %cst_3 [0] : vector<128x128xf32> to vector<128xf32>
    %4 = vector.shape_cast %3 : vector<128xf32> to vector<1x128xf32>
    %5 = arith.mulf %2, %2 : vector<128x128xf32>
    %cst_4 = arith.constant dense<0.000000e+00> : vector<128xf32>
    %6 = vector.multi_reduction <add>, %5, %cst_4 [0] : vector<128x128xf32> to vector<128xf32>
    %7 = vector.shape_cast %6 : vector<128xf32> to vector<1x128xf32>
    %cst_5 = arith.constant 7.812500e-03 : f32
    %8 = vector.broadcast %cst_5 : f32 to vector<1x128xf32>
    %9 = arith.mulf %4, %8 : vector<1x128xf32>
    %cst_6 = arith.constant 7.812500e-03 : f32
    %10 = vector.broadcast %cst_6 : f32 to vector<1x128xf32>
    %11 = arith.mulf %7, %10 : vector<1x128xf32>
    %12 = arith.mulf %9, %9 : vector<1x128xf32>
    %13 = arith.subf %11, %12 : vector<1x128xf32>
    %cst_7 = arith.constant 0.000000e+00 : f32
    %14 = vector.broadcast %cst_7 : f32 to vector<1x128xf32>
    %15 = arith.maximumf %13, %14 : vector<1x128xf32>
    %c0_8 = arith.constant 0 : index
    %c0_9 = arith.constant 0 : index
    %16 = vector.load %arg3[%c0_8, %c0_9] : memref<1x128xf32, #tpu.memory_space<vmem>>, vector<1x128xf32>
    %cst_10 = arith.constant 9.99999974E-6 : f32
    %17 = vector.broadcast %cst_10 : f32 to vector<1x128xf32>
    %18 = arith.addf %15, %17 : vector<1x128xf32>
    %19 = math.rsqrt %18 : vector<1x128xf32>
    %20 = arith.mulf %16, %19 : vector<1x128xf32>
    %c0_11 = arith.constant 0 : index
    %c0_12 = arith.constant 0 : index
    %21 = vector.load %arg4[%c0_11, %c0_12] : memref<1x128xf32, #tpu.memory_space<vmem>>, vector<1x128xf32>
    %22 = arith.mulf %9, %20 : vector<1x128xf32>
    %23 = arith.subf %21, %22 : vector<1x128xf32>
    %24 = vector.broadcast %20 : vector<1x128xf32> to vector<128x128xf32>
    %25 = arith.mulf %2, %24 : vector<128x128xf32>
    %26 = vector.broadcast %23 : vector<1x128xf32> to vector<128x128xf32>
    %27 = arith.addf %25, %26 : vector<128x128xf32>
    %cst_13 = arith.constant 0.000000e+00 : f32
    %28 = vector.broadcast %cst_13 : f32 to vector<128x128xf32>
    %29 = arith.maximumf %27, %28 : vector<128x128xf32>
    %30 = arith.truncf %29 : vector<128x128xf32> to vector<128x128xbf16>
    %c0_14 = arith.constant 0 : index
    %c0_15 = arith.constant 0 : index
    %31 = vector.load %arg5[%c0_14, %c0_15] : memref<128x128xbf16, #tpu.memory_space<vmem>>, vector<128x128xbf16>
    tpu.vector_store %arg5[%c0_14, %c0_15], %30 {strides = array<i32>} : memref<128x128xbf16, #tpu.memory_space<vmem>>, vector<128x128xbf16>,
    return
  }
  func.func @transform_0(%arg0: i32) -> (i32, i32) {
    %c0_i32 = arith.constant 0 : i32
    %c0_i32_0 = arith.constant 0 : i32
    %c0_i32_1 = arith.constant 0 : i32
    return %c0_i32, %c0_i32_0 : i32, i32
  }
  func.func @transform_1(%arg0: i32) -> (i32, i32) {
    %c0_i32 = arith.constant 0 : i32
    %c0_i32_0 = arith.constant 0 : i32
    return %c0_i32, %arg0 : i32, i32
  }
  func.func @transform_2(%arg0: i32) -> (i32, i32) {
    %c0_i32 = arith.constant 0 : i32
    %c0_i32_0 = arith.constant 0 : i32
    return %c0_i32, %arg0 : i32, i32
  }
  func.func @transform_3(%arg0: i32) -> (i32, i32) {
    %c0_i32 = arith.constant 0 : i32
    %c0_i32_0 = arith.constant 0 : i32
    return %c0_i32, %arg0 : i32, i32
  }
  func.func @transform_4(%arg0: i32) -> (i32, i32) {
    %c0_i32 = arith.constant 0 : i32
    %c0_i32_0 = arith.constant 0 : i32
    return %c0_i32, %arg0 : i32, i32
  }
}

module attributes {stable_mosaic.version = 11 : i64} {
  func.func @_matmul_bn_act_kernel(%arg0: i32, %arg1: memref<128x2304xbf16, #tpu.memory_space<vmem>>, %arg2: memref<2304x128xbf16, #tpu.memory_space<vmem>>, %arg3: memref<1x128xf32, #tpu.memory_space<vmem>>, %arg4: memref<1x128xf32, #tpu.memory_space<vmem>>, %arg5: memref<128x128xbf16, #tpu.memory_space<vmem>>, %arg6: memref<128x128xbf16, #tpu.memory_space<vmem>>) attributes {dimension_semantics = [#tpu.dimension_semantics<parallel>], iteration_bounds = array<i64: 2>, scalar_prefetch = 0 : i64, scratch_operands = 0 : i64, tpu.core_type = #tpu.core_type<tc>, window_params = [{pipeline_mode = #tpu.pipeline_mode<synchronous>, transform_indices = @transform_0, window_bounds = array<i64: 128, 2304>}, {transform_indices = @transform_1, window_bounds = array<i64: 2304, 128>}, {transform_indices = @transform_2, window_bounds = array<i64: 1, 128>}, {transform_indices = @transform_3, window_bounds = array<i64: 1, 128>}, {transform_indices = @transform_4, window_bounds = array<i64: 128, 128>}, {transform_indices = @transform_5, window_bounds = array<i64: 128, 128>}]} {
    %c0 = arith.constant 0 : index
    %c0_0 = arith.constant 0 : index
    %0 = vector.load %arg1[%c0, %c0_0] : memref<128x2304xbf16, #tpu.memory_space<vmem>>, vector<128x2304xbf16>
    %c0_1 = arith.constant 0 : index
    %c0_2 = arith.constant 0 : index
    %1 = vector.load %arg2[%c0_1, %c0_2] : memref<2304x128xbf16, #tpu.memory_space<vmem>>, vector<2304x128xbf16>
    %cst = arith.constant dense<0.000000e+00> : vector<128x128xf32>
    %2 = tpu.matmul %0, %1, %cst {dimension_numbers = #tpu.dot_dimension_numbers<[1], [0], [0], [1], [0, 0, 1, 1], [], []>} : vector<128x2304xbf16>, vector<2304x128xbf16>, vector<128x128xf32> -> vector<128x128xf32>
    %cst_3 = arith.constant dense<0.000000e+00> : vector<128xf32>
    %3 = vector.multi_reduction <add>, %2, %cst_3 [0] : vector<128x128xf32> to vector<128xf32>
    %4 = vector.shape_cast %3 : vector<128xf32> to vector<1x128xf32>
    %5 = arith.mulf %2, %2 : vector<128x128xf32>
    %cst_4 = arith.constant dense<0.000000e+00> : vector<128xf32>
    %6 = vector.multi_reduction <add>, %5, %cst_4 [0] : vector<128x128xf32> to vector<128xf32>
    %7 = vector.shape_cast %6 : vector<128xf32> to vector<1x128xf32>
    %cst_5 = arith.constant 7.812500e-03 : f32
    %8 = vector.broadcast %cst_5 : f32 to vector<1x128xf32>
    %9 = arith.mulf %4, %8 : vector<1x128xf32>
    %cst_6 = arith.constant 7.812500e-03 : f32
    %10 = vector.broadcast %cst_6 : f32 to vector<1x128xf32>
    %11 = arith.mulf %7, %10 : vector<1x128xf32>
    %12 = arith.mulf %9, %9 : vector<1x128xf32>
    %13 = arith.subf %11, %12 : vector<1x128xf32>
    %cst_7 = arith.constant 0.000000e+00 : f32
    %14 = vector.broadcast %cst_7 : f32 to vector<1x128xf32>
    %15 = arith.maximumf %13, %14 : vector<1x128xf32>
    %c0_8 = arith.constant 0 : index
    %c0_9 = arith.constant 0 : index
    %16 = vector.load %arg3[%c0_8, %c0_9] : memref<1x128xf32, #tpu.memory_space<vmem>>, vector<1x128xf32>
    %cst_10 = arith.constant 9.99999974E-6 : f32
    %17 = vector.broadcast %cst_10 : f32 to vector<1x128xf32>
    %18 = arith.addf %15, %17 : vector<1x128xf32>
    %19 = math.rsqrt %18 : vector<1x128xf32>
    %20 = arith.mulf %16, %19 : vector<1x128xf32>
    %c0_11 = arith.constant 0 : index
    %c0_12 = arith.constant 0 : index
    %21 = vector.load %arg4[%c0_11, %c0_12] : memref<1x128xf32, #tpu.memory_space<vmem>>, vector<1x128xf32>
    %22 = arith.mulf %9, %20 : vector<1x128xf32>
    %23 = arith.subf %21, %22 : vector<1x128xf32>
    %24 = vector.broadcast %20 : vector<1x128xf32> to vector<128x128xf32>
    %25 = arith.mulf %2, %24 : vector<128x128xf32>
    %26 = vector.broadcast %23 : vector<1x128xf32> to vector<128x128xf32>
    %27 = arith.addf %25, %26 : vector<128x128xf32>
    %c0_13 = arith.constant 0 : index
    %c0_14 = arith.constant 0 : index
    %28 = vector.load %arg5[%c0_13, %c0_14] : memref<128x128xbf16, #tpu.memory_space<vmem>>, vector<128x128xbf16>
    %29 = arith.extf %28 : vector<128x128xbf16> to vector<128x128xf32>
    %30 = arith.addf %27, %29 : vector<128x128xf32>
    %cst_15 = arith.constant 0.000000e+00 : f32
    %31 = vector.broadcast %cst_15 : f32 to vector<128x128xf32>
    %32 = arith.maximumf %30, %31 : vector<128x128xf32>
    %33 = arith.truncf %32 : vector<128x128xf32> to vector<128x128xbf16>
    %c0_16 = arith.constant 0 : index
    %c0_17 = arith.constant 0 : index
    %34 = vector.load %arg6[%c0_16, %c0_17] : memref<128x128xbf16, #tpu.memory_space<vmem>>, vector<128x128xbf16>
    tpu.vector_store %arg6[%c0_16, %c0_17], %33 {strides = array<i32>} : memref<128x128xbf16, #tpu.memory_space<vmem>>, vector<128x128xbf16>,
    return
  }
  func.func @transform_0(%arg0: i32) -> (i32, i32) {
    %c0_i32 = arith.constant 0 : i32
    %c0_i32_0 = arith.constant 0 : i32
    %c0_i32_1 = arith.constant 0 : i32
    return %c0_i32, %c0_i32_0 : i32, i32
  }
  func.func @transform_1(%arg0: i32) -> (i32, i32) {
    %c0_i32 = arith.constant 0 : i32
    %c0_i32_0 = arith.constant 0 : i32
    return %c0_i32, %arg0 : i32, i32
  }
  func.func @transform_2(%arg0: i32) -> (i32, i32) {
    %c0_i32 = arith.constant 0 : i32
    %c0_i32_0 = arith.constant 0 : i32
    return %c0_i32, %arg0 : i32, i32
  }
  func.func @transform_3(%arg0: i32) -> (i32, i32) {
    %c0_i32 = arith.constant 0 : i32
    %c0_i32_0 = arith.constant 0 : i32
    return %c0_i32, %arg0 : i32, i32
  }
  func.func @transform_4(%arg0: i32) -> (i32, i32) {
    %c0_i32 = arith.constant 0 : i32
    %c0_i32_0 = arith.constant 0 : i32
    return %c0_i32, %arg0 : i32, i32
  }
  func.func @transform_5(%arg0: i32) -> (i32, i32) {
    %c0_i32 = arith.constant 0 : i32
    %c0_i32_0 = arith.constant 0 : i32
    return %c0_i32, %arg0 : i32, i32
  }
}

module attributes {stable_mosaic.version = 11 : i64} {
  func.func @_matmul_bn_act_kernel(%arg0: i32, %arg1: memref<128x256xbf16, #tpu.memory_space<vmem>>, %arg2: memref<256x2xbf16, #tpu.memory_space<vmem>>, %arg3: memref<1x2xf32, #tpu.memory_space<vmem>>, %arg4: memref<1x2xf32, #tpu.memory_space<vmem>>, %arg5: memref<128x2xf32, #tpu.memory_space<vmem>>) attributes {dimension_semantics = [#tpu.dimension_semantics<parallel>], iteration_bounds = array<i64: 1>, scalar_prefetch = 0 : i64, scratch_operands = 0 : i64, tpu.core_type = #tpu.core_type<tc>, window_params = [{pipeline_mode = #tpu.pipeline_mode<synchronous>, transform_indices = @transform_0, window_bounds = array<i64: 128, 256>}, {transform_indices = @transform_1, window_bounds = array<i64: 256, 2>}, {transform_indices = @transform_2, window_bounds = array<i64: 1, 2>}, {transform_indices = @transform_3, window_bounds = array<i64: 1, 2>}, {transform_indices = @transform_4, window_bounds = array<i64: 128, 2>}]} {
    %c0 = arith.constant 0 : index
    %c0_0 = arith.constant 0 : index
    %0 = vector.load %arg1[%c0, %c0_0] : memref<128x256xbf16, #tpu.memory_space<vmem>>, vector<128x256xbf16>
    %c0_1 = arith.constant 0 : index
    %c0_2 = arith.constant 0 : index
    %1 = vector.load %arg2[%c0_1, %c0_2] : memref<256x2xbf16, #tpu.memory_space<vmem>>, vector<256x2xbf16>
    %cst = arith.constant dense<0.000000e+00> : vector<128x2xf32>
    %2 = tpu.matmul %0, %1, %cst {dimension_numbers = #tpu.dot_dimension_numbers<[1], [0], [0], [1], [0, 0, 1, 1], [], []>} : vector<128x256xbf16>, vector<256x2xbf16>, vector<128x2xf32> -> vector<128x2xf32>
    %cst_3 = arith.constant dense<0.000000e+00> : vector<2xf32>
    %3 = vector.multi_reduction <add>, %2, %cst_3 [0] : vector<128x2xf32> to vector<2xf32>
    %4 = vector.shape_cast %3 : vector<2xf32> to vector<1x2xf32>
    %5 = arith.mulf %2, %2 : vector<128x2xf32>
    %cst_4 = arith.constant dense<0.000000e+00> : vector<2xf32>
    %6 = vector.multi_reduction <add>, %5, %cst_4 [0] : vector<128x2xf32> to vector<2xf32>
    %7 = vector.shape_cast %6 : vector<2xf32> to vector<1x2xf32>
    %cst_5 = arith.constant 7.812500e-03 : f32
    %8 = vector.broadcast %cst_5 : f32 to vector<1x2xf32>
    %9 = arith.mulf %4, %8 : vector<1x2xf32>
    %cst_6 = arith.constant 7.812500e-03 : f32
    %10 = vector.broadcast %cst_6 : f32 to vector<1x2xf32>
    %11 = arith.mulf %7, %10 : vector<1x2xf32>
    %12 = arith.mulf %9, %9 : vector<1x2xf32>
    %13 = arith.subf %11, %12 : vector<1x2xf32>
    %cst_7 = arith.constant 0.000000e+00 : f32
    %14 = vector.broadcast %cst_7 : f32 to vector<1x2xf32>
    %15 = arith.maximumf %13, %14 : vector<1x2xf32>
    %c0_8 = arith.constant 0 : index
    %c0_9 = arith.constant 0 : index
    %16 = vector.load %arg3[%c0_8, %c0_9] : memref<1x2xf32, #tpu.memory_space<vmem>>, vector<1x2xf32>
    %cst_10 = arith.constant 9.99999974E-6 : f32
    %17 = vector.broadcast %cst_10 : f32 to vector<1x2xf32>
    %18 = arith.addf %15, %17 : vector<1x2xf32>
    %19 = math.rsqrt %18 : vector<1x2xf32>
    %20 = arith.mulf %16, %19 : vector<1x2xf32>
    %c0_11 = arith.constant 0 : index
    %c0_12 = arith.constant 0 : index
    %21 = vector.load %arg4[%c0_11, %c0_12] : memref<1x2xf32, #tpu.memory_space<vmem>>, vector<1x2xf32>
    %22 = arith.mulf %9, %20 : vector<1x2xf32>
    %23 = arith.subf %21, %22 : vector<1x2xf32>
    %24 = vector.broadcast %20 : vector<1x2xf32> to vector<128x2xf32>
    %25 = arith.mulf %2, %24 : vector<128x2xf32>
    %26 = vector.broadcast %23 : vector<1x2xf32> to vector<128x2xf32>
    %27 = arith.addf %25, %26 : vector<128x2xf32>
    %cst_13 = arith.constant 0.000000e+00 : f32
    %28 = vector.broadcast %cst_13 : f32 to vector<128x2xf32>
    %29 = arith.maximumf %27, %28 : vector<128x2xf32>
    %c0_14 = arith.constant 0 : index
    %c0_15 = arith.constant 0 : index
    %30 = vector.load %arg5[%c0_14, %c0_15] : memref<128x2xf32, #tpu.memory_space<vmem>>, vector<128x2xf32>
    tpu.vector_store %arg5[%c0_14, %c0_15], %29 {strides = array<i32>} : memref<128x2xf32, #tpu.memory_space<vmem>>, vector<128x2xf32>,
    return
  }
  func.func @transform_0(%arg0: i32) -> (i32, i32) {
    %c0_i32 = arith.constant 0 : i32
    %c0_i32_0 = arith.constant 0 : i32
    %c0_i32_1 = arith.constant 0 : i32
    return %c0_i32, %c0_i32_0 : i32, i32
  }
  func.func @transform_1(%arg0: i32) -> (i32, i32) {
    %c0_i32 = arith.constant 0 : i32
    %c0_i32_0 = arith.constant 0 : i32
    return %c0_i32, %arg0 : i32, i32
  }
  func.func @transform_2(%arg0: i32) -> (i32, i32) {
    %c0_i32 = arith.constant 0 : i32
    %c0_i32_0 = arith.constant 0 : i32
    return %c0_i32, %arg0 : i32, i32
  }
  func.func @transform_3(%arg0: i32) -> (i32, i32) {
    %c0_i32 = arith.constant 0 : i32
    %c0_i32_0 = arith.constant 0 : i32
    return %c0_i32, %arg0 : i32, i32
  }
  func.func @transform_4(%arg0: i32) -> (i32, i32) {
    %c0_i32 = arith.constant 0 : i32
    %c0_i32_0 = arith.constant 0 : i32
    return %c0_i32, %arg0 : i32, i32
  }
}

module attributes {stable_mosaic.version = 11 : i64} {
  func.func @_dense_logsoftmax_kernel(%arg0: memref<2x128xf32, #tpu.memory_space<vmem>>, %arg1: memref<128x65xf32, #tpu.memory_space<vmem>>, %arg2: memref<1x65xf32, #tpu.memory_space<vmem>>, %arg3: memref<2x65xf32, #tpu.memory_space<vmem>>) attributes {dimension_semantics = [], scalar_prefetch = 0 : i64, scratch_operands = 0 : i64, tpu.core_type = #tpu.core_type<tc>} {
    %c0 = arith.constant 0 : index
    %c0_0 = arith.constant 0 : index
    %0 = vector.load %arg0[%c0, %c0_0] : memref<2x128xf32, #tpu.memory_space<vmem>>, vector<2x128xf32>
    %c0_1 = arith.constant 0 : index
    %c0_2 = arith.constant 0 : index
    %1 = vector.load %arg1[%c0_1, %c0_2] : memref<128x65xf32, #tpu.memory_space<vmem>>, vector<128x65xf32>
    %cst = arith.constant dense<0.000000e+00> : vector<2x65xf32>
    %2 = tpu.matmul %0, %1, %cst {dimension_numbers = #tpu.dot_dimension_numbers<[1], [0], [0], [1], [0, 0, 1, 1], [], []>} : vector<2x128xf32>, vector<128x65xf32>, vector<2x65xf32> -> vector<2x65xf32>
    %c0_3 = arith.constant 0 : index
    %c0_4 = arith.constant 0 : index
    %3 = vector.load %arg2[%c0_3, %c0_4] : memref<1x65xf32, #tpu.memory_space<vmem>>, vector<1x65xf32>
    %4 = vector.broadcast %3 : vector<1x65xf32> to vector<2x65xf32>
    %5 = arith.addf %2, %4 : vector<2x65xf32>
    %cst_5 = arith.constant dense<0xFF800000> : vector<2xf32>
    %6 = vector.multi_reduction <maximumf>, %5, %cst_5 [1] : vector<2x65xf32> to vector<2xf32>
    %7 = vector.shape_cast %6 : vector<2xf32> to vector<2x1xf32>
    %8 = vector.broadcast %7 : vector<2x1xf32> to vector<2x65xf32>
    %9 = arith.subf %5, %8 : vector<2x65xf32>
    %10 = math.exp %9 : vector<2x65xf32>
    %cst_6 = arith.constant dense<0.000000e+00> : vector<2xf32>
    %11 = vector.multi_reduction <add>, %10, %cst_6 [1] : vector<2x65xf32> to vector<2xf32>
    %12 = vector.shape_cast %11 : vector<2xf32> to vector<2x1xf32>
    %13 = math.log %12 : vector<2x1xf32>
    %14 = vector.broadcast %13 : vector<2x1xf32> to vector<2x65xf32>
    %15 = arith.subf %9, %14 : vector<2x65xf32>
    %c0_7 = arith.constant 0 : index
    %c0_8 = arith.constant 0 : index
    %16 = vector.load %arg3[%c0_7, %c0_8] : memref<2x65xf32, #tpu.memory_space<vmem>>, vector<2x65xf32>
    tpu.vector_store %arg3[%c0_7, %c0_8], %15 {strides = array<i32>} : memref<2x65xf32, #tpu.memory_space<vmem>>, vector<2x65xf32>,
    return
  }
}

module attributes {stable_mosaic.version = 11 : i64} {
  func.func @_matmul_bn_act_kernel(%arg0: i32, %arg1: memref<128x256xbf16, #tpu.memory_space<vmem>>, %arg2: memref<256x1xbf16, #tpu.memory_space<vmem>>, %arg3: memref<1x1xf32, #tpu.memory_space<vmem>>, %arg4: memref<1x1xf32, #tpu.memory_space<vmem>>, %arg5: memref<128x1xf32, #tpu.memory_space<vmem>>) attributes {dimension_semantics = [#tpu.dimension_semantics<parallel>], iteration_bounds = array<i64: 1>, scalar_prefetch = 0 : i64, scratch_operands = 0 : i64, tpu.core_type = #tpu.core_type<tc>, window_params = [{pipeline_mode = #tpu.pipeline_mode<synchronous>, transform_indices = @transform_0, window_bounds = array<i64: 128, 256>}, {transform_indices = @transform_1, window_bounds = array<i64: 256, 1>}, {transform_indices = @transform_2, window_bounds = array<i64: 1, 1>}, {transform_indices = @transform_3, window_bounds = array<i64: 1, 1>}, {transform_indices = @transform_4, window_bounds = array<i64: 128, 1>}]} {
    %c0 = arith.constant 0 : index
    %c0_0 = arith.constant 0 : index
    %0 = vector.load %arg1[%c0, %c0_0] : memref<128x256xbf16, #tpu.memory_space<vmem>>, vector<128x256xbf16>
    %c0_1 = arith.constant 0 : index
    %c0_2 = arith.constant 0 : index
    %1 = vector.load %arg2[%c0_1, %c0_2] : memref<256x1xbf16, #tpu.memory_space<vmem>>, vector<256x1xbf16>
    %cst = arith.constant dense<0.000000e+00> : vector<128x1xf32>
    %2 = tpu.matmul %0, %1, %cst {dimension_numbers = #tpu.dot_dimension_numbers<[1], [0], [0], [1], [0, 0, 1, 1], [], []>} : vector<128x256xbf16>, vector<256x1xbf16>, vector<128x1xf32> -> vector<128x1xf32>
    %cst_3 = arith.constant dense<0.000000e+00> : vector<1xf32>
    %3 = vector.multi_reduction <add>, %2, %cst_3 [0] : vector<128x1xf32> to vector<1xf32>
    %4 = vector.shape_cast %3 : vector<1xf32> to vector<1x1xf32>
    %5 = arith.mulf %2, %2 : vector<128x1xf32>
    %cst_4 = arith.constant dense<0.000000e+00> : vector<1xf32>
    %6 = vector.multi_reduction <add>, %5, %cst_4 [0] : vector<128x1xf32> to vector<1xf32>
    %7 = vector.shape_cast %6 : vector<1xf32> to vector<1x1xf32>
    %cst_5 = arith.constant 7.812500e-03 : f32
    %8 = vector.broadcast %cst_5 : f32 to vector<1x1xf32>
    %9 = arith.mulf %4, %8 : vector<1x1xf32>
    %cst_6 = arith.constant 7.812500e-03 : f32
    %10 = vector.broadcast %cst_6 : f32 to vector<1x1xf32>
    %11 = arith.mulf %7, %10 : vector<1x1xf32>
    %12 = arith.mulf %9, %9 : vector<1x1xf32>
    %13 = arith.subf %11, %12 : vector<1x1xf32>
    %cst_7 = arith.constant 0.000000e+00 : f32
    %14 = vector.broadcast %cst_7 : f32 to vector<1x1xf32>
    %15 = arith.maximumf %13, %14 : vector<1x1xf32>
    %c0_8 = arith.constant 0 : index
    %c0_9 = arith.constant 0 : index
    %16 = vector.load %arg3[%c0_8, %c0_9] : memref<1x1xf32, #tpu.memory_space<vmem>>, vector<1x1xf32>
    %cst_10 = arith.constant 9.99999974E-6 : f32
    %17 = vector.broadcast %cst_10 : f32 to vector<1x1xf32>
    %18 = arith.addf %15, %17 : vector<1x1xf32>
    %19 = math.rsqrt %18 : vector<1x1xf32>
    %20 = arith.mulf %16, %19 : vector<1x1xf32>
    %c0_11 = arith.constant 0 : index
    %c0_12 = arith.constant 0 : index
    %21 = vector.load %arg4[%c0_11, %c0_12] : memref<1x1xf32, #tpu.memory_space<vmem>>, vector<1x1xf32>
    %22 = arith.mulf %9, %20 : vector<1x1xf32>
    %23 = arith.subf %21, %22 : vector<1x1xf32>
    %24 = vector.broadcast %20 : vector<1x1xf32> to vector<128x1xf32>
    %25 = arith.mulf %2, %24 : vector<128x1xf32>
    %26 = vector.broadcast %23 : vector<1x1xf32> to vector<128x1xf32>
    %27 = arith.addf %25, %26 : vector<128x1xf32>
    %cst_13 = arith.constant 0.000000e+00 : f32
    %28 = vector.broadcast %cst_13 : f32 to vector<128x1xf32>
    %29 = arith.maximumf %27, %28 : vector<128x1xf32>
    %c0_14 = arith.constant 0 : index
    %c0_15 = arith.constant 0 : index
    %30 = vector.load %arg5[%c0_14, %c0_15] : memref<128x1xf32, #tpu.memory_space<vmem>>, vector<128x1xf32>
    tpu.vector_store %arg5[%c0_14, %c0_15], %29 {strides = array<i32>} : memref<128x1xf32, #tpu.memory_space<vmem>>, vector<128x1xf32>,
    return
  }
  func.func @transform_0(%arg0: i32) -> (i32, i32) {
    %c0_i32 = arith.constant 0 : i32
    %c0_i32_0 = arith.constant 0 : i32
    %c0_i32_1 = arith.constant 0 : i32
    return %c0_i32, %c0_i32_0 : i32, i32
  }
  func.func @transform_1(%arg0: i32) -> (i32, i32) {
    %c0_i32 = arith.constant 0 : i32
    %c0_i32_0 = arith.constant 0 : i32
    return %c0_i32, %arg0 : i32, i32
  }
  func.func @transform_2(%arg0: i32) -> (i32, i32) {
    %c0_i32 = arith.constant 0 : i32
    %c0_i32_0 = arith.constant 0 : i32
    return %c0_i32, %arg0 : i32, i32
  }
  func.func @transform_3(%arg0: i32) -> (i32, i32) {
    %c0_i32 = arith.constant 0 : i32
    %c0_i32_0 = arith.constant 0 : i32
    return %c0_i32, %arg0 : i32, i32
  }
  func.func @transform_4(%arg0: i32) -> (i32, i32) {
    %c0_i32 = arith.constant 0 : i32
    %c0_i32_0 = arith.constant 0 : i32
    return %c0_i32, %arg0 : i32, i32
  }
}

module attributes {stable_mosaic.version = 11 : i64} {
  func.func @_dense_relu_dense_tanh_kernel(%arg0: memref<2x64xf32, #tpu.memory_space<vmem>>, %arg1: memref<64x64xf32, #tpu.memory_space<vmem>>, %arg2: memref<1x64xf32, #tpu.memory_space<vmem>>, %arg3: memref<64x1xf32, #tpu.memory_space<vmem>>, %arg4: memref<1x1xf32, #tpu.memory_space<vmem>>, %arg5: memref<2x1xf32, #tpu.memory_space<vmem>>) attributes {dimension_semantics = [], scalar_prefetch = 0 : i64, scratch_operands = 0 : i64, tpu.core_type = #tpu.core_type<tc>} {
    %c0 = arith.constant 0 : index
    %c0_0 = arith.constant 0 : index
    %0 = vector.load %arg0[%c0, %c0_0] : memref<2x64xf32, #tpu.memory_space<vmem>>, vector<2x64xf32>
    %c0_1 = arith.constant 0 : index
    %c0_2 = arith.constant 0 : index
    %1 = vector.load %arg1[%c0_1, %c0_2] : memref<64x64xf32, #tpu.memory_space<vmem>>, vector<64x64xf32>
    %cst = arith.constant dense<0.000000e+00> : vector<2x64xf32>
    %2 = tpu.matmul %0, %1, %cst {dimension_numbers = #tpu.dot_dimension_numbers<[1], [0], [0], [1], [0, 0, 1, 1], [], []>} : vector<2x64xf32>, vector<64x64xf32>, vector<2x64xf32> -> vector<2x64xf32>
    %c0_3 = arith.constant 0 : index
    %c0_4 = arith.constant 0 : index
    %3 = vector.load %arg2[%c0_3, %c0_4] : memref<1x64xf32, #tpu.memory_space<vmem>>, vector<1x64xf32>
    %4 = vector.broadcast %3 : vector<1x64xf32> to vector<2x64xf32>
    %5 = arith.addf %2, %4 : vector<2x64xf32>
    %cst_5 = arith.constant 0.000000e+00 : f32
    %6 = vector.broadcast %cst_5 : f32 to vector<2x64xf32>
    %7 = arith.maximumf %5, %6 : vector<2x64xf32>
    %c0_6 = arith.constant 0 : index
    %c0_7 = arith.constant 0 : index
    %8 = vector.load %arg3[%c0_6, %c0_7] : memref<64x1xf32, #tpu.memory_space<vmem>>, vector<64x1xf32>
    %cst_8 = arith.constant dense<0.000000e+00> : vector<2x1xf32>
    %9 = tpu.matmul %7, %8, %cst_8 {dimension_numbers = #tpu.dot_dimension_numbers<[1], [0], [0], [1], [0, 0, 1, 1], [], []>} : vector<2x64xf32>, vector<64x1xf32>, vector<2x1xf32> -> vector<2x1xf32>
    %c0_9 = arith.constant 0 : index
    %c0_10 = arith.constant 0 : index
    %10 = vector.load %arg4[%c0_9, %c0_10] : memref<1x1xf32, #tpu.memory_space<vmem>>, vector<1x1xf32>
    %11 = vector.broadcast %10 : vector<1x1xf32> to vector<2x1xf32>
    %12 = arith.addf %9, %11 : vector<2x1xf32>
    %13 = math.tanh %12 : vector<2x1xf32>
    %c0_11 = arith.constant 0 : index
    %c0_12 = arith.constant 0 : index
    %14 = vector.load %arg5[%c0_11, %c0_12] : memref<2x1xf32, #tpu.memory_space<vmem>>, vector<2x1xf32>
    tpu.vector_store %arg5[%c0_11, %c0_12], %13 {strides = array<i32>} : memref<2x1xf32, #tpu.memory_space<vmem>>, vector<2x1xf32>,
    return
  }
}

</mosaic_0001>

<bundles_post_ra>
// kernel: policy_value_forward.9
= control target key start
LH: loop header
LB: loop body
LE: loop exit
PB: predicated region body
PF: predicated region fallthrough
CT: control target
= control target key end

     0   :  { %s1630_s0 = inlined_call_operand.vmem [shape: bf16[128,36], index: 0, kind: input, shape index: {}]   ;;  %s1631_s1 = inlined_call_operand.hbm [shape: bf16[36,256], index: 1, kind: input, shape index: {}]   ;;  %s1632_s2 = inlined_call_operand.hbm [shape: f32[1,256], index: 2, kind: input, shape index: {}]   ;;  %s1633_s3 = inlined_call_operand.hbm [shape: f32[1,256], index: 3, kind: input, shape index: {}]   ;;  %s1634_s4 = inlined_call_operand.vmem [shape: bf16[128,256], index: 4, kind: output, shape index: {}]  }
   0x1   :  { %1637 = sst [smem:[#allocation10_spill]] %s1631_s1 }
   0x2   :  { %9 = vsyncpa [#allocation3], 0 }
   0x3   :  { %11 = vsyncpa [#allocation3 + $0x1], 0 }
   0x4   :  { %12 = vsyncpa [#allocation5], 0 }
   0x5   :  { %14 = vsyncpa [#allocation5 + $0x1], 0  ;;  %s1275_s15 = smov 0   ;;  %s1277_s16 = smov 0  }
   0x6   :  { %s1279_s17 = smov 0   ;;  %s1281_s18 = smov 0  }
   0x7 LB: > { %s1294_s19 = sadd.s32 4294967295, %s1242_s18   ;;  %s1297_s20 = sadd.s32 1, %s1242_s18   ;;  %s1242_s18 = sphi %s1281_s18, %s1651_s18   ;;  %s1238_s17 = sphi %s1279_s17, %s1650_s17   ;;  %s1234_s16 = sphi %s1277_s16, %s1649_s16   ;;  %s1230_s15 = sphi %s1275_s15, %s1648_s15  }
   0x8   : > { %s45_s21 = ssub.s32 %s1242_s18, %s1297_s20  ;;  %s48_s22 = sadd.s32 1, %s1238_s17 }
   0x9   : > { %p46_p0 = scmp.eq.s32.totalorder %s45_s21, 0  ;;  %p55_p1 = scmp.ne.s32.totalorder %s1238_s17, %s1234_s16 }
   0xa   : > { %p56_p2 = scmp.eq.s32.totalorder %s1242_s18, 0  ;;  %p61_p3 = scmp.ne.s32.totalorder %s1234_s16, %s1230_s15 }
   0xb   : > { %s1307_s23 = scalar_select %p46_p0, %s1238_s17, %s48_s22  }
   0xc   : > { %p57_p4 = por %p56_p2, %p55_p1  ;;  %p62_p5 = scmp.eq.s32.totalorder %s1294_s19, 0 }
   0xd   : > { %p137_p6 = scmp.eq.s32.totalorder %s1294_s19, 1  ;;  %p1065_p8 = scmp.lt.s32.totalorder %s1242_s18, 2 }
   0xe   : > { %p1311_p7 = por %p62_p5, %p61_p3  ;;  %s1321_s26 = sand.u32 1, %s1238_s17  }
   0xf   : > { %p1316_p9 = por %p137_p6, %p55_p1  ;;  %s1047_s27 = smul.u32 20, %s1321_s26 }
  0x10   : > { %s1638_s24 = scalar_select %p1311_p7, 1, 0 }
  0x11   : > { %s1639_s25 = scalar_select %p1316_p9, 1, 0 }
  0x12   : > { %p1324_p10 = pnand %p1065_p8, %p57_p4  ;;  %s186_s29 = sand.u32 1, %s1242_s18  }
  0x13   : > { %s900_s30 = sshll.u32 %s1242_s18, 4  ;;  %s189_s5 = scalar_lea.vmem [#allocation4], %s1321_s26 }
  0x14   : > { %s1640_s28 = scalar_select %p1324_p10, 1, 0 }
  0x15   : > { %s196_s6 = sshll.u32 %s189_s5, 4  ;;  %s1336_s9 = scalar_lea.hbm %s1632_s2, %s900_s30  ;;  %s1338_s6 = int_to_ptr.vmem [resolvable:$true] %s196_s6 }
  0x16   : > { %s1340_s10 = scalar_lea.sflag [#allocation5], %s186_s29  ;;  %s1114_s11 = scalar_lea.hbm %s1336_s9, 16 }
  0x17   : > { %p1115_p11 = scmp.ne.s32.totalorder %s1336_s9, %s1114_s11  ;;  %p1346_p12 = pneg %p1324_p10 }
  0x18   : > { %s1119_s15 = scalar_lea.hbm %s1632_s2, 32  ;;  %p1120_p1 = scmp.lt.u32.totalorder %s1336_s9, %s1632_s2 }
  0x19   : > { %p1117_p13 = pnand %p1346_p12, %p1115_p11  ;;  %p1121_p2 = scmp.lt.u32.totalorder %s1119_s15, %s1114_s11 }
  0x1a   : > { %p1123_p4 = scmp.lt.u32.totalorder %s1114_s11, %s1336_s9 }
  0x1b   : > { %p1118_p0 = pneg %p1117_p13  ;;  %p1122_p3 = por %p1121_p2, %p1120_p1 }
  0x1d   : > { %p1124_p5 = por %p1123_p4, %p1122_p3 }
  0x1f   : > { %p1125_p6 = pnand %p1124_p5, %p1118_p0 }
  0x21   : > { %1128 = shalt.err (!%p1125_p6)
}
  0x22   : > { %s1129_s29 = scalar_lea.vmem %s1338_s6, 16  ;;  %s1244_s5 = smov [#allocation4]  }
  0x23   : > { %p1130_p8 = scmp.ne.s32.totalorder %s1338_s6, %s1129_s29  ;;  %s1134_s7 = sshll.u32 %s1244_s5, 4  ;;  %s1135_s7 = int_to_ptr.vmem [resolvable:$false] %s1134_s7 }
  0x24   : > { %s1136_s8 = scalar_lea.vmem %s1135_s7, 32  ;;  %p1137_p9 = scmp.lt.s32.totalorder %s1338_s6, %s1135_s7 }
  0x25   : > { %p1132_p11 = pnand %p1130_p8, %p1346_p12  ;;  %p1138_p7 = scmp.lt.s32.totalorder %s1136_s8, %s1129_s29 }
  0x27   : > { %p1133_p13 = pneg %p1132_p11  ;;  %p1139_p1 = por %p1138_p7, %p1137_p9 }
  0x29   : > { %p1140_p2 = pnand %p1139_p1, %p1133_p13 }
  0x2b   : > { %1143 = shalt.err (!%p1140_p2)
}
  0x2c   : > { %1061 = dma.hbm_to_vmem [thread:$0]  (!%p1324_p10), %s1336_s9, 16, %s1338_s6, %s1340_s10  }
  0x2d   : > { %s1375_s14 = scalar_lea.hbm %s1633_s3, %s900_s30  ;;  %p902_p7 = scmp.ge.s32.totalorder %s1242_s18, 1 }
  0x2e   : > { %p218_p9 = scmp.lt.s32.totalorder %s1242_s18, 3  ;;  %s899_s15 = sshll.u32 %s1242_s18, 6 }
  0x2f   : > { %s1643_s1 = sld [smem:[#allocation10_spill]]  ;;  %s170_s6 = scalar_lea.vmem [#allocation2], %s1047_s27 }
  0x30   : > { %p1380_p0 = pnand %p902_p7, %p218_p9  ;;  %s176_s30 = sshll.u32 %s170_s6, 4  ;;  %s1391_s30 = int_to_ptr.vmem [resolvable:$true] %s176_s30 }
  0x31   : > { %s167_s9 = scalar_lea.sflag [#allocation3], %s1321_s26 }
  0x32   : > { %s1642_s21 = scalar_select %p1380_p0, 1, 0 }
  0x35   : > { %s1387_s5 = scalar_lea.hbm %s1643_s1, %s899_s15  ;;  %s1149_s11 = scalar_lea.hbm %s1643_s1, 640 }
  0x36   : > { %s1144_s18 = scalar_lea.hbm %s1387_s5, 320  ;;  %p1150_p6 = scmp.lt.u32.totalorder %s1387_s5, %s1643_s1 }
  0x37   : > { %p1145_p3 = scmp.ne.s32.totalorder %s1387_s5, %s1144_s18  ;;  %p1151_p8 = scmp.lt.u32.totalorder %s1149_s11, %s1144_s18 }
  0x38   : > { %p1153_p13 = scmp.lt.u32.totalorder %s1144_s18, %s1387_s5 }
  0x39   : > { %p1147_p4 = pnand %p1145_p3, %p1346_p12  ;;  %p1152_p11 = por %p1151_p8, %p1150_p6 }
  0x3b   : > { %p1148_p5 = pneg %p1147_p4  ;;  %p1154_p1 = por %p1153_p13, %p1152_p11 }
  0x3d   : > { %p1155_p2 = pnand %p1154_p1, %p1148_p5 }
  0x3f   : > { %1158 = shalt.err (!%p1155_p2)
}
  0x40   : > { %s1159_s27 = scalar_lea.vmem %s1391_s30, 320  ;;  %s1245_s22 = smov [#allocation2]  }
  0x41   : > { %p1160_p7 = scmp.ne.s32.totalorder %s1391_s30, %s1159_s27  ;;  %s1164_s29 = sshll.u32 %s1245_s22, 4  ;;  %s1165_s29 = int_to_ptr.vmem [resolvable:$false] %s1164_s29 }
  0x42   : > { %s1166_s6 = scalar_lea.vmem %s1165_s29, 640  ;;  %p1167_p4 = scmp.lt.s32.totalorder %s1391_s30, %s1165_s29 }
  0x43   : > { %p1162_p9 = pnand %p1160_p7, %p1346_p12  ;;  %p1168_p0 = scmp.lt.s32.totalorder %s1166_s6, %s1159_s27 }
  0x45   : > { %p1163_p3 = pneg %p1162_p9  ;;  %p1169_p6 = por %p1168_p0, %p1167_p4 }
  0x47   : > { %p1170_p8 = pnand %p1169_p6, %p1163_p3 }
  0x49   : > { %1173 = shalt.err (!%p1170_p8)
}
  0x4a   : > { %s1246_s18 = smov 128   ;;  %s1247_s7 = smov 64  }
  0x4b   : > { %s1248_s8 = smov 4   ;;  %s206_s11 = scalar_lea.vmem [#allocation6], %s1321_s26 }
  0x4c   : > { %1058 = dma.hbm_to_vmem [thread:$0]  (!%p1324_p10), %s1387_s5, 320, %s1391_s30, %s167_s9, %s1246_s18, %s1247_s7, %s1248_s8  }
  0x4d   : > { %s213_s13 = sshll.u32 %s206_s11, 4  ;;  %s1174_s15 = scalar_lea.hbm %s1375_s14, 16  ;;  %s214_s13 = int_to_ptr.vmem [resolvable:$true] %s213_s13 }
  0x4e   : > { %p1175_p0 = scmp.ne.s32.totalorder %s1375_s14, %s1174_s15  ;;  %s1179_s29 = scalar_lea.hbm %s1633_s3, 32 }
  0x4f   : > { %p1180_p13 = scmp.lt.u32.totalorder %s1375_s14, %s1633_s3  ;;  %p1181_p1 = scmp.lt.u32.totalorder %s1179_s29, %s1174_s15 }
  0x50   : > { %p1177_p5 = pnand %p1175_p0, %p1346_p12  ;;  %p1183_p7 = scmp.lt.u32.totalorder %s1174_s15, %s1375_s14 }
  0x51   : > { %p1182_p2 = por %p1181_p1, %p1180_p13 }
  0x52   : > { %p1178_p11 = pneg %p1177_p5 }
  0x53   : > { %p1184_p9 = por %p1183_p7, %p1182_p2 }
  0x55   : > { %p1185_p3 = pnand %p1184_p9, %p1178_p11 }
  0x57   : > { %1188 = shalt.err (!%p1185_p3)
}
  0x58   : > { %s1189_s26 = scalar_lea.vmem %s214_s13, 16  ;;  %s1249_s5 = smov [#allocation6]  }
  0x59   : > { %p1190_p4 = scmp.ne.s32.totalorder %s214_s13, %s1189_s26  ;;  %s1194_s30 = sshll.u32 %s1249_s5, 4  ;;  %s1195_s30 = int_to_ptr.vmem [resolvable:$false] %s1194_s30 }
  0x5a   : > { %s1196_s9 = scalar_lea.vmem %s1195_s30, 32  ;;  %p1197_p0 = scmp.lt.s32.totalorder %s214_s13, %s1195_s30 }
  0x5b   : > { %p1192_p6 = pnand %p1190_p4, %p1346_p12  ;;  %p1198_p5 = scmp.lt.s32.totalorder %s1196_s9, %s1189_s26 }
  0x5d   : > { %p1193_p8 = pneg %p1192_p6  ;;  %p1199_p10 = por %p1198_p5, %p1197_p0 }
  0x5f   : > { %p1200_p1 = pnand %p1199_p10, %p1193_p8 }
  0x61   : > { %1203 = shalt.err (!%p1200_p1)
}
  0x62   : > { %p1644_p13 = scmp.ne.s32.totalorder %s1640_s28, 0  ;;  %p1645_p11 = scmp.ne.s32.totalorder %s1642_s21, 0 }
  0x63   : > { %s1439_s1 = sand.u32 (!%p1645_p11), 1, %s1234_s16   ;;  %p1646_p12 = scmp.ne.s32.totalorder (!%p1645_p11), %s1638_s24, 0 }
  0x64   : > { %1064 = dma.hbm_to_vmem [thread:$0]  (!%p1644_p13), %s1375_s14, 16, %s214_s13, %s1340_s10  }
  0x65   : > { %222 = sbr.rel (%p1645_p11) target bundleno = 441 (0x1b9), region = 36  ;;  %s225_s18 = scalar_lea.sflag (!%p1645_p11), [#allocation3], %s1439_s1 }
  0x66   : > { %s1048_s12 = smul.u32 (!%p1645_p11), 20, %s1439_s1 }
  0x68   : > { %s228_s7 = scalar_lea.vmem (!%p1645_p11), [#allocation2], %s1048_s12 }
  0x6c   : > { %1221 = dma.done.wait (%p1646_p12), %s225_s18, 320  }
  0x6d   : > { %1223 = vsyncadd (%p1646_p12), %s225_s18, 4294966976  ;;  %s233_s28 = sand.u32 1, %s1294_s19   ;;  %s236_s14 = scalar_lea.vmem [#allocation4], %s1439_s1 }
  0x6e   : > { %s234_s10 = scalar_lea.sflag [#allocation5], %s233_s28 }
  0x6f   : > { %1225 = dma.done.wait (%p1646_p12), %s234_s10, 32  }
  0x70   : > { %1227 = vsyncadd (%p1646_p12), %s234_s10, 4294967264  ;;  %v1101_v0 = vld [vmem:[%s228_s7] sm:$0xff]   ;;  %v1102_v1 = vld [vmem:[%s228_s7 + $0x8] sm:$0xff]   ;;  %vm353_vm0 = vcmask 293888   ;;  %vm378_vm1 = vcmask 1041408   ;;  %s903_s28 = sshll.u32 %s1439_s1, 6 }
  0x71   : > { %1017 = vmatprep.subr.bf16.mxu0 %v1101_v0  ;;  %v1103_v2 = vld [vmem:[%s228_s7 + $0x10] ss:$0 sps:$4 sm:$0x33]   ;;  %1039 = vmatprep.subr.bf16.mxu1 %v1101_v0  ;;  %v1105_v6 = vld [vmem:[%s1630_s0 + $0x8] sm:$0xff]   ;;  %v1107_v10 = vld [vmem:[%s1630_s0 + $0x18] sm:$0xff]   ;;  %s244_s7 = scalar_lea.vmem [#allocation6], %s1439_s1 }
  0x72   : > { %v1104_v3 = vld [vmem:[%s1630_s0] sm:$0xff]   ;;  %1018 = vmatpush3.bf16.msra.mxu0 %v1101_v0  ;;  %1042 = vmatpush3.bf16.msra.mxu1 %v1101_v0  ;;  %v380_v5 = vsel %vm378_vm1, %v1103_v2, 0  ;;  %v1109_v7 = vld [vmem:[%s1630_s0 + $0x28] sm:$0xff]   ;;  %v1106_v8 = vld [vmem:[%s1630_s0 + $0x10] sm:$0xff]   ;;  %s1585_s1 = scalar_lea.vmem [#allocation7], %s903_s28  ;;  %p1647_p10 = scmp.ne.s32.totalorder %s1639_s25, 0 }
  0x73   : > { %1019 = vmatprep.subr.bf16.mxu0 %v1102_v1  ;;  %1023 = vmatprep.mubr.msk.bf16.mxu0 %vm353_vm0, %v1104_v3  ;;  %v1108_v4 = vld [vmem:[%s1630_s0 + $0x20] sm:$0xff]   ;;  %v1110_v9 = vld [vmem:[%s1630_s0 + $0x30] sm:$0xff]   ;;  %v1111_v11 = vld [vmem:[%s1630_s0 + $0x38] sm:$0xff]   ;;  %s940_s10 = sshll.u32 (%p1647_p10), %s1294_s19, 2 }
  0x74   : > { %1040 = vmatprep.subr.bf16.mxu1 %v1102_v1  ;;  %1031 = vmatprep.mubr.msk.bf16.mxu1 %vm353_vm0, %v1108_v4  ;;  %s697_s8 = scalar_lea.vmem (%p1647_p10), %s1634_s4, %s940_s10 }
  0x76   : > { %1020 = vmatpush3.bf16.msra.mxu0 %v1102_v1  ;;  %1043 = vmatpush3.bf16.msra.mxu1 %v1102_v1 }
  0x77   : > { %1045 = vmatprep.subr.msk.bf16.mxu0 %vm378_vm1, %v1103_v2  ;;  %1046 = vmatprep.subr.msk.bf16.mxu1 %vm378_vm1, %v1103_v2 }
  0x7a   : > { %1022 = vmatpush3.bf16.msra.mxu0 %v380_v5  ;;  %1044 = vmatpush3.bf16.msra.mxu1 %v380_v5 }
  0x7d   : > { %1024 = vmatmul.mubr.msk.bf16.vlgmr.msra.gmra.mrb[0].mxu0 %vm353_vm0, %v1105_v6  ;;  %1032 = vmatmul.mubr.msk.bf16.vlgmr.msra.gmra.mrb[0].mxu1 %vm353_vm0, %v1109_v7 }
  0x7e   : > { %1027 = vmatprep.mubr.msk.bf16.mxu0 %vm353_vm0, %v1106_v8  ;;  %1035 = vmatprep.mubr.msk.bf16.mxu1 %vm353_vm0, %v1110_v9 }
  0x85   : > { %1028 = vmatmul.mubr.msk.bf16.gmra.mrb[4].mxu0 %vm353_vm0, %v1107_v10  ;;  %1036 = vmatmul.mubr.msk.bf16.gmra.mrb[4].mxu1 %vm353_vm0, %v1111_v11 }
 0x150   : > { %v1485_v12 = vpop.f32.mrb[0].mxu0  ;;  %v1487_v13 = vpop.f32.mrb[0].mxu1 }
 0x151   : > { %v1489_v14 = vpop.f32.mrb[1].mxu0  ;;  %v1491_v15 = vpop.f32.mrb[1].mxu1  ;;  %v502_v23 = vmul.f32 %v1485_v12, %v1485_v12  ;;  %v510_v55 = vmul.f32 %v1487_v13, %v1487_v13 }
 0x152   : > { %v1493_v16 = vpop.f32.mrb[2].mxu0  ;;  %v1495_v17 = vpop.f32.mrb[2].mxu1  ;;  %v500_v20 = vmul.f32 %v1489_v14, %v1489_v14  ;;  %v508_v49 = vmul.f32 %v1491_v15, %v1491_v15 }
 0x153   : > { %v1497_v18 = vpop.f32.mrb[3].mxu0  ;;  %v1499_v19 = vpop.f32.mrb[3].mxu1  ;;  %v503_v26 = vmul.f32 %v1493_v16, %v1493_v16  ;;  %v511_v58 = vmul.f32 %v1495_v17, %v1495_v17 }
 0x154   : > { %v479_v21 = vadd.f32 %v1497_v18, %v1489_v14  ;;  %v501_v22 = vmul.f32 %v1497_v18, %v1497_v18  ;;  %v509_v54 = vmul.f32 %v1499_v19, %v1499_v19 }
 0x156   : > { %v480_v24 = vadd.f32 %v1485_v12, %v479_v21  ;;  %v516_v25 = vadd.f32 %v501_v22, %v500_v20 }
 0x158   : > { %v517_v27 = vadd.f32 %v516_v25, %v502_v23  ;;  %v1512_v28 = vpop.f32.mrb[4].mxu0  ;;  %v481_v29 = vadd.f32 %v1493_v16, %v480_v24  ;;  %v1515_v30 = vpop.f32.mrb[4].mxu1 }
 0x159   : > { %v1517_v31 = vpop.f32.mrb[5].mxu0  ;;  %v1519_v32 = vpop.f32.mrb[5].mxu1  ;;  %v506_v43 = vmul.f32 %v1512_v28, %v1512_v28  ;;  %v514_v3 = vmul.f32 %v1515_v30, %v1515_v30 }
 0x15a   : > { %v482_v33 = vadd.f32 %v481_v29, %v1517_v31  ;;  %v504_v34 = vmul.f32 %v1517_v31, %v1517_v31  ;;  %v518_v35 = vadd.f32 %v517_v27, %v503_v26  ;;  %v1524_v36 = vpop.f32.mrb[6].mxu0  ;;  %v1526_v37 = vpop.f32.mrb[6].mxu1  ;;  %v512_v61 = vmul.f32 %v1519_v32, %v1519_v32 }
 0x15b   : > { %v1528_v38 = vpop.f32.mrb[7].mxu0  ;;  %v1530_v39 = vpop.f32.mrb[7].mxu1  ;;  %v507_v46 = vmul.f32 %v1524_v36, %v1524_v36  ;;  %v515_v6 = vmul.f32 %v1526_v37, %v1526_v37 }
 0x15c   : > { %v519_v40 = vadd.f32 %v518_v35, %v504_v34  ;;  %v483_v41 = vadd.f32 %v482_v33, %v1528_v38  ;;  %v505_v42 = vmul.f32 %v1528_v38, %v1528_v38  ;;  %v513_v2 = vmul.f32 %v1530_v39, %v1530_v39 }
 0x15e   : > { %v484_v44 = vadd.f32 %v1512_v28, %v483_v41  ;;  %v520_v45 = vadd.f32 %v519_v40, %v505_v42 }
 0x160   : > { %v521_v47 = vadd.f32 %v520_v45, %v506_v43  ;;  %v485_v48 = vadd.f32 %v1524_v36, %v484_v44  ;;  %v550_v44 = vlaneseq }
 0x162   : > { %v486_v50 = vadd.f32 %v485_v48, %v1491_v15  ;;  %v522_v51 = vadd.f32 %v521_v47, %v507_v46  ;;  %v551_v45 = vshrl.u32 %v550_v44, 7  ;;  %v542_v46 = vld [vmem:[%s236_s14] sm:$0x1] }
 0x164   : > { %v523_v52 = vadd.f32 %v522_v51, %v508_v49  ;;  %v487_v53 = vadd.f32 %v486_v50, %v1499_v19  ;;  %v552_v47 = vsub.s32 0, %v551_v45  ;;  %v546_v50 = vld [vmem:[%s244_s7] sm:$0x1] }
 0x166   : > { %v488_v56 = vadd.f32 %v1487_v13, %v487_v53  ;;  %v524_v57 = vadd.f32 %v523_v52, %v509_v54 }
 0x168   : > { %v525_v59 = vadd.f32 %v524_v57, %v510_v55  ;;  %v489_v60 = vadd.f32 %v1495_v17, %v488_v56 }
 0x16a   : > { %v490_v62 = vadd.f32 %v489_v60, %v1519_v32  ;;  %v526_v63 = vadd.f32 %v525_v59, %v511_v58 }
 0x16c   : > { %v527_v0 = vadd.f32 %v526_v63, %v512_v61  ;;  %v491_v1 = vadd.f32 %v490_v62, %v1530_v39 }
 0x16e   : > { %v492_v4 = vadd.f32 %v1515_v30, %v491_v1  ;;  %v528_v5 = vadd.f32 %v527_v0, %v513_v2 }
 0x170   : > { %v493_v7 = vadd.f32 %v1526_v37, %v492_v4  ;;  %v529_v8 = vadd.f32 %v528_v5, %v514_v3 }
 0x172   : > { %v494_v9 = vrot.slane %v493_v7, 4  ;;  %v530_v10 = vadd.f32 %v529_v8, %v515_v6 }
 0x174   : > { %v495_v11 = vadd.f32 %v494_v9, %v493_v7  ;;  %v531_v20 = vrot.slane %v530_v10, 4 }
 0x176   : > { %v496_v21 = vrot.slane %v495_v11, 2  ;;  %v532_v22 = vadd.f32 %v531_v20, %v530_v10 }
 0x178   : > { %v497_v23 = vadd.f32 %v496_v21, %v495_v11  ;;  %v533_v24 = vrot.slane %v532_v22, 2 }
 0x17a   : > { %v498_v25 = vrot.slane %v497_v23, 1  ;;  %v534_v26 = vadd.f32 %v533_v24, %v532_v22 }
 0x17c   : > { %v499_v27 = vadd.f32 %v498_v25, %v497_v23  ;;  %v535_v29 = vrot.slane %v534_v26, 1 }
 0x17e   : > { %v536_v33 = vadd.f32 %v535_v29, %v534_v26  ;;  %v537_v34 = vmul.f32 0.0078125, %v499_v27 }
 0x180   : > { %v538_v35 = vmul.f32 0.0078125, %v536_v33  ;;  %v539_v40 = vmul.f32 %v537_v34, %v537_v34 }
 0x182   : > { %v540_v41 = vsub.f32 %v538_v35, %v539_v40 }
 0x184   : > { %v541_v42 = vmax.f32 %v540_v41, 0.0 }
 0x186   : > { %v543_v43 = vadd.f32 1e-05, %v541_v42 }
 0x188   : > { %1112 = vrsqrt.f32 %v543_v43 }
 0x192   : > { %v1113_v48 = vpop.eup %1112 }
 0x193   : > { %v545_v49 = vmul.f32 %v1113_v48, %v542_v46 }
 0x195   : > { %v547_v51 = vmul.f32 %v545_v49, %v537_v34  ;;  %v553_v52 = vrot.slane %v545_v49, %v552_v47 }
 0x197   : > { %v548_v53 = vsub.f32 %v546_v50, %v547_v51  ;;  %v555_v54 = vmul.f32 %v553_v52, %v1489_v14  ;;  %v556_v55 = vmul.f32 %v553_v52, %v1497_v18  ;;  %v557_v56 = vmul.f32 %v1485_v12, %v553_v52 }
 0x198   : > { %v558_v57 = vmul.f32 %v1493_v16, %v553_v52  ;;  %v559_v58 = vmul.f32 %v553_v52, %v1517_v31  ;;  %v560_v59 = vmul.f32 %v553_v52, %v1528_v38  ;;  %v561_v60 = vmul.f32 %v1512_v28, %v553_v52 }
 0x199   : > { %v562_v61 = vmul.f32 %v1524_v36, %v553_v52  ;;  %v563_v62 = vmul.f32 %v553_v52, %v1491_v15  ;;  %v564_v63 = vmul.f32 %v553_v52, %v1499_v19  ;;  %v565_v14 = vmul.f32 %v1487_v13, %v553_v52 }
 0x19a   : > { %v566_v18 = vmul.f32 %v1495_v17, %v553_v52  ;;  %v567_v12 = vmul.f32 %v553_v52, %v1519_v32  ;;  %v568_v16 = vmul.f32 %v553_v52, %v1530_v39  ;;  %v569_v31 = vmul.f32 %v1515_v30, %v553_v52 }
 0x19b   : > { %v570_v38 = vmul.f32 %v1526_v37, %v553_v52  ;;  %v575_v0 = vrot.slane %v548_v53, %v552_v47 }
 0x19d   : > { %v577_v28 = vadd.f32 %v575_v0, %v555_v54  ;;  %v578_v36 = vadd.f32 %v575_v0, %v556_v55  ;;  %v579_v1 = vadd.f32 %v575_v0, %v557_v56  ;;  %v580_v15 = vadd.f32 %v575_v0, %v558_v57 }
 0x19e   : > { %v581_v2 = vadd.f32 %v575_v0, %v559_v58  ;;  %v582_v19 = vadd.f32 %v575_v0, %v560_v59  ;;  %v583_v3 = vadd.f32 %v575_v0, %v561_v60  ;;  %v584_v13 = vadd.f32 %v575_v0, %v562_v61 }
 0x19f   : > { %v585_v4 = vadd.f32 %v575_v0, %v563_v62  ;;  %v586_v17 = vadd.f32 %v575_v0, %v564_v63  ;;  %v587_v5 = vadd.f32 %v575_v0, %v565_v14  ;;  %v588_v32 = vadd.f32 %v575_v0, %v566_v18 }
 0x1a0   : > { %v589_v6 = vadd.f32 %v575_v0, %v567_v12  ;;  %v590_v39 = vadd.f32 %v575_v0, %v568_v16  ;;  %v591_v7 = vadd.f32 %v575_v0, %v569_v31  ;;  %v592_v30 = vadd.f32 %v575_v0, %v570_v38 }
 0x1a1   : > { %v593_v37 = vmax.f32 %v577_v28, 0.0  ;;  %v594_v8 = vmax.f32 %v578_v36, 0.0  ;;  %v595_v9 = vmax.f32 %v579_v1, 0.0  ;;  %v596_v10 = vmax.f32 %v580_v15, 0.0 }
 0x1a2   : > { %v597_v11 = vmax.f32 %v581_v2, 0.0  ;;  %v598_v20 = vmax.f32 %v582_v19, 0.0  ;;  %v599_v21 = vmax.f32 %v583_v3, 0.0  ;;  %v600_v22 = vmax.f32 %v584_v13, 0.0 }
 0x1a3   : > { %v601_v23 = vmax.f32 %v585_v4, 0.0  ;;  %v602_v24 = vmax.f32 %v586_v17, 0.0  ;;  %v603_v25 = vmax.f32 %v587_v5, 0.0  ;;  %v604_v26 = vmax.f32 %v588_v32, 0.0 }
 0x1a4   : > { %v605_v27 = vmax.f32 %v589_v6, 0.0  ;;  %v606_v29 = vmax.f32 %v590_v39, 0.0  ;;  %v607_v33 = vmax.f32 %v591_v7, 0.0  ;;  %v608_v34 = vmax.f32 %v592_v30, 0.0  ;;  %695 = sbr.rel (!%p1647_p10) target bundleno = 441 (0x1b9), region = 52 }
 0x1a5   : > { %v962_v35 = vpack.c.bf16 %v594_v8, %v593_v37  ;;  %v967_v40 = vpack.c.bf16 %v596_v10, %v595_v9  ;;  %v972_v41 = vpack.c.bf16 %v598_v20, %v597_v11  ;;  %v977_v42 = vpack.c.bf16 %v600_v22, %v599_v21 }
 0x1a6   : > { %v982_v43 = vpack.c.bf16 %v602_v24, %v601_v23  ;;  %v987_v44 = vpack.c.bf16 %v604_v26, %v603_v25  ;;  %v992_v45 = vpack.c.bf16 %v606_v29, %v605_v27  ;;  %v997_v46 = vpack.c.bf16 %v608_v34, %v607_v33 }
 0x1a7   : > { %963 = vst [vmem:[%s1585_s1] sm:$0xff] %v962_v35   ;;  %999 = vst [vmem:[%s1585_s1 + $0x8] sm:$0xff] %v967_v40  }
 0x1a8   : > { %1000 = vst [vmem:[%s1585_s1 + $0x10] sm:$0xff] %v972_v41   ;;  %1001 = vst [vmem:[%s1585_s1 + $0x18] sm:$0xff] %v977_v42  }
 0x1a9   : > { %1002 = vst [vmem:[%s1585_s1 + $0x20] sm:$0xff] %v982_v43   ;;  %1003 = vst [vmem:[%s1585_s1 + $0x28] sm:$0xff] %v987_v44  }
 0x1aa   : > { %1004 = vst [vmem:[%s1585_s1 + $0x30] sm:$0xff] %v992_v45   ;;  %1005 = vst [vmem:[%s1585_s1 + $0x38] sm:$0xff] %v997_v46  }
 0x1ae   : > { %v713_v47 = vld [vmem:[%s1585_s1] sm:$0xf]  ;;  %v715_v48 = vld [vmem:[%s1585_s1 + $0x4] sm:$0xf]  ;;  %v717_v49 = vld [vmem:[%s1585_s1 + $0x8] sm:$0xf] }
 0x1af   : > { %v719_v50 = vld [vmem:[%s1585_s1 + $0xc] sm:$0xf]  ;;  %v721_v51 = vld [vmem:[%s1585_s1 + $0x10] sm:$0xf]  ;;  %714 = vst [vmem:[%s697_s8] sm:$0xf] %v713_v47 }
 0x1b0   : > { %716 = vst [vmem:[%s697_s8 + $0x8] sm:$0xf] %v715_v48  ;;  %718 = vst [vmem:[%s697_s8 + $0x10] sm:$0xf] %v717_v49  ;;  %v723_v52 = vld [vmem:[%s1585_s1 + $0x14] sm:$0xf] }
 0x1b1   : > { %720 = vst [vmem:[%s697_s8 + $0x18] sm:$0xf] %v719_v50  ;;  %722 = vst [vmem:[%s697_s8 + $0x20] sm:$0xf] %v721_v51  ;;  %v725_v53 = vld [vmem:[%s1585_s1 + $0x18] sm:$0xf] }
 0x1b2   : > { %v727_v54 = vld [vmem:[%s1585_s1 + $0x1c] sm:$0xf]  ;;  %724 = vst [vmem:[%s697_s8 + $0x28] sm:$0xf] %v723_v52  ;;  %726 = vst [vmem:[%s697_s8 + $0x30] sm:$0xf] %v725_v53 }
 0x1b3   : > { %728 = vst [vmem:[%s697_s8 + $0x38] sm:$0xf] %v727_v54  ;;  %v729_v55 = vld [vmem:[%s1585_s1 + $0x20] sm:$0xf]  ;;  %v731_v56 = vld [vmem:[%s1585_s1 + $0x24] sm:$0xf] }
 0x1b4   : > { %v733_v57 = vld [vmem:[%s1585_s1 + $0x28] sm:$0xf]  ;;  %730 = vst [vmem:[%s697_s8 + $0x40] sm:$0xf] %v729_v55  ;;  %732 = vst [vmem:[%s697_s8 + $0x48] sm:$0xf] %v731_v56 }
 0x1b5   : > { %734 = vst [vmem:[%s697_s8 + $0x50] sm:$0xf] %v733_v57  ;;  %v735_v58 = vld [vmem:[%s1585_s1 + $0x2c] sm:$0xf]  ;;  %v737_v59 = vld [vmem:[%s1585_s1 + $0x30] sm:$0xf] }
 0x1b6   : > { %v739_v60 = vld [vmem:[%s1585_s1 + $0x34] sm:$0xf]  ;;  %736 = vst [vmem:[%s697_s8 + $0x58] sm:$0xf] %v735_v58  ;;  %738 = vst [vmem:[%s697_s8 + $0x60] sm:$0xf] %v737_v59 }
 0x1b7   : > { %740 = vst [vmem:[%s697_s8 + $0x68] sm:$0xf] %v739_v60  ;;  %v741_v61 = vld [vmem:[%s1585_s1 + $0x38] sm:$0xf]  ;;  %v743_v62 = vld [vmem:[%s1585_s1 + $0x3c] sm:$0xf] }
 0x1b8   : > { %742 = vst [vmem:[%s697_s8 + $0x70] sm:$0xf] %v741_v61  ;;  %744 = vst [vmem:[%s697_s8 + $0x78] sm:$0xf] %v743_v62 }
 0x1b9 PF: > { %p17_p2 = scmp.ge.s32.totalorder %s1297_s20, 4   ;;  %s1648_s15 = smov %s1234_s16 }
 0x1ba   : > { %s1649_s16 = smov %s1238_s17  ;;  %s1650_s17 = smov %s1307_s23 }
 0x1bb   : > { %s1651_s18 = smov %s1297_s20  ;;  %19 = sbr.rel (!%p17_p2) target bundleno = 7 (0x7), region = 141 }
 0x1c2   :  { %809 = vsyncpa [#allocation3], 1 }
 0x1c3   :  { %811 = vsyncpa [#allocation3 + $0x1], 1 }
 0x1c4   :  { %812 = vsyncpa [#allocation5], 1 }
 0x1c5   :  { %814 = vsyncpa [#allocation5 + $0x1], 1 }

// kernel: policy_value_forward.14
= control target key start
LH: loop header
LB: loop body
LE: loop exit
PB: predicated region body
PF: predicated region fallthrough
CT: control target
= control target key end

     0   :  { %vm339_vm0 = vcmask 15360   ;;  %s995_s1 = inlined_call_operand.vmem [shape: bf16[256,2], index: 1, kind: input, shape index: {}]   ;;  %s996_s0 = inlined_call_operand.vmem [shape: bf16[128,256], index: 0, kind: input, shape index: {}]   ;;  %s997_s2 = inlined_call_operand.vmem [shape: f32[1,2], index: 2, kind: input, shape index: {}]   ;;  %s998_s3 = inlined_call_operand.vmem [shape: f32[1,2], index: 3, kind: input, shape index: {}]   ;;  %s999_s4 = inlined_call_operand.vmem [shape: f32[128,2], index: 4, kind: output, shape index: {}]  }
   0x1   :  { %v634_v0 = vld [vmem:[%s995_s1 + $0x40] sm:$0xff]   ;;  %v636_v2 = vld [vmem:[%s995_s1 + $0x48] sm:$0xff]   ;;  %v638_v4 = vld [vmem:[%s995_s1 + $0x50] sm:$0xff]  }
   0x2   :  { %v635_v1 = vld [vmem:[%s995_s1] sm:$0xff]   ;;  %554 = vmatprep.subr.bf16.mxu0 %v634_v0  ;;  %618 = vmatprep.subr.bf16.mxu1 %v634_v0  ;;  %v637_v3 = vld [vmem:[%s995_s1 + $0x8] sm:$0xff]   ;;  %v639_v5 = vld [vmem:[%s995_s1 + $0x10] sm:$0xff]  }
   0x3   :  { %555 = vmatpush3.bf16.msra.mxu0 %v635_v1  ;;  %626 = vmatpush3.bf16.msra.mxu1 %v635_v1  ;;  %v640_v6 = vld [vmem:[%s995_s1 + $0x58] sm:$0xff]   ;;  %v642_v8 = vld [vmem:[%s995_s1 + $0x60] sm:$0xff]   ;;  %v644_v10 = vld [vmem:[%s995_s1 + $0x68] sm:$0xff]  }
   0x4   :  { %556 = vmatprep.subr.bf16.mxu0 %v636_v2  ;;  %619 = vmatprep.subr.bf16.mxu1 %v636_v2  ;;  %v641_v7 = vld [vmem:[%s995_s1 + $0x18] sm:$0xff]   ;;  %v643_v9 = vld [vmem:[%s995_s1 + $0x20] sm:$0xff]   ;;  %v645_v12 = vld [vmem:[%s995_s1 + $0x28] sm:$0xff]  }
   0x5   :  { %v652_v11 = vld [vmem:[%s996_s0 + $0x4] ss:$8 sps:$4 sm:$0xff]   ;;  %v646_v14 = vld [vmem:[%s995_s1 + $0x70] sm:$0xff]   ;;  %v648_v16 = vld [vmem:[%s995_s1 + $0x78] sm:$0xff]  }
   0x6   :  { %v658_v13 = vld [vmem:[%s996_s0 + $0x44] ss:$8 sps:$4 sm:$0xff]   ;;  %274 = vmatprep.mubr.bf16.mxu0 %v652_v11  ;;  %v647_v15 = vld [vmem:[%s995_s1 + $0x30] sm:$0xff]   ;;  %v649_v17 = vld [vmem:[%s995_s1 + $0x38] sm:$0xff]  }
   0x7   :  { %557 = vmatpush3.bf16.msra.mxu0 %v637_v3  ;;  %627 = vmatpush3.bf16.msra.mxu1 %v637_v3  ;;  %v650_v18 = vld [vmem:[%s996_s0] ss:$8 sps:$4 sm:$0xff]   ;;  %v653_v20 = vld [vmem:[%s996_s0 + $0x14] ss:$8 sps:$4 sm:$0xff]   ;;  %v655_v22 = vld [vmem:[%s996_s0 + $0x10] ss:$8 sps:$4 sm:$0xff]  }
   0x8   :  { %558 = vmatprep.subr.bf16.mxu0 %v638_v4  ;;  %620 = vmatprep.subr.bf16.mxu1 %v638_v4  ;;  %v656_v19 = vld [vmem:[%s996_s0 + $0x40] ss:$8 sps:$4 sm:$0xff]   ;;  %v662_v21 = vld [vmem:[%s996_s0 + $0x54] ss:$8 sps:$4 sm:$0xff]   ;;  %v664_v23 = vld [vmem:[%s996_s0 + $0x50] ss:$8 sps:$4 sm:$0xff]  }
   0x9   :  { %306 = vmatprep.mubr.bf16.mxu1 %v658_v13  ;;  %v659_v24 = vld [vmem:[%s996_s0 + $0x24] ss:$8 sps:$4 sm:$0xff]   ;;  %v661_v26 = vld [vmem:[%s996_s0 + $0x20] ss:$8 sps:$4 sm:$0xff]   ;;  %v665_v28 = vld [vmem:[%s996_s0 + $0x34] ss:$8 sps:$4 sm:$0xff]  }
   0xa   :  { %v668_v25 = vld [vmem:[%s996_s0 + $0x64] ss:$8 sps:$4 sm:$0xff]   ;;  %v670_v27 = vld [vmem:[%s996_s0 + $0x60] ss:$8 sps:$4 sm:$0xff]   ;;  %v671_v29 = vld [vmem:[%s996_s0 + $0x74] ss:$8 sps:$4 sm:$0xff]  }
   0xb   :  { %559 = vmatpush3.bf16.msra.mxu0 %v639_v5  ;;  %628 = vmatpush3.bf16.msra.mxu1 %v639_v5  ;;  %v667_v30 = vld [vmem:[%s996_s0 + $0x30] ss:$8 sps:$4 sm:$0xff]  }
   0xc   :  { %560 = vmatprep.subr.bf16.mxu0 %v640_v6  ;;  %621 = vmatprep.subr.bf16.mxu1 %v640_v6  ;;  %v673_v31 = vld [vmem:[%s996_s0 + $0x70] ss:$8 sps:$4 sm:$0xff]  }
   0xf   :  { %561 = vmatpush3.bf16.msra.mxu0 %v641_v7  ;;  %629 = vmatpush3.bf16.msra.mxu1 %v641_v7 }
  0x10   :  { %562 = vmatprep.subr.bf16.mxu0 %v642_v8  ;;  %622 = vmatprep.subr.bf16.mxu1 %v642_v8 }
  0x13   :  { %563 = vmatpush3.bf16.msra.mxu0 %v643_v9  ;;  %630 = vmatpush3.bf16.msra.mxu1 %v643_v9 }
  0x14   :  { %564 = vmatprep.subr.bf16.mxu0 %v644_v10  ;;  %623 = vmatprep.subr.bf16.mxu1 %v644_v10 }
  0x17   :  { %565 = vmatpush3.bf16.msra.mxu0 %v645_v12  ;;  %631 = vmatpush3.bf16.msra.mxu1 %v645_v12 }
  0x18   :  { %566 = vmatprep.subr.bf16.mxu0 %v646_v14  ;;  %624 = vmatprep.subr.bf16.mxu1 %v646_v14 }
  0x1b   :  { %567 = vmatpush3.bf16.msra.mxu0 %v647_v15  ;;  %632 = vmatpush3.bf16.msra.mxu1 %v647_v15 }
  0x1c   :  { %568 = vmatprep.subr.bf16.mxu0 %v648_v16  ;;  %625 = vmatprep.subr.bf16.mxu1 %v648_v16 }
  0x1f   :  { %569 = vmatpush3.bf16.msra.mxu0 %v649_v17  ;;  %633 = vmatpush3.bf16.msra.mxu1 %v649_v17 }
  0x22   :  { %275 = vmatmul.mubr.bf16.vlgmr.msra.gmra.mrb[0].mxu0 %v650_v18  ;;  %307 = vmatmul.mubr.bf16.vlgmr.msra.gmra.mrb[0].mxu1 %v656_v19 }
  0x23   :  { %282 = vmatprep.mubr.bf16.mxu0 %v653_v20  ;;  %314 = vmatprep.mubr.bf16.mxu1 %v662_v21 }
  0x2a   :  { %283 = vmatmul.mubr.bf16.gmra.mrb[4].mxu0 %v655_v22  ;;  %315 = vmatmul.mubr.bf16.gmra.mrb[4].mxu1 %v664_v23 }
  0x2b   :  { %290 = vmatprep.mubr.bf16.mxu0 %v659_v24  ;;  %322 = vmatprep.mubr.bf16.mxu1 %v668_v25 }
  0x32   :  { %291 = vmatmul.mubr.bf16.gmra.mrb[8].mxu0 %v661_v26  ;;  %323 = vmatmul.mubr.bf16.gmra.mrb[8].mxu1 %v670_v27 }
  0x33   :  { %298 = vmatprep.mubr.bf16.mxu0 %v665_v28  ;;  %330 = vmatprep.mubr.bf16.mxu1 %v671_v29 }
  0x3a   :  { %299 = vmatmul.mubr.bf16.gmra.mrb[12].mxu0 %v667_v30  ;;  %331 = vmatmul.mubr.bf16.gmra.mrb[12].mxu1 %v673_v31 }
  0xf5   :  { %v570_v32 = vpop.f32.mrb[0].mxu0  ;;  %v594_v33 = vpop.f32.mrb[0].mxu1 }
  0xf6   :  { %v571_v34 = vpop.f32.mrb[1].mxu0  ;;  %v595_v35 = vpop.f32.mrb[1].mxu1 }
  0xf7   :  { %v797_v36 = vadd.f32 %v571_v34, %v570_v32  ;;  %v573_v37 = vpop.f32.mrb[2].mxu0  ;;  %v799_v38 = vadd.f32 %v595_v35, %v594_v33  ;;  %v597_v39 = vpop.f32.mrb[2].mxu1 }
  0xf8   :  { %v574_v40 = vpop.f32.mrb[3].mxu0  ;;  %v598_v41 = vpop.f32.mrb[3].mxu1 }
  0xf9   :  { %v801_v42 = vadd.f32 %v574_v40, %v573_v37  ;;  %v803_v43 = vadd.f32 %v598_v41, %v597_v39  ;;  %v377_v55 = vmul.f32 %v797_v36, %v797_v36  ;;  %v340_v60 = vsel %vm339_vm0, %v797_v36, 0.0 }
  0xfb   :  { %v378_v48 = vmul.f32 %v801_v42, %v801_v42  ;;  %v341_v56 = vsel %vm339_vm0, %v801_v42, 0.0  ;;  %v393_v0 = vsel %vm339_vm0, %v377_v55, 0.0 }
  0xfc   :  { %v342_v63 = vadd.f32 %v341_v56, %v340_v60 }
  0xfd   :  { %v576_v44 = vpop.f32.mrb[4].mxu0  ;;  %v600_v45 = vpop.f32.mrb[4].mxu1  ;;  %v394_v61 = vsel %vm339_vm0, %v378_v48, 0.0 }
  0xfe   :  { %v577_v46 = vpop.f32.mrb[5].mxu0  ;;  %v601_v47 = vpop.f32.mrb[5].mxu1  ;;  %v395_v5 = vadd.f32 %v394_v61, %v393_v0  ;;  %v355_v61 = vsel %vm339_vm0, %v799_v38, 0.0 }
  0xff   :  { %v807_v49 = vadd.f32 %v577_v46, %v576_v44  ;;  %v579_v50 = vpop.f32.mrb[6].mxu0  ;;  %v809_v51 = vadd.f32 %v601_v47, %v600_v45  ;;  %v603_v52 = vpop.f32.mrb[6].mxu1 }
 0x100   :  { %v580_v53 = vpop.f32.mrb[7].mxu0  ;;  %v604_v54 = vpop.f32.mrb[7].mxu1 }
 0x101   :  { %v379_v57 = vmul.f32 %v807_v49, %v807_v49  ;;  %v817_v58 = vadd.f32 %v580_v53, %v579_v50  ;;  %v819_v59 = vadd.f32 %v604_v54, %v603_v52  ;;  %v343_v62 = vsel %vm339_vm0, %v807_v49, 0.0 }
 0x102   :  { %v344_v6 = vadd.f32 %v343_v62, %v342_v63  ;;  %v385_v53 = vmul.f32 %v799_v38, %v799_v38  ;;  %v386_v62 = vmul.f32 %v803_v43, %v803_v43 }
 0x103   :  { %v396_v1 = vsel %vm339_vm0, %v379_v57, 0.0  ;;  %v380_v2 = vmul.f32 %v817_v58, %v817_v58  ;;  %v345_v9 = vsel %vm339_vm0, %v817_v58, 0.0 }
 0x104   :  { %v397_v14 = vadd.f32 %v396_v1, %v395_v5  ;;  %v346_v21 = vadd.f32 %v345_v9, %v344_v6  ;;  %v388_v9 = vmul.f32 %v819_v59, %v819_v59 }
 0x105   :  { %v582_v3 = vpop.f32.mrb[8].mxu0  ;;  %v606_v4 = vpop.f32.mrb[8].mxu1  ;;  %v398_v17 = vsel %vm339_vm0, %v380_v2, 0.0  ;;  %v408_v2 = vsel %vm339_vm0, %v385_v53, 0.0 }
 0x106   :  { %v583_v7 = vpop.f32.mrb[9].mxu0  ;;  %v607_v8 = vpop.f32.mrb[9].mxu1  ;;  %v399_v25 = vadd.f32 %v398_v17, %v397_v14 }
 0x107   :  { %v832_v10 = vadd.f32 %v583_v7, %v582_v3  ;;  %v585_v11 = vpop.f32.mrb[10].mxu0  ;;  %v834_v12 = vadd.f32 %v607_v8, %v606_v4  ;;  %v609_v13 = vpop.f32.mrb[10].mxu1  ;;  %v357_v3 = vsel %vm339_vm0, %v803_v43, 0.0  ;;  %v387_v4 = vmul.f32 %v809_v51, %v809_v51 }
 0x108   :  { %v586_v15 = vpop.f32.mrb[11].mxu0  ;;  %v610_v16 = vpop.f32.mrb[11].mxu1  ;;  %v410_v7 = vsel %vm339_vm0, %v386_v62, 0.0  ;;  %v359_v8 = vsel %vm339_vm0, %v809_v51, 0.0 }
 0x109   :  { %v347_v18 = vsel %vm339_vm0, %v832_v10, 0.0  ;;  %v381_v19 = vmul.f32 %v832_v10, %v832_v10  ;;  %v841_v20 = vadd.f32 %v586_v15, %v585_v11  ;;  %v843_v22 = vadd.f32 %v610_v16, %v609_v13 }
 0x10a   :  { %v348_v26 = vadd.f32 %v347_v18, %v346_v21  ;;  %v412_v14 = vsel %vm339_vm0, %v387_v4, 0.0  ;;  %v361_v15 = vsel %vm339_vm0, %v819_v59, 0.0  ;;  %v389_v16 = vmul.f32 %v834_v12, %v834_v12 }
 0x10b   :  { %v400_v23 = vsel %vm339_vm0, %v381_v19, 0.0  ;;  %v382_v24 = vmul.f32 %v841_v20, %v841_v20  ;;  %v349_v27 = vsel %vm339_vm0, %v841_v20, 0.0  ;;  %v414_v19 = vsel %vm339_vm0, %v388_v9, 0.0 }
 0x10c   :  { %v401_v30 = vadd.f32 %v400_v23, %v399_v25  ;;  %v350_v40 = vadd.f32 %v349_v27, %v348_v26  ;;  %v363_v21 = vsel %vm339_vm0, %v834_v12, 0.0  ;;  %v390_v23 = vmul.f32 %v843_v22, %v843_v22 }
 0x10d   :  { %v588_v28 = vpop.f32.mrb[12].mxu0  ;;  %v612_v29 = vpop.f32.mrb[12].mxu1  ;;  %v402_v33 = vsel %vm339_vm0, %v382_v24, 0.0  ;;  %v416_v27 = vsel %vm339_vm0, %v389_v16, 0.0  ;;  %v439_v16 = vld [vmem:[%s998_s3] sm:$0x1] }
 0x10e   :  { %v589_v31 = vpop.f32.mrb[13].mxu0  ;;  %v613_v32 = vpop.f32.mrb[13].mxu1  ;;  %v403_v48 = vadd.f32 %v402_v33, %v401_v30 }
 0x10f   :  { %v851_v34 = vadd.f32 %v589_v31, %v588_v28  ;;  %v591_v35 = vpop.f32.mrb[14].mxu0  ;;  %v853_v37 = vadd.f32 %v613_v32, %v612_v29  ;;  %v615_v39 = vpop.f32.mrb[14].mxu1  ;;  %v365_v28 = vsel %vm339_vm0, %v843_v22, 0.0  ;;  %v418_v32 = vsel %vm339_vm0, %v390_v23, 0.0 }
 0x110   :  { %v592_v41 = vpop.f32.mrb[15].mxu0  ;;  %v616_v44 = vpop.f32.mrb[15].mxu1 }
 0x111   :  { %v351_v45 = vsel %vm339_vm0, %v851_v34, 0.0  ;;  %v383_v46 = vmul.f32 %v851_v34, %v851_v34  ;;  %v859_v47 = vadd.f32 %v592_v41, %v591_v35  ;;  %v861_v52 = vadd.f32 %v616_v44, %v615_v39 }
 0x112   :  { %v352_v50 = vadd.f32 %v351_v45, %v350_v40  ;;  %v391_v24 = vmul.f32 %v853_v37, %v853_v37  ;;  %v367_v29 = vsel %vm339_vm0, %v853_v37, 0.0 }
 0x113   :  { %v404_v54 = vsel %vm339_vm0, %v383_v46, 0.0  ;;  %v353_v55 = vsel %vm339_vm0, %v859_v47, 0.0  ;;  %v384_v56 = vmul.f32 %v859_v47, %v859_v47  ;;  %v392_v35 = vmul.f32 %v861_v52, %v861_v52 }
 0x114   :  { %v405_v57 = vadd.f32 %v404_v54, %v403_v48  ;;  %v354_v60 = vadd.f32 %v353_v55, %v352_v50  ;;  %v420_v33 = vsel %vm339_vm0, %v391_v24, 0.0  ;;  %v369_v41 = vsel %vm339_vm0, %v861_v52, 0.0 }
 0x115   :  { %v406_v63 = vsel %vm339_vm0, %v384_v56, 0.0  ;;  %v422_v46 = vsel %vm339_vm0, %v392_v35, 0.0 }
 0x116   :  { %v356_v0 = vadd.f32 %v355_v61, %v354_v60  ;;  %v407_v1 = vadd.f32 %v406_v63, %v405_v57 }
 0x118   :  { %v358_v5 = vadd.f32 %v357_v3, %v356_v0  ;;  %v409_v6 = vadd.f32 %v408_v2, %v407_v1 }
 0x11a   :  { %v411_v11 = vadd.f32 %v410_v7, %v409_v6  ;;  %v360_v13 = vadd.f32 %v359_v8, %v358_v5  ;;  %v443_v8 = vlaneseq }
 0x11c   :  { %v362_v17 = vadd.f32 %v361_v15, %v360_v13  ;;  %v413_v18 = vadd.f32 %v412_v14, %v411_v11  ;;  %v444_v9 = vshrl.u32 %v443_v8, 7  ;;  %v435_v11 = vld [vmem:[%s997_s2] sm:$0x1] }
 0x11e   :  { %v364_v25 = vadd.f32 %v363_v21, %v362_v17  ;;  %v415_v26 = vadd.f32 %v414_v19, %v413_v18  ;;  %v445_v13 = vsub.s32 0, %v444_v9 }
 0x120   :  { %v417_v30 = vadd.f32 %v416_v27, %v415_v26  ;;  %v366_v31 = vadd.f32 %v365_v28, %v364_v25 }
 0x122   :  { %v419_v39 = vadd.f32 %v418_v32, %v417_v30  ;;  %v368_v40 = vadd.f32 %v367_v29, %v366_v31 }
 0x124   :  { %v421_v44 = vadd.f32 %v420_v33, %v419_v39  ;;  %v370_v45 = vadd.f32 %v369_v41, %v368_v40 }
 0x126   :  { %v371_v48 = vrot.slane %v370_v45, 4  ;;  %v423_v50 = vadd.f32 %v422_v46, %v421_v44 }
 0x128   :  { %v372_v53 = vadd.f32 %v371_v48, %v370_v45  ;;  %v424_v54 = vrot.slane %v423_v50, 4 }
 0x12a   :  { %v373_v55 = vrot.slane %v372_v53, 2  ;;  %v425_v56 = vadd.f32 %v424_v54, %v423_v50 }
 0x12c   :  { %v374_v57 = vadd.f32 %v373_v55, %v372_v53  ;;  %v426_v60 = vrot.slane %v425_v56, 2 }
 0x12e   :  { %v375_v61 = vrot.slane %v374_v57, 1  ;;  %v427_v62 = vadd.f32 %v426_v60, %v425_v56 }
 0x130   :  { %v376_v63 = vadd.f32 %v375_v61, %v374_v57  ;;  %v428_v0 = vrot.slane %v427_v62, 1 }
 0x132   :  { %v429_v1 = vadd.f32 %v428_v0, %v427_v62  ;;  %v430_v2 = vmul.f32 0.0078125, %v376_v63 }
 0x134   :  { %v431_v3 = vmul.f32 0.0078125, %v429_v1  ;;  %v432_v4 = vmul.f32 %v430_v2, %v430_v2 }
 0x136   :  { %v433_v5 = vsub.f32 %v431_v3, %v432_v4 }
 0x138   :  { %v434_v6 = vmax.f32 %v433_v5, 0.0 }
 0x13a   :  { %v436_v7 = vadd.f32 1e-05, %v434_v6 }
 0x13c   :  { %674 = vrsqrt.f32 %v436_v7 }
 0x146   :  { %v675_v14 = vpop.eup %674 }
 0x147   :  { %v438_v15 = vmul.f32 %v675_v14, %v435_v11 }
 0x149   :  { %v440_v17 = vmul.f32 %v438_v15, %v430_v2  ;;  %v446_v18 = vrot.slane %v438_v15, %v445_v13 }
 0x14b   :  { %v441_v19 = vsub.f32 %v439_v16, %v440_v17  ;;  %v448_v21 = vmul.f32 %v797_v36, %v446_v18  ;;  %v449_v23 = vmul.f32 %v801_v42, %v446_v18  ;;  %v453_v24 = vmul.f32 %v841_v20, %v446_v18 }
 0x14c   :  { %v454_v25 = vmul.f32 %v851_v34, %v446_v18  ;;  %v455_v26 = vmul.f32 %v859_v47, %v446_v18  ;;  %v456_v27 = vmul.f32 %v799_v38, %v446_v18  ;;  %v457_v28 = vmul.f32 %v803_v43, %v446_v18 }
 0x14d   :  { %v458_v29 = vmul.f32 %v809_v51, %v446_v18  ;;  %v459_v30 = vmul.f32 %v819_v59, %v446_v18  ;;  %v460_v31 = vmul.f32 %v834_v12, %v446_v18  ;;  %v461_v36 = vmul.f32 %v843_v22, %v446_v18 }
 0x14e   :  { %v462_v42 = vmul.f32 %v853_v37, %v446_v18  ;;  %v450_v20 = vmul.f32 %v807_v49, %v446_v18  ;;  %v451_v34 = vmul.f32 %v817_v58, %v446_v18  ;;  %v463_v47 = vmul.f32 %v861_v52, %v446_v18 }
 0x14f   :  { %v468_v32 = vrot.slane %v441_v19, %v445_v13  ;;  %v452_v38 = vmul.f32 %v832_v10, %v446_v18 }
 0x151   :  { %v470_v43 = vadd.f32 %v468_v32, %v448_v21  ;;  %v471_v33 = vadd.f32 %v468_v32, %v449_v23  ;;  %v472_v51 = vadd.f32 %v468_v32, %v450_v20  ;;  %v473_v35 = vadd.f32 %v468_v32, %v451_v34 }
 0x152   :  { %v474_v59 = vadd.f32 %v468_v32, %v452_v38  ;;  %v475_v39 = vadd.f32 %v468_v32, %v453_v24  ;;  %v476_v12 = vadd.f32 %v468_v32, %v454_v25  ;;  %v477_v40 = vadd.f32 %v468_v32, %v455_v26 }
 0x153   :  { %v478_v22 = vadd.f32 %v468_v32, %v456_v27  ;;  %v479_v41 = vadd.f32 %v468_v32, %v457_v28  ;;  %v480_v37 = vadd.f32 %v468_v32, %v458_v29  ;;  %v481_v44 = vadd.f32 %v468_v32, %v459_v30 }
 0x154   :  { %v482_v49 = vadd.f32 %v468_v32, %v460_v31  ;;  %v483_v45 = vadd.f32 %v468_v32, %v461_v36  ;;  %v484_v58 = vadd.f32 %v468_v32, %v462_v42  ;;  %v485_v46 = vadd.f32 %v468_v32, %v463_v47 }
 0x155   :  { %v486_v52 = vmax.f32 %v470_v43, 0.0  ;;  %v487_v48 = vmax.f32 %v471_v33, 0.0  ;;  %v488_v50 = vmax.f32 %v472_v51, 0.0  ;;  %v489_v10 = vmax.f32 %v473_v35, 0.0 }
 0x156   :  { %v490_v53 = vmax.f32 %v474_v59, 0.0  ;;  %v491_v54 = vmax.f32 %v475_v39, 0.0  ;;  %v492_v55 = vmax.f32 %v476_v12, 0.0  ;;  %v493_v56 = vmax.f32 %v477_v40, 0.0 }
 0x157   :  { %v494_v57 = vmax.f32 %v478_v22, 0.0  ;;  %v495_v60 = vmax.f32 %v479_v41, 0.0  ;;  %v496_v61 = vmax.f32 %v480_v37, 0.0  ;;  %v497_v62 = vmax.f32 %v481_v44, 0.0  ;;  %502 = vst.msk [vmem:[%s999_s4] sm:$0xff] %vm339_vm0, %v486_v52  ;;  %503 = vst.msk [vmem:[%s999_s4 + $0x8] sm:$0xff] %vm339_vm0, %v487_v48 }
 0x158   :  { %504 = vst.msk [vmem:[%s999_s4 + $0x10] sm:$0xff] %vm339_vm0, %v488_v50  ;;  %505 = vst.msk [vmem:[%s999_s4 + $0x18] sm:$0xff] %vm339_vm0, %v489_v10  ;;  %v498_v63 = vmax.f32 %v482_v49, 0.0  ;;  %v499_v0 = vmax.f32 %v483_v45, 0.0  ;;  %v500_v1 = vmax.f32 %v484_v58, 0.0  ;;  %v501_v2 = vmax.f32 %v485_v46, 0.0 }
 0x159   :  { %506 = vst.msk [vmem:[%s999_s4 + $0x20] sm:$0xff] %vm339_vm0, %v490_v53  ;;  %507 = vst.msk [vmem:[%s999_s4 + $0x28] sm:$0xff] %vm339_vm0, %v491_v54 }
 0x15a   :  { %508 = vst.msk [vmem:[%s999_s4 + $0x30] sm:$0xff] %vm339_vm0, %v492_v55  ;;  %509 = vst.msk [vmem:[%s999_s4 + $0x38] sm:$0xff] %vm339_vm0, %v493_v56 }
 0x15b   :  { %510 = vst.msk [vmem:[%s999_s4 + $0x40] sm:$0xff] %vm339_vm0, %v494_v57  ;;  %511 = vst.msk [vmem:[%s999_s4 + $0x48] sm:$0xff] %vm339_vm0, %v495_v60 }
 0x15c   :  { %512 = vst.msk [vmem:[%s999_s4 + $0x50] sm:$0xff] %vm339_vm0, %v496_v61  ;;  %513 = vst.msk [vmem:[%s999_s4 + $0x58] sm:$0xff] %vm339_vm0, %v497_v62 }
 0x15d   :  { %514 = vst.msk [vmem:[%s999_s4 + $0x60] sm:$0xff] %vm339_vm0, %v498_v63  ;;  %515 = vst.msk [vmem:[%s999_s4 + $0x68] sm:$0xff] %vm339_vm0, %v499_v0 }
 0x15e   :  { %516 = vst.msk [vmem:[%s999_s4 + $0x70] sm:$0xff] %vm339_vm0, %v500_v1  ;;  %517 = vst.msk [vmem:[%s999_s4 + $0x78] sm:$0xff] %vm339_vm0, %v501_v2 }

// kernel: policy_value_forward.15
= control target key start
LH: loop header
LB: loop body
LE: loop exit
PB: predicated region body
PF: predicated region fallthrough
CT: control target
= control target key end

     0   :  { %v246_v3 = vmov 0.0|0.0   ;;  %vm247_vm0 = vmmov 0   ;;  %v248_v6 = vmov 0.0   ;;  %s339_s0 = inlined_call_operand.vmem [shape: f32[2,128], index: 0, kind: input, shape index: {}]   ;;  %s340_s1 = inlined_call_operand.vmem [shape: f32[128,65], index: 1, kind: input, shape index: {}]   ;;  %s341_s2 = inlined_call_operand.vmem [shape: f32[1,65], index: 2, kind: input, shape index: {}]   ;;  %s342_s3 = inlined_call_operand.hbm [shape: f32[2,65], index: 3, kind: output, shape index: {}]  }
   0x1   :  { %v16_v0 = vld [vmem:[%s340_s1] sm:$0xff]  ;;  %v17_v1 = vld [vmem:[%s340_s1 + $0x8] sm:$0xff]  ;;  %v18_v2 = vld [vmem:[%s340_s1 + $0x10] sm:$0xff]  ;;  %190 = vmatprep.subr.bf16.mxu0 %v246_v3  ;;  %187 = vmatprep.mubr.msk.f32.mxu0 %vm247_vm0, %v248_v6 }
   0x2   :  { %v191_v4 = vpack.c.bf16 %v17_v1, %v16_v0  ;;  %v19_v5 = vld [vmem:[%s340_s1 + $0x18] sm:$0xff]  ;;  %v20_v8 = vld [vmem:[%s340_s1 + $0x20] sm:$0xff]  ;;  %v21_v9 = vld [vmem:[%s340_s1 + $0x28] sm:$0xff] }
   0x3   :  { %v194_v7 = vpack.c.bf16 %v19_v5, %v18_v2 }
   0x4   :  { %192 = vmatpush3.bf16.msra.mxu0 %v191_v4 }
   0x5   :  { %193 = vmatprep.subr.bf16.mxu0 %v246_v3 }
   0x6   :  { %8 = vsyncpa [#allocation3], 0  ;;  %v197_v10 = vpack.c.bf16 %v21_v9, %v20_v8  ;;  %v22_v11 = vld [vmem:[%s340_s1 + $0x30] sm:$0xff]  ;;  %v23_v12 = vld [vmem:[%s340_s1 + $0x38] sm:$0xff]  ;;  %vm109_vm1 = vcmask 525312  }
   0x7   :  { %v200_v13 = vpack.c.bf16 %v23_v12, %v22_v11  ;;  %v24_v14 = vld [vmem:[%s340_s1 + $0x40] sm:$0xff]  ;;  %v25_v15 = vld [vmem:[%s340_s1 + $0x48] sm:$0xff]  ;;  %v26_v17 = vld [vmem:[%s340_s1 + $0x50] sm:$0xff] }
   0x8   :  { %195 = vmatpush3.bf16.msra.mxu0 %v194_v7  ;;  %v203_v16 = vpack.c.bf16 %v25_v15, %v24_v14  ;;  %v27_v18 = vld [vmem:[%s340_s1 + $0x58] sm:$0xff]  ;;  %v28_v20 = vld [vmem:[%s340_s1 + $0x60] sm:$0xff]  ;;  %v29_v21 = vld [vmem:[%s340_s1 + $0x68] sm:$0xff] }
   0x9   :  { %196 = vmatprep.subr.bf16.mxu0 %v246_v3  ;;  %v206_v19 = vpack.c.bf16 %v27_v18, %v26_v17  ;;  %v209_v22 = vpack.c.bf16 %v29_v21, %v28_v20  ;;  %v30_v23 = vld [vmem:[%s340_s1 + $0x70] sm:$0xff]  ;;  %v31_v24 = vld [vmem:[%s340_s1 + $0x78] sm:$0xff]  ;;  %v15_v26 = vld [vmem:[%s339_s0] sm:$0x3]  ;;  %s249_s0 = smov [#allocation2]  }
   0xa   :  { %v212_v25 = vpack.c.bf16 %v31_v24, %v30_v23  ;;  %v137_v27 = vld [vmem:[%s341_s2] ss:$0 sm:$0xff]  ;;  %s129_s1 = sshll.u32 %s249_s0, 4  ;;  %s130_s1 = int_to_ptr.vmem [resolvable:$true] %s129_s1 }
   0xb   :  { %s222_s2 = scalar_lea.vmem %s130_s1, 32  ;;  %p227_p1 = scmp.lt.s32.totalorder %s130_s1, %s130_s1 }
   0xc   :  { %198 = vmatpush3.bf16.msra.mxu0 %v197_v10  ;;  %p223_p0 = scmp.ne.s32.totalorder %s130_s1, %s222_s2  ;;  %p228_p2 = scmp.lt.s32.totalorder %s222_s2, %s222_s2 }
   0xd   :  { %199 = vmatprep.subr.bf16.mxu0 %v246_v3 }
   0xe   :  { %p229_p3 = por %p228_p2, %p227_p1 }
  0x10   :  { %201 = vmatpush3.bf16.msra.mxu0 %v200_v13  ;;  %p230_p4 = pnand %p229_p3, %p223_p0 }
  0x11   :  { %202 = vmatprep.subr.bf16.mxu0 %v246_v3 }
  0x14   :  { %204 = vmatpush3.bf16.msra.mxu0 %v203_v16 }
  0x15   :  { %205 = vmatprep.subr.bf16.mxu0 %v246_v3 }
  0x18   :  { %207 = vmatpush3.bf16.msra.mxu0 %v206_v19 }
  0x19   :  { %208 = vmatprep.subr.bf16.mxu0 %v246_v3 }
  0x1c   :  { %210 = vmatpush3.bf16.msra.mxu0 %v209_v22 }
  0x1d   :  { %211 = vmatprep.subr.bf16.mxu0 %v246_v3 }
  0x20   :  { %213 = vmatpush3.bf16.msra.mxu0 %v212_v25 }
  0x23   :  { %188 = vmatmul.mubr.f32.vlgmr.msra.gmra.mrb[0].mxu0 %v15_v26 }
  0xf6   :  { %v105_v28 = vpop.f32.mrb[0].mxu0 }
  0xf7   :  { %v106_v29 = vadd.f32 %v137_v27, %v105_v28  ;;  %v189_v30 = vpop.f32.mrb[1].mxu0 }
  0xf9   :  { %v110_v31 = vsel %vm109_vm1, %v106_v29, -inf }
  0xfa   :  { %111 = vmax.xlane.f32.xlu0 %v110_v31 }
 0x187   :  { %v112_v32 = vpop.xlane.xlu0 %111 }
 0x188   :  { %v113_v33 = vsub.f32 %v106_v29, %v112_v32 }
 0x18a   :  { %v114_v34 = vmul.f32 1.442695, %v113_v33 }
 0x18c   :  { %218 = vpow2.f32 %v114_v34 }
 0x196   :  { %v219_v35 = vpop.eup %218 }
 0x197   :  { %v116_v36 = vsel %vm109_vm1, %v219_v35, 0.0 }
 0x198   :  { %117 = vadd.xlane.f32.xlu0 %v116_v36 }
 0x225   :  { %v118_v37 = vpop.xlane.xlu0 %117 }
 0x226   :  { %220 = vlog2.f32 %v118_v37 }
 0x230   :  { %v221_v38 = vpop.eup %220 }
 0x231   :  { %v120_v39 = vmul.f32 0.6931472, %v221_v38 }
 0x233   :  { %v121_v40 = vsub.f32 %v113_v33, %v120_v39 }
 0x235   :  { %122 = vst.msk [vmem:[#allocation2] sm:$0x3] %vm109_vm1, %v121_v40 }
 0x236   :  { %233 = shalt.err (!%p230_p4)
}
 0x237   :  { %s234_s23 = scalar_lea.hbm %s342_s3, 32 }
 0x238   :  { %p235_p5 = scmp.ne.s32.totalorder %s342_s3, %s234_s23  ;;  %p238_p6 = scmp.lt.u32.totalorder %s234_s23, %s342_s3 }
 0x23a   :  { %p240_p7 = pnand %p238_p6, %p235_p5 }
 0x23c   :  { %243 = shalt.err (!%p240_p7)
}
 0x23d   :  { %132 = dma.vmem_to_hbm [thread:$0]  %s130_s1, 32, %s342_s3, [#allocation3]  }
 0x23e   :  { %244 = dma.done.wait [#allocation3], 32  }
 0x23f   :  { %245 = vsyncadd [#allocation3], 4294967264 }
 0x240   :  { %136 = vsyncpa [#allocation3], 1 }

// kernel: policy_value_forward.11
= control target key start
LH: loop header
LB: loop body
LE: loop exit
PB: predicated region body
PF: predicated region fallthrough
CT: control target
= control target key end

     0   :  { %s6359_s18 = smov 0   ;;  %s6361_s19 = smov 0   ;;  %s7972_s0 = inlined_call_operand.vmem [shape: bf16[128,2304], index: 0, kind: input, shape index: {}]   ;;  %s7973_s1 = inlined_call_operand.vmem [shape: bf16[2304,256], index: 1, kind: input, shape index: {}]   ;;  %s7974_s2 = inlined_call_operand.vmem [shape: f32[1,256], index: 2, kind: input, shape index: {}]   ;;  %s7975_s3 = inlined_call_operand.vmem [shape: f32[1,256], index: 3, kind: input, shape index: {}]   ;;  %s7976_s4 = inlined_call_operand.vmem [shape: bf16[128,256], index: 4, kind: input, shape index: {}]   ;;  %s7977_s5 = inlined_call_operand.vmem [shape: bf16[128,256], index: 5, kind: output, shape index: {}]  }
   0x1   :  { %s6363_s20 = smov 0  }
   0x2 LB: > { %s6375_s21 = sadd.s32 4294967295, %s6327_s20   ;;  %s6378_s22 = sadd.s32 1, %s6327_s20   ;;  %s6327_s20 = sphi %s6363_s20, %s7982_s20   ;;  %s6323_s19 = sphi %s6361_s19, %s7981_s19   ;;  %s6319_s18 = sphi %s6359_s18, %s7980_s18  }
   0x3   : > { %s40_s23 = ssub.s32 %s6327_s20, %s6378_s22  ;;  %s43_s24 = sadd.s32 1, %s6323_s19 }
   0x4   : > { %p41_p0 = scmp.eq.s32.totalorder %s40_s23, 0  ;;  %p50_p1 = scmp.ne.s32.totalorder %s6323_s19, %s6319_s18 }
   0x5   : > { %p51_p2 = scmp.eq.s32.totalorder %s6327_s20, 0  ;;  %p158_p3 = scmp.eq.s32.totalorder %s6375_s21, 1 }
   0x6   : > { %s6388_s25 = scalar_select %p41_p0, %s6323_s19, %s43_s24  }
   0x7   : > { %p6390_p4 = por %p51_p2, %p50_p1  ;;  %p6394_p5 = por %p158_p3, %p50_p1 }
   0x8   : > { %p4908_p6 = scmp.ge.s32.totalorder %s6327_s20, 2 }
   0xa   : > { %183 = sbr.rel (%p4908_p6) target bundleno = 227 (0xe3), region = 20 }
  0x11   : > { %186 = sbr.rel (!%p6390_p4) target bundleno = 213 (0xd5), region = 24  ;;  %s188_s28 = sand.u32 (%p6390_p4), 1, %s6323_s19  }
  0x12   : > { %s4909_s29 = sshll.u32 (%p6390_p4), %s6327_s20, 2  ;;  %s5917_s30 = smul.u32 (%p6390_p4), 1152, %s188_s28 }
  0x13   : > { %s6406_s8 = scalar_lea.vmem (%p6390_p4), %s7973_s1, %s4909_s29 }
  0x14   : > { %v208_v0 = vld [vmem:[%s6406_s8] sm:$0xf] (%p6390_p4)  ;;  %v210_v1 = vld [vmem:[%s6406_s8 + $0x8] sm:$0xf] (%p6390_p4)  ;;  %v212_v2 = vld [vmem:[%s6406_s8 + $0x10] sm:$0xf] (%p6390_p4) }
  0x15   : > { %v214_v3 = vld [vmem:[%s6406_s8 + $0x18] sm:$0xf] (%p6390_p4)  ;;  %v216_v4 = vld [vmem:[%s6406_s8 + $0x20] sm:$0xf] (%p6390_p4)  ;;  %s6413_s9 = scalar_lea.vmem (%p6390_p4), [#allocation2], %s5917_s30 }
  0x16   : > { %209 = vst [vmem:[%s6413_s9] sm:$0xf] (%p6390_p4), %v208_v0  ;;  %211 = vst [vmem:[%s6413_s9 + $0x4] sm:$0xf] (%p6390_p4), %v210_v1  ;;  %v218_v5 = vld [vmem:[%s6406_s8 + $0x28] sm:$0xf] (%p6390_p4) }
  0x17   : > { %213 = vst [vmem:[%s6413_s9 + $0x8] sm:$0xf] (%p6390_p4), %v212_v2  ;;  %215 = vst [vmem:[%s6413_s9 + $0xc] sm:$0xf] (%p6390_p4), %v214_v3  ;;  %v220_v6 = vld [vmem:[%s6406_s8 + $0x30] sm:$0xf] (%p6390_p4) }
  0x18   : > { %217 = vst [vmem:[%s6413_s9 + $0x10] sm:$0xf] %v216_v4  ;;  %v222_v7 = vld [vmem:[%s6406_s8 + $0x38] sm:$0xf]  ;;  %219 = vst [vmem:[%s6413_s9 + $0x14] sm:$0xf] %v218_v5 }
  0x19   : > { %221 = vst [vmem:[%s6413_s9 + $0x18] sm:$0xf] %v220_v6  ;;  %223 = vst [vmem:[%s6413_s9 + $0x1c] sm:$0xf] %v222_v7  ;;  %v224_v8 = vld [vmem:[%s6406_s8 + $0x40] sm:$0xf] }
  0x1a   : > { %v226_v9 = vld [vmem:[%s6406_s8 + $0x48] sm:$0xf]  ;;  %v228_v10 = vld [vmem:[%s6406_s8 + $0x50] sm:$0xf]  ;;  %225 = vst [vmem:[%s6413_s9 + $0x20] sm:$0xf] %v224_v8 }
  0x1b   : > { %227 = vst [vmem:[%s6413_s9 + $0x24] sm:$0xf] %v226_v9  ;;  %229 = vst [vmem:[%s6413_s9 + $0x28] sm:$0xf] %v228_v10  ;;  %v230_v11 = vld [vmem:[%s6406_s8 + $0x58] sm:$0xf] }
  0x1c   : > { %v232_v12 = vld [vmem:[%s6406_s8 + $0x60] sm:$0xf]  ;;  %v234_v13 = vld [vmem:[%s6406_s8 + $0x68] sm:$0xf]  ;;  %231 = vst [vmem:[%s6413_s9 + $0x2c] sm:$0xf] %v230_v11 }
  0x1d   : > { %233 = vst [vmem:[%s6413_s9 + $0x30] sm:$0xf] %v232_v12  ;;  %235 = vst [vmem:[%s6413_s9 + $0x34] sm:$0xf] %v234_v13  ;;  %v236_v14 = vld [vmem:[%s6406_s8 + $0x70] sm:$0xf] }
  0x1e   : > { %v238_v15 = vld [vmem:[%s6406_s8 + $0x78] sm:$0xf]  ;;  %v240_v16 = vld [vmem:[%s6406_s8 + $0x80] sm:$0xf]  ;;  %237 = vst [vmem:[%s6413_s9 + $0x38] sm:$0xf] %v236_v14 }
  0x1f   : > { %239 = vst [vmem:[%s6413_s9 + $0x3c] sm:$0xf] %v238_v15  ;;  %241 = vst [vmem:[%s6413_s9 + $0x40] sm:$0xf] %v240_v16  ;;  %v242_v17 = vld [vmem:[%s6406_s8 + $0x88] sm:$0xf] }
  0x20   : > { %v244_v18 = vld [vmem:[%s6406_s8 + $0x90] sm:$0xf]  ;;  %v246_v19 = vld [vmem:[%s6406_s8 + $0x98] sm:$0xf]  ;;  %243 = vst [vmem:[%s6413_s9 + $0x44] sm:$0xf] %v242_v17 }
  0x21   : > { %245 = vst [vmem:[%s6413_s9 + $0x48] sm:$0xf] %v244_v18  ;;  %247 = vst [vmem:[%s6413_s9 + $0x4c] sm:$0xf] %v246_v19  ;;  %v248_v20 = vld [vmem:[%s6406_s8 + $0xa0] sm:$0xf] }
  0x22   : > { %v250_v21 = vld [vmem:[%s6406_s8 + $0xa8] sm:$0xf]  ;;  %v252_v22 = vld [vmem:[%s6406_s8 + $0xb0] sm:$0xf]  ;;  %249 = vst [vmem:[%s6413_s9 + $0x50] sm:$0xf] %v248_v20 }
  0x23   : > { %251 = vst [vmem:[%s6413_s9 + $0x54] sm:$0xf] %v250_v21  ;;  %253 = vst [vmem:[%s6413_s9 + $0x58] sm:$0xf] %v252_v22  ;;  %v254_v23 = vld [vmem:[%s6406_s8 + $0xb8] sm:$0xf] }
  0x24   : > { %v256_v24 = vld [vmem:[%s6406_s8 + $0xc0] sm:$0xf]  ;;  %v258_v25 = vld [vmem:[%s6406_s8 + $0xc8] sm:$0xf]  ;;  %255 = vst [vmem:[%s6413_s9 + $0x5c] sm:$0xf] %v254_v23 }
  0x25   : > { %257 = vst [vmem:[%s6413_s9 + $0x60] sm:$0xf] %v256_v24  ;;  %259 = vst [vmem:[%s6413_s9 + $0x64] sm:$0xf] %v258_v25  ;;  %v260_v26 = vld [vmem:[%s6406_s8 + $0xd0] sm:$0xf] }
  0x26   : > { %v262_v27 = vld [vmem:[%s6406_s8 + $0xd8] sm:$0xf]  ;;  %v264_v28 = vld [vmem:[%s6406_s8 + $0xe0] sm:$0xf]  ;;  %261 = vst [vmem:[%s6413_s9 + $0x68] sm:$0xf] %v260_v26 }
  0x27   : > { %263 = vst [vmem:[%s6413_s9 + $0x6c] sm:$0xf] %v262_v27  ;;  %265 = vst [vmem:[%s6413_s9 + $0x70] sm:$0xf] %v264_v28  ;;  %v266_v29 = vld [vmem:[%s6406_s8 + $0xe8] sm:$0xf] }
  0x28   : > { %v268_v30 = vld [vmem:[%s6406_s8 + $0xf0] sm:$0xf]  ;;  %v270_v31 = vld [vmem:[%s6406_s8 + $0xf8] sm:$0xf]  ;;  %267 = vst [vmem:[%s6413_s9 + $0x74] sm:$0xf] %v266_v29 }
  0x29   : > { %269 = vst [vmem:[%s6413_s9 + $0x78] sm:$0xf] %v268_v30  ;;  %271 = vst [vmem:[%s6413_s9 + $0x7c] sm:$0xf] %v270_v31  ;;  %v272_v32 = vld [vmem:[%s6406_s8 + $0x100] sm:$0xf] }
  0x2a   : > { %v274_v33 = vld [vmem:[%s6406_s8 + $0x108] sm:$0xf]  ;;  %v276_v34 = vld [vmem:[%s6406_s8 + $0x110] sm:$0xf]  ;;  %273 = vst [vmem:[%s6413_s9 + $0x80] sm:$0xf] %v272_v32 }
  0x2b   : > { %275 = vst [vmem:[%s6413_s9 + $0x84] sm:$0xf] %v274_v33  ;;  %277 = vst [vmem:[%s6413_s9 + $0x88] sm:$0xf] %v276_v34  ;;  %v278_v35 = vld [vmem:[%s6406_s8 + $0x118] sm:$0xf] }
  0x2c   : > { %v280_v36 = vld [vmem:[%s6406_s8 + $0x120] sm:$0xf]  ;;  %v282_v37 = vld [vmem:[%s6406_s8 + $0x128] sm:$0xf]  ;;  %279 = vst [vmem:[%s6413_s9 + $0x8c] sm:$0xf] %v278_v35 }
  0x2d   : > { %281 = vst [vmem:[%s6413_s9 + $0x90] sm:$0xf] %v280_v36  ;;  %283 = vst [vmem:[%s6413_s9 + $0x94] sm:$0xf] %v282_v37  ;;  %v284_v38 = vld [vmem:[%s6406_s8 + $0x130] sm:$0xf] }
  0x2e   : > { %v286_v39 = vld [vmem:[%s6406_s8 + $0x138] sm:$0xf]  ;;  %v288_v40 = vld [vmem:[%s6406_s8 + $0x140] sm:$0xf]  ;;  %285 = vst [vmem:[%s6413_s9 + $0x98] sm:$0xf] %v284_v38 }
  0x2f   : > { %287 = vst [vmem:[%s6413_s9 + $0x9c] sm:$0xf] %v286_v39  ;;  %289 = vst [vmem:[%s6413_s9 + $0xa0] sm:$0xf] %v288_v40  ;;  %v290_v41 = vld [vmem:[%s6406_s8 + $0x148] sm:$0xf] }
  0x30   : > { %v292_v42 = vld [vmem:[%s6406_s8 + $0x150] sm:$0xf]  ;;  %v294_v43 = vld [vmem:[%s6406_s8 + $0x158] sm:$0xf]  ;;  %291 = vst [vmem:[%s6413_s9 + $0xa4] sm:$0xf] %v290_v41 }
  0x31   : > { %293 = vst [vmem:[%s6413_s9 + $0xa8] sm:$0xf] %v292_v42  ;;  %295 = vst [vmem:[%s6413_s9 + $0xac] sm:$0xf] %v294_v43  ;;  %v296_v44 = vld [vmem:[%s6406_s8 + $0x160] sm:$0xf] }
  0x32   : > { %v298_v45 = vld [vmem:[%s6406_s8 + $0x168] sm:$0xf]  ;;  %v300_v46 = vld [vmem:[%s6406_s8 + $0x170] sm:$0xf]  ;;  %297 = vst [vmem:[%s6413_s9 + $0xb0] sm:$0xf] %v296_v44 }
  0x33   : > { %299 = vst [vmem:[%s6413_s9 + $0xb4] sm:$0xf] %v298_v45  ;;  %301 = vst [vmem:[%s6413_s9 + $0xb8] sm:$0xf] %v300_v46  ;;  %v302_v47 = vld [vmem:[%s6406_s8 + $0x178] sm:$0xf] }
  0x34   : > { %v304_v48 = vld [vmem:[%s6406_s8 + $0x180] sm:$0xf]  ;;  %v306_v49 = vld [vmem:[%s6406_s8 + $0x188] sm:$0xf]  ;;  %303 = vst [vmem:[%s6413_s9 + $0xbc] sm:$0xf] %v302_v47 }
  0x35   : > { %305 = vst [vmem:[%s6413_s9 + $0xc0] sm:$0xf] %v304_v48  ;;  %307 = vst [vmem:[%s6413_s9 + $0xc4] sm:$0xf] %v306_v49  ;;  %v308_v50 = vld [vmem:[%s6406_s8 + $0x190] sm:$0xf] }
  0x36   : > { %v310_v51 = vld [vmem:[%s6406_s8 + $0x198] sm:$0xf]  ;;  %v312_v52 = vld [vmem:[%s6406_s8 + $0x1a0] sm:$0xf]  ;;  %309 = vst [vmem:[%s6413_s9 + $0xc8] sm:$0xf] %v308_v50 }
  0x37   : > { %311 = vst [vmem:[%s6413_s9 + $0xcc] sm:$0xf] %v310_v51  ;;  %313 = vst [vmem:[%s6413_s9 + $0xd0] sm:$0xf] %v312_v52  ;;  %v314_v53 = vld [vmem:[%s6406_s8 + $0x1a8] sm:$0xf] }
  0x38   : > { %v316_v54 = vld [vmem:[%s6406_s8 + $0x1b0] sm:$0xf]  ;;  %v318_v55 = vld [vmem:[%s6406_s8 + $0x1b8] sm:$0xf]  ;;  %315 = vst [vmem:[%s6413_s9 + $0xd4] sm:$0xf] %v314_v53 }
  0x39   : > { %317 = vst [vmem:[%s6413_s9 + $0xd8] sm:$0xf] %v316_v54  ;;  %319 = vst [vmem:[%s6413_s9 + $0xdc] sm:$0xf] %v318_v55  ;;  %v320_v56 = vld [vmem:[%s6406_s8 + $0x1c0] sm:$0xf] }
  0x3a   : > { %v322_v57 = vld [vmem:[%s6406_s8 + $0x1c8] sm:$0xf]  ;;  %v324_v58 = vld [vmem:[%s6406_s8 + $0x1d0] sm:$0xf]  ;;  %321 = vst [vmem:[%s6413_s9 + $0xe0] sm:$0xf] %v320_v56 }
  0x3b   : > { %323 = vst [vmem:[%s6413_s9 + $0xe4] sm:$0xf] %v322_v57  ;;  %325 = vst [vmem:[%s6413_s9 + $0xe8] sm:$0xf] %v324_v58  ;;  %v326_v59 = vld [vmem:[%s6406_s8 + $0x1d8] sm:$0xf] }
  0x3c   : > { %v328_v60 = vld [vmem:[%s6406_s8 + $0x1e0] sm:$0xf]  ;;  %v330_v61 = vld [vmem:[%s6406_s8 + $0x1e8] sm:$0xf]  ;;  %327 = vst [vmem:[%s6413_s9 + $0xec] sm:$0xf] %v326_v59 }
  0x3d   : > { %329 = vst [vmem:[%s6413_s9 + $0xf0] sm:$0xf] %v328_v60  ;;  %331 = vst [vmem:[%s6413_s9 + $0xf4] sm:$0xf] %v330_v61  ;;  %v332_v62 = vld [vmem:[%s6406_s8 + $0x1f0] sm:$0xf] }
  0x3e   : > { %v334_v63 = vld [vmem:[%s6406_s8 + $0x1f8] sm:$0xf]  ;;  %v336_v0 = vld [vmem:[%s6406_s8 + $0x200] sm:$0xf]  ;;  %333 = vst [vmem:[%s6413_s9 + $0xf8] sm:$0xf] %v332_v62 }
  0x3f   : > { %335 = vst [vmem:[%s6413_s9 + $0xfc] sm:$0xf] %v334_v63  ;;  %337 = vst [vmem:[%s6413_s9 + $0x100] sm:$0xf] %v336_v0  ;;  %v338_v1 = vld [vmem:[%s6406_s8 + $0x208] sm:$0xf] }
  0x40   : > { %v340_v2 = vld [vmem:[%s6406_s8 + $0x210] sm:$0xf]  ;;  %v342_v3 = vld [vmem:[%s6406_s8 + $0x218] sm:$0xf]  ;;  %339 = vst [vmem:[%s6413_s9 + $0x104] sm:$0xf] %v338_v1 }
  0x41   : > { %341 = vst [vmem:[%s6413_s9 + $0x108] sm:$0xf] %v340_v2  ;;  %343 = vst [vmem:[%s6413_s9 + $0x10c] sm:$0xf] %v342_v3  ;;  %v344_v4 = vld [vmem:[%s6406_s8 + $0x220] sm:$0xf] }
  0x42   : > { %v346_v5 = vld [vmem:[%s6406_s8 + $0x228] sm:$0xf]  ;;  %v348_v6 = vld [vmem:[%s6406_s8 + $0x230] sm:$0xf]  ;;  %345 = vst [vmem:[%s6413_s9 + $0x110] sm:$0xf] %v344_v4 }
  0x43   : > { %347 = vst [vmem:[%s6413_s9 + $0x114] sm:$0xf] %v346_v5  ;;  %349 = vst [vmem:[%s6413_s9 + $0x118] sm:$0xf] %v348_v6  ;;  %v350_v7 = vld [vmem:[%s6406_s8 + $0x238] sm:$0xf] }
  0x44   : > { %v352_v8 = vld [vmem:[%s6406_s8 + $0x240] sm:$0xf]  ;;  %v354_v9 = vld [vmem:[%s6406_s8 + $0x248] sm:$0xf]  ;;  %351 = vst [vmem:[%s6413_s9 + $0x11c] sm:$0xf] %v350_v7 }
  0x45   : > { %353 = vst [vmem:[%s6413_s9 + $0x120] sm:$0xf] %v352_v8  ;;  %355 = vst [vmem:[%s6413_s9 + $0x124] sm:$0xf] %v354_v9  ;;  %v356_v10 = vld [vmem:[%s6406_s8 + $0x250] sm:$0xf] }
  0x46   : > { %v358_v11 = vld [vmem:[%s6406_s8 + $0x258] sm:$0xf]  ;;  %v360_v12 = vld [vmem:[%s6406_s8 + $0x260] sm:$0xf]  ;;  %357 = vst [vmem:[%s6413_s9 + $0x128] sm:$0xf] %v356_v10 }
  0x47   : > { %359 = vst [vmem:[%s6413_s9 + $0x12c] sm:$0xf] %v358_v11  ;;  %361 = vst [vmem:[%s6413_s9 + $0x130] sm:$0xf] %v360_v12  ;;  %v362_v13 = vld [vmem:[%s6406_s8 + $0x268] sm:$0xf] }
  0x48   : > { %v364_v14 = vld [vmem:[%s6406_s8 + $0x270] sm:$0xf]  ;;  %v366_v15 = vld [vmem:[%s6406_s8 + $0x278] sm:$0xf]  ;;  %363 = vst [vmem:[%s6413_s9 + $0x134] sm:$0xf] %v362_v13 }
  0x49   : > { %365 = vst [vmem:[%s6413_s9 + $0x138] sm:$0xf] %v364_v14  ;;  %367 = vst [vmem:[%s6413_s9 + $0x13c] sm:$0xf] %v366_v15  ;;  %v368_v16 = vld [vmem:[%s6406_s8 + $0x280] sm:$0xf] }
  0x4a   : > { %v370_v17 = vld [vmem:[%s6406_s8 + $0x288] sm:$0xf]  ;;  %v372_v18 = vld [vmem:[%s6406_s8 + $0x290] sm:$0xf]  ;;  %369 = vst [vmem:[%s6413_s9 + $0x140] sm:$0xf] %v368_v16 }
  0x4b   : > { %371 = vst [vmem:[%s6413_s9 + $0x144] sm:$0xf] %v370_v17  ;;  %373 = vst [vmem:[%s6413_s9 + $0x148] sm:$0xf] %v372_v18  ;;  %v374_v19 = vld [vmem:[%s6406_s8 + $0x298] sm:$0xf] }
  0x4c   : > { %v376_v20 = vld [vmem:[%s6406_s8 + $0x2a0] sm:$0xf]  ;;  %v378_v21 = vld [vmem:[%s6406_s8 + $0x2a8] sm:$0xf]  ;;  %375 = vst [vmem:[%s6413_s9 + $0x14c] sm:$0xf] %v374_v19 }
  0x4d   : > { %377 = vst [vmem:[%s6413_s9 + $0x150] sm:$0xf] %v376_v20  ;;  %379 = vst [vmem:[%s6413_s9 + $0x154] sm:$0xf] %v378_v21  ;;  %v380_v22 = vld [vmem:[%s6406_s8 + $0x2b0] sm:$0xf] }
  0x4e   : > { %v382_v23 = vld [vmem:[%s6406_s8 + $0x2b8] sm:$0xf]  ;;  %v384_v24 = vld [vmem:[%s6406_s8 + $0x2c0] sm:$0xf]  ;;  %381 = vst [vmem:[%s6413_s9 + $0x158] sm:$0xf] %v380_v22 }
  0x4f   : > { %383 = vst [vmem:[%s6413_s9 + $0x15c] sm:$0xf] %v382_v23  ;;  %385 = vst [vmem:[%s6413_s9 + $0x160] sm:$0xf] %v384_v24  ;;  %v386_v25 = vld [vmem:[%s6406_s8 + $0x2c8] sm:$0xf] }
  0x50   : > { %v388_v26 = vld [vmem:[%s6406_s8 + $0x2d0] sm:$0xf]  ;;  %v390_v27 = vld [vmem:[%s6406_s8 + $0x2d8] sm:$0xf]  ;;  %387 = vst [vmem:[%s6413_s9 + $0x164] sm:$0xf] %v386_v25 }
  0x51   : > { %389 = vst [vmem:[%s6413_s9 + $0x168] sm:$0xf] %v388_v26  ;;  %391 = vst [vmem:[%s6413_s9 + $0x16c] sm:$0xf] %v390_v27  ;;  %v392_v28 = vld [vmem:[%s6406_s8 + $0x2e0] sm:$0xf] }
  0x52   : > { %v394_v29 = vld [vmem:[%s6406_s8 + $0x2e8] sm:$0xf]  ;;  %v396_v30 = vld [vmem:[%s6406_s8 + $0x2f0] sm:$0xf]  ;;  %393 = vst [vmem:[%s6413_s9 + $0x170] sm:$0xf] %v392_v28 }
  0x53   : > { %395 = vst [vmem:[%s6413_s9 + $0x174] sm:$0xf] %v394_v29  ;;  %397 = vst [vmem:[%s6413_s9 + $0x178] sm:$0xf] %v396_v30  ;;  %v398_v31 = vld [vmem:[%s6406_s8 + $0x2f8] sm:$0xf] }
  0x54   : > { %v400_v32 = vld [vmem:[%s6406_s8 + $0x300] sm:$0xf]  ;;  %v402_v33 = vld [vmem:[%s6406_s8 + $0x308] sm:$0xf]  ;;  %399 = vst [vmem:[%s6413_s9 + $0x17c] sm:$0xf] %v398_v31 }
  0x55   : > { %401 = vst [vmem:[%s6413_s9 + $0x180] sm:$0xf] %v400_v32  ;;  %403 = vst [vmem:[%s6413_s9 + $0x184] sm:$0xf] %v402_v33  ;;  %v404_v34 = vld [vmem:[%s6406_s8 + $0x310] sm:$0xf] }
  0x56   : > { %v406_v35 = vld [vmem:[%s6406_s8 + $0x318] sm:$0xf]  ;;  %v408_v36 = vld [vmem:[%s6406_s8 + $0x320] sm:$0xf]  ;;  %405 = vst [vmem:[%s6413_s9 + $0x188] sm:$0xf] %v404_v34 }
  0x57   : > { %407 = vst [vmem:[%s6413_s9 + $0x18c] sm:$0xf] %v406_v35  ;;  %409 = vst [vmem:[%s6413_s9 + $0x190] sm:$0xf] %v408_v36  ;;  %v410_v37 = vld [vmem:[%s6406_s8 + $0x328] sm:$0xf] }
  0x58   : > { %v412_v38 = vld [vmem:[%s6406_s8 + $0x330] sm:$0xf]  ;;  %v414_v39 = vld [vmem:[%s6406_s8 + $0x338] sm:$0xf]  ;;  %411 = vst [vmem:[%s6413_s9 + $0x194] sm:$0xf] %v410_v37 }
  0x59   : > { %413 = vst [vmem:[%s6413_s9 + $0x198] sm:$0xf] %v412_v38  ;;  %415 = vst [vmem:[%s6413_s9 + $0x19c] sm:$0xf] %v414_v39  ;;  %v416_v40 = vld [vmem:[%s6406_s8 + $0x340] sm:$0xf] }
  0x5a   : > { %v418_v41 = vld [vmem:[%s6406_s8 + $0x348] sm:$0xf]  ;;  %v420_v42 = vld [vmem:[%s6406_s8 + $0x350] sm:$0xf]  ;;  %417 = vst [vmem:[%s6413_s9 + $0x1a0] sm:$0xf] %v416_v40 }
  0x5b   : > { %419 = vst [vmem:[%s6413_s9 + $0x1a4] sm:$0xf] %v418_v41  ;;  %421 = vst [vmem:[%s6413_s9 + $0x1a8] sm:$0xf] %v420_v42  ;;  %v422_v43 = vld [vmem:[%s6406_s8 + $0x358] sm:$0xf] }
  0x5c   : > { %v424_v44 = vld [vmem:[%s6406_s8 + $0x360] sm:$0xf]  ;;  %v426_v45 = vld [vmem:[%s6406_s8 + $0x368] sm:$0xf]  ;;  %423 = vst [vmem:[%s6413_s9 + $0x1ac] sm:$0xf] %v422_v43 }
  0x5d   : > { %425 = vst [vmem:[%s6413_s9 + $0x1b0] sm:$0xf] %v424_v44  ;;  %427 = vst [vmem:[%s6413_s9 + $0x1b4] sm:$0xf] %v426_v45  ;;  %v428_v46 = vld [vmem:[%s6406_s8 + $0x370] sm:$0xf] }
  0x5e   : > { %v430_v47 = vld [vmem:[%s6406_s8 + $0x378] sm:$0xf]  ;;  %v432_v48 = vld [vmem:[%s6406_s8 + $0x380] sm:$0xf]  ;;  %429 = vst [vmem:[%s6413_s9 + $0x1b8] sm:$0xf] %v428_v46 }
  0x5f   : > { %431 = vst [vmem:[%s6413_s9 + $0x1bc] sm:$0xf] %v430_v47  ;;  %433 = vst [vmem:[%s6413_s9 + $0x1c0] sm:$0xf] %v432_v48  ;;  %v434_v49 = vld [vmem:[%s6406_s8 + $0x388] sm:$0xf] }
  0x60   : > { %v436_v50 = vld [vmem:[%s6406_s8 + $0x390] sm:$0xf]  ;;  %v438_v51 = vld [vmem:[%s6406_s8 + $0x398] sm:$0xf]  ;;  %435 = vst [vmem:[%s6413_s9 + $0x1c4] sm:$0xf] %v434_v49 }
  0x61   : > { %437 = vst [vmem:[%s6413_s9 + $0x1c8] sm:$0xf] %v436_v50  ;;  %439 = vst [vmem:[%s6413_s9 + $0x1cc] sm:$0xf] %v438_v51  ;;  %v440_v52 = vld [vmem:[%s6406_s8 + $0x3a0] sm:$0xf] }
  0x62   : > { %v442_v53 = vld [vmem:[%s6406_s8 + $0x3a8] sm:$0xf]  ;;  %v444_v54 = vld [vmem:[%s6406_s8 + $0x3b0] sm:$0xf]  ;;  %441 = vst [vmem:[%s6413_s9 + $0x1d0] sm:$0xf] %v440_v52 }
  0x63   : > { %443 = vst [vmem:[%s6413_s9 + $0x1d4] sm:$0xf] %v442_v53  ;;  %445 = vst [vmem:[%s6413_s9 + $0x1d8] sm:$0xf] %v444_v54  ;;  %v446_v55 = vld [vmem:[%s6406_s8 + $0x3b8] sm:$0xf] }
  0x64   : > { %v448_v56 = vld [vmem:[%s6406_s8 + $0x3c0] sm:$0xf]  ;;  %v450_v57 = vld [vmem:[%s6406_s8 + $0x3c8] sm:$0xf]  ;;  %447 = vst [vmem:[%s6413_s9 + $0x1dc] sm:$0xf] %v446_v55 }
  0x65   : > { %449 = vst [vmem:[%s6413_s9 + $0x1e0] sm:$0xf] %v448_v56  ;;  %451 = vst [vmem:[%s6413_s9 + $0x1e4] sm:$0xf] %v450_v57  ;;  %v452_v58 = vld [vmem:[%s6406_s8 + $0x3d0] sm:$0xf] }
  0x66   : > { %v454_v59 = vld [vmem:[%s6406_s8 + $0x3d8] sm:$0xf]  ;;  %v456_v60 = vld [vmem:[%s6406_s8 + $0x3e0] sm:$0xf]  ;;  %453 = vst [vmem:[%s6413_s9 + $0x1e8] sm:$0xf] %v452_v58 }
  0x67   : > { %455 = vst [vmem:[%s6413_s9 + $0x1ec] sm:$0xf] %v454_v59  ;;  %457 = vst [vmem:[%s6413_s9 + $0x1f0] sm:$0xf] %v456_v60  ;;  %v458_v61 = vld [vmem:[%s6406_s8 + $0x3e8] sm:$0xf] }
  0x68   : > { %v460_v62 = vld [vmem:[%s6406_s8 + $0x3f0] sm:$0xf]  ;;  %v462_v63 = vld [vmem:[%s6406_s8 + $0x3f8] sm:$0xf]  ;;  %459 = vst [vmem:[%s6413_s9 + $0x1f4] sm:$0xf] %v458_v61 }
  0x69   : > { %461 = vst [vmem:[%s6413_s9 + $0x1f8] sm:$0xf] %v460_v62  ;;  %463 = vst [vmem:[%s6413_s9 + $0x1fc] sm:$0xf] %v462_v63  ;;  %v464_v0 = vld [vmem:[%s6406_s8 + $0x400] sm:$0xf] }
  0x6a   : > { %v466_v1 = vld [vmem:[%s6406_s8 + $0x408] sm:$0xf]  ;;  %v468_v2 = vld [vmem:[%s6406_s8 + $0x410] sm:$0xf]  ;;  %465 = vst [vmem:[%s6413_s9 + $0x200] sm:$0xf] %v464_v0 }
  0x6b   : > { %467 = vst [vmem:[%s6413_s9 + $0x204] sm:$0xf] %v466_v1  ;;  %469 = vst [vmem:[%s6413_s9 + $0x208] sm:$0xf] %v468_v2  ;;  %v470_v3 = vld [vmem:[%s6406_s8 + $0x418] sm:$0xf] }
  0x6c   : > { %v472_v4 = vld [vmem:[%s6406_s8 + $0x420] sm:$0xf]  ;;  %v474_v5 = vld [vmem:[%s6406_s8 + $0x428] sm:$0xf]  ;;  %471 = vst [vmem:[%s6413_s9 + $0x20c] sm:$0xf] %v470_v3 }
  0x6d   : > { %473 = vst [vmem:[%s6413_s9 + $0x210] sm:$0xf] %v472_v4  ;;  %475 = vst [vmem:[%s6413_s9 + $0x214] sm:$0xf] %v474_v5  ;;  %v476_v6 = vld [vmem:[%s6406_s8 + $0x430] sm:$0xf] }
  0x6e   : > { %v478_v7 = vld [vmem:[%s6406_s8 + $0x438] sm:$0xf]  ;;  %v480_v8 = vld [vmem:[%s6406_s8 + $0x440] sm:$0xf]  ;;  %477 = vst [vmem:[%s6413_s9 + $0x218] sm:$0xf] %v476_v6 }
  0x6f   : > { %479 = vst [vmem:[%s6413_s9 + $0x21c] sm:$0xf] %v478_v7  ;;  %481 = vst [vmem:[%s6413_s9 + $0x220] sm:$0xf] %v480_v8  ;;  %v482_v9 = vld [vmem:[%s6406_s8 + $0x448] sm:$0xf] }
  0x70   : > { %v484_v10 = vld [vmem:[%s6406_s8 + $0x450] sm:$0xf]  ;;  %v486_v11 = vld [vmem:[%s6406_s8 + $0x458] sm:$0xf]  ;;  %483 = vst [vmem:[%s6413_s9 + $0x224] sm:$0xf] %v482_v9 }
  0x71   : > { %485 = vst [vmem:[%s6413_s9 + $0x228] sm:$0xf] %v484_v10  ;;  %487 = vst [vmem:[%s6413_s9 + $0x22c] sm:$0xf] %v486_v11  ;;  %v488_v12 = vld [vmem:[%s6406_s8 + $0x460] sm:$0xf] }
  0x72   : > { %v490_v13 = vld [vmem:[%s6406_s8 + $0x468] sm:$0xf]  ;;  %v492_v14 = vld [vmem:[%s6406_s8 + $0x470] sm:$0xf]  ;;  %489 = vst [vmem:[%s6413_s9 + $0x230] sm:$0xf] %v488_v12 }
  0x73   : > { %491 = vst [vmem:[%s6413_s9 + $0x234] sm:$0xf] %v490_v13  ;;  %493 = vst [vmem:[%s6413_s9 + $0x238] sm:$0xf] %v492_v14  ;;  %v494_v15 = vld [vmem:[%s6406_s8 + $0x478] sm:$0xf] }
  0x74   : > { %v496_v16 = vld [vmem:[%s6406_s8 + $0x480] sm:$0xf]  ;;  %v498_v17 = vld [vmem:[%s6406_s8 + $0x488] sm:$0xf]  ;;  %495 = vst [vmem:[%s6413_s9 + $0x23c] sm:$0xf] %v494_v15 }
  0x75   : > { %497 = vst [vmem:[%s6413_s9 + $0x240] sm:$0xf] %v496_v16  ;;  %499 = vst [vmem:[%s6413_s9 + $0x244] sm:$0xf] %v498_v17  ;;  %v500_v18 = vld [vmem:[%s6406_s8 + $0x490] sm:$0xf] }
  0x76   : > { %v502_v19 = vld [vmem:[%s6406_s8 + $0x498] sm:$0xf]  ;;  %v504_v20 = vld [vmem:[%s6406_s8 + $0x4a0] sm:$0xf]  ;;  %501 = vst [vmem:[%s6413_s9 + $0x248] sm:$0xf] %v500_v18 }
  0x77   : > { %503 = vst [vmem:[%s6413_s9 + $0x24c] sm:$0xf] %v502_v19  ;;  %505 = vst [vmem:[%s6413_s9 + $0x250] sm:$0xf] %v504_v20  ;;  %v506_v21 = vld [vmem:[%s6406_s8 + $0x4a8] sm:$0xf] }
  0x78   : > { %v508_v22 = vld [vmem:[%s6406_s8 + $0x4b0] sm:$0xf]  ;;  %v510_v23 = vld [vmem:[%s6406_s8 + $0x4b8] sm:$0xf]  ;;  %507 = vst [vmem:[%s6413_s9 + $0x254] sm:$0xf] %v506_v21 }
  0x79   : > { %509 = vst [vmem:[%s6413_s9 + $0x258] sm:$0xf] %v508_v22  ;;  %511 = vst [vmem:[%s6413_s9 + $0x25c] sm:$0xf] %v510_v23  ;;  %v512_v24 = vld [vmem:[%s6406_s8 + $0x4c0] sm:$0xf] }
  0x7a   : > { %v514_v25 = vld [vmem:[%s6406_s8 + $0x4c8] sm:$0xf]  ;;  %v516_v26 = vld [vmem:[%s6406_s8 + $0x4d0] sm:$0xf]  ;;  %513 = vst [vmem:[%s6413_s9 + $0x260] sm:$0xf] %v512_v24 }
  0x7b   : > { %515 = vst [vmem:[%s6413_s9 + $0x264] sm:$0xf] %v514_v25  ;;  %517 = vst [vmem:[%s6413_s9 + $0x268] sm:$0xf] %v516_v26  ;;  %v518_v27 = vld [vmem:[%s6406_s8 + $0x4d8] sm:$0xf] }
  0x7c   : > { %v520_v28 = vld [vmem:[%s6406_s8 + $0x4e0] sm:$0xf]  ;;  %v522_v29 = vld [vmem:[%s6406_s8 + $0x4e8] sm:$0xf]  ;;  %519 = vst [vmem:[%s6413_s9 + $0x26c] sm:$0xf] %v518_v27 }
  0x7d   : > { %521 = vst [vmem:[%s6413_s9 + $0x270] sm:$0xf] %v520_v28  ;;  %523 = vst [vmem:[%s6413_s9 + $0x274] sm:$0xf] %v522_v29  ;;  %v524_v30 = vld [vmem:[%s6406_s8 + $0x4f0] sm:$0xf] }
  0x7e   : > { %v526_v31 = vld [vmem:[%s6406_s8 + $0x4f8] sm:$0xf]  ;;  %v528_v32 = vld [vmem:[%s6406_s8 + $0x500] sm:$0xf]  ;;  %525 = vst [vmem:[%s6413_s9 + $0x278] sm:$0xf] %v524_v30 }
  0x7f   : > { %527 = vst [vmem:[%s6413_s9 + $0x27c] sm:$0xf] %v526_v31  ;;  %529 = vst [vmem:[%s6413_s9 + $0x280] sm:$0xf] %v528_v32  ;;  %v530_v33 = vld [vmem:[%s6406_s8 + $0x508] sm:$0xf] }
  0x80   : > { %v532_v34 = vld [vmem:[%s6406_s8 + $0x510] sm:$0xf]  ;;  %v534_v35 = vld [vmem:[%s6406_s8 + $0x518] sm:$0xf]  ;;  %531 = vst [vmem:[%s6413_s9 + $0x284] sm:$0xf] %v530_v33 }
  0x81   : > { %533 = vst [vmem:[%s6413_s9 + $0x288] sm:$0xf] %v532_v34  ;;  %535 = vst [vmem:[%s6413_s9 + $0x28c] sm:$0xf] %v534_v35  ;;  %v536_v36 = vld [vmem:[%s6406_s8 + $0x520] sm:$0xf] }
  0x82   : > { %v538_v37 = vld [vmem:[%s6406_s8 + $0x528] sm:$0xf]  ;;  %v540_v38 = vld [vmem:[%s6406_s8 + $0x530] sm:$0xf]  ;;  %537 = vst [vmem:[%s6413_s9 + $0x290] sm:$0xf] %v536_v36 }
  0x83   : > { %539 = vst [vmem:[%s6413_s9 + $0x294] sm:$0xf] %v538_v37  ;;  %541 = vst [vmem:[%s6413_s9 + $0x298] sm:$0xf] %v540_v38  ;;  %v542_v39 = vld [vmem:[%s6406_s8 + $0x538] sm:$0xf] }
  0x84   : > { %v544_v40 = vld [vmem:[%s6406_s8 + $0x540] sm:$0xf]  ;;  %v546_v41 = vld [vmem:[%s6406_s8 + $0x548] sm:$0xf]  ;;  %543 = vst [vmem:[%s6413_s9 + $0x29c] sm:$0xf] %v542_v39 }
  0x85   : > { %545 = vst [vmem:[%s6413_s9 + $0x2a0] sm:$0xf] %v544_v40  ;;  %547 = vst [vmem:[%s6413_s9 + $0x2a4] sm:$0xf] %v546_v41  ;;  %v548_v42 = vld [vmem:[%s6406_s8 + $0x550] sm:$0xf] }
  0x86   : > { %v550_v43 = vld [vmem:[%s6406_s8 + $0x558] sm:$0xf]  ;;  %v552_v44 = vld [vmem:[%s6406_s8 + $0x560] sm:$0xf]  ;;  %549 = vst [vmem:[%s6413_s9 + $0x2a8] sm:$0xf] %v548_v42 }
  0x87   : > { %551 = vst [vmem:[%s6413_s9 + $0x2ac] sm:$0xf] %v550_v43  ;;  %553 = vst [vmem:[%s6413_s9 + $0x2b0] sm:$0xf] %v552_v44  ;;  %v554_v45 = vld [vmem:[%s6406_s8 + $0x568] sm:$0xf] }
  0x88   : > { %v556_v46 = vld [vmem:[%s6406_s8 + $0x570] sm:$0xf]  ;;  %v558_v47 = vld [vmem:[%s6406_s8 + $0x578] sm:$0xf]  ;;  %555 = vst [vmem:[%s6413_s9 + $0x2b4] sm:$0xf] %v554_v45 }
  0x89   : > { %557 = vst [vmem:[%s6413_s9 + $0x2b8] sm:$0xf] %v556_v46  ;;  %559 = vst [vmem:[%s6413_s9 + $0x2bc] sm:$0xf] %v558_v47  ;;  %v560_v48 = vld [vmem:[%s6406_s8 + $0x580] sm:$0xf] }
  0x8a   : > { %v562_v49 = vld [vmem:[%s6406_s8 + $0x588] sm:$0xf]  ;;  %v564_v50 = vld [vmem:[%s6406_s8 + $0x590] sm:$0xf]  ;;  %561 = vst [vmem:[%s6413_s9 + $0x2c0] sm:$0xf] %v560_v48 }
  0x8b   : > { %563 = vst [vmem:[%s6413_s9 + $0x2c4] sm:$0xf] %v562_v49  ;;  %565 = vst [vmem:[%s6413_s9 + $0x2c8] sm:$0xf] %v564_v50  ;;  %v566_v51 = vld [vmem:[%s6406_s8 + $0x598] sm:$0xf] }
  0x8c   : > { %v568_v52 = vld [vmem:[%s6406_s8 + $0x5a0] sm:$0xf]  ;;  %v570_v53 = vld [vmem:[%s6406_s8 + $0x5a8] sm:$0xf]  ;;  %567 = vst [vmem:[%s6413_s9 + $0x2cc] sm:$0xf] %v566_v51 }
  0x8d   : > { %569 = vst [vmem:[%s6413_s9 + $0x2d0] sm:$0xf] %v568_v52  ;;  %571 = vst [vmem:[%s6413_s9 + $0x2d4] sm:$0xf] %v570_v53  ;;  %v572_v54 = vld [vmem:[%s6406_s8 + $0x5b0] sm:$0xf] }
  0x8e   : > { %v574_v55 = vld [vmem:[%s6406_s8 + $0x5b8] sm:$0xf]  ;;  %v576_v56 = vld [vmem:[%s6406_s8 + $0x5c0] sm:$0xf]  ;;  %573 = vst [vmem:[%s6413_s9 + $0x2d8] sm:$0xf] %v572_v54 }
  0x8f   : > { %575 = vst [vmem:[%s6413_s9 + $0x2dc] sm:$0xf] %v574_v55  ;;  %577 = vst [vmem:[%s6413_s9 + $0x2e0] sm:$0xf] %v576_v56  ;;  %v578_v57 = vld [vmem:[%s6406_s8 + $0x5c8] sm:$0xf] }
  0x90   : > { %v580_v58 = vld [vmem:[%s6406_s8 + $0x5d0] sm:$0xf]  ;;  %v582_v59 = vld [vmem:[%s6406_s8 + $0x5d8] sm:$0xf]  ;;  %579 = vst [vmem:[%s6413_s9 + $0x2e4] sm:$0xf] %v578_v57 }
  0x91   : > { %581 = vst [vmem:[%s6413_s9 + $0x2e8] sm:$0xf] %v580_v58  ;;  %583 = vst [vmem:[%s6413_s9 + $0x2ec] sm:$0xf] %v582_v59  ;;  %v584_v60 = vld [vmem:[%s6406_s8 + $0x5e0] sm:$0xf] }
  0x92   : > { %v586_v61 = vld [vmem:[%s6406_s8 + $0x5e8] sm:$0xf]  ;;  %v588_v62 = vld [vmem:[%s6406_s8 + $0x5f0] sm:$0xf]  ;;  %585 = vst [vmem:[%s6413_s9 + $0x2f0] sm:$0xf] %v584_v60 }
  0x93   : > { %587 = vst [vmem:[%s6413_s9 + $0x2f4] sm:$0xf] %v586_v61  ;;  %589 = vst [vmem:[%s6413_s9 + $0x2f8] sm:$0xf] %v588_v62  ;;  %v590_v63 = vld [vmem:[%s6406_s8 + $0x5f8] sm:$0xf] }
  0x94   : > { %v592_v0 = vld [vmem:[%s6406_s8 + $0x600] sm:$0xf]  ;;  %v594_v1 = vld [vmem:[%s6406_s8 + $0x608] sm:$0xf]  ;;  %591 = vst [vmem:[%s6413_s9 + $0x2fc] sm:$0xf] %v590_v63 }
  0x95   : > { %593 = vst [vmem:[%s6413_s9 + $0x300] sm:$0xf] %v592_v0  ;;  %595 = vst [vmem:[%s6413_s9 + $0x304] sm:$0xf] %v594_v1  ;;  %v596_v2 = vld [vmem:[%s6406_s8 + $0x610] sm:$0xf] }
  0x96   : > { %v598_v3 = vld [vmem:[%s6406_s8 + $0x618] sm:$0xf]  ;;  %v600_v4 = vld [vmem:[%s6406_s8 + $0x620] sm:$0xf]  ;;  %597 = vst [vmem:[%s6413_s9 + $0x308] sm:$0xf] %v596_v2 }
  0x97   : > { %599 = vst [vmem:[%s6413_s9 + $0x30c] sm:$0xf] %v598_v3  ;;  %601 = vst [vmem:[%s6413_s9 + $0x310] sm:$0xf] %v600_v4  ;;  %v602_v5 = vld [vmem:[%s6406_s8 + $0x628] sm:$0xf] }
  0x98   : > { %v604_v6 = vld [vmem:[%s6406_s8 + $0x630] sm:$0xf]  ;;  %v606_v7 = vld [vmem:[%s6406_s8 + $0x638] sm:$0xf]  ;;  %603 = vst [vmem:[%s6413_s9 + $0x314] sm:$0xf] %v602_v5 }
  0x99   : > { %605 = vst [vmem:[%s6413_s9 + $0x318] sm:$0xf] %v604_v6  ;;  %607 = vst [vmem:[%s6413_s9 + $0x31c] sm:$0xf] %v606_v7  ;;  %v608_v8 = vld [vmem:[%s6406_s8 + $0x640] sm:$0xf] }
  0x9a   : > { %v610_v9 = vld [vmem:[%s6406_s8 + $0x648] sm:$0xf]  ;;  %v612_v10 = vld [vmem:[%s6406_s8 + $0x650] sm:$0xf]  ;;  %609 = vst [vmem:[%s6413_s9 + $0x320] sm:$0xf] %v608_v8 }
  0x9b   : > { %611 = vst [vmem:[%s6413_s9 + $0x324] sm:$0xf] %v610_v9  ;;  %613 = vst [vmem:[%s6413_s9 + $0x328] sm:$0xf] %v612_v10  ;;  %v614_v11 = vld [vmem:[%s6406_s8 + $0x658] sm:$0xf] }
  0x9c   : > { %v616_v12 = vld [vmem:[%s6406_s8 + $0x660] sm:$0xf]  ;;  %v618_v13 = vld [vmem:[%s6406_s8 + $0x668] sm:$0xf]  ;;  %615 = vst [vmem:[%s6413_s9 + $0x32c] sm:$0xf] %v614_v11 }
  0x9d   : > { %617 = vst [vmem:[%s6413_s9 + $0x330] sm:$0xf] %v616_v12  ;;  %619 = vst [vmem:[%s6413_s9 + $0x334] sm:$0xf] %v618_v13  ;;  %v620_v14 = vld [vmem:[%s6406_s8 + $0x670] sm:$0xf] }
  0x9e   : > { %v622_v15 = vld [vmem:[%s6406_s8 + $0x678] sm:$0xf]  ;;  %v624_v16 = vld [vmem:[%s6406_s8 + $0x680] sm:$0xf]  ;;  %621 = vst [vmem:[%s6413_s9 + $0x338] sm:$0xf] %v620_v14 }
  0x9f   : > { %623 = vst [vmem:[%s6413_s9 + $0x33c] sm:$0xf] %v622_v15  ;;  %625 = vst [vmem:[%s6413_s9 + $0x340] sm:$0xf] %v624_v16  ;;  %v626_v17 = vld [vmem:[%s6406_s8 + $0x688] sm:$0xf] }
  0xa0   : > { %v628_v18 = vld [vmem:[%s6406_s8 + $0x690] sm:$0xf]  ;;  %v630_v19 = vld [vmem:[%s6406_s8 + $0x698] sm:$0xf]  ;;  %627 = vst [vmem:[%s6413_s9 + $0x344] sm:$0xf] %v626_v17 }
  0xa1   : > { %629 = vst [vmem:[%s6413_s9 + $0x348] sm:$0xf] %v628_v18  ;;  %631 = vst [vmem:[%s6413_s9 + $0x34c] sm:$0xf] %v630_v19  ;;  %v632_v20 = vld [vmem:[%s6406_s8 + $0x6a0] sm:$0xf] }
  0xa2   : > { %v634_v21 = vld [vmem:[%s6406_s8 + $0x6a8] sm:$0xf]  ;;  %v636_v22 = vld [vmem:[%s6406_s8 + $0x6b0] sm:$0xf]  ;;  %633 = vst [vmem:[%s6413_s9 + $0x350] sm:$0xf] %v632_v20 }
  0xa3   : > { %635 = vst [vmem:[%s6413_s9 + $0x354] sm:$0xf] %v634_v21  ;;  %637 = vst [vmem:[%s6413_s9 + $0x358] sm:$0xf] %v636_v22  ;;  %v638_v23 = vld [vmem:[%s6406_s8 + $0x6b8] sm:$0xf] }
  0xa4   : > { %v640_v24 = vld [vmem:[%s6406_s8 + $0x6c0] sm:$0xf]  ;;  %v642_v25 = vld [vmem:[%s6406_s8 + $0x6c8] sm:$0xf]  ;;  %639 = vst [vmem:[%s6413_s9 + $0x35c] sm:$0xf] %v638_v23 }
  0xa5   : > { %641 = vst [vmem:[%s6413_s9 + $0x360] sm:$0xf] %v640_v24  ;;  %643 = vst [vmem:[%s6413_s9 + $0x364] sm:$0xf] %v642_v25  ;;  %v644_v26 = vld [vmem:[%s6406_s8 + $0x6d0] sm:$0xf] }
  0xa6   : > { %v646_v27 = vld [vmem:[%s6406_s8 + $0x6d8] sm:$0xf]  ;;  %v648_v28 = vld [vmem:[%s6406_s8 + $0x6e0] sm:$0xf]  ;;  %645 = vst [vmem:[%s6413_s9 + $0x368] sm:$0xf] %v644_v26 }
  0xa7   : > { %647 = vst [vmem:[%s6413_s9 + $0x36c] sm:$0xf] %v646_v27  ;;  %649 = vst [vmem:[%s6413_s9 + $0x370] sm:$0xf] %v648_v28  ;;  %v650_v29 = vld [vmem:[%s6406_s8 + $0x6e8] sm:$0xf] }
  0xa8   : > { %v652_v30 = vld [vmem:[%s6406_s8 + $0x6f0] sm:$0xf]  ;;  %v654_v31 = vld [vmem:[%s6406_s8 + $0x6f8] sm:$0xf]  ;;  %651 = vst [vmem:[%s6413_s9 + $0x374] sm:$0xf] %v650_v29 }
  0xa9   : > { %653 = vst [vmem:[%s6413_s9 + $0x378] sm:$0xf] %v652_v30  ;;  %655 = vst [vmem:[%s6413_s9 + $0x37c] sm:$0xf] %v654_v31  ;;  %v656_v32 = vld [vmem:[%s6406_s8 + $0x700] sm:$0xf] }
  0xaa   : > { %v658_v33 = vld [vmem:[%s6406_s8 + $0x708] sm:$0xf]  ;;  %v660_v34 = vld [vmem:[%s6406_s8 + $0x710] sm:$0xf]  ;;  %657 = vst [vmem:[%s6413_s9 + $0x380] sm:$0xf] %v656_v32 }
  0xab   : > { %659 = vst [vmem:[%s6413_s9 + $0x384] sm:$0xf] %v658_v33  ;;  %661 = vst [vmem:[%s6413_s9 + $0x388] sm:$0xf] %v660_v34  ;;  %v662_v35 = vld [vmem:[%s6406_s8 + $0x718] sm:$0xf] }
  0xac   : > { %v664_v36 = vld [vmem:[%s6406_s8 + $0x720] sm:$0xf]  ;;  %v666_v37 = vld [vmem:[%s6406_s8 + $0x728] sm:$0xf]  ;;  %663 = vst [vmem:[%s6413_s9 + $0x38c] sm:$0xf] %v662_v35 }
  0xad   : > { %665 = vst [vmem:[%s6413_s9 + $0x390] sm:$0xf] %v664_v36  ;;  %667 = vst [vmem:[%s6413_s9 + $0x394] sm:$0xf] %v666_v37  ;;  %v668_v38 = vld [vmem:[%s6406_s8 + $0x730] sm:$0xf] }
  0xae   : > { %v670_v39 = vld [vmem:[%s6406_s8 + $0x738] sm:$0xf]  ;;  %v672_v40 = vld [vmem:[%s6406_s8 + $0x740] sm:$0xf]  ;;  %669 = vst [vmem:[%s6413_s9 + $0x398] sm:$0xf] %v668_v38 }
  0xaf   : > { %671 = vst [vmem:[%s6413_s9 + $0x39c] sm:$0xf] %v670_v39  ;;  %673 = vst [vmem:[%s6413_s9 + $0x3a0] sm:$0xf] %v672_v40  ;;  %v674_v41 = vld [vmem:[%s6406_s8 + $0x748] sm:$0xf] }
  0xb0   : > { %v676_v42 = vld [vmem:[%s6406_s8 + $0x750] sm:$0xf]  ;;  %v678_v43 = vld [vmem:[%s6406_s8 + $0x758] sm:$0xf]  ;;  %675 = vst [vmem:[%s6413_s9 + $0x3a4] sm:$0xf] %v674_v41 }
  0xb1   : > { %677 = vst [vmem:[%s6413_s9 + $0x3a8] sm:$0xf] %v676_v42  ;;  %679 = vst [vmem:[%s6413_s9 + $0x3ac] sm:$0xf] %v678_v43  ;;  %v680_v44 = vld [vmem:[%s6406_s8 + $0x760] sm:$0xf] }
  0xb2   : > { %v682_v45 = vld [vmem:[%s6406_s8 + $0x768] sm:$0xf]  ;;  %v684_v46 = vld [vmem:[%s6406_s8 + $0x770] sm:$0xf]  ;;  %681 = vst [vmem:[%s6413_s9 + $0x3b0] sm:$0xf] %v680_v44 }
  0xb3   : > { %683 = vst [vmem:[%s6413_s9 + $0x3b4] sm:$0xf] %v682_v45  ;;  %685 = vst [vmem:[%s6413_s9 + $0x3b8] sm:$0xf] %v684_v46  ;;  %v686_v47 = vld [vmem:[%s6406_s8 + $0x778] sm:$0xf] }
  0xb4   : > { %v688_v48 = vld [vmem:[%s6406_s8 + $0x780] sm:$0xf]  ;;  %v690_v49 = vld [vmem:[%s6406_s8 + $0x788] sm:$0xf]  ;;  %687 = vst [vmem:[%s6413_s9 + $0x3bc] sm:$0xf] %v686_v47 }
  0xb5   : > { %689 = vst [vmem:[%s6413_s9 + $0x3c0] sm:$0xf] %v688_v48  ;;  %691 = vst [vmem:[%s6413_s9 + $0x3c4] sm:$0xf] %v690_v49  ;;  %v692_v50 = vld [vmem:[%s6406_s8 + $0x790] sm:$0xf] }
  0xb6   : > { %v694_v51 = vld [vmem:[%s6406_s8 + $0x798] sm:$0xf]  ;;  %v696_v52 = vld [vmem:[%s6406_s8 + $0x7a0] sm:$0xf]  ;;  %693 = vst [vmem:[%s6413_s9 + $0x3c8] sm:$0xf] %v692_v50 }
  0xb7   : > { %695 = vst [vmem:[%s6413_s9 + $0x3cc] sm:$0xf] %v694_v51  ;;  %697 = vst [vmem:[%s6413_s9 + $0x3d0] sm:$0xf] %v696_v52  ;;  %v698_v53 = vld [vmem:[%s6406_s8 + $0x7a8] sm:$0xf] }
  0xb8   : > { %v700_v54 = vld [vmem:[%s6406_s8 + $0x7b0] sm:$0xf]  ;;  %v702_v55 = vld [vmem:[%s6406_s8 + $0x7b8] sm:$0xf]  ;;  %699 = vst [vmem:[%s6413_s9 + $0x3d4] sm:$0xf] %v698_v53 }
  0xb9   : > { %701 = vst [vmem:[%s6413_s9 + $0x3d8] sm:$0xf] %v700_v54  ;;  %703 = vst [vmem:[%s6413_s9 + $0x3dc] sm:$0xf] %v702_v55  ;;  %v704_v56 = vld [vmem:[%s6406_s8 + $0x7c0] sm:$0xf] }
  0xba   : > { %v706_v57 = vld [vmem:[%s6406_s8 + $0x7c8] sm:$0xf]  ;;  %v708_v58 = vld [vmem:[%s6406_s8 + $0x7d0] sm:$0xf]  ;;  %705 = vst [vmem:[%s6413_s9 + $0x3e0] sm:$0xf] %v704_v56 }
  0xbb   : > { %707 = vst [vmem:[%s6413_s9 + $0x3e4] sm:$0xf] %v706_v57  ;;  %709 = vst [vmem:[%s6413_s9 + $0x3e8] sm:$0xf] %v708_v58  ;;  %v710_v59 = vld [vmem:[%s6406_s8 + $0x7d8] sm:$0xf] }
  0xbc   : > { %v712_v60 = vld [vmem:[%s6406_s8 + $0x7e0] sm:$0xf]  ;;  %v714_v61 = vld [vmem:[%s6406_s8 + $0x7e8] sm:$0xf]  ;;  %711 = vst [vmem:[%s6413_s9 + $0x3ec] sm:$0xf] %v710_v59 }
  0xbd   : > { %713 = vst [vmem:[%s6413_s9 + $0x3f0] sm:$0xf] %v712_v60  ;;  %715 = vst [vmem:[%s6413_s9 + $0x3f4] sm:$0xf] %v714_v61  ;;  %v716_v62 = vld [vmem:[%s6406_s8 + $0x7f0] sm:$0xf] }
  0xbe   : > { %v718_v63 = vld [vmem:[%s6406_s8 + $0x7f8] sm:$0xf]  ;;  %v720_v0 = vld [vmem:[%s6406_s8 + $0x800] sm:$0xf]  ;;  %717 = vst [vmem:[%s6413_s9 + $0x3f8] sm:$0xf] %v716_v62 }
  0xbf   : > { %719 = vst [vmem:[%s6413_s9 + $0x3fc] sm:$0xf] %v718_v63  ;;  %721 = vst [vmem:[%s6413_s9 + $0x400] sm:$0xf] %v720_v0  ;;  %v722_v1 = vld [vmem:[%s6406_s8 + $0x808] sm:$0xf] }
  0xc0   : > { %v724_v2 = vld [vmem:[%s6406_s8 + $0x810] sm:$0xf]  ;;  %v726_v3 = vld [vmem:[%s6406_s8 + $0x818] sm:$0xf]  ;;  %723 = vst [vmem:[%s6413_s9 + $0x404] sm:$0xf] %v722_v1 }
  0xc1   : > { %725 = vst [vmem:[%s6413_s9 + $0x408] sm:$0xf] %v724_v2  ;;  %727 = vst [vmem:[%s6413_s9 + $0x40c] sm:$0xf] %v726_v3  ;;  %v728_v4 = vld [vmem:[%s6406_s8 + $0x820] sm:$0xf] }
  0xc2   : > { %v730_v5 = vld [vmem:[%s6406_s8 + $0x828] sm:$0xf]  ;;  %v732_v6 = vld [vmem:[%s6406_s8 + $0x830] sm:$0xf]  ;;  %729 = vst [vmem:[%s6413_s9 + $0x410] sm:$0xf] %v728_v4 }
  0xc3   : > { %731 = vst [vmem:[%s6413_s9 + $0x414] sm:$0xf] %v730_v5  ;;  %733 = vst [vmem:[%s6413_s9 + $0x418] sm:$0xf] %v732_v6  ;;  %v734_v7 = vld [vmem:[%s6406_s8 + $0x838] sm:$0xf] }
  0xc4   : > { %v736_v8 = vld [vmem:[%s6406_s8 + $0x840] sm:$0xf]  ;;  %v738_v9 = vld [vmem:[%s6406_s8 + $0x848] sm:$0xf]  ;;  %735 = vst [vmem:[%s6413_s9 + $0x41c] sm:$0xf] %v734_v7 }
  0xc5   : > { %737 = vst [vmem:[%s6413_s9 + $0x420] sm:$0xf] %v736_v8  ;;  %739 = vst [vmem:[%s6413_s9 + $0x424] sm:$0xf] %v738_v9  ;;  %v740_v10 = vld [vmem:[%s6406_s8 + $0x850] sm:$0xf] }
  0xc6   : > { %v742_v11 = vld [vmem:[%s6406_s8 + $0x858] sm:$0xf]  ;;  %v744_v12 = vld [vmem:[%s6406_s8 + $0x860] sm:$0xf]  ;;  %741 = vst [vmem:[%s6413_s9 + $0x428] sm:$0xf] %v740_v10 }
  0xc7   : > { %743 = vst [vmem:[%s6413_s9 + $0x42c] sm:$0xf] %v742_v11  ;;  %745 = vst [vmem:[%s6413_s9 + $0x430] sm:$0xf] %v744_v12  ;;  %v746_v13 = vld [vmem:[%s6406_s8 + $0x868] sm:$0xf] }
  0xc8   : > { %v748_v14 = vld [vmem:[%s6406_s8 + $0x870] sm:$0xf]  ;;  %v750_v15 = vld [vmem:[%s6406_s8 + $0x878] sm:$0xf]  ;;  %747 = vst [vmem:[%s6413_s9 + $0x434] sm:$0xf] %v746_v13 }
  0xc9   : > { %749 = vst [vmem:[%s6413_s9 + $0x438] sm:$0xf] %v748_v14  ;;  %751 = vst [vmem:[%s6413_s9 + $0x43c] sm:$0xf] %v750_v15  ;;  %v752_v16 = vld [vmem:[%s6406_s8 + $0x880] sm:$0xf] }
  0xca   : > { %v754_v17 = vld [vmem:[%s6406_s8 + $0x888] sm:$0xf]  ;;  %v756_v18 = vld [vmem:[%s6406_s8 + $0x890] sm:$0xf]  ;;  %753 = vst [vmem:[%s6413_s9 + $0x440] sm:$0xf] %v752_v16 }
  0xcb   : > { %755 = vst [vmem:[%s6413_s9 + $0x444] sm:$0xf] %v754_v17  ;;  %757 = vst [vmem:[%s6413_s9 + $0x448] sm:$0xf] %v756_v18  ;;  %v758_v19 = vld [vmem:[%s6406_s8 + $0x898] sm:$0xf] }
  0xcc   : > { %v760_v20 = vld [vmem:[%s6406_s8 + $0x8a0] sm:$0xf]  ;;  %v762_v21 = vld [vmem:[%s6406_s8 + $0x8a8] sm:$0xf]  ;;  %759 = vst [vmem:[%s6413_s9 + $0x44c] sm:$0xf] %v758_v19 }
  0xcd   : > { %761 = vst [vmem:[%s6413_s9 + $0x450] sm:$0xf] %v760_v20  ;;  %763 = vst [vmem:[%s6413_s9 + $0x454] sm:$0xf] %v762_v21  ;;  %v764_v22 = vld [vmem:[%s6406_s8 + $0x8b0] sm:$0xf] }
  0xce   : > { %v766_v23 = vld [vmem:[%s6406_s8 + $0x8b8] sm:$0xf]  ;;  %v768_v24 = vld [vmem:[%s6406_s8 + $0x8c0] sm:$0xf]  ;;  %765 = vst [vmem:[%s6413_s9 + $0x458] sm:$0xf] %v764_v22 }
  0xcf   : > { %767 = vst [vmem:[%s6413_s9 + $0x45c] sm:$0xf] %v766_v23  ;;  %769 = vst [vmem:[%s6413_s9 + $0x460] sm:$0xf] %v768_v24  ;;  %v770_v25 = vld [vmem:[%s6406_s8 + $0x8c8] sm:$0xf] }
  0xd0   : > { %v772_v26 = vld [vmem:[%s6406_s8 + $0x8d0] sm:$0xf]  ;;  %v774_v27 = vld [vmem:[%s6406_s8 + $0x8d8] sm:$0xf]  ;;  %771 = vst [vmem:[%s6413_s9 + $0x464] sm:$0xf] %v770_v25 }
  0xd1   : > { %773 = vst [vmem:[%s6413_s9 + $0x468] sm:$0xf] %v772_v26  ;;  %775 = vst [vmem:[%s6413_s9 + $0x46c] sm:$0xf] %v774_v27  ;;  %v776_v28 = vld [vmem:[%s6406_s8 + $0x8e0] sm:$0xf] }
  0xd2   : > { %v778_v29 = vld [vmem:[%s6406_s8 + $0x8e8] sm:$0xf]  ;;  %v780_v30 = vld [vmem:[%s6406_s8 + $0x8f0] sm:$0xf]  ;;  %777 = vst [vmem:[%s6413_s9 + $0x470] sm:$0xf] %v776_v28 }
  0xd3   : > { %779 = vst [vmem:[%s6413_s9 + $0x474] sm:$0xf] %v778_v29  ;;  %781 = vst [vmem:[%s6413_s9 + $0x478] sm:$0xf] %v780_v30  ;;  %v782_v31 = vld [vmem:[%s6406_s8 + $0x8f8] sm:$0xf] }
  0xd4   : > { %783 = vst [vmem:[%s6413_s9 + $0x47c] sm:$0xf] %v782_v31 }
  0xd5 PF: > { %1394 = sbr.rel (!%p6390_p4) target bundleno = 227 (0xe3), region = 73  ;;  %s1396_s10 = sand.u32 (%p6390_p4), 1, %s6323_s19  }
  0xd6   : > { %s4911_s11 = sshll.u32 (%p6390_p4), %s6327_s20, 2  ;;  %s4910_s12 = sshll.u32 (%p6390_p4), %s1396_s10, 6 }
  0xd7   : > { %s6993_s15 = scalar_lea.vmem (%p6390_p4), %s7976_s4, %s4911_s11  ;;  %s1398_s16 = scalar_lea.vmem (%p6390_p4), [#allocation3], %s4910_s12 }
  0xd8   : > { %v1416_v32 = vld [vmem:[%s6993_s15] sm:$0xf] (%p6390_p4)  ;;  %v1418_v33 = vld [vmem:[%s6993_s15 + $0x8] sm:$0xf] (%p6390_p4)  ;;  %v1420_v34 = vld [vmem:[%s6993_s15 + $0x10] sm:$0xf] (%p6390_p4) }
  0xd9   : > { %1417 = vst [vmem:[%s1398_s16] sm:$0xf] (%p6390_p4), %v1416_v32  ;;  %1419 = vst [vmem:[%s1398_s16 + $0x4] sm:$0xf] (%p6390_p4), %v1418_v33  ;;  %v1422_v35 = vld [vmem:[%s6993_s15 + $0x18] sm:$0xf] (%p6390_p4) }
  0xda   : > { %v1424_v36 = vld [vmem:[%s6993_s15 + $0x20] sm:$0xf] (%p6390_p4)  ;;  %1421 = vst [vmem:[%s1398_s16 + $0x8] sm:$0xf] (%p6390_p4), %v1420_v34  ;;  %1423 = vst [vmem:[%s1398_s16 + $0xc] sm:$0xf] (%p6390_p4), %v1422_v35 }
  0xdb   : > { %1425 = vst [vmem:[%s1398_s16 + $0x10] sm:$0xf] (%p6390_p4), %v1424_v36  ;;  %v1426_v37 = vld [vmem:[%s6993_s15 + $0x28] sm:$0xf] (%p6390_p4)  ;;  %v1428_v38 = vld [vmem:[%s6993_s15 + $0x30] sm:$0xf] (%p6390_p4) }
  0xdc   : > { %v1430_v39 = vld [vmem:[%s6993_s15 + $0x38] sm:$0xf]  ;;  %1427 = vst [vmem:[%s1398_s16 + $0x14] sm:$0xf] %v1426_v37  ;;  %1429 = vst [vmem:[%s1398_s16 + $0x18] sm:$0xf] %v1428_v38 }
  0xdd   : > { %1431 = vst [vmem:[%s1398_s16 + $0x1c] sm:$0xf] %v1430_v39  ;;  %v1432_v40 = vld [vmem:[%s6993_s15 + $0x40] sm:$0xf]  ;;  %v1434_v41 = vld [vmem:[%s6993_s15 + $0x48] sm:$0xf] }
  0xde   : > { %v1436_v42 = vld [vmem:[%s6993_s15 + $0x50] sm:$0xf]  ;;  %1433 = vst [vmem:[%s1398_s16 + $0x20] sm:$0xf] %v1432_v40  ;;  %1435 = vst [vmem:[%s1398_s16 + $0x24] sm:$0xf] %v1434_v41 }
  0xdf   : > { %1437 = vst [vmem:[%s1398_s16 + $0x28] sm:$0xf] %v1436_v42  ;;  %v1438_v43 = vld [vmem:[%s6993_s15 + $0x58] sm:$0xf]  ;;  %v1440_v44 = vld [vmem:[%s6993_s15 + $0x60] sm:$0xf] }
  0xe0   : > { %v1442_v45 = vld [vmem:[%s6993_s15 + $0x68] sm:$0xf]  ;;  %1439 = vst [vmem:[%s1398_s16 + $0x2c] sm:$0xf] %v1438_v43  ;;  %1441 = vst [vmem:[%s1398_s16 + $0x30] sm:$0xf] %v1440_v44 }
  0xe1   : > { %1443 = vst [vmem:[%s1398_s16 + $0x34] sm:$0xf] %v1442_v45  ;;  %v1444_v46 = vld [vmem:[%s6993_s15 + $0x70] sm:$0xf]  ;;  %v1446_v47 = vld [vmem:[%s6993_s15 + $0x78] sm:$0xf] }
  0xe2   : > { %1445 = vst [vmem:[%s1398_s16 + $0x38] sm:$0xf] %v1444_v46  ;;  %1447 = vst [vmem:[%s1398_s16 + $0x3c] sm:$0xf] %v1446_v47 }
  0xe3 PF: > { %p4912_p7 = scmp.ge.s32.totalorder %s6327_s20, 1  ;;  %p1501_p8 = scmp.lt.s32.totalorder %s6327_s20, 3 }
  0xe5   : > { %p1502_p9 = pnand %p4912_p7, %p1501_p8 }
  0xe6   : > { %s1508_s17 = sand.u32 (!%p1502_p9), 1, %s6319_s18   ;;  %v5961_v48 = vld [vmem:[%s7972_s0 + $0x4] ss:$72 sps:$4 sm:$0xff] (!%p1502_p9)   ;;  %v5959_v3 = vld [vmem:[%s7972_s0] ss:$72 sps:$4 sm:$0xff] (!%p1502_p9)   ;;  %p1551_p10 = scmp.lt.s32.totalorder (!%p1502_p9), %s6375_s21, 1 }
  0xe7   : > { %1505 = sbr.rel (%p1502_p9) target bundleno = 846 (0x34e), region = 114  ;;  %v5964_v49 = vld [vmem:[%s7972_s0 + $0x244] ss:$72 sps:$4 sm:$0xff] (!%p1502_p9)   ;;  %3606 = vmatprep.mubr.bf16.mxu0 (!%p1502_p9), %v5961_v48  ;;  %v5962_v4 = vld [vmem:[%s7972_s0 + $0x240] ss:$72 sps:$4 sm:$0xff] (!%p1502_p9)   ;;  %s7870_s13 = sshll.u32 (!%p1502_p9), %s1508_s17, 6 }
  0xe8   : > { %s5918_s23 = smul.u32 (!%p1502_p9), 1152, %s1508_s17  ;;  %3638 = vmatprep.mubr.bf16.mxu1 (!%p1502_p9), %v5964_v49  ;;  %v5973_v9 = vld [vmem:[%s7972_s0 + $0x94] ss:$72 sps:$4 sm:$0xff] (!%p1502_p9)   ;;  %v5977_v15 = vld [vmem:[%s7972_s0 + $0x90] ss:$72 sps:$4 sm:$0xff] (!%p1502_p9)   ;;  %s7879_s26 = scalar_lea.vmem (!%p1502_p9), [#allocation3], %s7870_s13 }
  0xe9   : > { %v5975_v11 = vld [vmem:[%s7972_s0 + $0x2d4] ss:$72 sps:$4 sm:$0xff] (!%p1502_p9)   ;;  %v5978_v16 = vld [vmem:[%s7972_s0 + $0x2d0] ss:$72 sps:$4 sm:$0xff] (!%p1502_p9)   ;;  %v5987_v22 = vld [vmem:[%s7972_s0 + $0x124] ss:$72 sps:$4 sm:$0xff] (!%p1502_p9)  }
  0xea   : > { %s7022_s30 = scalar_lea.vmem (!%p1502_p9), [#allocation2], %s5918_s23  ;;  %v5989_v24 = vld [vmem:[%s7972_s0 + $0x364] ss:$72 sps:$4 sm:$0xff] (!%p1502_p9)   ;;  %v5991_v27 = vld [vmem:[%s7972_s0 + $0x120] ss:$72 sps:$4 sm:$0xff] (!%p1502_p9)   ;;  %s7930_s18 = scalar_lea.vmem (!%p1502_p9), [#allocation4], %s7870_s13 }
  0xeb   : > { %v5943_v50 = vld [vmem:[%s7022_s30 + $0x40] sm:$0xff] (!%p1502_p9)   ;;  %v5945_v52 = vld [vmem:[%s7022_s30 + $0x48] sm:$0xff] (!%p1502_p9)   ;;  %v5947_v54 = vld [vmem:[%s7022_s30 + $0x50] sm:$0xff] (!%p1502_p9)  }
  0xec   : > { %v5944_v51 = vld [vmem:[%s7022_s30] sm:$0xff] (!%p1502_p9)   ;;  %5325 = vmatprep.subr.bf16.mxu0 (!%p1502_p9), %v5943_v50  ;;  %5901 = vmatprep.subr.bf16.mxu1 (!%p1502_p9), %v5943_v50  ;;  %v5946_v53 = vld [vmem:[%s7022_s30 + $0x8] sm:$0xff] (!%p1502_p9)   ;;  %v5948_v55 = vld [vmem:[%s7022_s30 + $0x10] sm:$0xff] (!%p1502_p9)  }
  0xed   : > { %5326 = vmatpush3.bf16.msra.mxu0 (!%p1502_p9), %v5944_v51  ;;  %5909 = vmatpush3.bf16.msra.mxu1 (!%p1502_p9), %v5944_v51  ;;  %v5949_v56 = vld [vmem:[%s7022_s30 + $0x58] sm:$0xff] (!%p1502_p9)   ;;  %v5951_v58 = vld [vmem:[%s7022_s30 + $0x60] sm:$0xff] (!%p1502_p9)   ;;  %v5953_v60 = vld [vmem:[%s7022_s30 + $0x68] sm:$0xff] (!%p1502_p9)  }
  0xee   : > { %5327 = vmatprep.subr.bf16.mxu0 %v5945_v52  ;;  %5902 = vmatprep.subr.bf16.mxu1 %v5945_v52  ;;  %v5950_v57 = vld [vmem:[%s7022_s30 + $0x18] sm:$0xff]   ;;  %v5952_v59 = vld [vmem:[%s7022_s30 + $0x20] sm:$0xff]   ;;  %v5954_v61 = vld [vmem:[%s7022_s30 + $0x28] sm:$0xff]   ;;  %s1552_s12 = scalar_select %p1551_p10, %s6375_s21, 1 }
  0xef   : > { %v5955_v62 = vld [vmem:[%s7022_s30 + $0x70] sm:$0xff]   ;;  %v5957_v0 = vld [vmem:[%s7022_s30 + $0x78] sm:$0xff]   ;;  %v5965_v2 = vld [vmem:[%s7022_s30 + $0xc0] sm:$0xff]   ;;  %s5220_s17 = sshll.u32 (%p6394_p5), %s6375_s21, 2 }
  0xf0   : > { %v5956_v63 = vld [vmem:[%s7022_s30 + $0x30] sm:$0xff]   ;;  %v5958_v1 = vld [vmem:[%s7022_s30 + $0x38] sm:$0xff]   ;;  %v5966_v5 = vld [vmem:[%s7022_s30 + $0x140] sm:$0xff]   ;;  %s1553_s16 = scalar_lea.vmem %s7974_s2, %s1552_s12  ;;  %s1556_s24 = scalar_lea.vmem %s7975_s3, %s1552_s12 }
  0xf1   : > { %5328 = vmatpush3.bf16.msra.mxu0 %v5946_v53  ;;  %5910 = vmatpush3.bf16.msra.mxu1 %v5946_v53  ;;  %v5967_v6 = vld [vmem:[%s7022_s30 + $0x80] sm:$0xff]   ;;  %v5969_v8 = vld [vmem:[%s7022_s30 + $0xc8] sm:$0xff]   ;;  %v5979_v14 = vld [vmem:[%s7022_s30 + $0xd0] sm:$0xff]   ;;  %s4713_s20 = scalar_lea.vmem (%p6394_p5), %s7977_s5, %s5220_s17 }
  0xf2   : > { %5329 = vmatprep.subr.bf16.mxu0 %v5947_v54  ;;  %5903 = vmatprep.subr.bf16.mxu1 %v5947_v54  ;;  %v5968_v7 = vld [vmem:[%s7022_s30 + $0x100] sm:$0xff]   ;;  %v5970_v10 = vld [vmem:[%s7022_s30 + $0x148] sm:$0xff]   ;;  %v5980_v17 = vld [vmem:[%s7022_s30 + $0x150] sm:$0xff]  }
  0xf3   : > { %v5971_v12 = vld [vmem:[%s7022_s30 + $0x88] sm:$0xff]   ;;  %v5981_v18 = vld [vmem:[%s7022_s30 + $0x90] sm:$0xff]   ;;  %v5983_v20 = vld [vmem:[%s7022_s30 + $0xd8] sm:$0xff]  }
  0xf4   : > { %v5972_v13 = vld [vmem:[%s7022_s30 + $0x108] sm:$0xff]   ;;  %v5982_v19 = vld [vmem:[%s7022_s30 + $0x110] sm:$0xff]   ;;  %v5984_v21 = vld [vmem:[%s7022_s30 + $0x158] sm:$0xff]  }
  0xf5   : > { %5330 = vmatpush3.bf16.msra.mxu0 %v5948_v55  ;;  %5911 = vmatpush3.bf16.msra.mxu1 %v5948_v55  ;;  %v5985_v23 = vld [vmem:[%s7022_s30 + $0x98] sm:$0xff]   ;;  %v5993_v26 = vld [vmem:[%s7022_s30 + $0xe0] sm:$0xff]   ;;  %v5997_v32 = vld [vmem:[%s7022_s30 + $0xe8] sm:$0xff]  }
  0xf6   : > { %5331 = vmatprep.subr.bf16.mxu0 %v5949_v56  ;;  %5904 = vmatprep.subr.bf16.mxu1 %v5949_v56  ;;  %v5986_v25 = vld [vmem:[%s7022_s30 + $0x118] sm:$0xff]   ;;  %v5992_v28 = vld [vmem:[%s7972_s0 + $0x360] ss:$72 sps:$4 sm:$0xff]   ;;  %v6007_v38 = vld [vmem:[%s7022_s30 + $0xf0] sm:$0xff]  }
  0xf7   : > { %v5994_v29 = vld [vmem:[%s7022_s30 + $0x160] sm:$0xff]   ;;  %v5998_v33 = vld [vmem:[%s7022_s30 + $0x168] sm:$0xff]   ;;  %v6001_v34 = vld [vmem:[%s7972_s0 + $0x1b4] ss:$72 sps:$4 sm:$0xff]  }
  0xf8   : > { %v5995_v30 = vld [vmem:[%s7022_s30 + $0xa0] sm:$0xff]   ;;  %v5999_v35 = vld [vmem:[%s7022_s30 + $0xa8] sm:$0xff]   ;;  %v6003_v36 = vld [vmem:[%s7972_s0 + $0x3f4] ss:$72 sps:$4 sm:$0xff]  }
  0xf9   : > { %5332 = vmatpush3.bf16.msra.mxu0 %v5950_v57  ;;  %5912 = vmatpush3.bf16.msra.mxu1 %v5950_v57  ;;  %v5996_v31 = vld [vmem:[%s7022_s30 + $0x120] sm:$0xff]   ;;  %v6000_v37 = vld [vmem:[%s7022_s30 + $0x128] sm:$0xff]   ;;  %v6005_v39 = vld [vmem:[%s7972_s0 + $0x1b0] ss:$72 sps:$4 sm:$0xff]  }
  0xfa   : > { %5333 = vmatprep.subr.bf16.mxu0 %v5951_v58  ;;  %5905 = vmatprep.subr.bf16.mxu1 %v5951_v58  ;;  %v6006_v40 = vld [vmem:[%s7972_s0 + $0x3f0] ss:$72 sps:$4 sm:$0xff]   ;;  %v6017_v46 = vld [vmem:[%s7972_s0 + $0xc] ss:$72 sps:$4 sm:$0xff]   ;;  %v6021_v50 = vld [vmem:[%s7022_s30 + $0x1c0] sm:$0xff]  }
  0xfb   : > { %v6008_v41 = vld [vmem:[%s7022_s30 + $0x170] sm:$0xff]   ;;  %v6011_v44 = vld [vmem:[%s7022_s30 + $0xf8] sm:$0xff]   ;;  %v6023_v52 = vld [vmem:[%s7022_s30 + $0x240] sm:$0xff]  }
  0xfc   : > { %v6009_v42 = vld [vmem:[%s7022_s30 + $0xb0] sm:$0xff]   ;;  %v6012_v45 = vld [vmem:[%s7022_s30 + $0x178] sm:$0xff]   ;;  %v6022_v54 = vld [vmem:[%s7022_s30 + $0x180] sm:$0xff]  }
  0xfd   : > { %5334 = vmatpush3.bf16.msra.mxu0 %v5952_v59  ;;  %5913 = vmatpush3.bf16.msra.mxu1 %v5952_v59  ;;  %v6010_v43 = vld [vmem:[%s7022_s30 + $0x130] sm:$0xff]   ;;  %v6013_v47 = vld [vmem:[%s7022_s30 + $0xb8] sm:$0xff]   ;;  %v6024_v55 = vld [vmem:[%s7022_s30 + $0x200] sm:$0xff]  }
  0xfe   : > { %5335 = vmatprep.subr.bf16.mxu0 %v5953_v60  ;;  %5906 = vmatprep.subr.bf16.mxu1 %v5953_v60  ;;  %v6020_v48 = vld [vmem:[%s7972_s0 + $0x14] ss:$72 sps:$4 sm:$0xff]   ;;  %v6015_v51 = vld [vmem:[%s7972_s0 + $0x8] ss:$72 sps:$4 sm:$0xff]   ;;  %v6027_v57 = vld [vmem:[%s7972_s0 + $0xa4] ss:$72 sps:$4 sm:$0xff]  }
  0xff   : > { %v6014_v49 = vld [vmem:[%s7022_s30 + $0x138] sm:$0xff]   ;;  %v6031_v58 = vld [vmem:[%s7022_s30 + $0x1c8] sm:$0xff]  }
 0x100   : > { %v6018_v53 = vld [vmem:[%s7972_s0 + $0x10] ss:$72 sps:$4 sm:$0xff]   ;;  %v6025_v56 = vld [vmem:[%s7972_s0 + $0x9c] ss:$72 sps:$4 sm:$0xff]   ;;  %v6032_v59 = vld [vmem:[%s7022_s30 + $0x188] sm:$0xff]  }
 0x101   : > { %5336 = vmatpush3.bf16.msra.mxu0 %v5954_v61  ;;  %5914 = vmatpush3.bf16.msra.mxu1 %v5954_v61  ;;  %v6033_v60 = vld [vmem:[%s7022_s30 + $0x248] sm:$0xff]  }
 0x102   : > { %5337 = vmatprep.subr.bf16.mxu0 %v5955_v62  ;;  %5907 = vmatprep.subr.bf16.mxu1 %v5955_v62  ;;  %v6034_v61 = vld [vmem:[%s7022_s30 + $0x208] sm:$0xff]   ;;  %v6029_v62 = vld [vmem:[%s7972_s0 + $0x98] ss:$72 sps:$4 sm:$0xff]  }
 0x105   : > { %5338 = vmatpush3.bf16.msra.mxu0 %v5956_v63  ;;  %5915 = vmatpush3.bf16.msra.mxu1 %v5956_v63  ;;  %v6030_v63 = vld [vmem:[%s7972_s0 + $0xa0] ss:$72 sps:$4 sm:$0xff]  }
 0x106   : > { %5339 = vmatprep.subr.bf16.mxu0 %v5957_v0  ;;  %5908 = vmatprep.subr.bf16.mxu1 %v5957_v0  ;;  %v6035_v0 = vld [vmem:[%s7972_s0 + $0x12c] ss:$72 sps:$4 sm:$0xff]  }
 0x109   : > { %5340 = vmatpush3.bf16.msra.mxu0 %v5958_v1  ;;  %5916 = vmatpush3.bf16.msra.mxu1 %v5958_v1  ;;  %v6037_v1 = vld [vmem:[%s7972_s0 + $0x134] ss:$72 sps:$4 sm:$0xff]  }
 0x10a   : > { %5389 = vmatprep.subr.bf16.mxu1 %v5965_v2  ;;  %5453 = vmatprep.subr.bf16.mxu0 %v5966_v5  ;;  %v6041_v2 = vld [vmem:[%s7022_s30 + $0x1d0] sm:$0xff]  }
 0x10b   : > { %v6044_v5 = vld [vmem:[%s7022_s30 + $0x210] sm:$0xff]  }
 0x10c   : > { %3607 = vmatmul.mubr.bf16.vlgmr.msra.gmra.mrb[0].mxu0 %v5959_v3  ;;  %3639 = vmatmul.mubr.bf16.vlgmr.msra.gmra.mrb[0].mxu1 %v5962_v4  ;;  %v6042_v3 = vld [vmem:[%s7022_s30 + $0x190] sm:$0xff]  }
 0x10d   : > { %5390 = vmatpush3.bf16.msra.mxu1 %v5967_v6  ;;  %5454 = vmatpush3.bf16.msra.mxu0 %v5968_v7  ;;  %v6043_v4 = vld [vmem:[%s7022_s30 + $0x250] sm:$0xff]  }
 0x10e   : > { %5391 = vmatprep.subr.bf16.mxu1 %v5969_v8  ;;  %5455 = vmatprep.subr.bf16.mxu0 %v5970_v10  ;;  %v6039_v6 = vld [vmem:[%s7972_s0 + $0x128] ss:$72 sps:$4 sm:$0xff]   ;;  %v6045_v8 = vld [vmem:[%s7972_s0 + $0x1bc] ss:$72 sps:$4 sm:$0xff]  }
 0x10f   : > { %3614 = vmatprep.mubr.bf16.mxu0 %v5973_v9  ;;  %3646 = vmatprep.mubr.bf16.mxu1 %v5975_v11  ;;  %v6040_v7 = vld [vmem:[%s7972_s0 + $0x130] ss:$72 sps:$4 sm:$0xff]   ;;  %v6047_v9 = vld [vmem:[%s7972_s0 + $0x1c4] ss:$72 sps:$4 sm:$0xff]  }
 0x110   : > { %v6051_v10 = vld [vmem:[%s7022_s30 + $0x1d8] sm:$0xff]  }
 0x111   : > { %5392 = vmatpush3.bf16.msra.mxu1 %v5971_v12  ;;  %5456 = vmatpush3.bf16.msra.mxu0 %v5972_v13  ;;  %v6052_v11 = vld [vmem:[%s7022_s30 + $0x198] sm:$0xff]  }
 0x112   : > { %5393 = vmatprep.subr.bf16.mxu1 %v5979_v14  ;;  %5457 = vmatprep.subr.bf16.mxu0 %v5980_v17  ;;  %v6053_v12 = vld [vmem:[%s7022_s30 + $0x258] sm:$0xff]   ;;  %v6055_v17 = vld [vmem:[%s7972_s0 + $0x24c] ss:$72 sps:$4 sm:$0xff]  }
 0x113   : > { %v6054_v13 = vld [vmem:[%s7022_s30 + $0x218] sm:$0xff]  }
 0x114   : > { %3615 = vmatmul.mubr.bf16.gmra.mrb[4].mxu0 %v5977_v15  ;;  %3647 = vmatmul.mubr.bf16.gmra.mrb[4].mxu1 %v5978_v16  ;;  %v6049_v14 = vld [vmem:[%s7972_s0 + $0x1b8] ss:$72 sps:$4 sm:$0xff]  }
 0x115   : > { %5394 = vmatpush3.bf16.msra.mxu1 %v5981_v18  ;;  %5458 = vmatpush3.bf16.msra.mxu0 %v5982_v19  ;;  %v6050_v15 = vld [vmem:[%s7972_s0 + $0x1c0] ss:$72 sps:$4 sm:$0xff]   ;;  %v6057_v18 = vld [vmem:[%s7972_s0 + $0x254] ss:$72 sps:$4 sm:$0xff]  }
 0x116   : > { %5395 = vmatprep.subr.bf16.mxu1 %v5983_v20  ;;  %5459 = vmatprep.subr.bf16.mxu0 %v5984_v21  ;;  %v6061_v16 = vld [vmem:[%s7022_s30 + $0x1e0] sm:$0xff]  }
 0x117   : > { %3622 = vmatprep.mubr.bf16.mxu0 %v5987_v22  ;;  %3654 = vmatprep.mubr.bf16.mxu1 %v5989_v24  ;;  %v6062_v19 = vld [vmem:[%s7022_s30 + $0x1a0] sm:$0xff]   ;;  %v6071_v22 = vld [vmem:[%s7022_s30 + $0x1e8] sm:$0xff]   ;;  %v6060_v24 = vld [vmem:[%s7972_s0 + $0x250] ss:$72 sps:$4 sm:$0xff]  }
 0x118   : > { %v6063_v20 = vld [vmem:[%s7022_s30 + $0x260] sm:$0xff]  }
 0x119   : > { %5396 = vmatpush3.bf16.msra.mxu1 %v5985_v23  ;;  %5460 = vmatpush3.bf16.msra.mxu0 %v5986_v25  ;;  %v6064_v21 = vld [vmem:[%s7022_s30 + $0x220] sm:$0xff]   ;;  %v6059_v23 = vld [vmem:[%s7972_s0 + $0x248] ss:$72 sps:$4 sm:$0xff]  }
 0x11a   : > { %5397 = vmatprep.subr.bf16.mxu1 %v5993_v26  ;;  %5461 = vmatprep.subr.bf16.mxu0 %v5994_v29  ;;  %v6072_v25 = vld [vmem:[%s7022_s30 + $0x1a8] sm:$0xff]   ;;  %v6065_v26 = vld [vmem:[%s7972_s0 + $0x2dc] ss:$72 sps:$4 sm:$0xff]  }
 0x11b   : > { %v6067_v29 = vld [vmem:[%s7972_s0 + $0x2e4] ss:$72 sps:$4 sm:$0xff]  }
 0x11c   : > { %3623 = vmatmul.mubr.bf16.gmra.mrb[8].mxu0 %v5991_v27  ;;  %3655 = vmatmul.mubr.bf16.gmra.mrb[8].mxu1 %v5992_v28  ;;  %v6073_v27 = vld [vmem:[%s7022_s30 + $0x268] sm:$0xff]  }
 0x11d   : > { %5398 = vmatpush3.bf16.msra.mxu1 %v5995_v30  ;;  %5462 = vmatpush3.bf16.msra.mxu0 %v5996_v31  ;;  %v6074_v28 = vld [vmem:[%s7022_s30 + $0x228] sm:$0xff]   ;;  %v6081_v30 = vld [vmem:[%s7022_s30 + $0x1f0] sm:$0xff]  }
 0x11e   : > { %5399 = vmatprep.subr.bf16.mxu1 %v5997_v32  ;;  %5463 = vmatprep.subr.bf16.mxu0 %v5998_v33  ;;  %v6082_v31 = vld [vmem:[%s7022_s30 + $0x1b0] sm:$0xff]   ;;  %v6069_v32 = vld [vmem:[%s7972_s0 + $0x2d8] ss:$72 sps:$4 sm:$0xff]  }
 0x11f   : > { %3630 = vmatprep.mubr.bf16.mxu0 %v6001_v34  ;;  %3662 = vmatprep.mubr.bf16.mxu1 %v6003_v36  ;;  %v6083_v33 = vld [vmem:[%s7022_s30 + $0x270] sm:$0xff]  }
 0x120   : > { %v6084_v34 = vld [vmem:[%s7022_s30 + $0x230] sm:$0xff]  }
 0x121   : > { %5400 = vmatpush3.bf16.msra.mxu1 %v5999_v35  ;;  %5464 = vmatpush3.bf16.msra.mxu0 %v6000_v37  ;;  %v6070_v35 = vld [vmem:[%s7972_s0 + $0x2e0] ss:$72 sps:$4 sm:$0xff]   ;;  %v6075_v36 = vld [vmem:[%s7972_s0 + $0x36c] ss:$72 sps:$4 sm:$0xff]  }
 0x122   : > { %5401 = vmatprep.subr.bf16.mxu1 %v6007_v38  ;;  %5465 = vmatprep.subr.bf16.mxu0 %v6008_v41  ;;  %v6077_v37 = vld [vmem:[%s7972_s0 + $0x374] ss:$72 sps:$4 sm:$0xff]  }
 0x123   : > { %v6091_v38 = vld [vmem:[%s7022_s30 + $0x1f8] sm:$0xff]  }
 0x124   : > { %3631 = vmatmul.mubr.bf16.gmra.mrb[12].mxu0 %v6005_v39  ;;  %3663 = vmatmul.mubr.bf16.gmra.mrb[12].mxu1 %v6006_v40  ;;  %v6092_v39 = vld [vmem:[%s7022_s30 + $0x1b8] sm:$0xff]  }
 0x125   : > { %5402 = vmatpush3.bf16.msra.mxu1 %v6009_v42  ;;  %5466 = vmatpush3.bf16.msra.mxu0 %v6010_v43  ;;  %v6093_v40 = vld [vmem:[%s7022_s30 + $0x278] sm:$0xff]   ;;  %v6079_v42 = vld [vmem:[%s7972_s0 + $0x368] ss:$72 sps:$4 sm:$0xff]  }
 0x126   : > { %5403 = vmatprep.subr.bf16.mxu1 %v6011_v44  ;;  %5467 = vmatprep.subr.bf16.mxu0 %v6012_v45  ;;  %v6094_v41 = vld [vmem:[%s7022_s30 + $0x238] sm:$0xff]   ;;  %v6087_v45 = vld [vmem:[%s7972_s0 + $0x404] ss:$72 sps:$4 sm:$0xff]  }
 0x127   : > { %3703 = vmatprep.mubr.bf16.mxu1 %v6017_v46  ;;  %3800 = vmatprep.mubr.bf16.mxu0 %v6020_v48  ;;  %v6080_v43 = vld [vmem:[%s7972_s0 + $0x370] ss:$72 sps:$4 sm:$0xff]   ;;  %v6085_v44 = vld [vmem:[%s7972_s0 + $0x3fc] ss:$72 sps:$4 sm:$0xff]  }
 0x128   : > { %v6101_v46 = vld [vmem:[%s7022_s30 + $0x2c0] sm:$0xff]  }
 0x129   : > { %5404 = vmatpush3.bf16.msra.mxu1 %v6013_v47  ;;  %5468 = vmatpush3.bf16.msra.mxu0 %v6014_v49  ;;  %v6103_v47 = vld [vmem:[%s7022_s30 + $0x340] sm:$0xff]  }
 0x12a   : > { %5517 = vmatprep.subr.bf16.mxu1 %v6021_v50  ;;  %5581 = vmatprep.subr.bf16.mxu0 %v6023_v52  ;;  %v6089_v48 = vld [vmem:[%s7972_s0 + $0x3f8] ss:$72 sps:$4 sm:$0xff]   ;;  %v6097_v50 = vld [vmem:[%s7972_s0 + $0x1c] ss:$72 sps:$4 sm:$0xff]  }
 0x12b   : > { %v6090_v49 = vld [vmem:[%s7972_s0 + $0x400] ss:$72 sps:$4 sm:$0xff]  }
 0x12c   : > { %3704 = vmatmul.mubr.bf16.vlgmr.msra.gmra.mrb[16].mxu1 %v6015_v51  ;;  %3801 = vmatmul.mubr.bf16.vlgmr.msra.gmra.mrb[16].mxu0 %v6018_v53  ;;  %v6100_v51 = vld [vmem:[%s7972_s0 + $0x24] ss:$72 sps:$4 sm:$0xff]   ;;  %v6095_v52 = vld [vmem:[%s7972_s0 + $0x18] ss:$72 sps:$4 sm:$0xff]  }
 0x12d   : > { %5518 = vmatpush3.bf16.msra.mxu1 %v6022_v54  ;;  %5582 = vmatpush3.bf16.msra.mxu0 %v6024_v55  ;;  %v6098_v53 = vld [vmem:[%s7972_s0 + $0x20] ss:$72 sps:$4 sm:$0xff]  }
 0x12e   : > { %3711 = vmatprep.mubr.bf16.mxu1 %v6025_v56  ;;  %3808 = vmatprep.mubr.bf16.mxu0 %v6027_v57  ;;  %v6102_v54 = vld [vmem:[%s7022_s30 + $0x280] sm:$0xff]   ;;  %v6105_v56 = vld [vmem:[%s7972_s0 + $0xac] ss:$72 sps:$4 sm:$0xff]  }
 0x12f   : > { %5519 = vmatprep.subr.bf16.mxu1 %v6031_v58  ;;  %5583 = vmatprep.subr.bf16.mxu0 %v6033_v60  ;;  %v6104_v55 = vld [vmem:[%s7022_s30 + $0x300] sm:$0xff]   ;;  %v6107_v57 = vld [vmem:[%s7972_s0 + $0xb4] ss:$72 sps:$4 sm:$0xff]   ;;  %v6111_v58 = vld [vmem:[%s7022_s30 + $0x2c8] sm:$0xff]  }
 0x130   : > { %v6112_v60 = vld [vmem:[%s7022_s30 + $0x288] sm:$0xff]  }
 0x131   : > { %5520 = vmatpush3.bf16.msra.mxu1 %v6032_v59  ;;  %5584 = vmatpush3.bf16.msra.mxu0 %v6034_v61  ;;  %v6113_v59 = vld [vmem:[%s7022_s30 + $0x348] sm:$0xff]  }
 0x132   : > { %5521 = vmatprep.subr.bf16.mxu1 %v6041_v2  ;;  %5585 = vmatprep.subr.bf16.mxu0 %v6043_v4  ;;  %v6114_v61 = vld [vmem:[%s7022_s30 + $0x308] sm:$0xff]   ;;  %v6115_v2 = vld [vmem:[%s7972_s0 + $0x13c] ss:$72 sps:$4 sm:$0xff]   ;;  %v6122_v4 = vld [vmem:[%s7022_s30 + $0x290] sm:$0xff]  }
 0x134   : > { %3712 = vmatmul.mubr.bf16.gmra.mrb[20].mxu1 %v6029_v62  ;;  %3809 = vmatmul.mubr.bf16.gmra.mrb[20].mxu0 %v6030_v63  ;;  %v6121_v62 = vld [vmem:[%s7022_s30 + $0x2d0] sm:$0xff]  }
 0x135   : > { %3719 = vmatprep.mubr.bf16.mxu1 %v6035_v0  ;;  %3816 = vmatprep.mubr.bf16.mxu0 %v6037_v1  ;;  %v6109_v63 = vld [vmem:[%s7972_s0 + $0xa8] ss:$72 sps:$4 sm:$0xff]  }
 0x136   : > { %5522 = vmatpush3.bf16.msra.mxu1 %v6042_v3  ;;  %5586 = vmatpush3.bf16.msra.mxu0 %v6044_v5  ;;  %v6110_v0 = vld [vmem:[%s7972_s0 + $0xb0] ss:$72 sps:$4 sm:$0xff]   ;;  %v6117_v3 = vld [vmem:[%s7972_s0 + $0x144] ss:$72 sps:$4 sm:$0xff]  }
 0x137   : > { %5523 = vmatprep.subr.bf16.mxu1 %v6051_v10  ;;  %5587 = vmatprep.subr.bf16.mxu0 %v6053_v12  ;;  %v6123_v1 = vld [vmem:[%s7022_s30 + $0x350] sm:$0xff]   ;;  %v6119_v10 = vld [vmem:[%s7972_s0 + $0x138] ss:$72 sps:$4 sm:$0xff]  }
 0x138   : > { %v6124_v5 = vld [vmem:[%s7022_s30 + $0x310] sm:$0xff]   ;;  %v6143_v12 = vld [vmem:[%s7022_s30 + $0x360] sm:$0xff]  }
 0x13a   : > { %5524 = vmatpush3.bf16.msra.mxu1 %v6052_v11  ;;  %5588 = vmatpush3.bf16.msra.mxu0 %v6054_v13  ;;  %v6141_v11 = vld [vmem:[%s7022_s30 + $0x2e0] sm:$0xff]  }
 0x13b   : > { %5525 = vmatprep.subr.bf16.mxu1 %v6061_v16  ;;  %5589 = vmatprep.subr.bf16.mxu0 %v6063_v20  ;;  %v6120_v13 = vld [vmem:[%s7972_s0 + $0x140] ss:$72 sps:$4 sm:$0xff]  }
 0x13c   : > { %3720 = vmatmul.mubr.bf16.gmra.mrb[24].mxu1 %v6039_v6  ;;  %3817 = vmatmul.mubr.bf16.gmra.mrb[24].mxu0 %v6040_v7  ;;  %v6131_v6 = vld [vmem:[%s7022_s30 + $0x2d8] sm:$0xff]   ;;  %v6142_v16 = vld [vmem:[%s7022_s30 + $0x2a0] sm:$0xff]   ;;  %v6152_v20 = vld [vmem:[%s7022_s30 + $0x2a8] sm:$0xff]  }
 0x13d   : > { %3727 = vmatprep.mubr.bf16.mxu1 %v6045_v8  ;;  %3824 = vmatprep.mubr.bf16.mxu0 %v6047_v9  ;;  %v6133_v7 = vld [vmem:[%s7022_s30 + $0x358] sm:$0xff]  }
 0x13e   : > { %5526 = vmatpush3.bf16.msra.mxu1 %v6062_v19  ;;  %5590 = vmatpush3.bf16.msra.mxu0 %v6064_v21  ;;  %v6132_v8 = vld [vmem:[%s7022_s30 + $0x298] sm:$0xff]   ;;  %v6153_v19 = vld [vmem:[%s7022_s30 + $0x368] sm:$0xff]  }
 0x13f   : > { %5527 = vmatprep.subr.bf16.mxu1 %v6071_v22  ;;  %5591 = vmatprep.subr.bf16.mxu0 %v6073_v27  ;;  %v6134_v9 = vld [vmem:[%s7022_s30 + $0x318] sm:$0xff]   ;;  %v6129_v21 = vld [vmem:[%s7972_s0 + $0x1c8] ss:$72 sps:$4 sm:$0xff]  }
 0x140   : > { %v6154_v22 = vld [vmem:[%s7022_s30 + $0x328] sm:$0xff]   ;;  %v6162_v27 = vld [vmem:[%s7022_s30 + $0x2b0] sm:$0xff]  }
 0x142   : > { %5528 = vmatpush3.bf16.msra.mxu1 %v6072_v25  ;;  %5592 = vmatpush3.bf16.msra.mxu0 %v6074_v28  ;;  %v6137_v25 = vld [vmem:[%s7972_s0 + $0x264] ss:$72 sps:$4 sm:$0xff]   ;;  %v6163_v28 = vld [vmem:[%s7022_s30 + $0x370] sm:$0xff]  }
 0x143   : > { %5529 = vmatprep.subr.bf16.mxu1 %v6081_v30  ;;  %5593 = vmatprep.subr.bf16.mxu0 %v6083_v33  ;;  %v6139_v30 = vld [vmem:[%s7972_s0 + $0x258] ss:$72 sps:$4 sm:$0xff]   ;;  %v6147_v33 = vld [vmem:[%s7972_s0 + $0x2f4] ss:$72 sps:$4 sm:$0xff]  }
 0x144   : > { %3728 = vmatmul.mubr.bf16.gmra.mrb[28].mxu1 %v6049_v14  ;;  %3825 = vmatmul.mubr.bf16.gmra.mrb[28].mxu0 %v6050_v15  ;;  %v6125_v14 = vld [vmem:[%s7972_s0 + $0x1cc] ss:$72 sps:$4 sm:$0xff]  }
 0x145   : > { %3735 = vmatprep.mubr.bf16.mxu1 %v6055_v17  ;;  %3832 = vmatprep.mubr.bf16.mxu0 %v6057_v18  ;;  %v6127_v15 = vld [vmem:[%s7972_s0 + $0x1d4] ss:$72 sps:$4 sm:$0xff]   ;;  %v6144_v17 = vld [vmem:[%s7022_s30 + $0x320] sm:$0xff]   ;;  %v6151_v18 = vld [vmem:[%s7022_s30 + $0x2e8] sm:$0xff]  }
 0x146   : > { %5530 = vmatpush3.bf16.msra.mxu1 %v6082_v31  ;;  %5594 = vmatpush3.bf16.msra.mxu0 %v6084_v34  ;;  %v6140_v31 = vld [vmem:[%s7972_s0 + $0x260] ss:$72 sps:$4 sm:$0xff]   ;;  %v6171_v34 = vld [vmem:[%s7022_s30 + $0x2f8] sm:$0xff]  }
 0x147   : > { %5531 = vmatprep.subr.bf16.mxu1 %v6091_v38  ;;  %5595 = vmatprep.subr.bf16.mxu0 %v6093_v40  ;;  %v6149_v38 = vld [vmem:[%s7972_s0 + $0x2e8] ss:$72 sps:$4 sm:$0xff]   ;;  %v6181_v40 = vld [vmem:[%s7022_s30 + $0x3c0] sm:$0xff]  }
 0x14a   : > { %5532 = vmatpush3.bf16.msra.mxu1 %v6092_v39  ;;  %5596 = vmatpush3.bf16.msra.mxu0 %v6094_v41  ;;  %v6150_v39 = vld [vmem:[%s7972_s0 + $0x2f0] ss:$72 sps:$4 sm:$0xff]   ;;  %v6155_v41 = vld [vmem:[%s7972_s0 + $0x37c] ss:$72 sps:$4 sm:$0xff]  }
 0x14b   : > { %5645 = vmatprep.subr.bf16.mxu1 %v6101_v46  ;;  %5709 = vmatprep.subr.bf16.mxu0 %v6103_v47  ;;  %v6165_v46 = vld [vmem:[%s7972_s0 + $0x40c] ss:$72 sps:$4 sm:$0xff]  }
 0x14c   : > { %3736 = vmatmul.mubr.bf16.gmra.mrb[32].mxu1 %v6059_v23  ;;  %3833 = vmatmul.mubr.bf16.gmra.mrb[32].mxu0 %v6060_v24  ;;  %v6130_v23 = vld [vmem:[%s7972_s0 + $0x1d0] ss:$72 sps:$4 sm:$0xff]   ;;  %v6135_v24 = vld [vmem:[%s7972_s0 + $0x25c] ss:$72 sps:$4 sm:$0xff]  }
 0x14d   : > { %3743 = vmatprep.mubr.bf16.mxu1 %v6065_v26  ;;  %3840 = vmatprep.mubr.bf16.mxu0 %v6067_v29  ;;  %v6161_v26 = vld [vmem:[%s7022_s30 + $0x2f0] sm:$0xff]  }
 0x14e   : > { %v6164_v29 = vld [vmem:[%s7022_s30 + $0x330] sm:$0xff]  }
 0x14f   : > { %v6167_v47 = vld [vmem:[%s7972_s0 + $0x414] ss:$72 sps:$4 sm:$0xff]  }
 0x154   : > { %3744 = vmatmul.mubr.bf16.gmra.mrb[36].mxu1 %v6069_v32  ;;  %3841 = vmatmul.mubr.bf16.gmra.mrb[36].mxu0 %v6070_v35  ;;  %v6145_v32 = vld [vmem:[%s7972_s0 + $0x2ec] ss:$72 sps:$4 sm:$0xff]   ;;  %v6172_v35 = vld [vmem:[%s7022_s30 + $0x2b8] sm:$0xff]  }
 0x155   : > { %3751 = vmatprep.mubr.bf16.mxu1 %v6075_v36  ;;  %3848 = vmatprep.mubr.bf16.mxu0 %v6077_v37  ;;  %v6173_v36 = vld [vmem:[%s7022_s30 + $0x378] sm:$0xff]  }
 0x156   : > { %v6174_v37 = vld [vmem:[%s7022_s30 + $0x338] sm:$0xff]  }
 0x15c   : > { %3752 = vmatmul.mubr.bf16.gmra.mrb[40].mxu1 %v6079_v42  ;;  %3849 = vmatmul.mubr.bf16.gmra.mrb[40].mxu0 %v6080_v43  ;;  %v6183_v42 = vld [vmem:[%s7022_s30 + $0x440] sm:$0xff]  }
 0x15d   : > { %3759 = vmatprep.mubr.bf16.mxu1 %v6085_v44  ;;  %3856 = vmatprep.mubr.bf16.mxu0 %v6087_v45  ;;  %v6157_v43 = vld [vmem:[%s7972_s0 + $0x384] ss:$72 sps:$4 sm:$0xff]   ;;  %v6159_v44 = vld [vmem:[%s7972_s0 + $0x378] ss:$72 sps:$4 sm:$0xff]  }
 0x15e   : > { %v6160_v45 = vld [vmem:[%s7972_s0 + $0x380] ss:$72 sps:$4 sm:$0xff]  }
 0x164   : > { %3760 = vmatmul.mubr.bf16.gmra.mrb[44].mxu1 %v6089_v48  ;;  %3857 = vmatmul.mubr.bf16.gmra.mrb[44].mxu0 %v6090_v49  ;;  %v6169_v48 = vld [vmem:[%s7972_s0 + $0x408] ss:$72 sps:$4 sm:$0xff]  }
 0x165   : > { %3897 = vmatprep.mubr.bf16.mxu1 %v6097_v50  ;;  %3994 = vmatprep.mubr.bf16.mxu0 %v6100_v51  ;;  %v6170_v49 = vld [vmem:[%s7972_s0 + $0x410] ss:$72 sps:$4 sm:$0xff]   ;;  %v6177_v50 = vld [vmem:[%s7972_s0 + $0x2c] ss:$72 sps:$4 sm:$0xff]  }
 0x166   : > { %v6180_v51 = vld [vmem:[%s7972_s0 + $0x34] ss:$72 sps:$4 sm:$0xff]  }
 0x16c   : > { %3898 = vmatmul.mubr.bf16.vlgmr.msra.gmra.mrb[48].mxu1 %v6095_v52  ;;  %3995 = vmatmul.mubr.bf16.vlgmr.msra.gmra.mrb[48].mxu0 %v6098_v53  ;;  %v6175_v52 = vld [vmem:[%s7972_s0 + $0x28] ss:$72 sps:$4 sm:$0xff]  }
 0x16d   : > { %5646 = vmatpush3.bf16.msra.mxu1 %v6102_v54  ;;  %5710 = vmatpush3.bf16.msra.mxu0 %v6104_v55  ;;  %v6178_v53 = vld [vmem:[%s7972_s0 + $0x30] ss:$72 sps:$4 sm:$0xff]   ;;  %v6182_v54 = vld [vmem:[%s7022_s30 + $0x380] sm:$0xff]  }
 0x16e   : > { %3905 = vmatprep.mubr.bf16.mxu1 %v6105_v56  ;;  %4002 = vmatprep.mubr.bf16.mxu0 %v6107_v57  ;;  %v6184_v55 = vld [vmem:[%s7022_s30 + $0x400] sm:$0xff]  }
 0x16f   : > { %5647 = vmatprep.subr.bf16.mxu1 %v6111_v58  ;;  %5711 = vmatprep.subr.bf16.mxu0 %v6113_v59  ;;  %v6185_v56 = vld [vmem:[%s7972_s0 + $0xbc] ss:$72 sps:$4 sm:$0xff]   ;;  %v6191_v58 = vld [vmem:[%s7022_s30 + $0x3c8] sm:$0xff]  }
 0x170   : > { %v6187_v57 = vld [vmem:[%s7972_s0 + $0xc4] ss:$72 sps:$4 sm:$0xff]  }
 0x171   : > { %5648 = vmatpush3.bf16.msra.mxu1 %v6112_v60  ;;  %5712 = vmatpush3.bf16.msra.mxu0 %v6114_v61  ;;  %v6193_v59 = vld [vmem:[%s7022_s30 + $0x448] sm:$0xff]  }
 0x172   : > { %5649 = vmatprep.subr.bf16.mxu1 %v6121_v62  ;;  %5713 = vmatprep.subr.bf16.mxu0 %v6123_v1  ;;  %v6192_v60 = vld [vmem:[%s7022_s30 + $0x388] sm:$0xff]   ;;  %v6189_v62 = vld [vmem:[%s7972_s0 + $0xb8] ss:$72 sps:$4 sm:$0xff]   ;;  %v6203_v1 = vld [vmem:[%s7022_s30 + $0x450] sm:$0xff]  }
 0x173   : > { %v6194_v61 = vld [vmem:[%s7022_s30 + $0x408] sm:$0xff]  }
 0x174   : > { %3906 = vmatmul.mubr.bf16.gmra.mrb[52].mxu1 %v6109_v63  ;;  %4003 = vmatmul.mubr.bf16.gmra.mrb[52].mxu0 %v6110_v0  ;;  %v6190_v63 = vld [vmem:[%s7972_s0 + $0xc0] ss:$72 sps:$4 sm:$0xff]   ;;  %v6201_v0 = vld [vmem:[%s7022_s30 + $0x3d0] sm:$0xff]  }
 0x175   : > { %3913 = vmatprep.mubr.bf16.mxu1 %v6115_v2  ;;  %4010 = vmatprep.mubr.bf16.mxu0 %v6117_v3  ;;  %v6195_v2 = vld [vmem:[%s7972_s0 + $0x14c] ss:$72 sps:$4 sm:$0xff]  }
 0x176   : > { %5650 = vmatpush3.bf16.msra.mxu1 %v6122_v4  ;;  %5714 = vmatpush3.bf16.msra.mxu0 %v6124_v5  ;;  %v6197_v3 = vld [vmem:[%s7972_s0 + $0x154] ss:$72 sps:$4 sm:$0xff]  }
 0x177   : > { %5651 = vmatprep.subr.bf16.mxu1 %v6131_v6  ;;  %5715 = vmatprep.subr.bf16.mxu0 %v6133_v7  ;;  %v6202_v4 = vld [vmem:[%s7022_s30 + $0x390] sm:$0xff]   ;;  %v6211_v6 = vld [vmem:[%s7022_s30 + $0x3d8] sm:$0xff]  }
 0x178   : > { %v6204_v5 = vld [vmem:[%s7022_s30 + $0x410] sm:$0xff]   ;;  %v6213_v7 = vld [vmem:[%s7022_s30 + $0x458] sm:$0xff]  }
 0x17a   : > { %5652 = vmatpush3.bf16.msra.mxu1 %v6132_v8  ;;  %5716 = vmatpush3.bf16.msra.mxu0 %v6134_v9  ;;  %v6212_v8 = vld [vmem:[%s7022_s30 + $0x398] sm:$0xff]  }
 0x17b   : > { %5653 = vmatprep.subr.bf16.mxu1 %v6141_v11  ;;  %5717 = vmatprep.subr.bf16.mxu0 %v6143_v12  ;;  %v6214_v9 = vld [vmem:[%s7022_s30 + $0x418] sm:$0xff]   ;;  %v6221_v12 = vld [vmem:[%s7022_s30 + $0x3e0] sm:$0xff]  }
 0x17c   : > { %3914 = vmatmul.mubr.bf16.gmra.mrb[56].mxu1 %v6119_v10  ;;  %4011 = vmatmul.mubr.bf16.gmra.mrb[56].mxu0 %v6120_v13  ;;  %v6199_v10 = vld [vmem:[%s7972_s0 + $0x148] ss:$72 sps:$4 sm:$0xff]   ;;  %v6205_v13 = vld [vmem:[%s7972_s0 + $0x1dc] ss:$72 sps:$4 sm:$0xff]  }
 0x17d   : > { %3921 = vmatprep.mubr.bf16.mxu1 %v6125_v14  ;;  %4018 = vmatprep.mubr.bf16.mxu0 %v6127_v15  ;;  %v6200_v11 = vld [vmem:[%s7972_s0 + $0x150] ss:$72 sps:$4 sm:$0xff]   ;;  %v6207_v14 = vld [vmem:[%s7972_s0 + $0x1e4] ss:$72 sps:$4 sm:$0xff]  }
 0x17e   : > { %5654 = vmatpush3.bf16.msra.mxu1 %v6142_v16  ;;  %5718 = vmatpush3.bf16.msra.mxu0 %v6144_v17  ;;  %v6223_v15 = vld [vmem:[%s7022_s30 + $0x460] sm:$0xff]  }
 0x17f   : > { %5655 = vmatprep.subr.bf16.mxu1 %v6151_v18  ;;  %5719 = vmatprep.subr.bf16.mxu0 %v6153_v19  ;;  %v6222_v16 = vld [vmem:[%s7022_s30 + $0x3a0] sm:$0xff]   ;;  %v6231_v18 = vld [vmem:[%s7022_s30 + $0x3e8] sm:$0xff]  }
 0x180   : > { %v6224_v17 = vld [vmem:[%s7022_s30 + $0x420] sm:$0xff]   ;;  %v6233_v19 = vld [vmem:[%s7022_s30 + $0x468] sm:$0xff]  }
 0x182   : > { %5656 = vmatpush3.bf16.msra.mxu1 %v6152_v20  ;;  %5720 = vmatpush3.bf16.msra.mxu0 %v6154_v22  ;;  %v6232_v20 = vld [vmem:[%s7022_s30 + $0x3a8] sm:$0xff]   ;;  %v6209_v22 = vld [vmem:[%s7972_s0 + $0x1d8] ss:$72 sps:$4 sm:$0xff]  }
 0x183   : > { %5657 = vmatprep.subr.bf16.mxu1 %v6161_v26  ;;  %5721 = vmatprep.subr.bf16.mxu0 %v6163_v28  ;;  %v6243_v26 = vld [vmem:[%s7022_s30 + $0x470] sm:$0xff]  }
 0x184   : > { %3922 = vmatmul.mubr.bf16.gmra.mrb[60].mxu1 %v6129_v21  ;;  %4019 = vmatmul.mubr.bf16.gmra.mrb[60].mxu0 %v6130_v23  ;;  %v6234_v21 = vld [vmem:[%s7022_s30 + $0x428] sm:$0xff]   ;;  %v6242_v28 = vld [vmem:[%s7022_s30 + $0x3b0] sm:$0xff]  }
 0x185   : > { %3929 = vmatprep.mubr.bf16.mxu1 %v6135_v24  ;;  %4026 = vmatprep.mubr.bf16.mxu0 %v6137_v25  ;;  %v6210_v23 = vld [vmem:[%s7972_s0 + $0x1e0] ss:$72 sps:$4 sm:$0xff]   ;;  %v6241_v24 = vld [vmem:[%s7022_s30 + $0x3f0] sm:$0xff]  }
 0x186   : > { %5658 = vmatpush3.bf16.msra.mxu1 %v6162_v27  ;;  %5722 = vmatpush3.bf16.msra.mxu0 %v6164_v29  ;;  %v6215_v25 = vld [vmem:[%s7972_s0 + $0x26c] ss:$72 sps:$4 sm:$0xff]  }
 0x187   : > { %5659 = vmatprep.subr.bf16.mxu1 %v6171_v34  ;;  %5723 = vmatprep.subr.bf16.mxu0 %v6173_v36  ;;  %v6217_v27 = vld [vmem:[%s7972_s0 + $0x274] ss:$72 sps:$4 sm:$0xff]   ;;  %v6219_v34 = vld [vmem:[%s7972_s0 + $0x268] ss:$72 sps:$4 sm:$0xff]  }
 0x188   : > { %v6244_v29 = vld [vmem:[%s7022_s30 + $0x430] sm:$0xff]   ;;  %v6225_v36 = vld [vmem:[%s7972_s0 + $0x2fc] ss:$72 sps:$4 sm:$0xff]  }
 0x18a   : > { %5660 = vmatpush3.bf16.msra.mxu1 %v6172_v35  ;;  %5724 = vmatpush3.bf16.msra.mxu0 %v6174_v37  ;;  %v6220_v35 = vld [vmem:[%s7972_s0 + $0x270] ss:$72 sps:$4 sm:$0xff]   ;;  %v6227_v37 = vld [vmem:[%s7972_s0 + $0x304] ss:$72 sps:$4 sm:$0xff]  }
 0x18b   : > { %5773 = vmatprep.subr.bf16.mxu1 %v6181_v40  ;;  %5837 = vmatprep.subr.bf16.mxu0 %v6183_v42  ;;  %v6235_v40 = vld [vmem:[%s7972_s0 + $0x38c] ss:$72 sps:$4 sm:$0xff]   ;;  %v6239_v42 = vld [vmem:[%s7972_s0 + $0x388] ss:$72 sps:$4 sm:$0xff]  }
 0x18c   : > { %3930 = vmatmul.mubr.bf16.gmra.mrb[64].mxu1 %v6139_v30  ;;  %4027 = vmatmul.mubr.bf16.gmra.mrb[64].mxu0 %v6140_v31  ;;  %v6251_v30 = vld [vmem:[%s7022_s30 + $0x3f8] sm:$0xff]  }
 0x18d   : > { %3937 = vmatprep.mubr.bf16.mxu1 %v6145_v32  ;;  %4034 = vmatprep.mubr.bf16.mxu0 %v6147_v33  ;;  %v6253_v31 = vld [vmem:[%s7022_s30 + $0x478] sm:$0xff]  }
 0x18e   : > { %v6252_v32 = vld [vmem:[%s7022_s30 + $0x3b8] sm:$0xff]  }
 0x18f   : > { %v6254_v33 = vld [vmem:[%s7022_s30 + $0x438] sm:$0xff]  }
 0x194   : > { %3938 = vmatmul.mubr.bf16.gmra.mrb[68].mxu1 %v6149_v38  ;;  %4035 = vmatmul.mubr.bf16.gmra.mrb[68].mxu0 %v6150_v39  ;;  %v6229_v38 = vld [vmem:[%s7972_s0 + $0x2f8] ss:$72 sps:$4 sm:$0xff]  }
 0x195   : > { %3945 = vmatprep.mubr.bf16.mxu1 %v6155_v41  ;;  %4042 = vmatprep.mubr.bf16.mxu0 %v6157_v43  ;;  %v6230_v39 = vld [vmem:[%s7972_s0 + $0x300] ss:$72 sps:$4 sm:$0xff]   ;;  %v6237_v41 = vld [vmem:[%s7972_s0 + $0x394] ss:$72 sps:$4 sm:$0xff]   ;;  %v6240_v43 = vld [vmem:[%s7972_s0 + $0x390] ss:$72 sps:$4 sm:$0xff]  }
 0x19c   : > { %3946 = vmatmul.mubr.bf16.gmra.mrb[72].mxu1 %v6159_v44  ;;  %4043 = vmatmul.mubr.bf16.gmra.mrb[72].mxu0 %v6160_v45  ;;  %v6245_v44 = vld [vmem:[%s7972_s0 + $0x41c] ss:$72 sps:$4 sm:$0xff]  }
 0x19d   : > { %3953 = vmatprep.mubr.bf16.mxu1 %v6165_v46  ;;  %4050 = vmatprep.mubr.bf16.mxu0 %v6167_v47  ;;  %v6247_v45 = vld [vmem:[%s7972_s0 + $0x424] ss:$72 sps:$4 sm:$0xff]  }
 0x1a4   : > { %3954 = vmatmul.mubr.bf16.gmra.mrb[76].mxu1 %v6169_v48  ;;  %4051 = vmatmul.mubr.bf16.gmra.mrb[76].mxu0 %v6170_v49 }
 0x1a5   : > { %4091 = vmatprep.mubr.bf16.mxu1 %v6177_v50  ;;  %4188 = vmatprep.mubr.bf16.mxu0 %v6180_v51  ;;  %v6249_v50 = vld [vmem:[%s7972_s0 + $0x418] ss:$72 sps:$4 sm:$0xff]  }
 0x1a6   : > { %v6250_v51 = vld [vmem:[%s7972_s0 + $0x420] ss:$72 sps:$4 sm:$0xff]  }
 0x1ac   : > { %4092 = vmatmul.mubr.bf16.vlgmr.msra.gmra.mrb[80].mxu1 %v6175_v52  ;;  %4189 = vmatmul.mubr.bf16.vlgmr.msra.gmra.mrb[80].mxu0 %v6178_v53 }
 0x1ad   : > { %5774 = vmatpush3.bf16.msra.mxu1 %v6182_v54  ;;  %5838 = vmatpush3.bf16.msra.mxu0 %v6184_v55 }
 0x1ae   : > { %4099 = vmatprep.mubr.bf16.mxu1 %v6185_v56  ;;  %4196 = vmatprep.mubr.bf16.mxu0 %v6187_v57  ;;  %v6257_v56 = vld [vmem:[%s7972_s0 + $0x3c] ss:$72 sps:$4 sm:$0xff]  }
 0x1af   : > { %5775 = vmatprep.subr.bf16.mxu1 %v6191_v58  ;;  %5839 = vmatprep.subr.bf16.mxu0 %v6193_v59  ;;  %v6260_v57 = vld [vmem:[%s7972_s0 + $0x44] ss:$72 sps:$4 sm:$0xff]  }
 0x1b1   : > { %5776 = vmatpush3.bf16.msra.mxu1 %v6192_v60  ;;  %5840 = vmatpush3.bf16.msra.mxu0 %v6194_v61 }
 0x1b2   : > { %5777 = vmatprep.subr.bf16.mxu1 %v6201_v0  ;;  %5841 = vmatprep.subr.bf16.mxu0 %v6203_v1 }
 0x1b4   : > { %4100 = vmatmul.mubr.bf16.gmra.mrb[84].mxu1 %v6189_v62  ;;  %4197 = vmatmul.mubr.bf16.gmra.mrb[84].mxu0 %v6190_v63 }
 0x1b5   : > { %4107 = vmatprep.mubr.bf16.mxu1 %v6195_v2  ;;  %4204 = vmatprep.mubr.bf16.mxu0 %v6197_v3  ;;  %v6255_v2 = vld [vmem:[%s7972_s0 + $0x38] ss:$72 sps:$4 sm:$0xff]  }
 0x1b6   : > { %5778 = vmatpush3.bf16.msra.mxu1 %v6202_v4  ;;  %5842 = vmatpush3.bf16.msra.mxu0 %v6204_v5  ;;  %v6258_v3 = vld [vmem:[%s7972_s0 + $0x40] ss:$72 sps:$4 sm:$0xff]  }
 0x1b7   : > { %5779 = vmatprep.subr.bf16.mxu1 %v6211_v6  ;;  %5843 = vmatprep.subr.bf16.mxu0 %v6213_v7 }
 0x1ba   : > { %5780 = vmatpush3.bf16.msra.mxu1 %v6212_v8  ;;  %5844 = vmatpush3.bf16.msra.mxu0 %v6214_v9  ;;  %v6261_v8 = vld [vmem:[%s7972_s0 + $0xcc] ss:$72 sps:$4 sm:$0xff]  }
 0x1bb   : > { %5781 = vmatprep.subr.bf16.mxu1 %v6221_v12  ;;  %5845 = vmatprep.subr.bf16.mxu0 %v6223_v15  ;;  %v6263_v9 = vld [vmem:[%s7972_s0 + $0xd4] ss:$72 sps:$4 sm:$0xff]  }
 0x1bc   : > { %4108 = vmatmul.mubr.bf16.gmra.mrb[88].mxu1 %v6199_v10  ;;  %4205 = vmatmul.mubr.bf16.gmra.mrb[88].mxu0 %v6200_v11 }
 0x1bd   : > { %4115 = vmatprep.mubr.bf16.mxu1 %v6205_v13  ;;  %4212 = vmatprep.mubr.bf16.mxu0 %v6207_v14 }
 0x1be   : > { %5782 = vmatpush3.bf16.msra.mxu1 %v6222_v16  ;;  %5846 = vmatpush3.bf16.msra.mxu0 %v6224_v17 }
 0x1bf   : > { %5783 = vmatprep.subr.bf16.mxu1 %v6231_v18  ;;  %5847 = vmatprep.subr.bf16.mxu0 %v6233_v19  ;;  %v6265_v18 = vld [vmem:[%s7972_s0 + $0xc8] ss:$72 sps:$4 sm:$0xff]  }
 0x1c0   : > { %v6266_v19 = vld [vmem:[%s7972_s0 + $0xd0] ss:$72 sps:$4 sm:$0xff]  }
 0x1c2   : > { %5784 = vmatpush3.bf16.msra.mxu1 %v6232_v20  ;;  %5848 = vmatpush3.bf16.msra.mxu0 %v6234_v21 }
 0x1c3   : > { %5785 = vmatprep.subr.bf16.mxu1 %v6241_v24  ;;  %5849 = vmatprep.subr.bf16.mxu0 %v6243_v26  ;;  %v6267_v24 = vld [vmem:[%s7972_s0 + $0x15c] ss:$72 sps:$4 sm:$0xff]  }
 0x1c4   : > { %4116 = vmatmul.mubr.bf16.gmra.mrb[92].mxu1 %v6209_v22  ;;  %4213 = vmatmul.mubr.bf16.gmra.mrb[92].mxu0 %v6210_v23 }
 0x1c5   : > { %4123 = vmatprep.mubr.bf16.mxu1 %v6215_v25  ;;  %4220 = vmatprep.mubr.bf16.mxu0 %v6217_v27  ;;  %v6269_v25 = vld [vmem:[%s7972_s0 + $0x164] ss:$72 sps:$4 sm:$0xff]  }
 0x1c6   : > { %5786 = vmatpush3.bf16.msra.mxu1 %v6242_v28  ;;  %5850 = vmatpush3.bf16.msra.mxu0 %v6244_v29 }
 0x1c7   : > { %5787 = vmatprep.subr.bf16.mxu1 %v6251_v30  ;;  %5851 = vmatprep.subr.bf16.mxu0 %v6253_v31 }
 0x1ca   : > { %5788 = vmatpush3.bf16.msra.mxu1 %v6252_v32  ;;  %5852 = vmatpush3.bf16.msra.mxu0 %v6254_v33 }
 0x1cc   : > { %4124 = vmatmul.mubr.bf16.gmra.mrb[96].mxu1 %v6219_v34  ;;  %4221 = vmatmul.mubr.bf16.gmra.mrb[96].mxu0 %v6220_v35  ;;  %v6271_v34 = vld [vmem:[%s7972_s0 + $0x158] ss:$72 sps:$4 sm:$0xff]  }
 0x1cd   : > { %4131 = vmatprep.mubr.bf16.mxu1 %v6225_v36  ;;  %4228 = vmatprep.mubr.bf16.mxu0 %v6227_v37  ;;  %v6272_v35 = vld [vmem:[%s7972_s0 + $0x160] ss:$72 sps:$4 sm:$0xff]  }
 0x1d4   : > { %4132 = vmatmul.mubr.bf16.gmra.mrb[100].mxu1 %v6229_v38  ;;  %4229 = vmatmul.mubr.bf16.gmra.mrb[100].mxu0 %v6230_v39 }
 0x1d5   : > { %4139 = vmatprep.mubr.bf16.mxu1 %v6235_v40  ;;  %4236 = vmatprep.mubr.bf16.mxu0 %v6237_v41  ;;  %v6273_v40 = vld [vmem:[%s7972_s0 + $0x1ec] ss:$72 sps:$4 sm:$0xff]  }
 0x1d6   : > { %v6275_v41 = vld [vmem:[%s7972_s0 + $0x1f4] ss:$72 sps:$4 sm:$0xff]  }
 0x1dc   : > { %4140 = vmatmul.mubr.bf16.gmra.mrb[104].mxu1 %v6239_v42  ;;  %4237 = vmatmul.mubr.bf16.gmra.mrb[104].mxu0 %v6240_v43 }
 0x1dd   : > { %4147 = vmatprep.mubr.bf16.mxu1 %v6245_v44  ;;  %4244 = vmatprep.mubr.bf16.mxu0 %v6247_v45 }
 0x1df   : > { %v5341_v46 = vpop.f32.mrb[0].mxu0  ;;  %v5365_v47 = vpop.f32.mrb[0].mxu1 }
 0x1e0   : > { %v5342_v48 = vpop.f32.mrb[1].mxu0  ;;  %v5366_v49 = vpop.f32.mrb[1].mxu1 }
 0x1e1   : > { %v7498_v52 = vadd.f32 %v5342_v48, %v5341_v46  ;;  %v7500_v53 = vadd.f32 %v5366_v49, %v5365_v47  ;;  %v5344_v54 = vpop.f32.mrb[2].mxu0  ;;  %v5368_v55 = vpop.f32.mrb[2].mxu1 }
 0x1e2   : > { %v5345_v58 = vpop.f32.mrb[3].mxu0  ;;  %v5369_v59 = vpop.f32.mrb[3].mxu1 }
 0x1e3   : > { %v7508_v60 = vadd.f32 %v5345_v58, %v5344_v54  ;;  %v7510_v61 = vadd.f32 %v5369_v59, %v5368_v55  ;;  %v6279_v58 = vld [vmem:[%s7972_s0 + $0x27c] ss:$72 sps:$4 sm:$0xff]  }
 0x1e4   : > { %4148 = vmatmul.mubr.bf16.gmra.mrb[108].mxu1 %v6249_v50  ;;  %4245 = vmatmul.mubr.bf16.gmra.mrb[108].mxu0 %v6250_v51  ;;  %v6277_v50 = vld [vmem:[%s7972_s0 + $0x1e8] ss:$72 sps:$4 sm:$0xff]   ;;  %v6281_v59 = vld [vmem:[%s7972_s0 + $0x284] ss:$72 sps:$4 sm:$0xff]  }
 0x1e5   : > { %4285 = vmatprep.mubr.bf16.mxu1 %v6257_v56  ;;  %4382 = vmatprep.mubr.bf16.mxu0 %v6260_v57  ;;  %v6278_v51 = vld [vmem:[%s7972_s0 + $0x1f0] ss:$72 sps:$4 sm:$0xff]  }
 0x1e7   : > { %v5347_v62 = vpop.f32.mrb[4].mxu0  ;;  %v5371_v63 = vpop.f32.mrb[4].mxu1 }
 0x1e8   : > { %v5348_v0 = vpop.f32.mrb[5].mxu0  ;;  %v5372_v1 = vpop.f32.mrb[5].mxu1 }
 0x1e9   : > { %v7518_v4 = vadd.f32 %v5348_v0, %v5347_v62  ;;  %v7520_v5 = vadd.f32 %v5372_v1, %v5371_v63  ;;  %v5350_v6 = vpop.f32.mrb[6].mxu0  ;;  %v5374_v7 = vpop.f32.mrb[6].mxu1 }
 0x1ea   : > { %v5351_v10 = vpop.f32.mrb[7].mxu0  ;;  %v5375_v11 = vpop.f32.mrb[7].mxu1 }
 0x1eb   : > { %v7528_v12 = vadd.f32 %v5351_v10, %v5350_v6  ;;  %v7530_v13 = vadd.f32 %v5375_v11, %v5374_v7 }
 0x1ec   : > { %4286 = vmatmul.mubr.bf16.vlgmr.msra.gmra.mrb[112].mxu1 %v6255_v2  ;;  %4383 = vmatmul.mubr.bf16.vlgmr.msra.gmra.mrb[112].mxu0 %v6258_v3 }
 0x1ed   : > { %4293 = vmatprep.mubr.bf16.mxu1 %v6261_v8  ;;  %4390 = vmatprep.mubr.bf16.mxu0 %v6263_v9 }
 0x1ef   : > { %v5353_v14 = vpop.f32.mrb[8].mxu0  ;;  %v5377_v15 = vpop.f32.mrb[8].mxu1 }
 0x1f0   : > { %v5354_v16 = vpop.f32.mrb[9].mxu0  ;;  %v5378_v17 = vpop.f32.mrb[9].mxu1 }
 0x1f1   : > { %v7538_v20 = vadd.f32 %v5354_v16, %v5353_v14  ;;  %v7540_v21 = vadd.f32 %v5378_v17, %v5377_v15  ;;  %v5356_v22 = vpop.f32.mrb[10].mxu0  ;;  %v5380_v23 = vpop.f32.mrb[10].mxu1  ;;  %v6284_v14 = vld [vmem:[%s7972_s0 + $0x280] ss:$72 sps:$4 sm:$0xff]  }
 0x1f2   : > { %v5357_v26 = vpop.f32.mrb[11].mxu0  ;;  %v5381_v27 = vpop.f32.mrb[11].mxu1 }
 0x1f3   : > { %v7548_v28 = vadd.f32 %v5357_v26, %v5356_v22  ;;  %v7550_v29 = vadd.f32 %v5381_v27, %v5380_v23 }
 0x1f4   : > { %4294 = vmatmul.mubr.bf16.gmra.mrb[116].mxu1 %v6265_v18  ;;  %4391 = vmatmul.mubr.bf16.gmra.mrb[116].mxu0 %v6266_v19  ;;  %v6285_v18 = vld [vmem:[%s7972_s0 + $0x30c] ss:$72 sps:$4 sm:$0xff]  }
 0x1f5   : > { %4301 = vmatprep.mubr.bf16.mxu1 %v6267_v24  ;;  %4398 = vmatprep.mubr.bf16.mxu0 %v6269_v25  ;;  %v6287_v19 = vld [vmem:[%s7972_s0 + $0x314] ss:$72 sps:$4 sm:$0xff]  }
 0x1f7   : > { %v5359_v30 = vpop.f32.mrb[12].mxu0  ;;  %v5383_v31 = vpop.f32.mrb[12].mxu1 }
 0x1f8   : > { %v5360_v32 = vpop.f32.mrb[13].mxu0  ;;  %v5384_v33 = vpop.f32.mrb[13].mxu1 }
 0x1f9   : > { %v7558_v36 = vadd.f32 %v5360_v32, %v5359_v30  ;;  %v7560_v37 = vadd.f32 %v5384_v33, %v5383_v31  ;;  %v5362_v38 = vpop.f32.mrb[14].mxu0  ;;  %v5386_v39 = vpop.f32.mrb[14].mxu1 }
 0x1fa   : > { %v5363_v42 = vpop.f32.mrb[15].mxu0  ;;  %v5387_v43 = vpop.f32.mrb[15].mxu1 }
 0x1fb   : > { %v7568_v44 = vadd.f32 %v5363_v42, %v5362_v38  ;;  %v7570_v45 = vadd.f32 %v5387_v43, %v5386_v39  ;;  %v6290_v38 = vld [vmem:[%s7972_s0 + $0x310] ss:$72 sps:$4 sm:$0xff]   ;;  %v6291_v42 = vld [vmem:[%s7972_s0 + $0x39c] ss:$72 sps:$4 sm:$0xff]  }
 0x1fc   : > { %4302 = vmatmul.mubr.bf16.gmra.mrb[120].mxu1 %v6271_v34  ;;  %4399 = vmatmul.mubr.bf16.gmra.mrb[120].mxu0 %v6272_v35  ;;  %v6293_v43 = vld [vmem:[%s7972_s0 + $0x3a4] ss:$72 sps:$4 sm:$0xff]  }
 0x1fd   : > { %4309 = vmatprep.mubr.bf16.mxu1 %v6273_v40  ;;  %4406 = vmatprep.mubr.bf16.mxu0 %v6275_v41 }
 0x1ff   : > { %v5405_v46 = vpop.f32.mrb[16].mxu1  ;;  %v5469_v47 = vpop.f32.mrb[16].mxu0 }
 0x200   : > { %v5406_v48 = vpop.f32.mrb[17].mxu1  ;;  %v5470_v49 = vpop.f32.mrb[17].mxu0 }
 0x201   : > { %v5407_v54 = vadd.f32 %v5406_v48, %v5405_v46  ;;  %v5471_v55 = vadd.f32 %v5470_v49, %v5469_v47  ;;  %v5408_v56 = vpop.f32.mrb[18].mxu1  ;;  %v5472_v57 = vpop.f32.mrb[18].mxu0 }
 0x202   : > { %v5409_v62 = vpop.f32.mrb[19].mxu1  ;;  %v5473_v63 = vpop.f32.mrb[19].mxu0 }
 0x203   : > { %v3706_v0 = vadd.f32 %v5407_v54, %v7498_v52  ;;  %v5410_v1 = vadd.f32 %v5409_v62, %v5408_v56  ;;  %v5474_v2 = vadd.f32 %v5473_v63, %v5472_v57  ;;  %v6283_v52 = vld [vmem:[%s7972_s0 + $0x278] ss:$72 sps:$4 sm:$0xff]  }
 0x204   : > { %4310 = vmatmul.mubr.bf16.gmra.mrb[124].mxu1 %v6277_v50  ;;  %4407 = vmatmul.mubr.bf16.gmra.mrb[124].mxu0 %v6278_v51  ;;  %v6296_v62 = vld [vmem:[%s7972_s0 + $0x3a0] ss:$72 sps:$4 sm:$0xff]  }
 0x205   : > { %v7585_v3 = vadd.f32 %v5471_v55, %v3706_v0  ;;  %v3709_v6 = vadd.f32 %v5410_v1, %v7508_v60  ;;  %4317 = vmatprep.mubr.bf16.mxu1 %v6279_v58  ;;  %4414 = vmatprep.mubr.bf16.mxu0 %v6281_v59 }
 0x207   : > { %v7588_v7 = vadd.f32 %v5474_v2, %v3709_v6  ;;  %v5411_v8 = vpop.f32.mrb[20].mxu1  ;;  %v5475_v9 = vpop.f32.mrb[20].mxu0  ;;  %v6297_v2 = vld [vmem:[%s7972_s0 + $0x42c] ss:$72 sps:$4 sm:$0xff]  }
 0x208   : > { %v5412_v10 = vpop.f32.mrb[21].mxu1  ;;  %v5476_v11 = vpop.f32.mrb[21].mxu0  ;;  %v6299_v6 = vld [vmem:[%s7972_s0 + $0x434] ss:$72 sps:$4 sm:$0xff]  }
 0x209   : > { %v5413_v15 = vadd.f32 %v5412_v10, %v5411_v8  ;;  %v5477_v16 = vadd.f32 %v5476_v11, %v5475_v9  ;;  %v5414_v17 = vpop.f32.mrb[22].mxu1  ;;  %v5478_v60 = vpop.f32.mrb[22].mxu0 }
 0x20a   : > { %v5415_v22 = vpop.f32.mrb[23].mxu1  ;;  %v5479_v23 = vpop.f32.mrb[23].mxu0 }
 0x20b   : > { %v3714_v24 = vadd.f32 %v5413_v15, %v7518_v4  ;;  %v5416_v25 = vadd.f32 %v5415_v22, %v5414_v17  ;;  %v5480_v26 = vadd.f32 %v5479_v23, %v5478_v60  ;;  %v6289_v4 = vld [vmem:[%s7972_s0 + $0x308] ss:$72 sps:$4 sm:$0xff]  }
 0x20c   : > { %4318 = vmatmul.mubr.bf16.gmra.mrb[128].mxu1 %v6283_v52  ;;  %4415 = vmatmul.mubr.bf16.gmra.mrb[128].mxu0 %v6284_v14  ;;  %v6302_v22 = vld [vmem:[%s7972_s0 + $0x430] ss:$72 sps:$4 sm:$0xff]  }
 0x20d   : > { %v7603_v27 = vadd.f32 %v5477_v16, %v3714_v24  ;;  %v3717_v30 = vadd.f32 %v5416_v25, %v7528_v12  ;;  %4325 = vmatprep.mubr.bf16.mxu1 %v6285_v18  ;;  %4422 = vmatprep.mubr.bf16.mxu0 %v6287_v19 }
 0x20f   : > { %v7606_v31 = vadd.f32 %v5480_v26, %v3717_v30  ;;  %v5417_v32 = vpop.f32.mrb[24].mxu1  ;;  %v5481_v33 = vpop.f32.mrb[24].mxu0 }
 0x210   : > { %v5418_v34 = vpop.f32.mrb[25].mxu1  ;;  %v5482_v35 = vpop.f32.mrb[25].mxu0 }
 0x211   : > { %v5419_v39 = vadd.f32 %v5418_v34, %v5417_v32  ;;  %v5483_v40 = vadd.f32 %v5482_v35, %v5481_v33  ;;  %v5420_v41 = vpop.f32.mrb[26].mxu1  ;;  %v5484_v12 = vpop.f32.mrb[26].mxu0 }
 0x212   : > { %v5421_v46 = vpop.f32.mrb[27].mxu1  ;;  %v5485_v47 = vpop.f32.mrb[27].mxu0 }
 0x213   : > { %v3722_v48 = vadd.f32 %v5419_v39, %v7538_v20  ;;  %v5422_v49 = vadd.f32 %v5421_v46, %v5420_v41  ;;  %v5486_v50 = vadd.f32 %v5485_v47, %v5484_v12  ;;  %v6295_v20 = vld [vmem:[%s7972_s0 + $0x398] ss:$72 sps:$4 sm:$0xff]  }
 0x214   : > { %4326 = vmatmul.mubr.bf16.gmra.mrb[132].mxu1 %v6289_v4  ;;  %4423 = vmatmul.mubr.bf16.gmra.mrb[132].mxu0 %v6290_v38 }
 0x215   : > { %v7621_v51 = vadd.f32 %v5483_v40, %v3722_v48  ;;  %v3725_v54 = vadd.f32 %v5422_v49, %v7548_v28  ;;  %4333 = vmatprep.mubr.bf16.mxu1 %v6291_v42  ;;  %4430 = vmatprep.mubr.bf16.mxu0 %v6293_v43 }
 0x217   : > { %v7624_v55 = vadd.f32 %v5486_v50, %v3725_v54  ;;  %v5423_v56 = vpop.f32.mrb[28].mxu1  ;;  %v5487_v57 = vpop.f32.mrb[28].mxu0 }
 0x218   : > { %v5424_v58 = vpop.f32.mrb[29].mxu1  ;;  %v5488_v59 = vpop.f32.mrb[29].mxu0 }
 0x219   : > { %v5425_v63 = vadd.f32 %v5424_v58, %v5423_v56  ;;  %v5489_v0 = vadd.f32 %v5488_v59, %v5487_v57  ;;  %v5426_v1 = vpop.f32.mrb[30].mxu1  ;;  %v5490_v28 = vpop.f32.mrb[30].mxu0 }
 0x21a   : > { %v5427_v8 = vpop.f32.mrb[31].mxu1  ;;  %v5491_v9 = vpop.f32.mrb[31].mxu0 }
 0x21b   : > { %v3730_v10 = vadd.f32 %v5425_v63, %v7558_v36  ;;  %v5428_v11 = vadd.f32 %v5427_v8, %v5426_v1  ;;  %v5492_v52 = vadd.f32 %v5491_v9, %v5490_v28  ;;  %v6301_v36 = vld [vmem:[%s7972_s0 + $0x428] ss:$72 sps:$4 sm:$0xff]  }
 0x21c   : > { %4334 = vmatmul.mubr.bf16.gmra.mrb[136].mxu1 %v6295_v20  ;;  %4431 = vmatmul.mubr.bf16.gmra.mrb[136].mxu0 %v6296_v62 }
 0x21d   : > { %v7639_v14 = vadd.f32 %v5489_v0, %v3730_v10  ;;  %v3733_v15 = vadd.f32 %v5428_v11, %v7568_v44  ;;  %4341 = vmatprep.mubr.bf16.mxu1 %v6297_v2  ;;  %4438 = vmatprep.mubr.bf16.mxu0 %v6299_v6 }
 0x21f   : > { %v7642_v16 = vadd.f32 %v5492_v52, %v3733_v15  ;;  %v5429_v17 = vpop.f32.mrb[32].mxu1  ;;  %v5493_v60 = vpop.f32.mrb[32].mxu0 }
 0x220   : > { %v5430_v18 = vpop.f32.mrb[33].mxu1  ;;  %v5494_v19 = vpop.f32.mrb[33].mxu0 }
 0x221   : > { %v5431_v23 = vadd.f32 %v5430_v18, %v5429_v17  ;;  %v5495_v24 = vadd.f32 %v5494_v19, %v5493_v60  ;;  %v5432_v25 = vpop.f32.mrb[34].mxu1  ;;  %v5496_v44 = vpop.f32.mrb[34].mxu0 }
 0x222   : > { %v5433_v26 = vpop.f32.mrb[35].mxu1  ;;  %v5497_v30 = vpop.f32.mrb[35].mxu0 }
 0x223   : > { %v3738_v32 = vadd.f32 %v5431_v23, %v7500_v53  ;;  %v5434_v33 = vadd.f32 %v5433_v26, %v5432_v25  ;;  %v5498_v34 = vadd.f32 %v5497_v30, %v5496_v44 }
 0x224   : > { %4342 = vmatmul.mubr.bf16.gmra.mrb[140].mxu1 %v6301_v36  ;;  %4439 = vmatmul.mubr.bf16.gmra.mrb[140].mxu0 %v6302_v22 }
 0x225   : > { %v7651_v35 = vadd.f32 %v5495_v24, %v3738_v32  ;;  %v3741_v4 = vadd.f32 %v5434_v33, %v7510_v61 }
 0x227   : > { %v7654_v38 = vadd.f32 %v5498_v34, %v3741_v4  ;;  %v5435_v39 = vpop.f32.mrb[36].mxu1  ;;  %v5499_v40 = vpop.f32.mrb[36].mxu0 }
 0x228   : > { %v5436_v41 = vpop.f32.mrb[37].mxu1  ;;  %v5500_v12 = vpop.f32.mrb[37].mxu0 }
 0x229   : > { %v5437_v42 = vadd.f32 %v5436_v41, %v5435_v39  ;;  %v5501_v43 = vadd.f32 %v5500_v12, %v5499_v40  ;;  %v5438_v46 = vpop.f32.mrb[38].mxu1  ;;  %v5502_v47 = vpop.f32.mrb[38].mxu0 }
 0x22a   : > { %v5439_v48 = vpop.f32.mrb[39].mxu1  ;;  %v5503_v53 = vpop.f32.mrb[39].mxu0 }
 0x22b   : > { %v3746_v49 = vadd.f32 %v5437_v42, %v7520_v5  ;;  %v5440_v50 = vadd.f32 %v5439_v48, %v5438_v46  ;;  %v5504_v54 = vadd.f32 %v5503_v53, %v5502_v47 }
 0x22d   : > { %v7657_v56 = vadd.f32 %v5501_v43, %v3746_v49  ;;  %v3749_v61 = vadd.f32 %v5440_v50, %v7530_v13 }
 0x22f   : > { %v7660_v57 = vadd.f32 %v5504_v54, %v3749_v61  ;;  %v5441_v58 = vpop.f32.mrb[40].mxu1  ;;  %v5505_v59 = vpop.f32.mrb[40].mxu0 }
 0x230   : > { %v5442_v20 = vpop.f32.mrb[41].mxu1  ;;  %v5506_v62 = vpop.f32.mrb[41].mxu0 }
 0x231   : > { %v5443_v63 = vadd.f32 %v5442_v20, %v5441_v58  ;;  %v5507_v0 = vadd.f32 %v5506_v62, %v5505_v59  ;;  %v5444_v1 = vpop.f32.mrb[42].mxu1  ;;  %v5508_v28 = vpop.f32.mrb[42].mxu0 }
 0x232   : > { %v5445_v2 = vpop.f32.mrb[43].mxu1  ;;  %v5509_v6 = vpop.f32.mrb[43].mxu0 }
 0x233   : > { %v3754_v5 = vadd.f32 %v5443_v63, %v7540_v21  ;;  %v5446_v8 = vadd.f32 %v5445_v2, %v5444_v1  ;;  %v5510_v9 = vadd.f32 %v5509_v6, %v5508_v28 }
 0x235   : > { %v7663_v10 = vadd.f32 %v5507_v0, %v3754_v5  ;;  %v3757_v13 = vadd.f32 %v5446_v8, %v7550_v29 }
 0x237   : > { %v7666_v11 = vadd.f32 %v5510_v9, %v3757_v13  ;;  %v5447_v52 = vpop.f32.mrb[44].mxu1  ;;  %v5511_v15 = vpop.f32.mrb[44].mxu0 }
 0x238   : > { %v5448_v17 = vpop.f32.mrb[45].mxu1  ;;  %v5512_v60 = vpop.f32.mrb[45].mxu0 }
 0x239   : > { %v5449_v18 = vadd.f32 %v5448_v17, %v5447_v52  ;;  %v5513_v19 = vadd.f32 %v5512_v60, %v5511_v15  ;;  %v5450_v36 = vpop.f32.mrb[46].mxu1  ;;  %v5514_v22 = vpop.f32.mrb[46].mxu0 }
 0x23a   : > { %v5451_v23 = vpop.f32.mrb[47].mxu1  ;;  %v5515_v24 = vpop.f32.mrb[47].mxu0 }
 0x23b   : > { %v3762_v21 = vadd.f32 %v5449_v18, %v7560_v37  ;;  %v5452_v25 = vadd.f32 %v5451_v23, %v5450_v36  ;;  %v5516_v44 = vadd.f32 %v5515_v24, %v5514_v22 }
 0x23d   : > { %v7669_v26 = vadd.f32 %v5513_v19, %v3762_v21  ;;  %v3765_v29 = vadd.f32 %v5452_v25, %v7570_v45 }
 0x23f   : > { %v7672_v30 = vadd.f32 %v5516_v44, %v3765_v29  ;;  %v5533_v32 = vpop.f32.mrb[48].mxu1  ;;  %v5597_v33 = vpop.f32.mrb[48].mxu0 }
 0x240   : > { %v5534_v34 = vpop.f32.mrb[49].mxu1  ;;  %v5598_v4 = vpop.f32.mrb[49].mxu0 }
 0x241   : > { %v5535_v39 = vadd.f32 %v5534_v34, %v5533_v32  ;;  %v5599_v40 = vadd.f32 %v5598_v4, %v5597_v33  ;;  %v5536_v41 = vpop.f32.mrb[50].mxu1  ;;  %v5600_v12 = vpop.f32.mrb[50].mxu0 }
 0x242   : > { %v5537_v42 = vpop.f32.mrb[51].mxu1  ;;  %v5601_v43 = vpop.f32.mrb[51].mxu0 }
 0x243   : > { %v3900_v37 = vadd.f32 %v5535_v39, %v7585_v3  ;;  %v5538_v46 = vadd.f32 %v5537_v42, %v5536_v41  ;;  %v5602_v47 = vadd.f32 %v5601_v43, %v5600_v12 }
 0x245   : > { %v7675_v48 = vadd.f32 %v5599_v40, %v3900_v37  ;;  %v3903_v45 = vadd.f32 %v5538_v46, %v7588_v7 }
 0x247   : > { %v7678_v53 = vadd.f32 %v5602_v47, %v3903_v45  ;;  %v5539_v49 = vpop.f32.mrb[52].mxu1  ;;  %v5603_v50 = vpop.f32.mrb[52].mxu0 }
 0x248   : > { %v5540_v54 = vpop.f32.mrb[53].mxu1  ;;  %v5604_v61 = vpop.f32.mrb[53].mxu0 }
 0x249   : > { %v5541_v58 = vadd.f32 %v5540_v54, %v5539_v49  ;;  %v5605_v59 = vadd.f32 %v5604_v61, %v5603_v50  ;;  %v5542_v20 = vpop.f32.mrb[54].mxu1  ;;  %v5606_v62 = vpop.f32.mrb[54].mxu0 }
 0x24a   : > { %v5543_v63 = vpop.f32.mrb[55].mxu1  ;;  %v5607_v0 = vpop.f32.mrb[55].mxu0 }
 0x24b   : > { %v3908_v3 = vadd.f32 %v5541_v58, %v7603_v27  ;;  %v5544_v1 = vadd.f32 %v5543_v63, %v5542_v20  ;;  %v5608_v28 = vadd.f32 %v5607_v0, %v5606_v62 }
 0x24d   : > { %v7681_v2 = vadd.f32 %v5605_v59, %v3908_v3  ;;  %v3911_v7 = vadd.f32 %v5544_v1, %v7606_v31 }
 0x24f   : > { %v7684_v6 = vadd.f32 %v5608_v28, %v3911_v7  ;;  %v5545_v5 = vpop.f32.mrb[56].mxu1  ;;  %v5609_v8 = vpop.f32.mrb[56].mxu0 }
 0x250   : > { %v5546_v9 = vpop.f32.mrb[57].mxu1  ;;  %v5610_v13 = vpop.f32.mrb[57].mxu0 }
 0x251   : > { %v5547_v52 = vadd.f32 %v5546_v9, %v5545_v5  ;;  %v5611_v15 = vadd.f32 %v5610_v13, %v5609_v8  ;;  %v5548_v17 = vpop.f32.mrb[58].mxu1  ;;  %v5612_v60 = vpop.f32.mrb[58].mxu0 }
 0x252   : > { %v5549_v18 = vpop.f32.mrb[59].mxu1  ;;  %v5613_v19 = vpop.f32.mrb[59].mxu0 }
 0x253   : > { %v3916_v27 = vadd.f32 %v5547_v52, %v7621_v51  ;;  %v5550_v36 = vadd.f32 %v5549_v18, %v5548_v17  ;;  %v5614_v22 = vadd.f32 %v5613_v19, %v5612_v60 }
 0x255   : > { %v7687_v23 = vadd.f32 %v5611_v15, %v3916_v27  ;;  %v3919_v31 = vadd.f32 %v5550_v36, %v7624_v55 }
 0x257   : > { %v7690_v24 = vadd.f32 %v5614_v22, %v3919_v31  ;;  %v5551_v21 = vpop.f32.mrb[60].mxu1  ;;  %v5615_v25 = vpop.f32.mrb[60].mxu0 }
 0x258   : > { %v5552_v44 = vpop.f32.mrb[61].mxu1  ;;  %v5616_v29 = vpop.f32.mrb[61].mxu0 }
 0x259   : > { %v5553_v32 = vadd.f32 %v5552_v44, %v5551_v21  ;;  %v5617_v33 = vadd.f32 %v5616_v29, %v5615_v25  ;;  %v5554_v34 = vpop.f32.mrb[62].mxu1  ;;  %v5618_v4 = vpop.f32.mrb[62].mxu0 }
 0x25a   : > { %v5555_v39 = vpop.f32.mrb[63].mxu1  ;;  %v5619_v40 = vpop.f32.mrb[63].mxu0 }
 0x25b   : > { %v3924_v51 = vadd.f32 %v5553_v32, %v7639_v14  ;;  %v5556_v41 = vadd.f32 %v5555_v39, %v5554_v34  ;;  %v5620_v12 = vadd.f32 %v5619_v40, %v5618_v4 }
 0x25d   : > { %v7693_v42 = vadd.f32 %v5617_v33, %v3924_v51  ;;  %v3927_v55 = vadd.f32 %v5556_v41, %v7642_v16 }
 0x25f   : > { %v7696_v43 = vadd.f32 %v5620_v12, %v3927_v55  ;;  %v5557_v37 = vpop.f32.mrb[64].mxu1  ;;  %v5621_v46 = vpop.f32.mrb[64].mxu0 }
 0x260   : > { %v5558_v47 = vpop.f32.mrb[65].mxu1  ;;  %v5622_v45 = vpop.f32.mrb[65].mxu0 }
 0x261   : > { %v5559_v49 = vadd.f32 %v5558_v47, %v5557_v37  ;;  %v5623_v50 = vadd.f32 %v5622_v45, %v5621_v46  ;;  %v5560_v54 = vpop.f32.mrb[66].mxu1  ;;  %v5624_v61 = vpop.f32.mrb[66].mxu0 }
 0x262   : > { %v5561_v58 = vpop.f32.mrb[67].mxu1  ;;  %v5625_v59 = vpop.f32.mrb[67].mxu0 }
 0x263   : > { %v3932_v14 = vadd.f32 %v5559_v49, %v7651_v35  ;;  %v5562_v20 = vadd.f32 %v5561_v58, %v5560_v54  ;;  %v5626_v62 = vadd.f32 %v5625_v59, %v5624_v61 }
 0x265   : > { %v7699_v63 = vadd.f32 %v5623_v50, %v3932_v14  ;;  %v3935_v16 = vadd.f32 %v5562_v20, %v7654_v38 }
 0x267   : > { %v7702_v0 = vadd.f32 %v5626_v62, %v3935_v16  ;;  %v5563_v3 = vpop.f32.mrb[68].mxu1  ;;  %v5627_v1 = vpop.f32.mrb[68].mxu0 }
 0x268   : > { %v5564_v28 = vpop.f32.mrb[69].mxu1  ;;  %v5628_v7 = vpop.f32.mrb[69].mxu0 }
 0x269   : > { %v5565_v5 = vadd.f32 %v5564_v28, %v5563_v3  ;;  %v5629_v8 = vadd.f32 %v5628_v7, %v5627_v1  ;;  %v5566_v9 = vpop.f32.mrb[70].mxu1  ;;  %v5630_v13 = vpop.f32.mrb[70].mxu0 }
 0x26a   : > { %v5567_v52 = vpop.f32.mrb[71].mxu1  ;;  %v5631_v15 = vpop.f32.mrb[71].mxu0 }
 0x26b   : > { %v3940_v35 = vadd.f32 %v5565_v5, %v7657_v56  ;;  %v5568_v17 = vadd.f32 %v5567_v52, %v5566_v9  ;;  %v5632_v60 = vadd.f32 %v5631_v15, %v5630_v13 }
 0x26d   : > { %v7705_v18 = vadd.f32 %v5629_v8, %v3940_v35  ;;  %v3943_v38 = vadd.f32 %v5568_v17, %v7660_v57 }
 0x26f   : > { %v7708_v19 = vadd.f32 %v5632_v60, %v3943_v38  ;;  %v5569_v27 = vpop.f32.mrb[72].mxu1  ;;  %v5633_v36 = vpop.f32.mrb[72].mxu0 }
 0x270   : > { %v5570_v22 = vpop.f32.mrb[73].mxu1  ;;  %v5634_v31 = vpop.f32.mrb[73].mxu0 }
 0x271   : > { %v5571_v21 = vadd.f32 %v5570_v22, %v5569_v27  ;;  %v5635_v25 = vadd.f32 %v5634_v31, %v5633_v36  ;;  %v5572_v44 = vpop.f32.mrb[74].mxu1  ;;  %v5636_v29 = vpop.f32.mrb[74].mxu0 }
 0x272   : > { %v5573_v32 = vpop.f32.mrb[75].mxu1  ;;  %v5637_v33 = vpop.f32.mrb[75].mxu0 }
 0x273   : > { %v3948_v56 = vadd.f32 %v5571_v21, %v7663_v10  ;;  %v5574_v34 = vadd.f32 %v5573_v32, %v5572_v44  ;;  %v5638_v4 = vadd.f32 %v5637_v33, %v5636_v29 }
 0x275   : > { %v7711_v39 = vadd.f32 %v5635_v25, %v3948_v56  ;;  %v3951_v57 = vadd.f32 %v5574_v34, %v7666_v11 }
 0x277   : > { %v7714_v40 = vadd.f32 %v5638_v4, %v3951_v57  ;;  %v5575_v51 = vpop.f32.mrb[76].mxu1  ;;  %v5639_v41 = vpop.f32.mrb[76].mxu0 }
 0x278   : > { %v5576_v12 = vpop.f32.mrb[77].mxu1  ;;  %v5640_v55 = vpop.f32.mrb[77].mxu0 }
 0x279   : > { %v5577_v37 = vadd.f32 %v5576_v12, %v5575_v51  ;;  %v5641_v46 = vadd.f32 %v5640_v55, %v5639_v41  ;;  %v5578_v47 = vpop.f32.mrb[78].mxu1  ;;  %v5642_v45 = vpop.f32.mrb[78].mxu0 }
 0x27a   : > { %v5579_v49 = vpop.f32.mrb[79].mxu1  ;;  %v5643_v50 = vpop.f32.mrb[79].mxu0 }
 0x27b   : > { %v3956_v10 = vadd.f32 %v5577_v37, %v7669_v26  ;;  %v5580_v54 = vadd.f32 %v5579_v49, %v5578_v47  ;;  %v5644_v61 = vadd.f32 %v5643_v50, %v5642_v45 }
 0x27d   : > { %v7717_v58 = vadd.f32 %v5641_v46, %v3956_v10  ;;  %v3959_v11 = vadd.f32 %v5580_v54, %v7672_v30 }
 0x27f   : > { %v7720_v59 = vadd.f32 %v5644_v61, %v3959_v11  ;;  %v5661_v14 = vpop.f32.mrb[80].mxu1  ;;  %v5725_v20 = vpop.f32.mrb[80].mxu0 }
 0x280   : > { %v5662_v62 = vpop.f32.mrb[81].mxu1  ;;  %v5726_v16 = vpop.f32.mrb[81].mxu0 }
 0x281   : > { %v5663_v3 = vadd.f32 %v5662_v62, %v5661_v14  ;;  %v5727_v1 = vadd.f32 %v5726_v16, %v5725_v20  ;;  %v5664_v28 = vpop.f32.mrb[82].mxu1  ;;  %v5728_v7 = vpop.f32.mrb[82].mxu0 }
 0x282   : > { %v5665_v5 = vpop.f32.mrb[83].mxu1  ;;  %v5729_v8 = vpop.f32.mrb[83].mxu0 }
 0x283   : > { %v4094_v26 = vadd.f32 %v5663_v3, %v7675_v48  ;;  %v5666_v9 = vadd.f32 %v5665_v5, %v5664_v28  ;;  %v5730_v13 = vadd.f32 %v5729_v8, %v5728_v7 }
 0x285   : > { %v7723_v52 = vadd.f32 %v5727_v1, %v4094_v26  ;;  %v4097_v30 = vadd.f32 %v5666_v9, %v7678_v53 }
 0x287   : > { %v7726_v15 = vadd.f32 %v5730_v13, %v4097_v30  ;;  %v5667_v35 = vpop.f32.mrb[84].mxu1  ;;  %v5731_v17 = vpop.f32.mrb[84].mxu0 }
 0x288   : > { %v5668_v60 = vpop.f32.mrb[85].mxu1  ;;  %v5732_v38 = vpop.f32.mrb[85].mxu0 }
 0x289   : > { %v5669_v27 = vadd.f32 %v5668_v60, %v5667_v35  ;;  %v5733_v36 = vadd.f32 %v5732_v38, %v5731_v17  ;;  %v5670_v22 = vpop.f32.mrb[86].mxu1  ;;  %v5734_v31 = vpop.f32.mrb[86].mxu0 }
 0x28a   : > { %v5671_v21 = vpop.f32.mrb[87].mxu1  ;;  %v5735_v25 = vpop.f32.mrb[87].mxu0 }
 0x28b   : > { %v4102_v48 = vadd.f32 %v5669_v27, %v7681_v2  ;;  %v5672_v44 = vadd.f32 %v5671_v21, %v5670_v22  ;;  %v5736_v29 = vadd.f32 %v5735_v25, %v5734_v31 }
 0x28d   : > { %v7729_v32 = vadd.f32 %v5733_v36, %v4102_v48  ;;  %v4105_v53 = vadd.f32 %v5672_v44, %v7684_v6 }
 0x28f   : > { %v7732_v33 = vadd.f32 %v5736_v29, %v4105_v53  ;;  %v5673_v56 = vpop.f32.mrb[88].mxu1  ;;  %v5737_v34 = vpop.f32.mrb[88].mxu0 }
 0x290   : > { %v5674_v4 = vpop.f32.mrb[89].mxu1  ;;  %v5738_v57 = vpop.f32.mrb[89].mxu0 }
 0x291   : > { %v5675_v51 = vadd.f32 %v5674_v4, %v5673_v56  ;;  %v5739_v41 = vadd.f32 %v5738_v57, %v5737_v34  ;;  %v5676_v12 = vpop.f32.mrb[90].mxu1  ;;  %v5740_v55 = vpop.f32.mrb[90].mxu0 }
 0x292   : > { %v5677_v37 = vpop.f32.mrb[91].mxu1  ;;  %v5741_v46 = vpop.f32.mrb[91].mxu0 }
 0x293   : > { %v4110_v2 = vadd.f32 %v5675_v51, %v7687_v23  ;;  %v5678_v47 = vadd.f32 %v5677_v37, %v5676_v12  ;;  %v5742_v45 = vadd.f32 %v5741_v46, %v5740_v55 }
 0x295   : > { %v7735_v49 = vadd.f32 %v5739_v41, %v4110_v2  ;;  %v4113_v6 = vadd.f32 %v5678_v47, %v7690_v24 }
 0x297   : > { %v7738_v50 = vadd.f32 %v5742_v45, %v4113_v6  ;;  %v5679_v10 = vpop.f32.mrb[92].mxu1  ;;  %v5743_v54 = vpop.f32.mrb[92].mxu0 }
 0x298   : > { %v5680_v61 = vpop.f32.mrb[93].mxu1  ;;  %v5744_v11 = vpop.f32.mrb[93].mxu0 }
 0x299   : > { %v5681_v14 = vadd.f32 %v5680_v61, %v5679_v10  ;;  %v5745_v20 = vadd.f32 %v5744_v11, %v5743_v54  ;;  %v5682_v62 = vpop.f32.mrb[94].mxu1  ;;  %v5746_v16 = vpop.f32.mrb[94].mxu0 }
 0x29a   : > { %v5683_v3 = vpop.f32.mrb[95].mxu1  ;;  %v5747_v1 = vpop.f32.mrb[95].mxu0 }
 0x29b   : > { %v4118_v23 = vadd.f32 %v5681_v14, %v7693_v42  ;;  %v5684_v28 = vadd.f32 %v5683_v3, %v5682_v62  ;;  %v5748_v7 = vadd.f32 %v5747_v1, %v5746_v16 }
 0x29d   : > { %v7741_v5 = vadd.f32 %v5745_v20, %v4118_v23  ;;  %v4121_v24 = vadd.f32 %v5684_v28, %v7696_v43 }
 0x29f   : > { %v7744_v8 = vadd.f32 %v5748_v7, %v4121_v24  ;;  %v5685_v26 = vpop.f32.mrb[96].mxu1  ;;  %v5749_v9 = vpop.f32.mrb[96].mxu0 }
 0x2a0   : > { %v5686_v13 = vpop.f32.mrb[97].mxu1  ;;  %v5750_v30 = vpop.f32.mrb[97].mxu0 }
 0x2a1   : > { %v5687_v35 = vadd.f32 %v5686_v13, %v5685_v26  ;;  %v5751_v17 = vadd.f32 %v5750_v30, %v5749_v9  ;;  %v5688_v60 = vpop.f32.mrb[98].mxu1  ;;  %v5752_v38 = vpop.f32.mrb[98].mxu0 }
 0x2a2   : > { %v5689_v27 = vpop.f32.mrb[99].mxu1  ;;  %v5753_v36 = vpop.f32.mrb[99].mxu0 }
 0x2a3   : > { %v4126_v42 = vadd.f32 %v5687_v35, %v7699_v63  ;;  %v5690_v22 = vadd.f32 %v5689_v27, %v5688_v60  ;;  %v5754_v31 = vadd.f32 %v5753_v36, %v5752_v38 }
 0x2a5   : > { %v7747_v21 = vadd.f32 %v5751_v17, %v4126_v42  ;;  %v4129_v43 = vadd.f32 %v5690_v22, %v7702_v0 }
 0x2a7   : > { %v7750_v25 = vadd.f32 %v5754_v31, %v4129_v43  ;;  %v5691_v48 = vpop.f32.mrb[100].mxu1  ;;  %v5755_v44 = vpop.f32.mrb[100].mxu0 }
 0x2a8   : > { %v5692_v29 = vpop.f32.mrb[101].mxu1  ;;  %v5756_v53 = vpop.f32.mrb[101].mxu0 }
 0x2a9   : > { %v5693_v56 = vadd.f32 %v5692_v29, %v5691_v48  ;;  %v5757_v34 = vadd.f32 %v5756_v53, %v5755_v44  ;;  %v5694_v4 = vpop.f32.mrb[102].mxu1  ;;  %v5758_v57 = vpop.f32.mrb[102].mxu0 }
 0x2aa   : > { %v5695_v51 = vpop.f32.mrb[103].mxu1  ;;  %v5759_v41 = vpop.f32.mrb[103].mxu0 }
 0x2ab   : > { %v4134_v63 = vadd.f32 %v5693_v56, %v7705_v18  ;;  %v5696_v12 = vadd.f32 %v5695_v51, %v5694_v4  ;;  %v5760_v55 = vadd.f32 %v5759_v41, %v5758_v57 }
 0x2ad   : > { %v7753_v37 = vadd.f32 %v5757_v34, %v4134_v63  ;;  %v4137_v0 = vadd.f32 %v5696_v12, %v7708_v19 }
 0x2af   : > { %v7756_v46 = vadd.f32 %v5760_v55, %v4137_v0  ;;  %v5697_v2 = vpop.f32.mrb[104].mxu1  ;;  %v5761_v47 = vpop.f32.mrb[104].mxu0 }
 0x2b0   : > { %v5698_v45 = vpop.f32.mrb[105].mxu1  ;;  %v5762_v6 = vpop.f32.mrb[105].mxu0 }
 0x2b1   : > { %v5699_v10 = vadd.f32 %v5698_v45, %v5697_v2  ;;  %v5763_v54 = vadd.f32 %v5762_v6, %v5761_v47  ;;  %v5700_v61 = vpop.f32.mrb[106].mxu1  ;;  %v5764_v11 = vpop.f32.mrb[106].mxu0 }
 0x2b2   : > { %v5701_v14 = vpop.f32.mrb[107].mxu1  ;;  %v5765_v20 = vpop.f32.mrb[107].mxu0 }
 0x2b3   : > { %v4142_v18 = vadd.f32 %v5699_v10, %v7711_v39  ;;  %v5702_v62 = vadd.f32 %v5701_v14, %v5700_v61  ;;  %v5766_v16 = vadd.f32 %v5765_v20, %v5764_v11 }
 0x2b5   : > { %v7759_v3 = vadd.f32 %v5763_v54, %v4142_v18  ;;  %v4145_v19 = vadd.f32 %v5702_v62, %v7714_v40 }
 0x2b7   : > { %v7762_v1 = vadd.f32 %v5766_v16, %v4145_v19  ;;  %v5703_v23 = vpop.f32.mrb[108].mxu1  ;;  %v5767_v28 = vpop.f32.mrb[108].mxu0 }
 0x2b8   : > { %v5704_v7 = vpop.f32.mrb[109].mxu1  ;;  %v5768_v24 = vpop.f32.mrb[109].mxu0 }
 0x2b9   : > { %v5705_v26 = vadd.f32 %v5704_v7, %v5703_v23  ;;  %v5769_v9 = vadd.f32 %v5768_v24, %v5767_v28  ;;  %v5706_v13 = vpop.f32.mrb[110].mxu1  ;;  %v5770_v30 = vpop.f32.mrb[110].mxu0 }
 0x2ba   : > { %v5707_v35 = vpop.f32.mrb[111].mxu1  ;;  %v5771_v17 = vpop.f32.mrb[111].mxu0 }
 0x2bb   : > { %v4150_v39 = vadd.f32 %v5705_v26, %v7717_v58  ;;  %v5708_v60 = vadd.f32 %v5707_v35, %v5706_v13  ;;  %v5772_v38 = vadd.f32 %v5771_v17, %v5770_v30 }
 0x2bd   : > { %v7765_v27 = vadd.f32 %v5769_v9, %v4150_v39  ;;  %v4153_v40 = vadd.f32 %v5708_v60, %v7720_v59 }
 0x2bf   : > { %v7768_v36 = vadd.f32 %v5772_v38, %v4153_v40  ;;  %v5789_v42 = vpop.f32.mrb[112].mxu1  ;;  %v5853_v22 = vpop.f32.mrb[112].mxu0 }
 0x2c0   : > { %v5790_v31 = vpop.f32.mrb[113].mxu1  ;;  %v5854_v43 = vpop.f32.mrb[113].mxu0 }
 0x2c1   : > { %v5791_v48 = vadd.f32 %v5790_v31, %v5789_v42  ;;  %v5855_v44 = vadd.f32 %v5854_v43, %v5853_v22  ;;  %v5792_v29 = vpop.f32.mrb[114].mxu1  ;;  %v5856_v53 = vpop.f32.mrb[114].mxu0 }
 0x2c2   : > { %v5793_v56 = vpop.f32.mrb[115].mxu1  ;;  %v5857_v34 = vpop.f32.mrb[115].mxu0 }
 0x2c3   : > { %v4288_v58 = vadd.f32 %v5791_v48, %v7723_v52  ;;  %v5794_v4 = vadd.f32 %v5793_v56, %v5792_v29  ;;  %v5858_v57 = vadd.f32 %v5857_v34, %v5856_v53 }
 0x2c5   : > { %v7771_v51 = vadd.f32 %v5855_v44, %v4288_v58  ;;  %v4291_v59 = vadd.f32 %v5794_v4, %v7726_v15 }
 0x2c7   : > { %v7774_v41 = vadd.f32 %v5858_v57, %v4291_v59  ;;  %v5795_v63 = vpop.f32.mrb[116].mxu1  ;;  %v5859_v12 = vpop.f32.mrb[116].mxu0  ;;  %v4468_v18 = vmul.f32 %v7771_v51, %v7771_v51 }
 0x2c8   : > { %v5796_v55 = vpop.f32.mrb[117].mxu1  ;;  %v5860_v0 = vpop.f32.mrb[117].mxu0 }
 0x2c9   : > { %v5797_v2 = vadd.f32 %v5796_v55, %v5795_v63  ;;  %v5861_v47 = vadd.f32 %v5860_v0, %v5859_v12  ;;  %v5798_v45 = vpop.f32.mrb[118].mxu1  ;;  %v5862_v6 = vpop.f32.mrb[118].mxu0  ;;  %v4469_v14 = vmul.f32 %v7774_v41, %v7774_v41  ;;  %v4447_v62 = vadd.f32 %v7774_v41, %v7771_v51 }
 0x2ca   : > { %v5799_v10 = vpop.f32.mrb[119].mxu1  ;;  %v5863_v54 = vpop.f32.mrb[119].mxu0 }
 0x2cb   : > { %v4296_v52 = vadd.f32 %v5797_v2, %v7729_v32  ;;  %v5800_v61 = vadd.f32 %v5799_v10, %v5798_v45  ;;  %v5864_v11 = vadd.f32 %v5863_v54, %v5862_v6  ;;  %v4484_v28 = vadd.f32 %v4469_v14, %v4468_v18 }
 0x2cd   : > { %v7779_v15 = vadd.f32 %v5861_v47, %v4296_v52  ;;  %v4299_v20 = vadd.f32 %v5800_v61, %v7732_v33 }
 0x2cf   : > { %v4470_v16 = vmul.f32 %v7779_v15, %v7779_v15  ;;  %v7788_v19 = vadd.f32 %v5864_v11, %v4299_v20  ;;  %v5801_v32 = vpop.f32.mrb[120].mxu1  ;;  %v5865_v23 = vpop.f32.mrb[120].mxu0  ;;  %v4448_v26 = vadd.f32 %v4447_v62, %v7779_v15 }
 0x2d0   : > { %v5802_v7 = vpop.f32.mrb[121].mxu1  ;;  %v5866_v24 = vpop.f32.mrb[121].mxu0 }
 0x2d1   : > { %v5803_v9 = vadd.f32 %v5802_v7, %v5801_v32  ;;  %v5804_v33 = vpop.f32.mrb[122].mxu1  ;;  %v5868_v13 = vpop.f32.mrb[122].mxu0  ;;  %v4485_v30 = vadd.f32 %v4484_v28, %v4470_v16  ;;  %v5867_v35 = vadd.f32 %v5866_v24, %v5865_v23  ;;  %v4471_v60 = vmul.f32 %v7788_v19, %v7788_v19 }
 0x2d2   : > { %v5805_v17 = vpop.f32.mrb[123].mxu1  ;;  %v5869_v39 = vpop.f32.mrb[123].mxu0  ;;  %v4449_v22 = vadd.f32 %v4448_v26, %v7788_v19 }
 0x2d3   : > { %v4304_v38 = vadd.f32 %v5803_v9, %v7735_v49  ;;  %v5806_v40 = vadd.f32 %v5805_v17, %v5804_v33  ;;  %v5870_v42 = vadd.f32 %v5869_v39, %v5868_v13  ;;  %v4486_v48 = vadd.f32 %v4485_v30, %v4471_v60 }
 0x2d5   : > { %v7795_v31 = vadd.f32 %v5867_v35, %v4304_v38  ;;  %v4307_v43 = vadd.f32 %v5806_v40, %v7738_v50 }
 0x2d7   : > { %v4450_v44 = vadd.f32 %v4449_v22, %v7795_v31  ;;  %v4472_v29 = vmul.f32 %v7795_v31, %v7795_v31  ;;  %v7801_v53 = vadd.f32 %v5870_v42, %v4307_v43  ;;  %v5807_v56 = vpop.f32.mrb[124].mxu1  ;;  %v5871_v34 = vpop.f32.mrb[124].mxu0 }
 0x2d8   : > { %v5808_v58 = vpop.f32.mrb[125].mxu1  ;;  %v5872_v49 = vpop.f32.mrb[125].mxu0 }
 0x2d9   : > { %v4487_v4 = vadd.f32 %v4486_v48, %v4472_v29  ;;  %v4451_v57 = vadd.f32 %v4450_v44, %v7801_v53  ;;  %v4473_v59 = vmul.f32 %v7801_v53, %v7801_v53  ;;  %v5809_v63 = vadd.f32 %v5808_v58, %v5807_v56  ;;  %v5810_v50 = vpop.f32.mrb[126].mxu1  ;;  %v5874_v12 = vpop.f32.mrb[126].mxu0 }
 0x2da   : > { %v5873_v55 = vadd.f32 %v5872_v49, %v5871_v34  ;;  %v5811_v0 = vpop.f32.mrb[127].mxu1  ;;  %v5875_v2 = vpop.f32.mrb[127].mxu0 }
 0x2db   : > { %v4488_v47 = vadd.f32 %v4487_v4, %v4473_v59  ;;  %v4312_v45 = vadd.f32 %v5809_v63, %v7741_v5  ;;  %v5812_v6 = vadd.f32 %v5811_v0, %v5810_v50  ;;  %v5876_v10 = vadd.f32 %v5875_v2, %v5874_v12 }
 0x2dd   : > { %v7807_v54 = vadd.f32 %v5873_v55, %v4312_v45  ;;  %v4315_v52 = vadd.f32 %v5812_v6, %v7744_v8 }
 0x2df   : > { %v4452_v61 = vadd.f32 %v4451_v57, %v7807_v54  ;;  %v4474_v11 = vmul.f32 %v7807_v54, %v7807_v54  ;;  %v7813_v14 = vadd.f32 %v5876_v10, %v4315_v52  ;;  %v5813_v20 = vpop.f32.mrb[128].mxu1  ;;  %v5877_v18 = vpop.f32.mrb[128].mxu0 }
 0x2e0   : > { %v5814_v62 = vpop.f32.mrb[129].mxu1  ;;  %v5878_v16 = vpop.f32.mrb[129].mxu0 }
 0x2e1   : > { %v4489_v32 = vadd.f32 %v4488_v47, %v4474_v11  ;;  %v4453_v5 = vadd.f32 %v4452_v61, %v7813_v14  ;;  %v4475_v23 = vmul.f32 %v7813_v14, %v7813_v14  ;;  %v5815_v28 = vadd.f32 %v5814_v62, %v5813_v20  ;;  %v5816_v7 = vpop.f32.mrb[130].mxu1  ;;  %v5880_v8 = vpop.f32.mrb[130].mxu0 }
 0x2e2   : > { %v5879_v24 = vadd.f32 %v5878_v16, %v5877_v18  ;;  %v5817_v26 = vpop.f32.mrb[131].mxu1  ;;  %v5881_v9 = vpop.f32.mrb[131].mxu0 }
 0x2e3   : > { %v4490_v33 = vadd.f32 %v4489_v32, %v4475_v23  ;;  %v4320_v13 = vadd.f32 %v5815_v28, %v7747_v21  ;;  %v5818_v30 = vadd.f32 %v5817_v26, %v5816_v7  ;;  %v5882_v35 = vadd.f32 %v5881_v9, %v5880_v8 }
 0x2e5   : > { %v7819_v17 = vadd.f32 %v5879_v24, %v4320_v13  ;;  %v4323_v39 = vadd.f32 %v5818_v30, %v7750_v25 }
 0x2e7   : > { %v4454_v60 = vadd.f32 %v4453_v5, %v7819_v17  ;;  %v4476_v38 = vmul.f32 %v7819_v17, %v7819_v17  ;;  %v7825_v40 = vadd.f32 %v5882_v35, %v4323_v39  ;;  %v5819_v42 = vpop.f32.mrb[132].mxu1  ;;  %v5883_v22 = vpop.f32.mrb[132].mxu0 }
 0x2e8   : > { %v5820_v43 = vpop.f32.mrb[133].mxu1  ;;  %v5884_v48 = vpop.f32.mrb[133].mxu0 }
 0x2e9   : > { %v4491_v44 = vadd.f32 %v4490_v33, %v4476_v38  ;;  %v4455_v21 = vadd.f32 %v4454_v60, %v7825_v40  ;;  %v4477_v29 = vmul.f32 %v7825_v40, %v7825_v40  ;;  %v5821_v56 = vadd.f32 %v5820_v43, %v5819_v42  ;;  %v5822_v34 = vpop.f32.mrb[134].mxu1  ;;  %v5886_v25 = vpop.f32.mrb[134].mxu0 }
 0x2ea   : > { %v5885_v58 = vadd.f32 %v5884_v48, %v5883_v22  ;;  %v5823_v49 = vpop.f32.mrb[135].mxu1  ;;  %v5887_v4 = vpop.f32.mrb[135].mxu0 }
 0x2eb   : > { %v4492_v57 = vadd.f32 %v4491_v44, %v4477_v29  ;;  %v4328_v59 = vadd.f32 %v5821_v56, %v7753_v37  ;;  %v5824_v63 = vadd.f32 %v5823_v49, %v5822_v34  ;;  %v5888_v50 = vadd.f32 %v5887_v4, %v5886_v25 }
 0x2ed   : > { %v7831_v12 = vadd.f32 %v5885_v58, %v4328_v59  ;;  %v4331_v55 = vadd.f32 %v5824_v63, %v7756_v46 }
 0x2ef   : > { %v4456_v0 = vadd.f32 %v4455_v21, %v7831_v12  ;;  %v4478_v2 = vmul.f32 %v7831_v12, %v7831_v12  ;;  %v7837_v47 = vadd.f32 %v5888_v50, %v4331_v55  ;;  %v5825_v45 = vpop.f32.mrb[136].mxu1  ;;  %v5889_v6 = vpop.f32.mrb[136].mxu0 }
 0x2f0   : > { %v5826_v10 = vpop.f32.mrb[137].mxu1  ;;  %v5890_v52 = vpop.f32.mrb[137].mxu0 }
 0x2f1   : > { %v4493_v61 = vadd.f32 %v4492_v57, %v4478_v2  ;;  %v4457_v37 = vadd.f32 %v4456_v0, %v7837_v47  ;;  %v4479_v11 = vmul.f32 %v7837_v47, %v7837_v47  ;;  %v5827_v20 = vadd.f32 %v5826_v10, %v5825_v45  ;;  %v5828_v18 = vpop.f32.mrb[138].mxu1  ;;  %v5892_v46 = vpop.f32.mrb[138].mxu0 }
 0x2f2   : > { %v5891_v62 = vadd.f32 %v5890_v52, %v5889_v6  ;;  %v5829_v16 = vpop.f32.mrb[139].mxu1  ;;  %v5893_v32 = vpop.f32.mrb[139].mxu0 }
 0x2f3   : > { %v4494_v5 = vadd.f32 %v4493_v61, %v4479_v11  ;;  %v4336_v23 = vadd.f32 %v5827_v20, %v7759_v3  ;;  %v5830_v28 = vadd.f32 %v5829_v16, %v5828_v18  ;;  %v5894_v7 = vadd.f32 %v5893_v32, %v5892_v46 }
 0x2f5   : > { %v7843_v8 = vadd.f32 %v5891_v62, %v4336_v23  ;;  %v4339_v24 = vadd.f32 %v5830_v28, %v7762_v1  ;;  %v4518_v23 = vlaneseq }
 0x2f7   : > { %v4458_v26 = vadd.f32 %v4457_v37, %v7843_v8  ;;  %v4480_v9 = vmul.f32 %v7843_v8, %v7843_v8  ;;  %v7849_v33 = vadd.f32 %v5894_v7, %v4339_v24  ;;  %v5831_v13 = vpop.f32.mrb[140].mxu1  ;;  %v5895_v30 = vpop.f32.mrb[140].mxu0  ;;  %v4519_v28 = vshrl.u32 %v4518_v23, 7  ;;  %v4510_v7 = vld [vmem:[%s1553_s16] sm:$0x1] }
 0x2f8   : > { %v5832_v35 = vpop.f32.mrb[141].mxu1  ;;  %v5896_v39 = vpop.f32.mrb[141].mxu0 }
 0x2f9   : > { %v4495_v60 = vadd.f32 %v4494_v5, %v4480_v9  ;;  %v4459_v3 = vadd.f32 %v4458_v26, %v7849_v33  ;;  %v4481_v38 = vmul.f32 %v7849_v33, %v7849_v33  ;;  %v5833_v42 = vadd.f32 %v5832_v35, %v5831_v13  ;;  %v5834_v22 = vpop.f32.mrb[142].mxu1  ;;  %v5898_v1 = vpop.f32.mrb[142].mxu0  ;;  %v7882_v26 = vld [vmem:[%s7879_s26] sm:$0xff]   ;;  %v7885_v9 = vld [vmem:[%s7879_s26 + $0x8] sm:$0xff]  }
 0x2fa   : > { %v5897_v43 = vadd.f32 %v5896_v39, %v5895_v30  ;;  %v5835_v48 = vpop.f32.mrb[143].mxu1  ;;  %v5899_v44 = vpop.f32.mrb[143].mxu0  ;;  %v4520_v24 = vsub.s32 0, %v4519_v28  ;;  %v7888_v30 = vld [vmem:[%s7879_s26 + $0x10] sm:$0xff]   ;;  %v7891_v39 = vld [vmem:[%s7879_s26 + $0x18] sm:$0xff]  }
 0x2fb   : > { %v4496_v21 = vadd.f32 %v4495_v60, %v4481_v38  ;;  %v4344_v29 = vadd.f32 %v5833_v42, %v7765_v27  ;;  %v5836_v56 = vadd.f32 %v5835_v48, %v5834_v22  ;;  %v5900_v34 = vadd.f32 %v5899_v44, %v5898_v1  ;;  %v7894_v60 = vld [vmem:[%s7879_s26 + $0x20] sm:$0xff]  }
 0x2fc   : > { %v5241_v38 = vunpack.c.l.bf16 %v7882_v26  ;;  %v5242_v42 = vunpack.c.h.bf16 %v7882_v26  ;;  %v5245_v22 = vunpack.c.l.bf16 %v7885_v9  ;;  %v5246_v1 = vunpack.c.h.bf16 %v7885_v9 }
 0x2fd   : > { %v7855_v25 = vadd.f32 %v5897_v43, %v4344_v29  ;;  %v4347_v58 = vadd.f32 %v5836_v56, %v7768_v36  ;;  %v7901_v43 = vld [vmem:[%s7879_s26 + $0x28] sm:$0xff]   ;;  %v5250_v29 = vunpack.c.h.bf16 %v7888_v30  ;;  %v5253_v56 = vunpack.c.l.bf16 %v7891_v39 }
 0x2ff   : > { %v4460_v49 = vadd.f32 %v4459_v3, %v7855_v25  ;;  %v4482_v4 = vmul.f32 %v7855_v25, %v7855_v25  ;;  %v7861_v57 = vadd.f32 %v5900_v34, %v4347_v58  ;;  %v4514_v3 = vld [vmem:[%s1556_s24] sm:$0x1]  ;;  %v5254_v34 = vunpack.c.h.bf16 %v7891_v39 }
 0x300   : > { %v5257_v58 = vunpack.c.l.bf16 %v7894_v60 }
 0x301   : > { %v4497_v59 = vadd.f32 %v4496_v21, %v4482_v4  ;;  %v4461_v63 = vadd.f32 %v4460_v49, %v7861_v57  ;;  %v4483_v50 = vmul.f32 %v7861_v57, %v7861_v57  ;;  %v5249_v21 = vunpack.c.l.bf16 %v7888_v30 }
 0x302   : > { %v5258_v49 = vunpack.c.h.bf16 %v7894_v60 }
 0x303   : > { %v4462_v27 = vrot.slane %v4461_v63, 4  ;;  %v4498_v55 = vadd.f32 %v4497_v59, %v4483_v50  ;;  %v5262_v50 = vunpack.c.h.bf16 %v7901_v43 }
 0x305   : > { %v4463_v0 = vadd.f32 %v4462_v27, %v4461_v63  ;;  %v4499_v2 = vrot.slane %v4498_v55, 4  ;;  %v5261_v63 = vunpack.c.l.bf16 %v7901_v43 }
 0x307   : > { %v4464_v45 = vrot.slane %v4463_v0, 2  ;;  %v4500_v36 = vadd.f32 %v4499_v2, %v4498_v55 }
 0x309   : > { %v4465_v6 = vadd.f32 %v4464_v45, %v4463_v0  ;;  %v4501_v10 = vrot.slane %v4500_v36, 2 }
 0x30b   : > { %v4466_v52 = vrot.slane %v4465_v6, 1  ;;  %v4502_v61 = vadd.f32 %v4501_v10, %v4500_v36  ;;  %v5316_v10 = vld [vmem:[%s7879_s26 + $0x30] sm:$0xff]  }
 0x30d   : > { %v4467_v37 = vadd.f32 %v4466_v52, %v4465_v6  ;;  %v4503_v11 = vrot.slane %v4502_v61, 1  ;;  %v5317_v52 = vld [vmem:[%s7879_s26 + $0x38] sm:$0xff]  }
 0x30f   : > { %v4504_v20 = vadd.f32 %v4503_v11, %v4502_v61  ;;  %v4505_v18 = vmul.f32 0.0078125, %v4467_v37  ;;  %v5266_v11 = vunpack.c.h.bf16 %v5316_v10 }
 0x311   : > { %v4506_v46 = vmul.f32 0.0078125, %v4504_v20  ;;  %v4507_v62 = vmul.f32 %v4505_v18, %v4505_v18  ;;  %v5270_v20 = vunpack.c.h.bf16 %v5317_v52 }
 0x313   : > { %v4508_v16 = vsub.f32 %v4506_v46, %v4507_v62 }
 0x315   : > { %v4509_v32 = vmax.f32 %v4508_v16, 0.0 }
 0x317   : > { %v4511_v5 = vadd.f32 1e-05, %v4509_v32 }
 0x319   : > { %6303 = vrsqrt.f32 %v4511_v5 }
 0x323   : > { %v6304_v13 = vpop.eup %6303 }
 0x324   : > { %v4513_v35 = vmul.f32 %v6304_v13, %v4510_v7 }
 0x326   : > { %v4515_v48 = vmul.f32 %v4513_v35, %v4505_v18  ;;  %v4521_v44 = vrot.slane %v4513_v35, %v4520_v24 }
 0x328   : > { %v4516_v4 = vsub.f32 %v4514_v3, %v4515_v48  ;;  %v4523_v59 = vmul.f32 %v4521_v44, %v7771_v51  ;;  %v4524_v27 = vmul.f32 %v4521_v44, %v7774_v41  ;;  %v4527_v55 = vmul.f32 %v4521_v44, %v7795_v31 }
 0x329   : > { %v4528_v0 = vmul.f32 %v4521_v44, %v7801_v53  ;;  %v4529_v2 = vmul.f32 %v4521_v44, %v7807_v54  ;;  %v4530_v45 = vmul.f32 %v4521_v44, %v7813_v14  ;;  %v4531_v36 = vmul.f32 %v4521_v44, %v7819_v17 }
 0x32a   : > { %v4532_v6 = vmul.f32 %v4521_v44, %v7825_v40  ;;  %v4533_v51 = vmul.f32 %v4521_v44, %v7831_v12  ;;  %v4534_v61 = vmul.f32 %v4521_v44, %v7837_v47  ;;  %v4535_v41 = vmul.f32 %v4521_v44, %v7843_v8 }
 0x32b   : > { %v4536_v31 = vmul.f32 %v4521_v44, %v7849_v33  ;;  %v4537_v53 = vmul.f32 %v4521_v44, %v7855_v25  ;;  %v4525_v54 = vmul.f32 %v4521_v44, %v7779_v15  ;;  %v4526_v14 = vmul.f32 %v4521_v44, %v7788_v19 }
 0x32c   : > { %v4538_v17 = vmul.f32 %v4521_v44, %v7861_v57  ;;  %v4543_v37 = vrot.slane %v4516_v4, %v4520_v24  ;;  %v5265_v40 = vunpack.c.l.bf16 %v5316_v10  ;;  %v5269_v12 = vunpack.c.l.bf16 %v5317_v52 }
 0x32e   : > { %v4545_v18 = vadd.f32 %v4543_v37, %v4523_v59  ;;  %v4546_v46 = vadd.f32 %v4543_v37, %v4524_v27  ;;  %v4547_v47 = vadd.f32 %v4543_v37, %v4525_v54  ;;  %v4548_v62 = vadd.f32 %v4543_v37, %v4526_v14 }
 0x32f   : > { %v4549_v8 = vadd.f32 %v4543_v37, %v4527_v55  ;;  %v4550_v16 = vadd.f32 %v4543_v37, %v4528_v0  ;;  %v4551_v33 = vadd.f32 %v4543_v37, %v4529_v2  ;;  %v4552_v32 = vadd.f32 %v4543_v37, %v4530_v45 }
 0x330   : > { %v4553_v25 = vadd.f32 %v4543_v37, %v4531_v36  ;;  %v4554_v5 = vadd.f32 %v4543_v37, %v4532_v6  ;;  %v4555_v15 = vadd.f32 %v4543_v37, %v4533_v51  ;;  %v4556_v23 = vadd.f32 %v4543_v37, %v4534_v61 }
 0x331   : > { %v4557_v19 = vadd.f32 %v4543_v37, %v4535_v41  ;;  %v4558_v28 = vadd.f32 %v4543_v37, %v4536_v31  ;;  %v4559_v57 = vadd.f32 %v4543_v37, %v4537_v53  ;;  %v4560_v7 = vadd.f32 %v4543_v37, %v4538_v17 }
 0x332   : > { %v4593_v24 = vadd.f32 %v5241_v38, %v4545_v18  ;;  %v4594_v26 = vadd.f32 %v5242_v42, %v4546_v46  ;;  %v4595_v9 = vadd.f32 %v5245_v22, %v4547_v47  ;;  %v4596_v13 = vadd.f32 %v5246_v1, %v4548_v62 }
 0x333   : > { %v4597_v30 = vadd.f32 %v5249_v21, %v4549_v8  ;;  %v4598_v35 = vadd.f32 %v5250_v29, %v4550_v16  ;;  %v4599_v39 = vadd.f32 %v5253_v56, %v4551_v33  ;;  %v4600_v60 = vadd.f32 %v5254_v34, %v4552_v32 }
 0x334   : > { %v4601_v3 = vadd.f32 %v5257_v58, %v4553_v25  ;;  %v4602_v43 = vadd.f32 %v5258_v49, %v4554_v5  ;;  %v4603_v48 = vadd.f32 %v5261_v63, %v4555_v15  ;;  %v4604_v44 = vadd.f32 %v5262_v50, %v4556_v23 }
 0x335   : > { %v4605_v4 = vadd.f32 %v5265_v40, %v4557_v19  ;;  %v4606_v59 = vadd.f32 %v5266_v11, %v4558_v28  ;;  %v4607_v27 = vadd.f32 %v5269_v12, %v4559_v57  ;;  %v4608_v55 = vadd.f32 %v5270_v20, %v4560_v7 }
 0x336   : > { %v4609_v0 = vmax.f32 %v4593_v24, 0.0  ;;  %v4610_v2 = vmax.f32 %v4594_v26, 0.0  ;;  %v4611_v45 = vmax.f32 %v4595_v9, 0.0  ;;  %v4612_v36 = vmax.f32 %v4596_v13, 0.0 }
 0x337   : > { %v4613_v38 = vmax.f32 %v4597_v30, 0.0  ;;  %v4614_v42 = vmax.f32 %v4598_v35, 0.0  ;;  %v4615_v22 = vmax.f32 %v4599_v39, 0.0  ;;  %v4616_v1 = vmax.f32 %v4600_v60, 0.0 }
 0x338   : > { %v4617_v21 = vmax.f32 %v4601_v3, 0.0  ;;  %v4618_v29 = vmax.f32 %v4602_v43, 0.0  ;;  %v4619_v56 = vmax.f32 %v4603_v48, 0.0  ;;  %v4620_v34 = vmax.f32 %v4604_v44, 0.0 }
 0x339   : > { %v4621_v58 = vmax.f32 %v4605_v4, 0.0  ;;  %v4622_v49 = vmax.f32 %v4606_v59, 0.0  ;;  %v4623_v63 = vmax.f32 %v4607_v27, 0.0  ;;  %v4624_v50 = vmax.f32 %v4608_v55, 0.0  ;;  %4711 = sbr.rel (!%p6394_p5) target bundleno = 846 (0x34e), region = 126 }
 0x33a   : > { %v5274_v6 = vpack.c.bf16 %v4610_v2, %v4609_v0  ;;  %v5279_v51 = vpack.c.bf16 %v4612_v36, %v4611_v45  ;;  %v5284_v10 = vpack.c.bf16 %v4614_v42, %v4613_v38  ;;  %v5289_v52 = vpack.c.bf16 %v4616_v1, %v4615_v22 }
 0x33b   : > { %v5294_v61 = vpack.c.bf16 %v4618_v29, %v4617_v21  ;;  %v5299_v41 = vpack.c.bf16 %v4620_v34, %v4619_v56  ;;  %v5304_v31 = vpack.c.bf16 %v4622_v49, %v4621_v58  ;;  %v5309_v53 = vpack.c.bf16 %v4624_v50, %v4623_v63 }
 0x33c   : > { %5275 = vst [vmem:[%s7930_s18] sm:$0xff] %v5274_v6   ;;  %5318 = vst [vmem:[%s7930_s18 + $0x8] sm:$0xff] %v5279_v51  }
 0x33d   : > { %5319 = vst [vmem:[%s7930_s18 + $0x10] sm:$0xff] %v5284_v10   ;;  %5320 = vst [vmem:[%s7930_s18 + $0x18] sm:$0xff] %v5289_v52  }
 0x33e   : > { %5321 = vst [vmem:[%s7930_s18 + $0x20] sm:$0xff] %v5294_v61   ;;  %5322 = vst [vmem:[%s7930_s18 + $0x28] sm:$0xff] %v5299_v41  }
 0x33f   : > { %5323 = vst [vmem:[%s7930_s18 + $0x30] sm:$0xff] %v5304_v31   ;;  %5324 = vst [vmem:[%s7930_s18 + $0x38] sm:$0xff] %v5309_v53  }
 0x343   : > { %v4729_v54 = vld [vmem:[%s7930_s18] sm:$0xf]  ;;  %v4731_v14 = vld [vmem:[%s7930_s18 + $0x4] sm:$0xf]  ;;  %v4733_v17 = vld [vmem:[%s7930_s18 + $0x8] sm:$0xf] }
 0x344   : > { %v4735_v37 = vld [vmem:[%s7930_s18 + $0xc] sm:$0xf]  ;;  %v4737_v40 = vld [vmem:[%s7930_s18 + $0x10] sm:$0xf]  ;;  %4730 = vst [vmem:[%s4713_s20] sm:$0xf] %v4729_v54 }
 0x345   : > { %4732 = vst [vmem:[%s4713_s20 + $0x8] sm:$0xf] %v4731_v14  ;;  %4734 = vst [vmem:[%s4713_s20 + $0x10] sm:$0xf] %v4733_v17  ;;  %v4739_v11 = vld [vmem:[%s7930_s18 + $0x14] sm:$0xf] }
 0x346   : > { %4736 = vst [vmem:[%s4713_s20 + $0x18] sm:$0xf] %v4735_v37  ;;  %4738 = vst [vmem:[%s4713_s20 + $0x20] sm:$0xf] %v4737_v40  ;;  %v4741_v12 = vld [vmem:[%s7930_s18 + $0x18] sm:$0xf] }
 0x347   : > { %v4743_v20 = vld [vmem:[%s7930_s18 + $0x1c] sm:$0xf]  ;;  %4740 = vst [vmem:[%s4713_s20 + $0x28] sm:$0xf] %v4739_v11  ;;  %4742 = vst [vmem:[%s4713_s20 + $0x30] sm:$0xf] %v4741_v12 }
 0x348   : > { %4744 = vst [vmem:[%s4713_s20 + $0x38] sm:$0xf] %v4743_v20  ;;  %v4745_v18 = vld [vmem:[%s7930_s18 + $0x20] sm:$0xf]  ;;  %v4747_v46 = vld [vmem:[%s7930_s18 + $0x24] sm:$0xf] }
 0x349   : > { %v4749_v47 = vld [vmem:[%s7930_s18 + $0x28] sm:$0xf]  ;;  %4746 = vst [vmem:[%s4713_s20 + $0x40] sm:$0xf] %v4745_v18  ;;  %4748 = vst [vmem:[%s4713_s20 + $0x48] sm:$0xf] %v4747_v46 }
 0x34a   : > { %4750 = vst [vmem:[%s4713_s20 + $0x50] sm:$0xf] %v4749_v47  ;;  %v4751_v62 = vld [vmem:[%s7930_s18 + $0x2c] sm:$0xf]  ;;  %v4753_v8 = vld [vmem:[%s7930_s18 + $0x30] sm:$0xf] }
 0x34b   : > { %v4755_v16 = vld [vmem:[%s7930_s18 + $0x34] sm:$0xf]  ;;  %4752 = vst [vmem:[%s4713_s20 + $0x58] sm:$0xf] %v4751_v62  ;;  %4754 = vst [vmem:[%s4713_s20 + $0x60] sm:$0xf] %v4753_v8 }
 0x34c   : > { %4756 = vst [vmem:[%s4713_s20 + $0x68] sm:$0xf] %v4755_v16  ;;  %v4757_v33 = vld [vmem:[%s7930_s18 + $0x38] sm:$0xf]  ;;  %v4759_v32 = vld [vmem:[%s7930_s18 + $0x3c] sm:$0xf] }
 0x34d   : > { %4758 = vst [vmem:[%s4713_s20 + $0x70] sm:$0xf] %v4757_v33  ;;  %4760 = vst [vmem:[%s4713_s20 + $0x78] sm:$0xf] %v4759_v32 }
 0x34e PF: > { %p12_p11 = scmp.ge.s32.totalorder %s6378_s22, 4   ;;  %s7980_s18 = smov %s6323_s19 }
 0x34f   : > { %s7981_s19 = smov %s6388_s25  ;;  %s7982_s20 = smov %s6378_s22 }
 0x350   :  { %14 = sbr.rel (!%p12_p11) target bundleno = 2 (0x2), region = 212 }

// kernel: policy_value_forward.16
= control target key start
LH: loop header
LB: loop body
LE: loop exit
PB: predicated region body
PF: predicated region fallthrough
CT: control target
= control target key end

     0   :  { %vm343_vm0 = vcmask 7168   ;;  %s999_s1 = inlined_call_operand.vmem [shape: bf16[256,1], index: 1, kind: input, shape index: {}]   ;;  %s1000_s0 = inlined_call_operand.vmem [shape: bf16[128,256], index: 0, kind: input, shape index: {}]   ;;  %s1001_s2 = inlined_call_operand.<no memory space> [shape: f32[1,1], index: 2, kind: input, shape index: {}]   ;;  %s1002_s3 = inlined_call_operand.<no memory space> [shape: f32[1,1], index: 3, kind: input, shape index: {}]   ;;  %s1003_s4 = inlined_call_operand.vmem [shape: f32[128,1], index: 4, kind: output, shape index: {}]  }
   0x1   :  { %v638_v0 = vld [vmem:[%s999_s1 + $0x40] sm:$0xff]   ;;  %v640_v2 = vld [vmem:[%s999_s1 + $0x48] sm:$0xff]   ;;  %v642_v4 = vld [vmem:[%s999_s1 + $0x50] sm:$0xff]   ;;  %v9_v32 = vstv %s1001_s2 }
   0x2   :  { %v639_v1 = vld [vmem:[%s999_s1] sm:$0xff]   ;;  %558 = vmatprep.subr.bf16.mxu0 %v638_v0  ;;  %622 = vmatprep.subr.bf16.mxu1 %v638_v0  ;;  %v641_v3 = vld [vmem:[%s999_s1 + $0x8] sm:$0xff]   ;;  %v643_v5 = vld [vmem:[%s999_s1 + $0x10] sm:$0xff]   ;;  %v11_v33 = vstv %s1002_s3  ;;  %10 = vst [vmem:[#allocation2] sm:$0x1] %v9_v32 }
   0x3   :  { %559 = vmatpush3.bf16.msra.mxu0 %v639_v1  ;;  %630 = vmatpush3.bf16.msra.mxu1 %v639_v1  ;;  %v644_v6 = vld [vmem:[%s999_s1 + $0x58] sm:$0xff]   ;;  %v646_v8 = vld [vmem:[%s999_s1 + $0x60] sm:$0xff]   ;;  %v648_v10 = vld [vmem:[%s999_s1 + $0x68] sm:$0xff]   ;;  %12 = vst [vmem:[#allocation3] sm:$0x1] %v11_v33 }
   0x4   :  { %560 = vmatprep.subr.bf16.mxu0 %v640_v2  ;;  %623 = vmatprep.subr.bf16.mxu1 %v640_v2  ;;  %v645_v7 = vld [vmem:[%s999_s1 + $0x18] sm:$0xff]   ;;  %v647_v9 = vld [vmem:[%s999_s1 + $0x20] sm:$0xff]   ;;  %v649_v12 = vld [vmem:[%s999_s1 + $0x28] sm:$0xff]  }
   0x5   :  { %v656_v11 = vld [vmem:[%s1000_s0 + $0x4] ss:$8 sps:$4 sm:$0xff]   ;;  %v650_v14 = vld [vmem:[%s999_s1 + $0x70] sm:$0xff]   ;;  %v652_v16 = vld [vmem:[%s999_s1 + $0x78] sm:$0xff]  }
   0x6   :  { %v662_v13 = vld [vmem:[%s1000_s0 + $0x44] ss:$8 sps:$4 sm:$0xff]   ;;  %278 = vmatprep.mubr.bf16.mxu0 %v656_v11  ;;  %v651_v15 = vld [vmem:[%s999_s1 + $0x30] sm:$0xff]   ;;  %v653_v17 = vld [vmem:[%s999_s1 + $0x38] sm:$0xff]  }
   0x7   :  { %561 = vmatpush3.bf16.msra.mxu0 %v641_v3  ;;  %631 = vmatpush3.bf16.msra.mxu1 %v641_v3  ;;  %v654_v18 = vld [vmem:[%s1000_s0] ss:$8 sps:$4 sm:$0xff]   ;;  %v657_v20 = vld [vmem:[%s1000_s0 + $0x14] ss:$8 sps:$4 sm:$0xff]   ;;  %v659_v22 = vld [vmem:[%s1000_s0 + $0x10] ss:$8 sps:$4 sm:$0xff]  }
   0x8   :  { %562 = vmatprep.subr.bf16.mxu0 %v642_v4  ;;  %624 = vmatprep.subr.bf16.mxu1 %v642_v4  ;;  %v660_v19 = vld [vmem:[%s1000_s0 + $0x40] ss:$8 sps:$4 sm:$0xff]   ;;  %v666_v21 = vld [vmem:[%s1000_s0 + $0x54] ss:$8 sps:$4 sm:$0xff]   ;;  %v668_v23 = vld [vmem:[%s1000_s0 + $0x50] ss:$8 sps:$4 sm:$0xff]  }
   0x9   :  { %310 = vmatprep.mubr.bf16.mxu1 %v662_v13  ;;  %v663_v24 = vld [vmem:[%s1000_s0 + $0x24] ss:$8 sps:$4 sm:$0xff]   ;;  %v665_v26 = vld [vmem:[%s1000_s0 + $0x20] ss:$8 sps:$4 sm:$0xff]   ;;  %v669_v28 = vld [vmem:[%s1000_s0 + $0x34] ss:$8 sps:$4 sm:$0xff]  }
   0xa   :  { %v672_v25 = vld [vmem:[%s1000_s0 + $0x64] ss:$8 sps:$4 sm:$0xff]   ;;  %v674_v27 = vld [vmem:[%s1000_s0 + $0x60] ss:$8 sps:$4 sm:$0xff]   ;;  %v675_v29 = vld [vmem:[%s1000_s0 + $0x74] ss:$8 sps:$4 sm:$0xff]  }
   0xb   :  { %563 = vmatpush3.bf16.msra.mxu0 %v643_v5  ;;  %632 = vmatpush3.bf16.msra.mxu1 %v643_v5  ;;  %v671_v30 = vld [vmem:[%s1000_s0 + $0x30] ss:$8 sps:$4 sm:$0xff]  }
   0xc   :  { %564 = vmatprep.subr.bf16.mxu0 %v644_v6  ;;  %625 = vmatprep.subr.bf16.mxu1 %v644_v6  ;;  %v677_v31 = vld [vmem:[%s1000_s0 + $0x70] ss:$8 sps:$4 sm:$0xff]  }
   0xf   :  { %565 = vmatpush3.bf16.msra.mxu0 %v645_v7  ;;  %633 = vmatpush3.bf16.msra.mxu1 %v645_v7 }
  0x10   :  { %566 = vmatprep.subr.bf16.mxu0 %v646_v8  ;;  %626 = vmatprep.subr.bf16.mxu1 %v646_v8 }
  0x13   :  { %567 = vmatpush3.bf16.msra.mxu0 %v647_v9  ;;  %634 = vmatpush3.bf16.msra.mxu1 %v647_v9 }
  0x14   :  { %568 = vmatprep.subr.bf16.mxu0 %v648_v10  ;;  %627 = vmatprep.subr.bf16.mxu1 %v648_v10 }
  0x17   :  { %569 = vmatpush3.bf16.msra.mxu0 %v649_v12  ;;  %635 = vmatpush3.bf16.msra.mxu1 %v649_v12 }
  0x18   :  { %570 = vmatprep.subr.bf16.mxu0 %v650_v14  ;;  %628 = vmatprep.subr.bf16.mxu1 %v650_v14 }
  0x1b   :  { %571 = vmatpush3.bf16.msra.mxu0 %v651_v15  ;;  %636 = vmatpush3.bf16.msra.mxu1 %v651_v15 }
  0x1c   :  { %572 = vmatprep.subr.bf16.mxu0 %v652_v16  ;;  %629 = vmatprep.subr.bf16.mxu1 %v652_v16 }
  0x1f   :  { %573 = vmatpush3.bf16.msra.mxu0 %v653_v17  ;;  %637 = vmatpush3.bf16.msra.mxu1 %v653_v17 }
  0x22   :  { %279 = vmatmul.mubr.bf16.vlgmr.msra.gmra.mrb[0].mxu0 %v654_v18  ;;  %311 = vmatmul.mubr.bf16.vlgmr.msra.gmra.mrb[0].mxu1 %v660_v19 }
  0x23   :  { %286 = vmatprep.mubr.bf16.mxu0 %v657_v20  ;;  %318 = vmatprep.mubr.bf16.mxu1 %v666_v21 }
  0x2a   :  { %287 = vmatmul.mubr.bf16.gmra.mrb[4].mxu0 %v659_v22  ;;  %319 = vmatmul.mubr.bf16.gmra.mrb[4].mxu1 %v668_v23 }
  0x2b   :  { %294 = vmatprep.mubr.bf16.mxu0 %v663_v24  ;;  %326 = vmatprep.mubr.bf16.mxu1 %v672_v25 }
  0x32   :  { %295 = vmatmul.mubr.bf16.gmra.mrb[8].mxu0 %v665_v26  ;;  %327 = vmatmul.mubr.bf16.gmra.mrb[8].mxu1 %v674_v27 }
  0x33   :  { %302 = vmatprep.mubr.bf16.mxu0 %v669_v28  ;;  %334 = vmatprep.mubr.bf16.mxu1 %v675_v29 }
  0x3a   :  { %303 = vmatmul.mubr.bf16.gmra.mrb[12].mxu0 %v671_v30  ;;  %335 = vmatmul.mubr.bf16.gmra.mrb[12].mxu1 %v677_v31 }
  0xf5   :  { %v574_v34 = vpop.f32.mrb[0].mxu0  ;;  %v598_v35 = vpop.f32.mrb[0].mxu1 }
  0xf6   :  { %v575_v36 = vpop.f32.mrb[1].mxu0  ;;  %v599_v37 = vpop.f32.mrb[1].mxu1 }
  0xf7   :  { %v807_v38 = vadd.f32 %v575_v36, %v574_v34  ;;  %v577_v39 = vpop.f32.mrb[2].mxu0  ;;  %v809_v40 = vadd.f32 %v599_v37, %v598_v35  ;;  %v601_v41 = vpop.f32.mrb[2].mxu1 }
  0xf8   :  { %v578_v42 = vpop.f32.mrb[3].mxu0  ;;  %v602_v43 = vpop.f32.mrb[3].mxu1 }
  0xf9   :  { %v811_v44 = vadd.f32 %v578_v42, %v577_v39  ;;  %v813_v45 = vadd.f32 %v602_v43, %v601_v41  ;;  %v381_v57 = vmul.f32 %v807_v38, %v807_v38  ;;  %v344_v62 = vsel %vm343_vm0, %v807_v38, 0.0 }
  0xfb   :  { %v382_v50 = vmul.f32 %v811_v44, %v811_v44  ;;  %v345_v58 = vsel %vm343_vm0, %v811_v44, 0.0  ;;  %v397_v2 = vsel %vm343_vm0, %v381_v57, 0.0 }
  0xfc   :  { %v346_v1 = vadd.f32 %v345_v58, %v344_v62 }
  0xfd   :  { %v580_v46 = vpop.f32.mrb[4].mxu0  ;;  %v604_v47 = vpop.f32.mrb[4].mxu1  ;;  %v398_v63 = vsel %vm343_vm0, %v382_v50, 0.0 }
  0xfe   :  { %v581_v48 = vpop.f32.mrb[5].mxu0  ;;  %v605_v49 = vpop.f32.mrb[5].mxu1  ;;  %v399_v7 = vadd.f32 %v398_v63, %v397_v2  ;;  %v359_v63 = vsel %vm343_vm0, %v809_v40, 0.0 }
  0xff   :  { %v817_v51 = vadd.f32 %v581_v48, %v580_v46  ;;  %v583_v52 = vpop.f32.mrb[6].mxu0  ;;  %v819_v53 = vadd.f32 %v605_v49, %v604_v47  ;;  %v607_v54 = vpop.f32.mrb[6].mxu1 }
 0x100   :  { %v584_v55 = vpop.f32.mrb[7].mxu0  ;;  %v608_v56 = vpop.f32.mrb[7].mxu1 }
 0x101   :  { %v383_v59 = vmul.f32 %v817_v51, %v817_v51  ;;  %v827_v60 = vadd.f32 %v584_v55, %v583_v52  ;;  %v829_v61 = vadd.f32 %v608_v56, %v607_v54  ;;  %v347_v0 = vsel %vm343_vm0, %v817_v51, 0.0 }
 0x102   :  { %v348_v8 = vadd.f32 %v347_v0, %v346_v1  ;;  %v389_v55 = vmul.f32 %v809_v40, %v809_v40  ;;  %v390_v0 = vmul.f32 %v813_v45, %v813_v45 }
 0x103   :  { %v400_v3 = vsel %vm343_vm0, %v383_v59, 0.0  ;;  %v384_v4 = vmul.f32 %v827_v60, %v827_v60  ;;  %v349_v11 = vsel %vm343_vm0, %v827_v60, 0.0 }
 0x104   :  { %v401_v16 = vadd.f32 %v400_v3, %v399_v7  ;;  %v350_v23 = vadd.f32 %v349_v11, %v348_v8  ;;  %v392_v11 = vmul.f32 %v829_v61, %v829_v61 }
 0x105   :  { %v586_v5 = vpop.f32.mrb[8].mxu0  ;;  %v610_v6 = vpop.f32.mrb[8].mxu1  ;;  %v402_v19 = vsel %vm343_vm0, %v384_v4, 0.0  ;;  %v412_v4 = vsel %vm343_vm0, %v389_v55, 0.0 }
 0x106   :  { %v587_v9 = vpop.f32.mrb[9].mxu0  ;;  %v611_v10 = vpop.f32.mrb[9].mxu1  ;;  %v403_v27 = vadd.f32 %v402_v19, %v401_v16 }
 0x107   :  { %v842_v12 = vadd.f32 %v587_v9, %v586_v5  ;;  %v589_v13 = vpop.f32.mrb[10].mxu0  ;;  %v844_v14 = vadd.f32 %v611_v10, %v610_v6  ;;  %v613_v15 = vpop.f32.mrb[10].mxu1  ;;  %v361_v5 = vsel %vm343_vm0, %v813_v45, 0.0  ;;  %v391_v6 = vmul.f32 %v819_v53, %v819_v53 }
 0x108   :  { %v590_v17 = vpop.f32.mrb[11].mxu0  ;;  %v614_v18 = vpop.f32.mrb[11].mxu1  ;;  %v414_v9 = vsel %vm343_vm0, %v390_v0, 0.0  ;;  %v363_v10 = vsel %vm343_vm0, %v819_v53, 0.0 }
 0x109   :  { %v351_v20 = vsel %vm343_vm0, %v842_v12, 0.0  ;;  %v385_v21 = vmul.f32 %v842_v12, %v842_v12  ;;  %v851_v22 = vadd.f32 %v590_v17, %v589_v13  ;;  %v853_v24 = vadd.f32 %v614_v18, %v613_v15 }
 0x10a   :  { %v352_v28 = vadd.f32 %v351_v20, %v350_v23  ;;  %v416_v16 = vsel %vm343_vm0, %v391_v6, 0.0  ;;  %v365_v17 = vsel %vm343_vm0, %v829_v61, 0.0  ;;  %v393_v18 = vmul.f32 %v844_v14, %v844_v14 }
 0x10b   :  { %v404_v25 = vsel %vm343_vm0, %v385_v21, 0.0  ;;  %v386_v26 = vmul.f32 %v851_v22, %v851_v22  ;;  %v353_v29 = vsel %vm343_vm0, %v851_v22, 0.0  ;;  %v418_v21 = vsel %vm343_vm0, %v392_v11, 0.0 }
 0x10c   :  { %v405_v32 = vadd.f32 %v404_v25, %v403_v27  ;;  %v354_v42 = vadd.f32 %v353_v29, %v352_v28  ;;  %v367_v23 = vsel %vm343_vm0, %v844_v14, 0.0  ;;  %v394_v25 = vmul.f32 %v853_v24, %v853_v24 }
 0x10d   :  { %v592_v30 = vpop.f32.mrb[12].mxu0  ;;  %v616_v31 = vpop.f32.mrb[12].mxu1  ;;  %v406_v35 = vsel %vm343_vm0, %v386_v26, 0.0  ;;  %v420_v29 = vsel %vm343_vm0, %v393_v18, 0.0  ;;  %v443_v18 = vld [vmem:[#allocation3] sm:$0x1] }
 0x10e   :  { %v593_v33 = vpop.f32.mrb[13].mxu0  ;;  %v617_v34 = vpop.f32.mrb[13].mxu1  ;;  %v407_v50 = vadd.f32 %v406_v35, %v405_v32 }
 0x10f   :  { %v861_v36 = vadd.f32 %v593_v33, %v592_v30  ;;  %v595_v37 = vpop.f32.mrb[14].mxu0  ;;  %v863_v39 = vadd.f32 %v617_v34, %v616_v31  ;;  %v619_v41 = vpop.f32.mrb[14].mxu1  ;;  %v369_v30 = vsel %vm343_vm0, %v853_v24, 0.0  ;;  %v422_v34 = vsel %vm343_vm0, %v394_v25, 0.0 }
 0x110   :  { %v596_v43 = vpop.f32.mrb[15].mxu0  ;;  %v620_v46 = vpop.f32.mrb[15].mxu1 }
 0x111   :  { %v355_v47 = vsel %vm343_vm0, %v861_v36, 0.0  ;;  %v387_v48 = vmul.f32 %v861_v36, %v861_v36  ;;  %v869_v49 = vadd.f32 %v596_v43, %v595_v37  ;;  %v871_v54 = vadd.f32 %v620_v46, %v619_v41 }
 0x112   :  { %v356_v52 = vadd.f32 %v355_v47, %v354_v42  ;;  %v395_v26 = vmul.f32 %v863_v39, %v863_v39  ;;  %v371_v31 = vsel %vm343_vm0, %v863_v39, 0.0 }
 0x113   :  { %v408_v56 = vsel %vm343_vm0, %v387_v48, 0.0  ;;  %v357_v57 = vsel %vm343_vm0, %v869_v49, 0.0  ;;  %v388_v58 = vmul.f32 %v869_v49, %v869_v49  ;;  %v396_v37 = vmul.f32 %v871_v54, %v871_v54 }
 0x114   :  { %v409_v59 = vadd.f32 %v408_v56, %v407_v50  ;;  %v358_v62 = vadd.f32 %v357_v57, %v356_v52  ;;  %v424_v35 = vsel %vm343_vm0, %v395_v26, 0.0  ;;  %v373_v43 = vsel %vm343_vm0, %v871_v54, 0.0 }
 0x115   :  { %v410_v1 = vsel %vm343_vm0, %v388_v58, 0.0  ;;  %v426_v48 = vsel %vm343_vm0, %v396_v37, 0.0 }
 0x116   :  { %v360_v2 = vadd.f32 %v359_v63, %v358_v62  ;;  %v411_v3 = vadd.f32 %v410_v1, %v409_v59 }
 0x118   :  { %v362_v7 = vadd.f32 %v361_v5, %v360_v2  ;;  %v413_v8 = vadd.f32 %v412_v4, %v411_v3 }
 0x11a   :  { %v415_v13 = vadd.f32 %v414_v9, %v413_v8  ;;  %v364_v15 = vadd.f32 %v363_v10, %v362_v7  ;;  %v447_v10 = vlaneseq }
 0x11c   :  { %v366_v19 = vadd.f32 %v365_v17, %v364_v15  ;;  %v417_v20 = vadd.f32 %v416_v16, %v415_v13  ;;  %v448_v11 = vshrl.u32 %v447_v10, 7  ;;  %v439_v13 = vld [vmem:[#allocation2] sm:$0x1] }
 0x11e   :  { %v368_v27 = vadd.f32 %v367_v23, %v366_v19  ;;  %v419_v28 = vadd.f32 %v418_v21, %v417_v20  ;;  %v449_v15 = vsub.s32 0, %v448_v11 }
 0x120   :  { %v421_v32 = vadd.f32 %v420_v29, %v419_v28  ;;  %v370_v33 = vadd.f32 %v369_v30, %v368_v27 }
 0x122   :  { %v423_v41 = vadd.f32 %v422_v34, %v421_v32  ;;  %v372_v42 = vadd.f32 %v371_v31, %v370_v33 }
 0x124   :  { %v425_v46 = vadd.f32 %v424_v35, %v423_v41  ;;  %v374_v47 = vadd.f32 %v373_v43, %v372_v42 }
 0x126   :  { %v375_v50 = vrot.slane %v374_v47, 4  ;;  %v427_v52 = vadd.f32 %v426_v48, %v425_v46 }
 0x128   :  { %v376_v55 = vadd.f32 %v375_v50, %v374_v47  ;;  %v428_v56 = vrot.slane %v427_v52, 4 }
 0x12a   :  { %v377_v57 = vrot.slane %v376_v55, 2  ;;  %v429_v58 = vadd.f32 %v428_v56, %v427_v52 }
 0x12c   :  { %v378_v59 = vadd.f32 %v377_v57, %v376_v55  ;;  %v430_v62 = vrot.slane %v429_v58, 2 }
 0x12e   :  { %v379_v63 = vrot.slane %v378_v59, 1  ;;  %v431_v0 = vadd.f32 %v430_v62, %v429_v58 }
 0x130   :  { %v380_v1 = vadd.f32 %v379_v63, %v378_v59  ;;  %v432_v2 = vrot.slane %v431_v0, 1 }
 0x132   :  { %v433_v3 = vadd.f32 %v432_v2, %v431_v0  ;;  %v434_v4 = vmul.f32 0.0078125, %v380_v1 }
 0x134   :  { %v435_v5 = vmul.f32 0.0078125, %v433_v3  ;;  %v436_v6 = vmul.f32 %v434_v4, %v434_v4 }
 0x136   :  { %v437_v7 = vsub.f32 %v435_v5, %v436_v6 }
 0x138   :  { %v438_v8 = vmax.f32 %v437_v7, 0.0 }
 0x13a   :  { %v440_v9 = vadd.f32 1e-05, %v438_v8 }
 0x13c   :  { %678 = vrsqrt.f32 %v440_v9 }
 0x146   :  { %v679_v16 = vpop.eup %678 }
 0x147   :  { %v442_v17 = vmul.f32 %v679_v16, %v439_v13 }
 0x149   :  { %v444_v19 = vmul.f32 %v442_v17, %v434_v4  ;;  %v450_v20 = vrot.slane %v442_v17, %v449_v15 }
 0x14b   :  { %v445_v21 = vsub.f32 %v443_v18, %v444_v19  ;;  %v452_v23 = vmul.f32 %v807_v38, %v450_v20  ;;  %v453_v25 = vmul.f32 %v811_v44, %v450_v20  ;;  %v457_v26 = vmul.f32 %v851_v22, %v450_v20 }
 0x14c   :  { %v458_v27 = vmul.f32 %v861_v36, %v450_v20  ;;  %v459_v28 = vmul.f32 %v869_v49, %v450_v20  ;;  %v460_v29 = vmul.f32 %v809_v40, %v450_v20  ;;  %v461_v30 = vmul.f32 %v813_v45, %v450_v20 }
 0x14d   :  { %v462_v31 = vmul.f32 %v819_v53, %v450_v20  ;;  %v463_v32 = vmul.f32 %v829_v61, %v450_v20  ;;  %v464_v33 = vmul.f32 %v844_v14, %v450_v20  ;;  %v465_v38 = vmul.f32 %v853_v24, %v450_v20 }
 0x14e   :  { %v466_v44 = vmul.f32 %v863_v39, %v450_v20  ;;  %v454_v22 = vmul.f32 %v817_v51, %v450_v20  ;;  %v455_v36 = vmul.f32 %v827_v60, %v450_v20  ;;  %v467_v49 = vmul.f32 %v871_v54, %v450_v20 }
 0x14f   :  { %v472_v34 = vrot.slane %v445_v21, %v449_v15  ;;  %v456_v40 = vmul.f32 %v842_v12, %v450_v20 }
 0x151   :  { %v474_v45 = vadd.f32 %v472_v34, %v452_v23  ;;  %v475_v35 = vadd.f32 %v472_v34, %v453_v25  ;;  %v476_v53 = vadd.f32 %v472_v34, %v454_v22  ;;  %v477_v37 = vadd.f32 %v472_v34, %v455_v36 }
 0x152   :  { %v478_v61 = vadd.f32 %v472_v34, %v456_v40  ;;  %v479_v41 = vadd.f32 %v472_v34, %v457_v26  ;;  %v480_v14 = vadd.f32 %v472_v34, %v458_v27  ;;  %v481_v42 = vadd.f32 %v472_v34, %v459_v28 }
 0x153   :  { %v482_v24 = vadd.f32 %v472_v34, %v460_v29  ;;  %v483_v43 = vadd.f32 %v472_v34, %v461_v30  ;;  %v484_v39 = vadd.f32 %v472_v34, %v462_v31  ;;  %v485_v46 = vadd.f32 %v472_v34, %v463_v32 }
 0x154   :  { %v486_v51 = vadd.f32 %v472_v34, %v464_v33  ;;  %v487_v47 = vadd.f32 %v472_v34, %v465_v38  ;;  %v488_v60 = vadd.f32 %v472_v34, %v466_v44  ;;  %v489_v48 = vadd.f32 %v472_v34, %v467_v49 }
 0x155   :  { %v490_v54 = vmax.f32 %v474_v45, 0.0  ;;  %v491_v50 = vmax.f32 %v475_v35, 0.0  ;;  %v492_v52 = vmax.f32 %v476_v53, 0.0  ;;  %v493_v12 = vmax.f32 %v477_v37, 0.0 }
 0x156   :  { %v494_v55 = vmax.f32 %v478_v61, 0.0  ;;  %v495_v56 = vmax.f32 %v479_v41, 0.0  ;;  %v496_v57 = vmax.f32 %v480_v14, 0.0  ;;  %v497_v58 = vmax.f32 %v481_v42, 0.0 }
 0x157   :  { %v498_v59 = vmax.f32 %v482_v24, 0.0  ;;  %v499_v62 = vmax.f32 %v483_v43, 0.0  ;;  %v500_v63 = vmax.f32 %v484_v39, 0.0  ;;  %v501_v0 = vmax.f32 %v485_v46, 0.0  ;;  %506 = vst.msk [vmem:[%s1003_s4] sm:$0xff] %vm343_vm0, %v490_v54  ;;  %507 = vst.msk [vmem:[%s1003_s4 + $0x8] sm:$0xff] %vm343_vm0, %v491_v50 }
 0x158   :  { %508 = vst.msk [vmem:[%s1003_s4 + $0x10] sm:$0xff] %vm343_vm0, %v492_v52  ;;  %509 = vst.msk [vmem:[%s1003_s4 + $0x18] sm:$0xff] %vm343_vm0, %v493_v12  ;;  %v502_v1 = vmax.f32 %v486_v51, 0.0  ;;  %v503_v2 = vmax.f32 %v487_v47, 0.0  ;;  %v504_v3 = vmax.f32 %v488_v60, 0.0  ;;  %v505_v4 = vmax.f32 %v489_v48, 0.0 }
 0x159   :  { %510 = vst.msk [vmem:[%s1003_s4 + $0x20] sm:$0xff] %vm343_vm0, %v494_v55  ;;  %511 = vst.msk [vmem:[%s1003_s4 + $0x28] sm:$0xff] %vm343_vm0, %v495_v56 }
 0x15a   :  { %512 = vst.msk [vmem:[%s1003_s4 + $0x30] sm:$0xff] %vm343_vm0, %v496_v57  ;;  %513 = vst.msk [vmem:[%s1003_s4 + $0x38] sm:$0xff] %vm343_vm0, %v497_v58 }
 0x15b   :  { %514 = vst.msk [vmem:[%s1003_s4 + $0x40] sm:$0xff] %vm343_vm0, %v498_v59  ;;  %515 = vst.msk [vmem:[%s1003_s4 + $0x48] sm:$0xff] %vm343_vm0, %v499_v62 }
 0x15c   :  { %516 = vst.msk [vmem:[%s1003_s4 + $0x50] sm:$0xff] %vm343_vm0, %v500_v63  ;;  %517 = vst.msk [vmem:[%s1003_s4 + $0x58] sm:$0xff] %vm343_vm0, %v501_v0 }
 0x15d   :  { %518 = vst.msk [vmem:[%s1003_s4 + $0x60] sm:$0xff] %vm343_vm0, %v502_v1  ;;  %519 = vst.msk [vmem:[%s1003_s4 + $0x68] sm:$0xff] %vm343_vm0, %v503_v2 }
 0x15e   :  { %520 = vst.msk [vmem:[%s1003_s4 + $0x70] sm:$0xff] %vm343_vm0, %v504_v3  ;;  %521 = vst.msk [vmem:[%s1003_s4 + $0x78] sm:$0xff] %vm343_vm0, %v505_v4 }

// kernel: policy_value_forward.10
= control target key start
LH: loop header
LB: loop body
LE: loop exit
PB: predicated region body
PF: predicated region fallthrough
CT: control target
= control target key end

     0   :  { %s6098_s15 = smov 0   ;;  %s6100_s16 = smov 0   ;;  %s7630_s0 = inlined_call_operand.vmem [shape: bf16[128,2304], index: 0, kind: input, shape index: {}]   ;;  %s7631_s1 = inlined_call_operand.vmem [shape: bf16[2304,256], index: 1, kind: input, shape index: {}]   ;;  %s7632_s2 = inlined_call_operand.vmem [shape: f32[1,256], index: 2, kind: input, shape index: {}]   ;;  %s7633_s3 = inlined_call_operand.vmem [shape: f32[1,256], index: 3, kind: input, shape index: {}]   ;;  %s7634_s4 = inlined_call_operand.vmem [shape: bf16[128,256], index: 4, kind: output, shape index: {}]  }
   0x1   :  { %s6102_s17 = smov 0  }
   0x2 LB: > { %s6114_s18 = sadd.s32 4294967295, %s6071_s17   ;;  %s6117_s19 = sadd.s32 1, %s6071_s17   ;;  %s6071_s17 = sphi %s6102_s17, %s7638_s17   ;;  %s6067_s16 = sphi %s6100_s16, %s7637_s16   ;;  %s6063_s15 = sphi %s6098_s15, %s7636_s15  }
   0x3   : > { %s39_s20 = ssub.s32 %s6071_s17, %s6117_s19  ;;  %s42_s21 = sadd.s32 1, %s6067_s16 }
   0x4   : > { %p40_p0 = scmp.eq.s32.totalorder %s39_s20, 0  ;;  %p49_p1 = scmp.ne.s32.totalorder %s6067_s16, %s6063_s15 }
   0x5   : > { %p50_p2 = scmp.eq.s32.totalorder %s6071_s17, 0  ;;  %p131_p3 = scmp.eq.s32.totalorder %s6114_s18, 1 }
   0x6   : > { %s6127_s22 = scalar_select %p40_p0, %s6067_s16, %s42_s21  }
   0x7   : > { %p51_p4 = por %p50_p2, %p49_p1  ;;  %p6129_p5 = por %p131_p3, %p49_p1 }
   0x8   : > { %p4694_p6 = scmp.ge.s32.totalorder %s6071_s17, 2 }
   0xa   : > { %156 = sbr.rel (%p4694_p6) target bundleno = 213 (0xd5), region = 20 }
  0x11   : > { %159 = sbr.rel (!%p51_p4) target bundleno = 213 (0xd5), region = 24  ;;  %s161_s24 = sand.u32 (%p51_p4), 1, %s6067_s16  }
  0x12   : > { %s4695_s25 = sshll.u32 (%p51_p4), %s6071_s17, 2  ;;  %s5661_s26 = smul.u32 (%p51_p4), 1152, %s161_s24 }
  0x13   : > { %s6139_s29 = scalar_lea.vmem (%p51_p4), %s7631_s1, %s4695_s25 }
  0x14   : > { %v181_v0 = vld [vmem:[%s6139_s29] sm:$0xf] (%p51_p4)  ;;  %v183_v1 = vld [vmem:[%s6139_s29 + $0x8] sm:$0xf] (%p51_p4)  ;;  %v185_v2 = vld [vmem:[%s6139_s29 + $0x10] sm:$0xf] (%p51_p4) }
  0x15   : > { %v187_v3 = vld [vmem:[%s6139_s29 + $0x18] sm:$0xf] (%p51_p4)  ;;  %v189_v4 = vld [vmem:[%s6139_s29 + $0x20] sm:$0xf] (%p51_p4)  ;;  %s6146_s30 = scalar_lea.vmem (%p51_p4), [#allocation2], %s5661_s26 }
  0x16   : > { %182 = vst [vmem:[%s6146_s30] sm:$0xf] (%p51_p4), %v181_v0  ;;  %184 = vst [vmem:[%s6146_s30 + $0x4] sm:$0xf] (%p51_p4), %v183_v1  ;;  %v191_v5 = vld [vmem:[%s6139_s29 + $0x28] sm:$0xf] (%p51_p4) }
  0x17   : > { %186 = vst [vmem:[%s6146_s30 + $0x8] sm:$0xf] (%p51_p4), %v185_v2  ;;  %188 = vst [vmem:[%s6146_s30 + $0xc] sm:$0xf] (%p51_p4), %v187_v3  ;;  %v193_v6 = vld [vmem:[%s6139_s29 + $0x30] sm:$0xf] (%p51_p4) }
  0x18   : > { %190 = vst [vmem:[%s6146_s30 + $0x10] sm:$0xf] %v189_v4  ;;  %v195_v7 = vld [vmem:[%s6139_s29 + $0x38] sm:$0xf]  ;;  %192 = vst [vmem:[%s6146_s30 + $0x14] sm:$0xf] %v191_v5 }
  0x19   : > { %194 = vst [vmem:[%s6146_s30 + $0x18] sm:$0xf] %v193_v6  ;;  %196 = vst [vmem:[%s6146_s30 + $0x1c] sm:$0xf] %v195_v7  ;;  %v197_v8 = vld [vmem:[%s6139_s29 + $0x40] sm:$0xf] }
  0x1a   : > { %v199_v9 = vld [vmem:[%s6139_s29 + $0x48] sm:$0xf]  ;;  %v201_v10 = vld [vmem:[%s6139_s29 + $0x50] sm:$0xf]  ;;  %198 = vst [vmem:[%s6146_s30 + $0x20] sm:$0xf] %v197_v8 }
  0x1b   : > { %200 = vst [vmem:[%s6146_s30 + $0x24] sm:$0xf] %v199_v9  ;;  %202 = vst [vmem:[%s6146_s30 + $0x28] sm:$0xf] %v201_v10  ;;  %v203_v11 = vld [vmem:[%s6139_s29 + $0x58] sm:$0xf] }
  0x1c   : > { %v205_v12 = vld [vmem:[%s6139_s29 + $0x60] sm:$0xf]  ;;  %v207_v13 = vld [vmem:[%s6139_s29 + $0x68] sm:$0xf]  ;;  %204 = vst [vmem:[%s6146_s30 + $0x2c] sm:$0xf] %v203_v11 }
  0x1d   : > { %206 = vst [vmem:[%s6146_s30 + $0x30] sm:$0xf] %v205_v12  ;;  %208 = vst [vmem:[%s6146_s30 + $0x34] sm:$0xf] %v207_v13  ;;  %v209_v14 = vld [vmem:[%s6139_s29 + $0x70] sm:$0xf] }
  0x1e   : > { %v211_v15 = vld [vmem:[%s6139_s29 + $0x78] sm:$0xf]  ;;  %v213_v16 = vld [vmem:[%s6139_s29 + $0x80] sm:$0xf]  ;;  %210 = vst [vmem:[%s6146_s30 + $0x38] sm:$0xf] %v209_v14 }
  0x1f   : > { %212 = vst [vmem:[%s6146_s30 + $0x3c] sm:$0xf] %v211_v15  ;;  %214 = vst [vmem:[%s6146_s30 + $0x40] sm:$0xf] %v213_v16  ;;  %v215_v17 = vld [vmem:[%s6139_s29 + $0x88] sm:$0xf] }
  0x20   : > { %v217_v18 = vld [vmem:[%s6139_s29 + $0x90] sm:$0xf]  ;;  %v219_v19 = vld [vmem:[%s6139_s29 + $0x98] sm:$0xf]  ;;  %216 = vst [vmem:[%s6146_s30 + $0x44] sm:$0xf] %v215_v17 }
  0x21   : > { %218 = vst [vmem:[%s6146_s30 + $0x48] sm:$0xf] %v217_v18  ;;  %220 = vst [vmem:[%s6146_s30 + $0x4c] sm:$0xf] %v219_v19  ;;  %v221_v20 = vld [vmem:[%s6139_s29 + $0xa0] sm:$0xf] }
  0x22   : > { %v223_v21 = vld [vmem:[%s6139_s29 + $0xa8] sm:$0xf]  ;;  %v225_v22 = vld [vmem:[%s6139_s29 + $0xb0] sm:$0xf]  ;;  %222 = vst [vmem:[%s6146_s30 + $0x50] sm:$0xf] %v221_v20 }
  0x23   : > { %224 = vst [vmem:[%s6146_s30 + $0x54] sm:$0xf] %v223_v21  ;;  %226 = vst [vmem:[%s6146_s30 + $0x58] sm:$0xf] %v225_v22  ;;  %v227_v23 = vld [vmem:[%s6139_s29 + $0xb8] sm:$0xf] }
  0x24   : > { %v229_v24 = vld [vmem:[%s6139_s29 + $0xc0] sm:$0xf]  ;;  %v231_v25 = vld [vmem:[%s6139_s29 + $0xc8] sm:$0xf]  ;;  %228 = vst [vmem:[%s6146_s30 + $0x5c] sm:$0xf] %v227_v23 }
  0x25   : > { %230 = vst [vmem:[%s6146_s30 + $0x60] sm:$0xf] %v229_v24  ;;  %232 = vst [vmem:[%s6146_s30 + $0x64] sm:$0xf] %v231_v25  ;;  %v233_v26 = vld [vmem:[%s6139_s29 + $0xd0] sm:$0xf] }
  0x26   : > { %v235_v27 = vld [vmem:[%s6139_s29 + $0xd8] sm:$0xf]  ;;  %v237_v28 = vld [vmem:[%s6139_s29 + $0xe0] sm:$0xf]  ;;  %234 = vst [vmem:[%s6146_s30 + $0x68] sm:$0xf] %v233_v26 }
  0x27   : > { %236 = vst [vmem:[%s6146_s30 + $0x6c] sm:$0xf] %v235_v27  ;;  %238 = vst [vmem:[%s6146_s30 + $0x70] sm:$0xf] %v237_v28  ;;  %v239_v29 = vld [vmem:[%s6139_s29 + $0xe8] sm:$0xf] }
  0x28   : > { %v241_v30 = vld [vmem:[%s6139_s29 + $0xf0] sm:$0xf]  ;;  %v243_v31 = vld [vmem:[%s6139_s29 + $0xf8] sm:$0xf]  ;;  %240 = vst [vmem:[%s6146_s30 + $0x74] sm:$0xf] %v239_v29 }
  0x29   : > { %242 = vst [vmem:[%s6146_s30 + $0x78] sm:$0xf] %v241_v30  ;;  %244 = vst [vmem:[%s6146_s30 + $0x7c] sm:$0xf] %v243_v31  ;;  %v245_v32 = vld [vmem:[%s6139_s29 + $0x100] sm:$0xf] }
  0x2a   : > { %v247_v33 = vld [vmem:[%s6139_s29 + $0x108] sm:$0xf]  ;;  %v249_v34 = vld [vmem:[%s6139_s29 + $0x110] sm:$0xf]  ;;  %246 = vst [vmem:[%s6146_s30 + $0x80] sm:$0xf] %v245_v32 }
  0x2b   : > { %248 = vst [vmem:[%s6146_s30 + $0x84] sm:$0xf] %v247_v33  ;;  %250 = vst [vmem:[%s6146_s30 + $0x88] sm:$0xf] %v249_v34  ;;  %v251_v35 = vld [vmem:[%s6139_s29 + $0x118] sm:$0xf] }
  0x2c   : > { %v253_v36 = vld [vmem:[%s6139_s29 + $0x120] sm:$0xf]  ;;  %v255_v37 = vld [vmem:[%s6139_s29 + $0x128] sm:$0xf]  ;;  %252 = vst [vmem:[%s6146_s30 + $0x8c] sm:$0xf] %v251_v35 }
  0x2d   : > { %254 = vst [vmem:[%s6146_s30 + $0x90] sm:$0xf] %v253_v36  ;;  %256 = vst [vmem:[%s6146_s30 + $0x94] sm:$0xf] %v255_v37  ;;  %v257_v38 = vld [vmem:[%s6139_s29 + $0x130] sm:$0xf] }
  0x2e   : > { %v259_v39 = vld [vmem:[%s6139_s29 + $0x138] sm:$0xf]  ;;  %v261_v40 = vld [vmem:[%s6139_s29 + $0x140] sm:$0xf]  ;;  %258 = vst [vmem:[%s6146_s30 + $0x98] sm:$0xf] %v257_v38 }
  0x2f   : > { %260 = vst [vmem:[%s6146_s30 + $0x9c] sm:$0xf] %v259_v39  ;;  %262 = vst [vmem:[%s6146_s30 + $0xa0] sm:$0xf] %v261_v40  ;;  %v263_v41 = vld [vmem:[%s6139_s29 + $0x148] sm:$0xf] }
  0x30   : > { %v265_v42 = vld [vmem:[%s6139_s29 + $0x150] sm:$0xf]  ;;  %v267_v43 = vld [vmem:[%s6139_s29 + $0x158] sm:$0xf]  ;;  %264 = vst [vmem:[%s6146_s30 + $0xa4] sm:$0xf] %v263_v41 }
  0x31   : > { %266 = vst [vmem:[%s6146_s30 + $0xa8] sm:$0xf] %v265_v42  ;;  %268 = vst [vmem:[%s6146_s30 + $0xac] sm:$0xf] %v267_v43  ;;  %v269_v44 = vld [vmem:[%s6139_s29 + $0x160] sm:$0xf] }
  0x32   : > { %v271_v45 = vld [vmem:[%s6139_s29 + $0x168] sm:$0xf]  ;;  %v273_v46 = vld [vmem:[%s6139_s29 + $0x170] sm:$0xf]  ;;  %270 = vst [vmem:[%s6146_s30 + $0xb0] sm:$0xf] %v269_v44 }
  0x33   : > { %272 = vst [vmem:[%s6146_s30 + $0xb4] sm:$0xf] %v271_v45  ;;  %274 = vst [vmem:[%s6146_s30 + $0xb8] sm:$0xf] %v273_v46  ;;  %v275_v47 = vld [vmem:[%s6139_s29 + $0x178] sm:$0xf] }
  0x34   : > { %v277_v48 = vld [vmem:[%s6139_s29 + $0x180] sm:$0xf]  ;;  %v279_v49 = vld [vmem:[%s6139_s29 + $0x188] sm:$0xf]  ;;  %276 = vst [vmem:[%s6146_s30 + $0xbc] sm:$0xf] %v275_v47 }
  0x35   : > { %278 = vst [vmem:[%s6146_s30 + $0xc0] sm:$0xf] %v277_v48  ;;  %280 = vst [vmem:[%s6146_s30 + $0xc4] sm:$0xf] %v279_v49  ;;  %v281_v50 = vld [vmem:[%s6139_s29 + $0x190] sm:$0xf] }
  0x36   : > { %v283_v51 = vld [vmem:[%s6139_s29 + $0x198] sm:$0xf]  ;;  %v285_v52 = vld [vmem:[%s6139_s29 + $0x1a0] sm:$0xf]  ;;  %282 = vst [vmem:[%s6146_s30 + $0xc8] sm:$0xf] %v281_v50 }
  0x37   : > { %284 = vst [vmem:[%s6146_s30 + $0xcc] sm:$0xf] %v283_v51  ;;  %286 = vst [vmem:[%s6146_s30 + $0xd0] sm:$0xf] %v285_v52  ;;  %v287_v53 = vld [vmem:[%s6139_s29 + $0x1a8] sm:$0xf] }
  0x38   : > { %v289_v54 = vld [vmem:[%s6139_s29 + $0x1b0] sm:$0xf]  ;;  %v291_v55 = vld [vmem:[%s6139_s29 + $0x1b8] sm:$0xf]  ;;  %288 = vst [vmem:[%s6146_s30 + $0xd4] sm:$0xf] %v287_v53 }
  0x39   : > { %290 = vst [vmem:[%s6146_s30 + $0xd8] sm:$0xf] %v289_v54  ;;  %292 = vst [vmem:[%s6146_s30 + $0xdc] sm:$0xf] %v291_v55  ;;  %v293_v56 = vld [vmem:[%s6139_s29 + $0x1c0] sm:$0xf] }
  0x3a   : > { %v295_v57 = vld [vmem:[%s6139_s29 + $0x1c8] sm:$0xf]  ;;  %v297_v58 = vld [vmem:[%s6139_s29 + $0x1d0] sm:$0xf]  ;;  %294 = vst [vmem:[%s6146_s30 + $0xe0] sm:$0xf] %v293_v56 }
  0x3b   : > { %296 = vst [vmem:[%s6146_s30 + $0xe4] sm:$0xf] %v295_v57  ;;  %298 = vst [vmem:[%s6146_s30 + $0xe8] sm:$0xf] %v297_v58  ;;  %v299_v59 = vld [vmem:[%s6139_s29 + $0x1d8] sm:$0xf] }
  0x3c   : > { %v301_v60 = vld [vmem:[%s6139_s29 + $0x1e0] sm:$0xf]  ;;  %v303_v61 = vld [vmem:[%s6139_s29 + $0x1e8] sm:$0xf]  ;;  %300 = vst [vmem:[%s6146_s30 + $0xec] sm:$0xf] %v299_v59 }
  0x3d   : > { %302 = vst [vmem:[%s6146_s30 + $0xf0] sm:$0xf] %v301_v60  ;;  %304 = vst [vmem:[%s6146_s30 + $0xf4] sm:$0xf] %v303_v61  ;;  %v305_v62 = vld [vmem:[%s6139_s29 + $0x1f0] sm:$0xf] }
  0x3e   : > { %v307_v63 = vld [vmem:[%s6139_s29 + $0x1f8] sm:$0xf]  ;;  %v309_v0 = vld [vmem:[%s6139_s29 + $0x200] sm:$0xf]  ;;  %306 = vst [vmem:[%s6146_s30 + $0xf8] sm:$0xf] %v305_v62 }
  0x3f   : > { %308 = vst [vmem:[%s6146_s30 + $0xfc] sm:$0xf] %v307_v63  ;;  %310 = vst [vmem:[%s6146_s30 + $0x100] sm:$0xf] %v309_v0  ;;  %v311_v1 = vld [vmem:[%s6139_s29 + $0x208] sm:$0xf] }
  0x40   : > { %v313_v2 = vld [vmem:[%s6139_s29 + $0x210] sm:$0xf]  ;;  %v315_v3 = vld [vmem:[%s6139_s29 + $0x218] sm:$0xf]  ;;  %312 = vst [vmem:[%s6146_s30 + $0x104] sm:$0xf] %v311_v1 }
  0x41   : > { %314 = vst [vmem:[%s6146_s30 + $0x108] sm:$0xf] %v313_v2  ;;  %316 = vst [vmem:[%s6146_s30 + $0x10c] sm:$0xf] %v315_v3  ;;  %v317_v4 = vld [vmem:[%s6139_s29 + $0x220] sm:$0xf] }
  0x42   : > { %v319_v5 = vld [vmem:[%s6139_s29 + $0x228] sm:$0xf]  ;;  %v321_v6 = vld [vmem:[%s6139_s29 + $0x230] sm:$0xf]  ;;  %318 = vst [vmem:[%s6146_s30 + $0x110] sm:$0xf] %v317_v4 }
  0x43   : > { %320 = vst [vmem:[%s6146_s30 + $0x114] sm:$0xf] %v319_v5  ;;  %322 = vst [vmem:[%s6146_s30 + $0x118] sm:$0xf] %v321_v6  ;;  %v323_v7 = vld [vmem:[%s6139_s29 + $0x238] sm:$0xf] }
  0x44   : > { %v325_v8 = vld [vmem:[%s6139_s29 + $0x240] sm:$0xf]  ;;  %v327_v9 = vld [vmem:[%s6139_s29 + $0x248] sm:$0xf]  ;;  %324 = vst [vmem:[%s6146_s30 + $0x11c] sm:$0xf] %v323_v7 }
  0x45   : > { %326 = vst [vmem:[%s6146_s30 + $0x120] sm:$0xf] %v325_v8  ;;  %328 = vst [vmem:[%s6146_s30 + $0x124] sm:$0xf] %v327_v9  ;;  %v329_v10 = vld [vmem:[%s6139_s29 + $0x250] sm:$0xf] }
  0x46   : > { %v331_v11 = vld [vmem:[%s6139_s29 + $0x258] sm:$0xf]  ;;  %v333_v12 = vld [vmem:[%s6139_s29 + $0x260] sm:$0xf]  ;;  %330 = vst [vmem:[%s6146_s30 + $0x128] sm:$0xf] %v329_v10 }
  0x47   : > { %332 = vst [vmem:[%s6146_s30 + $0x12c] sm:$0xf] %v331_v11  ;;  %334 = vst [vmem:[%s6146_s30 + $0x130] sm:$0xf] %v333_v12  ;;  %v335_v13 = vld [vmem:[%s6139_s29 + $0x268] sm:$0xf] }
  0x48   : > { %v337_v14 = vld [vmem:[%s6139_s29 + $0x270] sm:$0xf]  ;;  %v339_v15 = vld [vmem:[%s6139_s29 + $0x278] sm:$0xf]  ;;  %336 = vst [vmem:[%s6146_s30 + $0x134] sm:$0xf] %v335_v13 }
  0x49   : > { %338 = vst [vmem:[%s6146_s30 + $0x138] sm:$0xf] %v337_v14  ;;  %340 = vst [vmem:[%s6146_s30 + $0x13c] sm:$0xf] %v339_v15  ;;  %v341_v16 = vld [vmem:[%s6139_s29 + $0x280] sm:$0xf] }
  0x4a   : > { %v343_v17 = vld [vmem:[%s6139_s29 + $0x288] sm:$0xf]  ;;  %v345_v18 = vld [vmem:[%s6139_s29 + $0x290] sm:$0xf]  ;;  %342 = vst [vmem:[%s6146_s30 + $0x140] sm:$0xf] %v341_v16 }
  0x4b   : > { %344 = vst [vmem:[%s6146_s30 + $0x144] sm:$0xf] %v343_v17  ;;  %346 = vst [vmem:[%s6146_s30 + $0x148] sm:$0xf] %v345_v18  ;;  %v347_v19 = vld [vmem:[%s6139_s29 + $0x298] sm:$0xf] }
  0x4c   : > { %v349_v20 = vld [vmem:[%s6139_s29 + $0x2a0] sm:$0xf]  ;;  %v351_v21 = vld [vmem:[%s6139_s29 + $0x2a8] sm:$0xf]  ;;  %348 = vst [vmem:[%s6146_s30 + $0x14c] sm:$0xf] %v347_v19 }
  0x4d   : > { %350 = vst [vmem:[%s6146_s30 + $0x150] sm:$0xf] %v349_v20  ;;  %352 = vst [vmem:[%s6146_s30 + $0x154] sm:$0xf] %v351_v21  ;;  %v353_v22 = vld [vmem:[%s6139_s29 + $0x2b0] sm:$0xf] }
  0x4e   : > { %v355_v23 = vld [vmem:[%s6139_s29 + $0x2b8] sm:$0xf]  ;;  %v357_v24 = vld [vmem:[%s6139_s29 + $0x2c0] sm:$0xf]  ;;  %354 = vst [vmem:[%s6146_s30 + $0x158] sm:$0xf] %v353_v22 }
  0x4f   : > { %356 = vst [vmem:[%s6146_s30 + $0x15c] sm:$0xf] %v355_v23  ;;  %358 = vst [vmem:[%s6146_s30 + $0x160] sm:$0xf] %v357_v24  ;;  %v359_v25 = vld [vmem:[%s6139_s29 + $0x2c8] sm:$0xf] }
  0x50   : > { %v361_v26 = vld [vmem:[%s6139_s29 + $0x2d0] sm:$0xf]  ;;  %v363_v27 = vld [vmem:[%s6139_s29 + $0x2d8] sm:$0xf]  ;;  %360 = vst [vmem:[%s6146_s30 + $0x164] sm:$0xf] %v359_v25 }
  0x51   : > { %362 = vst [vmem:[%s6146_s30 + $0x168] sm:$0xf] %v361_v26  ;;  %364 = vst [vmem:[%s6146_s30 + $0x16c] sm:$0xf] %v363_v27  ;;  %v365_v28 = vld [vmem:[%s6139_s29 + $0x2e0] sm:$0xf] }
  0x52   : > { %v367_v29 = vld [vmem:[%s6139_s29 + $0x2e8] sm:$0xf]  ;;  %v369_v30 = vld [vmem:[%s6139_s29 + $0x2f0] sm:$0xf]  ;;  %366 = vst [vmem:[%s6146_s30 + $0x170] sm:$0xf] %v365_v28 }
  0x53   : > { %368 = vst [vmem:[%s6146_s30 + $0x174] sm:$0xf] %v367_v29  ;;  %370 = vst [vmem:[%s6146_s30 + $0x178] sm:$0xf] %v369_v30  ;;  %v371_v31 = vld [vmem:[%s6139_s29 + $0x2f8] sm:$0xf] }
  0x54   : > { %v373_v32 = vld [vmem:[%s6139_s29 + $0x300] sm:$0xf]  ;;  %v375_v33 = vld [vmem:[%s6139_s29 + $0x308] sm:$0xf]  ;;  %372 = vst [vmem:[%s6146_s30 + $0x17c] sm:$0xf] %v371_v31 }
  0x55   : > { %374 = vst [vmem:[%s6146_s30 + $0x180] sm:$0xf] %v373_v32  ;;  %376 = vst [vmem:[%s6146_s30 + $0x184] sm:$0xf] %v375_v33  ;;  %v377_v34 = vld [vmem:[%s6139_s29 + $0x310] sm:$0xf] }
  0x56   : > { %v379_v35 = vld [vmem:[%s6139_s29 + $0x318] sm:$0xf]  ;;  %v381_v36 = vld [vmem:[%s6139_s29 + $0x320] sm:$0xf]  ;;  %378 = vst [vmem:[%s6146_s30 + $0x188] sm:$0xf] %v377_v34 }
  0x57   : > { %380 = vst [vmem:[%s6146_s30 + $0x18c] sm:$0xf] %v379_v35  ;;  %382 = vst [vmem:[%s6146_s30 + $0x190] sm:$0xf] %v381_v36  ;;  %v383_v37 = vld [vmem:[%s6139_s29 + $0x328] sm:$0xf] }
  0x58   : > { %v385_v38 = vld [vmem:[%s6139_s29 + $0x330] sm:$0xf]  ;;  %v387_v39 = vld [vmem:[%s6139_s29 + $0x338] sm:$0xf]  ;;  %384 = vst [vmem:[%s6146_s30 + $0x194] sm:$0xf] %v383_v37 }
  0x59   : > { %386 = vst [vmem:[%s6146_s30 + $0x198] sm:$0xf] %v385_v38  ;;  %388 = vst [vmem:[%s6146_s30 + $0x19c] sm:$0xf] %v387_v39  ;;  %v389_v40 = vld [vmem:[%s6139_s29 + $0x340] sm:$0xf] }
  0x5a   : > { %v391_v41 = vld [vmem:[%s6139_s29 + $0x348] sm:$0xf]  ;;  %v393_v42 = vld [vmem:[%s6139_s29 + $0x350] sm:$0xf]  ;;  %390 = vst [vmem:[%s6146_s30 + $0x1a0] sm:$0xf] %v389_v40 }
  0x5b   : > { %392 = vst [vmem:[%s6146_s30 + $0x1a4] sm:$0xf] %v391_v41  ;;  %394 = vst [vmem:[%s6146_s30 + $0x1a8] sm:$0xf] %v393_v42  ;;  %v395_v43 = vld [vmem:[%s6139_s29 + $0x358] sm:$0xf] }
  0x5c   : > { %v397_v44 = vld [vmem:[%s6139_s29 + $0x360] sm:$0xf]  ;;  %v399_v45 = vld [vmem:[%s6139_s29 + $0x368] sm:$0xf]  ;;  %396 = vst [vmem:[%s6146_s30 + $0x1ac] sm:$0xf] %v395_v43 }
  0x5d   : > { %398 = vst [vmem:[%s6146_s30 + $0x1b0] sm:$0xf] %v397_v44  ;;  %400 = vst [vmem:[%s6146_s30 + $0x1b4] sm:$0xf] %v399_v45  ;;  %v401_v46 = vld [vmem:[%s6139_s29 + $0x370] sm:$0xf] }
  0x5e   : > { %v403_v47 = vld [vmem:[%s6139_s29 + $0x378] sm:$0xf]  ;;  %v405_v48 = vld [vmem:[%s6139_s29 + $0x380] sm:$0xf]  ;;  %402 = vst [vmem:[%s6146_s30 + $0x1b8] sm:$0xf] %v401_v46 }
  0x5f   : > { %404 = vst [vmem:[%s6146_s30 + $0x1bc] sm:$0xf] %v403_v47  ;;  %406 = vst [vmem:[%s6146_s30 + $0x1c0] sm:$0xf] %v405_v48  ;;  %v407_v49 = vld [vmem:[%s6139_s29 + $0x388] sm:$0xf] }
  0x60   : > { %v409_v50 = vld [vmem:[%s6139_s29 + $0x390] sm:$0xf]  ;;  %v411_v51 = vld [vmem:[%s6139_s29 + $0x398] sm:$0xf]  ;;  %408 = vst [vmem:[%s6146_s30 + $0x1c4] sm:$0xf] %v407_v49 }
  0x61   : > { %410 = vst [vmem:[%s6146_s30 + $0x1c8] sm:$0xf] %v409_v50  ;;  %412 = vst [vmem:[%s6146_s30 + $0x1cc] sm:$0xf] %v411_v51  ;;  %v413_v52 = vld [vmem:[%s6139_s29 + $0x3a0] sm:$0xf] }
  0x62   : > { %v415_v53 = vld [vmem:[%s6139_s29 + $0x3a8] sm:$0xf]  ;;  %v417_v54 = vld [vmem:[%s6139_s29 + $0x3b0] sm:$0xf]  ;;  %414 = vst [vmem:[%s6146_s30 + $0x1d0] sm:$0xf] %v413_v52 }
  0x63   : > { %416 = vst [vmem:[%s6146_s30 + $0x1d4] sm:$0xf] %v415_v53  ;;  %418 = vst [vmem:[%s6146_s30 + $0x1d8] sm:$0xf] %v417_v54  ;;  %v419_v55 = vld [vmem:[%s6139_s29 + $0x3b8] sm:$0xf] }
  0x64   : > { %v421_v56 = vld [vmem:[%s6139_s29 + $0x3c0] sm:$0xf]  ;;  %v423_v57 = vld [vmem:[%s6139_s29 + $0x3c8] sm:$0xf]  ;;  %420 = vst [vmem:[%s6146_s30 + $0x1dc] sm:$0xf] %v419_v55 }
  0x65   : > { %422 = vst [vmem:[%s6146_s30 + $0x1e0] sm:$0xf] %v421_v56  ;;  %424 = vst [vmem:[%s6146_s30 + $0x1e4] sm:$0xf] %v423_v57  ;;  %v425_v58 = vld [vmem:[%s6139_s29 + $0x3d0] sm:$0xf] }
  0x66   : > { %v427_v59 = vld [vmem:[%s6139_s29 + $0x3d8] sm:$0xf]  ;;  %v429_v60 = vld [vmem:[%s6139_s29 + $0x3e0] sm:$0xf]  ;;  %426 = vst [vmem:[%s6146_s30 + $0x1e8] sm:$0xf] %v425_v58 }
  0x67   : > { %428 = vst [vmem:[%s6146_s30 + $0x1ec] sm:$0xf] %v427_v59  ;;  %430 = vst [vmem:[%s6146_s30 + $0x1f0] sm:$0xf] %v429_v60  ;;  %v431_v61 = vld [vmem:[%s6139_s29 + $0x3e8] sm:$0xf] }
  0x68   : > { %v433_v62 = vld [vmem:[%s6139_s29 + $0x3f0] sm:$0xf]  ;;  %v435_v63 = vld [vmem:[%s6139_s29 + $0x3f8] sm:$0xf]  ;;  %432 = vst [vmem:[%s6146_s30 + $0x1f4] sm:$0xf] %v431_v61 }
  0x69   : > { %434 = vst [vmem:[%s6146_s30 + $0x1f8] sm:$0xf] %v433_v62  ;;  %436 = vst [vmem:[%s6146_s30 + $0x1fc] sm:$0xf] %v435_v63  ;;  %v437_v0 = vld [vmem:[%s6139_s29 + $0x400] sm:$0xf] }
  0x6a   : > { %v439_v1 = vld [vmem:[%s6139_s29 + $0x408] sm:$0xf]  ;;  %v441_v2 = vld [vmem:[%s6139_s29 + $0x410] sm:$0xf]  ;;  %438 = vst [vmem:[%s6146_s30 + $0x200] sm:$0xf] %v437_v0 }
  0x6b   : > { %440 = vst [vmem:[%s6146_s30 + $0x204] sm:$0xf] %v439_v1  ;;  %442 = vst [vmem:[%s6146_s30 + $0x208] sm:$0xf] %v441_v2  ;;  %v443_v3 = vld [vmem:[%s6139_s29 + $0x418] sm:$0xf] }
  0x6c   : > { %v445_v4 = vld [vmem:[%s6139_s29 + $0x420] sm:$0xf]  ;;  %v447_v5 = vld [vmem:[%s6139_s29 + $0x428] sm:$0xf]  ;;  %444 = vst [vmem:[%s6146_s30 + $0x20c] sm:$0xf] %v443_v3 }
  0x6d   : > { %446 = vst [vmem:[%s6146_s30 + $0x210] sm:$0xf] %v445_v4  ;;  %448 = vst [vmem:[%s6146_s30 + $0x214] sm:$0xf] %v447_v5  ;;  %v449_v6 = vld [vmem:[%s6139_s29 + $0x430] sm:$0xf] }
  0x6e   : > { %v451_v7 = vld [vmem:[%s6139_s29 + $0x438] sm:$0xf]  ;;  %v453_v8 = vld [vmem:[%s6139_s29 + $0x440] sm:$0xf]  ;;  %450 = vst [vmem:[%s6146_s30 + $0x218] sm:$0xf] %v449_v6 }
  0x6f   : > { %452 = vst [vmem:[%s6146_s30 + $0x21c] sm:$0xf] %v451_v7  ;;  %454 = vst [vmem:[%s6146_s30 + $0x220] sm:$0xf] %v453_v8  ;;  %v455_v9 = vld [vmem:[%s6139_s29 + $0x448] sm:$0xf] }
  0x70   : > { %v457_v10 = vld [vmem:[%s6139_s29 + $0x450] sm:$0xf]  ;;  %v459_v11 = vld [vmem:[%s6139_s29 + $0x458] sm:$0xf]  ;;  %456 = vst [vmem:[%s6146_s30 + $0x224] sm:$0xf] %v455_v9 }
  0x71   : > { %458 = vst [vmem:[%s6146_s30 + $0x228] sm:$0xf] %v457_v10  ;;  %460 = vst [vmem:[%s6146_s30 + $0x22c] sm:$0xf] %v459_v11  ;;  %v461_v12 = vld [vmem:[%s6139_s29 + $0x460] sm:$0xf] }
  0x72   : > { %v463_v13 = vld [vmem:[%s6139_s29 + $0x468] sm:$0xf]  ;;  %v465_v14 = vld [vmem:[%s6139_s29 + $0x470] sm:$0xf]  ;;  %462 = vst [vmem:[%s6146_s30 + $0x230] sm:$0xf] %v461_v12 }
  0x73   : > { %464 = vst [vmem:[%s6146_s30 + $0x234] sm:$0xf] %v463_v13  ;;  %466 = vst [vmem:[%s6146_s30 + $0x238] sm:$0xf] %v465_v14  ;;  %v467_v15 = vld [vmem:[%s6139_s29 + $0x478] sm:$0xf] }
  0x74   : > { %v469_v16 = vld [vmem:[%s6139_s29 + $0x480] sm:$0xf]  ;;  %v471_v17 = vld [vmem:[%s6139_s29 + $0x488] sm:$0xf]  ;;  %468 = vst [vmem:[%s6146_s30 + $0x23c] sm:$0xf] %v467_v15 }
  0x75   : > { %470 = vst [vmem:[%s6146_s30 + $0x240] sm:$0xf] %v469_v16  ;;  %472 = vst [vmem:[%s6146_s30 + $0x244] sm:$0xf] %v471_v17  ;;  %v473_v18 = vld [vmem:[%s6139_s29 + $0x490] sm:$0xf] }
  0x76   : > { %v475_v19 = vld [vmem:[%s6139_s29 + $0x498] sm:$0xf]  ;;  %v477_v20 = vld [vmem:[%s6139_s29 + $0x4a0] sm:$0xf]  ;;  %474 = vst [vmem:[%s6146_s30 + $0x248] sm:$0xf] %v473_v18 }
  0x77   : > { %476 = vst [vmem:[%s6146_s30 + $0x24c] sm:$0xf] %v475_v19  ;;  %478 = vst [vmem:[%s6146_s30 + $0x250] sm:$0xf] %v477_v20  ;;  %v479_v21 = vld [vmem:[%s6139_s29 + $0x4a8] sm:$0xf] }
  0x78   : > { %v481_v22 = vld [vmem:[%s6139_s29 + $0x4b0] sm:$0xf]  ;;  %v483_v23 = vld [vmem:[%s6139_s29 + $0x4b8] sm:$0xf]  ;;  %480 = vst [vmem:[%s6146_s30 + $0x254] sm:$0xf] %v479_v21 }
  0x79   : > { %482 = vst [vmem:[%s6146_s30 + $0x258] sm:$0xf] %v481_v22  ;;  %484 = vst [vmem:[%s6146_s30 + $0x25c] sm:$0xf] %v483_v23  ;;  %v485_v24 = vld [vmem:[%s6139_s29 + $0x4c0] sm:$0xf] }
  0x7a   : > { %v487_v25 = vld [vmem:[%s6139_s29 + $0x4c8] sm:$0xf]  ;;  %v489_v26 = vld [vmem:[%s6139_s29 + $0x4d0] sm:$0xf]  ;;  %486 = vst [vmem:[%s6146_s30 + $0x260] sm:$0xf] %v485_v24 }
  0x7b   : > { %488 = vst [vmem:[%s6146_s30 + $0x264] sm:$0xf] %v487_v25  ;;  %490 = vst [vmem:[%s6146_s30 + $0x268] sm:$0xf] %v489_v26  ;;  %v491_v27 = vld [vmem:[%s6139_s29 + $0x4d8] sm:$0xf] }
  0x7c   : > { %v493_v28 = vld [vmem:[%s6139_s29 + $0x4e0] sm:$0xf]  ;;  %v495_v29 = vld [vmem:[%s6139_s29 + $0x4e8] sm:$0xf]  ;;  %492 = vst [vmem:[%s6146_s30 + $0x26c] sm:$0xf] %v491_v27 }
  0x7d   : > { %494 = vst [vmem:[%s6146_s30 + $0x270] sm:$0xf] %v493_v28  ;;  %496 = vst [vmem:[%s6146_s30 + $0x274] sm:$0xf] %v495_v29  ;;  %v497_v30 = vld [vmem:[%s6139_s29 + $0x4f0] sm:$0xf] }
  0x7e   : > { %v499_v31 = vld [vmem:[%s6139_s29 + $0x4f8] sm:$0xf]  ;;  %v501_v32 = vld [vmem:[%s6139_s29 + $0x500] sm:$0xf]  ;;  %498 = vst [vmem:[%s6146_s30 + $0x278] sm:$0xf] %v497_v30 }
  0x7f   : > { %500 = vst [vmem:[%s6146_s30 + $0x27c] sm:$0xf] %v499_v31  ;;  %502 = vst [vmem:[%s6146_s30 + $0x280] sm:$0xf] %v501_v32  ;;  %v503_v33 = vld [vmem:[%s6139_s29 + $0x508] sm:$0xf] }
  0x80   : > { %v505_v34 = vld [vmem:[%s6139_s29 + $0x510] sm:$0xf]  ;;  %v507_v35 = vld [vmem:[%s6139_s29 + $0x518] sm:$0xf]  ;;  %504 = vst [vmem:[%s6146_s30 + $0x284] sm:$0xf] %v503_v33 }
  0x81   : > { %506 = vst [vmem:[%s6146_s30 + $0x288] sm:$0xf] %v505_v34  ;;  %508 = vst [vmem:[%s6146_s30 + $0x28c] sm:$0xf] %v507_v35  ;;  %v509_v36 = vld [vmem:[%s6139_s29 + $0x520] sm:$0xf] }
  0x82   : > { %v511_v37 = vld [vmem:[%s6139_s29 + $0x528] sm:$0xf]  ;;  %v513_v38 = vld [vmem:[%s6139_s29 + $0x530] sm:$0xf]  ;;  %510 = vst [vmem:[%s6146_s30 + $0x290] sm:$0xf] %v509_v36 }
  0x83   : > { %512 = vst [vmem:[%s6146_s30 + $0x294] sm:$0xf] %v511_v37  ;;  %514 = vst [vmem:[%s6146_s30 + $0x298] sm:$0xf] %v513_v38  ;;  %v515_v39 = vld [vmem:[%s6139_s29 + $0x538] sm:$0xf] }
  0x84   : > { %v517_v40 = vld [vmem:[%s6139_s29 + $0x540] sm:$0xf]  ;;  %v519_v41 = vld [vmem:[%s6139_s29 + $0x548] sm:$0xf]  ;;  %516 = vst [vmem:[%s6146_s30 + $0x29c] sm:$0xf] %v515_v39 }
  0x85   : > { %518 = vst [vmem:[%s6146_s30 + $0x2a0] sm:$0xf] %v517_v40  ;;  %520 = vst [vmem:[%s6146_s30 + $0x2a4] sm:$0xf] %v519_v41  ;;  %v521_v42 = vld [vmem:[%s6139_s29 + $0x550] sm:$0xf] }
  0x86   : > { %v523_v43 = vld [vmem:[%s6139_s29 + $0x558] sm:$0xf]  ;;  %v525_v44 = vld [vmem:[%s6139_s29 + $0x560] sm:$0xf]  ;;  %522 = vst [vmem:[%s6146_s30 + $0x2a8] sm:$0xf] %v521_v42 }
  0x87   : > { %524 = vst [vmem:[%s6146_s30 + $0x2ac] sm:$0xf] %v523_v43  ;;  %526 = vst [vmem:[%s6146_s30 + $0x2b0] sm:$0xf] %v525_v44  ;;  %v527_v45 = vld [vmem:[%s6139_s29 + $0x568] sm:$0xf] }
  0x88   : > { %v529_v46 = vld [vmem:[%s6139_s29 + $0x570] sm:$0xf]  ;;  %v531_v47 = vld [vmem:[%s6139_s29 + $0x578] sm:$0xf]  ;;  %528 = vst [vmem:[%s6146_s30 + $0x2b4] sm:$0xf] %v527_v45 }
  0x89   : > { %530 = vst [vmem:[%s6146_s30 + $0x2b8] sm:$0xf] %v529_v46  ;;  %532 = vst [vmem:[%s6146_s30 + $0x2bc] sm:$0xf] %v531_v47  ;;  %v533_v48 = vld [vmem:[%s6139_s29 + $0x580] sm:$0xf] }
  0x8a   : > { %v535_v49 = vld [vmem:[%s6139_s29 + $0x588] sm:$0xf]  ;;  %v537_v50 = vld [vmem:[%s6139_s29 + $0x590] sm:$0xf]  ;;  %534 = vst [vmem:[%s6146_s30 + $0x2c0] sm:$0xf] %v533_v48 }
  0x8b   : > { %536 = vst [vmem:[%s6146_s30 + $0x2c4] sm:$0xf] %v535_v49  ;;  %538 = vst [vmem:[%s6146_s30 + $0x2c8] sm:$0xf] %v537_v50  ;;  %v539_v51 = vld [vmem:[%s6139_s29 + $0x598] sm:$0xf] }
  0x8c   : > { %v541_v52 = vld [vmem:[%s6139_s29 + $0x5a0] sm:$0xf]  ;;  %v543_v53 = vld [vmem:[%s6139_s29 + $0x5a8] sm:$0xf]  ;;  %540 = vst [vmem:[%s6146_s30 + $0x2cc] sm:$0xf] %v539_v51 }
  0x8d   : > { %542 = vst [vmem:[%s6146_s30 + $0x2d0] sm:$0xf] %v541_v52  ;;  %544 = vst [vmem:[%s6146_s30 + $0x2d4] sm:$0xf] %v543_v53  ;;  %v545_v54 = vld [vmem:[%s6139_s29 + $0x5b0] sm:$0xf] }
  0x8e   : > { %v547_v55 = vld [vmem:[%s6139_s29 + $0x5b8] sm:$0xf]  ;;  %v549_v56 = vld [vmem:[%s6139_s29 + $0x5c0] sm:$0xf]  ;;  %546 = vst [vmem:[%s6146_s30 + $0x2d8] sm:$0xf] %v545_v54 }
  0x8f   : > { %548 = vst [vmem:[%s6146_s30 + $0x2dc] sm:$0xf] %v547_v55  ;;  %550 = vst [vmem:[%s6146_s30 + $0x2e0] sm:$0xf] %v549_v56  ;;  %v551_v57 = vld [vmem:[%s6139_s29 + $0x5c8] sm:$0xf] }
  0x90   : > { %v553_v58 = vld [vmem:[%s6139_s29 + $0x5d0] sm:$0xf]  ;;  %v555_v59 = vld [vmem:[%s6139_s29 + $0x5d8] sm:$0xf]  ;;  %552 = vst [vmem:[%s6146_s30 + $0x2e4] sm:$0xf] %v551_v57 }
  0x91   : > { %554 = vst [vmem:[%s6146_s30 + $0x2e8] sm:$0xf] %v553_v58  ;;  %556 = vst [vmem:[%s6146_s30 + $0x2ec] sm:$0xf] %v555_v59  ;;  %v557_v60 = vld [vmem:[%s6139_s29 + $0x5e0] sm:$0xf] }
  0x92   : > { %v559_v61 = vld [vmem:[%s6139_s29 + $0x5e8] sm:$0xf]  ;;  %v561_v62 = vld [vmem:[%s6139_s29 + $0x5f0] sm:$0xf]  ;;  %558 = vst [vmem:[%s6146_s30 + $0x2f0] sm:$0xf] %v557_v60 }
  0x93   : > { %560 = vst [vmem:[%s6146_s30 + $0x2f4] sm:$0xf] %v559_v61  ;;  %562 = vst [vmem:[%s6146_s30 + $0x2f8] sm:$0xf] %v561_v62  ;;  %v563_v63 = vld [vmem:[%s6139_s29 + $0x5f8] sm:$0xf] }
  0x94   : > { %v565_v0 = vld [vmem:[%s6139_s29 + $0x600] sm:$0xf]  ;;  %v567_v1 = vld [vmem:[%s6139_s29 + $0x608] sm:$0xf]  ;;  %564 = vst [vmem:[%s6146_s30 + $0x2fc] sm:$0xf] %v563_v63 }
  0x95   : > { %566 = vst [vmem:[%s6146_s30 + $0x300] sm:$0xf] %v565_v0  ;;  %568 = vst [vmem:[%s6146_s30 + $0x304] sm:$0xf] %v567_v1  ;;  %v569_v2 = vld [vmem:[%s6139_s29 + $0x610] sm:$0xf] }
  0x96   : > { %v571_v3 = vld [vmem:[%s6139_s29 + $0x618] sm:$0xf]  ;;  %v573_v4 = vld [vmem:[%s6139_s29 + $0x620] sm:$0xf]  ;;  %570 = vst [vmem:[%s6146_s30 + $0x308] sm:$0xf] %v569_v2 }
  0x97   : > { %572 = vst [vmem:[%s6146_s30 + $0x30c] sm:$0xf] %v571_v3  ;;  %574 = vst [vmem:[%s6146_s30 + $0x310] sm:$0xf] %v573_v4  ;;  %v575_v5 = vld [vmem:[%s6139_s29 + $0x628] sm:$0xf] }
  0x98   : > { %v577_v6 = vld [vmem:[%s6139_s29 + $0x630] sm:$0xf]  ;;  %v579_v7 = vld [vmem:[%s6139_s29 + $0x638] sm:$0xf]  ;;  %576 = vst [vmem:[%s6146_s30 + $0x314] sm:$0xf] %v575_v5 }
  0x99   : > { %578 = vst [vmem:[%s6146_s30 + $0x318] sm:$0xf] %v577_v6  ;;  %580 = vst [vmem:[%s6146_s30 + $0x31c] sm:$0xf] %v579_v7  ;;  %v581_v8 = vld [vmem:[%s6139_s29 + $0x640] sm:$0xf] }
  0x9a   : > { %v583_v9 = vld [vmem:[%s6139_s29 + $0x648] sm:$0xf]  ;;  %v585_v10 = vld [vmem:[%s6139_s29 + $0x650] sm:$0xf]  ;;  %582 = vst [vmem:[%s6146_s30 + $0x320] sm:$0xf] %v581_v8 }
  0x9b   : > { %584 = vst [vmem:[%s6146_s30 + $0x324] sm:$0xf] %v583_v9  ;;  %586 = vst [vmem:[%s6146_s30 + $0x328] sm:$0xf] %v585_v10  ;;  %v587_v11 = vld [vmem:[%s6139_s29 + $0x658] sm:$0xf] }
  0x9c   : > { %v589_v12 = vld [vmem:[%s6139_s29 + $0x660] sm:$0xf]  ;;  %v591_v13 = vld [vmem:[%s6139_s29 + $0x668] sm:$0xf]  ;;  %588 = vst [vmem:[%s6146_s30 + $0x32c] sm:$0xf] %v587_v11 }
  0x9d   : > { %590 = vst [vmem:[%s6146_s30 + $0x330] sm:$0xf] %v589_v12  ;;  %592 = vst [vmem:[%s6146_s30 + $0x334] sm:$0xf] %v591_v13  ;;  %v593_v14 = vld [vmem:[%s6139_s29 + $0x670] sm:$0xf] }
  0x9e   : > { %v595_v15 = vld [vmem:[%s6139_s29 + $0x678] sm:$0xf]  ;;  %v597_v16 = vld [vmem:[%s6139_s29 + $0x680] sm:$0xf]  ;;  %594 = vst [vmem:[%s6146_s30 + $0x338] sm:$0xf] %v593_v14 }
  0x9f   : > { %596 = vst [vmem:[%s6146_s30 + $0x33c] sm:$0xf] %v595_v15  ;;  %598 = vst [vmem:[%s6146_s30 + $0x340] sm:$0xf] %v597_v16  ;;  %v599_v17 = vld [vmem:[%s6139_s29 + $0x688] sm:$0xf] }
  0xa0   : > { %v601_v18 = vld [vmem:[%s6139_s29 + $0x690] sm:$0xf]  ;;  %v603_v19 = vld [vmem:[%s6139_s29 + $0x698] sm:$0xf]  ;;  %600 = vst [vmem:[%s6146_s30 + $0x344] sm:$0xf] %v599_v17 }
  0xa1   : > { %602 = vst [vmem:[%s6146_s30 + $0x348] sm:$0xf] %v601_v18  ;;  %604 = vst [vmem:[%s6146_s30 + $0x34c] sm:$0xf] %v603_v19  ;;  %v605_v20 = vld [vmem:[%s6139_s29 + $0x6a0] sm:$0xf] }
  0xa2   : > { %v607_v21 = vld [vmem:[%s6139_s29 + $0x6a8] sm:$0xf]  ;;  %v609_v22 = vld [vmem:[%s6139_s29 + $0x6b0] sm:$0xf]  ;;  %606 = vst [vmem:[%s6146_s30 + $0x350] sm:$0xf] %v605_v20 }
  0xa3   : > { %608 = vst [vmem:[%s6146_s30 + $0x354] sm:$0xf] %v607_v21  ;;  %610 = vst [vmem:[%s6146_s30 + $0x358] sm:$0xf] %v609_v22  ;;  %v611_v23 = vld [vmem:[%s6139_s29 + $0x6b8] sm:$0xf] }
  0xa4   : > { %v613_v24 = vld [vmem:[%s6139_s29 + $0x6c0] sm:$0xf]  ;;  %v615_v25 = vld [vmem:[%s6139_s29 + $0x6c8] sm:$0xf]  ;;  %612 = vst [vmem:[%s6146_s30 + $0x35c] sm:$0xf] %v611_v23 }
  0xa5   : > { %614 = vst [vmem:[%s6146_s30 + $0x360] sm:$0xf] %v613_v24  ;;  %616 = vst [vmem:[%s6146_s30 + $0x364] sm:$0xf] %v615_v25  ;;  %v617_v26 = vld [vmem:[%s6139_s29 + $0x6d0] sm:$0xf] }
  0xa6   : > { %v619_v27 = vld [vmem:[%s6139_s29 + $0x6d8] sm:$0xf]  ;;  %v621_v28 = vld [vmem:[%s6139_s29 + $0x6e0] sm:$0xf]  ;;  %618 = vst [vmem:[%s6146_s30 + $0x368] sm:$0xf] %v617_v26 }
  0xa7   : > { %620 = vst [vmem:[%s6146_s30 + $0x36c] sm:$0xf] %v619_v27  ;;  %622 = vst [vmem:[%s6146_s30 + $0x370] sm:$0xf] %v621_v28  ;;  %v623_v29 = vld [vmem:[%s6139_s29 + $0x6e8] sm:$0xf] }
  0xa8   : > { %v625_v30 = vld [vmem:[%s6139_s29 + $0x6f0] sm:$0xf]  ;;  %v627_v31 = vld [vmem:[%s6139_s29 + $0x6f8] sm:$0xf]  ;;  %624 = vst [vmem:[%s6146_s30 + $0x374] sm:$0xf] %v623_v29 }
  0xa9   : > { %626 = vst [vmem:[%s6146_s30 + $0x378] sm:$0xf] %v625_v30  ;;  %628 = vst [vmem:[%s6146_s30 + $0x37c] sm:$0xf] %v627_v31  ;;  %v629_v32 = vld [vmem:[%s6139_s29 + $0x700] sm:$0xf] }
  0xaa   : > { %v631_v33 = vld [vmem:[%s6139_s29 + $0x708] sm:$0xf]  ;;  %v633_v34 = vld [vmem:[%s6139_s29 + $0x710] sm:$0xf]  ;;  %630 = vst [vmem:[%s6146_s30 + $0x380] sm:$0xf] %v629_v32 }
  0xab   : > { %632 = vst [vmem:[%s6146_s30 + $0x384] sm:$0xf] %v631_v33  ;;  %634 = vst [vmem:[%s6146_s30 + $0x388] sm:$0xf] %v633_v34  ;;  %v635_v35 = vld [vmem:[%s6139_s29 + $0x718] sm:$0xf] }
  0xac   : > { %v637_v36 = vld [vmem:[%s6139_s29 + $0x720] sm:$0xf]  ;;  %v639_v37 = vld [vmem:[%s6139_s29 + $0x728] sm:$0xf]  ;;  %636 = vst [vmem:[%s6146_s30 + $0x38c] sm:$0xf] %v635_v35 }
  0xad   : > { %638 = vst [vmem:[%s6146_s30 + $0x390] sm:$0xf] %v637_v36  ;;  %640 = vst [vmem:[%s6146_s30 + $0x394] sm:$0xf] %v639_v37  ;;  %v641_v38 = vld [vmem:[%s6139_s29 + $0x730] sm:$0xf] }
  0xae   : > { %v643_v39 = vld [vmem:[%s6139_s29 + $0x738] sm:$0xf]  ;;  %v645_v40 = vld [vmem:[%s6139_s29 + $0x740] sm:$0xf]  ;;  %642 = vst [vmem:[%s6146_s30 + $0x398] sm:$0xf] %v641_v38 }
  0xaf   : > { %644 = vst [vmem:[%s6146_s30 + $0x39c] sm:$0xf] %v643_v39  ;;  %646 = vst [vmem:[%s6146_s30 + $0x3a0] sm:$0xf] %v645_v40  ;;  %v647_v41 = vld [vmem:[%s6139_s29 + $0x748] sm:$0xf] }
  0xb0   : > { %v649_v42 = vld [vmem:[%s6139_s29 + $0x750] sm:$0xf]  ;;  %v651_v43 = vld [vmem:[%s6139_s29 + $0x758] sm:$0xf]  ;;  %648 = vst [vmem:[%s6146_s30 + $0x3a4] sm:$0xf] %v647_v41 }
  0xb1   : > { %650 = vst [vmem:[%s6146_s30 + $0x3a8] sm:$0xf] %v649_v42  ;;  %652 = vst [vmem:[%s6146_s30 + $0x3ac] sm:$0xf] %v651_v43  ;;  %v653_v44 = vld [vmem:[%s6139_s29 + $0x760] sm:$0xf] }
  0xb2   : > { %v655_v45 = vld [vmem:[%s6139_s29 + $0x768] sm:$0xf]  ;;  %v657_v46 = vld [vmem:[%s6139_s29 + $0x770] sm:$0xf]  ;;  %654 = vst [vmem:[%s6146_s30 + $0x3b0] sm:$0xf] %v653_v44 }
  0xb3   : > { %656 = vst [vmem:[%s6146_s30 + $0x3b4] sm:$0xf] %v655_v45  ;;  %658 = vst [vmem:[%s6146_s30 + $0x3b8] sm:$0xf] %v657_v46  ;;  %v659_v47 = vld [vmem:[%s6139_s29 + $0x778] sm:$0xf] }
  0xb4   : > { %v661_v48 = vld [vmem:[%s6139_s29 + $0x780] sm:$0xf]  ;;  %v663_v49 = vld [vmem:[%s6139_s29 + $0x788] sm:$0xf]  ;;  %660 = vst [vmem:[%s6146_s30 + $0x3bc] sm:$0xf] %v659_v47 }
  0xb5   : > { %662 = vst [vmem:[%s6146_s30 + $0x3c0] sm:$0xf] %v661_v48  ;;  %664 = vst [vmem:[%s6146_s30 + $0x3c4] sm:$0xf] %v663_v49  ;;  %v665_v50 = vld [vmem:[%s6139_s29 + $0x790] sm:$0xf] }
  0xb6   : > { %v667_v51 = vld [vmem:[%s6139_s29 + $0x798] sm:$0xf]  ;;  %v669_v52 = vld [vmem:[%s6139_s29 + $0x7a0] sm:$0xf]  ;;  %666 = vst [vmem:[%s6146_s30 + $0x3c8] sm:$0xf] %v665_v50 }
  0xb7   : > { %668 = vst [vmem:[%s6146_s30 + $0x3cc] sm:$0xf] %v667_v51  ;;  %670 = vst [vmem:[%s6146_s30 + $0x3d0] sm:$0xf] %v669_v52  ;;  %v671_v53 = vld [vmem:[%s6139_s29 + $0x7a8] sm:$0xf] }
  0xb8   : > { %v673_v54 = vld [vmem:[%s6139_s29 + $0x7b0] sm:$0xf]  ;;  %v675_v55 = vld [vmem:[%s6139_s29 + $0x7b8] sm:$0xf]  ;;  %672 = vst [vmem:[%s6146_s30 + $0x3d4] sm:$0xf] %v671_v53 }
  0xb9   : > { %674 = vst [vmem:[%s6146_s30 + $0x3d8] sm:$0xf] %v673_v54  ;;  %676 = vst [vmem:[%s6146_s30 + $0x3dc] sm:$0xf] %v675_v55  ;;  %v677_v56 = vld [vmem:[%s6139_s29 + $0x7c0] sm:$0xf] }
  0xba   : > { %v679_v57 = vld [vmem:[%s6139_s29 + $0x7c8] sm:$0xf]  ;;  %v681_v58 = vld [vmem:[%s6139_s29 + $0x7d0] sm:$0xf]  ;;  %678 = vst [vmem:[%s6146_s30 + $0x3e0] sm:$0xf] %v677_v56 }
  0xbb   : > { %680 = vst [vmem:[%s6146_s30 + $0x3e4] sm:$0xf] %v679_v57  ;;  %682 = vst [vmem:[%s6146_s30 + $0x3e8] sm:$0xf] %v681_v58  ;;  %v683_v59 = vld [vmem:[%s6139_s29 + $0x7d8] sm:$0xf] }
  0xbc   : > { %v685_v60 = vld [vmem:[%s6139_s29 + $0x7e0] sm:$0xf]  ;;  %v687_v61 = vld [vmem:[%s6139_s29 + $0x7e8] sm:$0xf]  ;;  %684 = vst [vmem:[%s6146_s30 + $0x3ec] sm:$0xf] %v683_v59 }
  0xbd   : > { %686 = vst [vmem:[%s6146_s30 + $0x3f0] sm:$0xf] %v685_v60  ;;  %688 = vst [vmem:[%s6146_s30 + $0x3f4] sm:$0xf] %v687_v61  ;;  %v689_v62 = vld [vmem:[%s6139_s29 + $0x7f0] sm:$0xf] }
  0xbe   : > { %v691_v63 = vld [vmem:[%s6139_s29 + $0x7f8] sm:$0xf]  ;;  %v693_v0 = vld [vmem:[%s6139_s29 + $0x800] sm:$0xf]  ;;  %690 = vst [vmem:[%s6146_s30 + $0x3f8] sm:$0xf] %v689_v62 }
  0xbf   : > { %692 = vst [vmem:[%s6146_s30 + $0x3fc] sm:$0xf] %v691_v63  ;;  %694 = vst [vmem:[%s6146_s30 + $0x400] sm:$0xf] %v693_v0  ;;  %v695_v1 = vld [vmem:[%s6139_s29 + $0x808] sm:$0xf] }
  0xc0   : > { %v697_v2 = vld [vmem:[%s6139_s29 + $0x810] sm:$0xf]  ;;  %v699_v3 = vld [vmem:[%s6139_s29 + $0x818] sm:$0xf]  ;;  %696 = vst [vmem:[%s6146_s30 + $0x404] sm:$0xf] %v695_v1 }
  0xc1   : > { %698 = vst [vmem:[%s6146_s30 + $0x408] sm:$0xf] %v697_v2  ;;  %700 = vst [vmem:[%s6146_s30 + $0x40c] sm:$0xf] %v699_v3  ;;  %v701_v4 = vld [vmem:[%s6139_s29 + $0x820] sm:$0xf] }
  0xc2   : > { %v703_v5 = vld [vmem:[%s6139_s29 + $0x828] sm:$0xf]  ;;  %v705_v6 = vld [vmem:[%s6139_s29 + $0x830] sm:$0xf]  ;;  %702 = vst [vmem:[%s6146_s30 + $0x410] sm:$0xf] %v701_v4 }
  0xc3   : > { %704 = vst [vmem:[%s6146_s30 + $0x414] sm:$0xf] %v703_v5  ;;  %706 = vst [vmem:[%s6146_s30 + $0x418] sm:$0xf] %v705_v6  ;;  %v707_v7 = vld [vmem:[%s6139_s29 + $0x838] sm:$0xf] }
  0xc4   : > { %v709_v8 = vld [vmem:[%s6139_s29 + $0x840] sm:$0xf]  ;;  %v711_v9 = vld [vmem:[%s6139_s29 + $0x848] sm:$0xf]  ;;  %708 = vst [vmem:[%s6146_s30 + $0x41c] sm:$0xf] %v707_v7 }
  0xc5   : > { %710 = vst [vmem:[%s6146_s30 + $0x420] sm:$0xf] %v709_v8  ;;  %712 = vst [vmem:[%s6146_s30 + $0x424] sm:$0xf] %v711_v9  ;;  %v713_v10 = vld [vmem:[%s6139_s29 + $0x850] sm:$0xf] }
  0xc6   : > { %v715_v11 = vld [vmem:[%s6139_s29 + $0x858] sm:$0xf]  ;;  %v717_v12 = vld [vmem:[%s6139_s29 + $0x860] sm:$0xf]  ;;  %714 = vst [vmem:[%s6146_s30 + $0x428] sm:$0xf] %v713_v10 }
  0xc7   : > { %716 = vst [vmem:[%s6146_s30 + $0x42c] sm:$0xf] %v715_v11  ;;  %718 = vst [vmem:[%s6146_s30 + $0x430] sm:$0xf] %v717_v12  ;;  %v719_v13 = vld [vmem:[%s6139_s29 + $0x868] sm:$0xf] }
  0xc8   : > { %v721_v14 = vld [vmem:[%s6139_s29 + $0x870] sm:$0xf]  ;;  %v723_v15 = vld [vmem:[%s6139_s29 + $0x878] sm:$0xf]  ;;  %720 = vst [vmem:[%s6146_s30 + $0x434] sm:$0xf] %v719_v13 }
  0xc9   : > { %722 = vst [vmem:[%s6146_s30 + $0x438] sm:$0xf] %v721_v14  ;;  %724 = vst [vmem:[%s6146_s30 + $0x43c] sm:$0xf] %v723_v15  ;;  %v725_v16 = vld [vmem:[%s6139_s29 + $0x880] sm:$0xf] }
  0xca   : > { %v727_v17 = vld [vmem:[%s6139_s29 + $0x888] sm:$0xf]  ;;  %v729_v18 = vld [vmem:[%s6139_s29 + $0x890] sm:$0xf]  ;;  %726 = vst [vmem:[%s6146_s30 + $0x440] sm:$0xf] %v725_v16 }
  0xcb   : > { %728 = vst [vmem:[%s6146_s30 + $0x444] sm:$0xf] %v727_v17  ;;  %730 = vst [vmem:[%s6146_s30 + $0x448] sm:$0xf] %v729_v18  ;;  %v731_v19 = vld [vmem:[%s6139_s29 + $0x898] sm:$0xf] }
  0xcc   : > { %v733_v20 = vld [vmem:[%s6139_s29 + $0x8a0] sm:$0xf]  ;;  %v735_v21 = vld [vmem:[%s6139_s29 + $0x8a8] sm:$0xf]  ;;  %732 = vst [vmem:[%s6146_s30 + $0x44c] sm:$0xf] %v731_v19 }
  0xcd   : > { %734 = vst [vmem:[%s6146_s30 + $0x450] sm:$0xf] %v733_v20  ;;  %736 = vst [vmem:[%s6146_s30 + $0x454] sm:$0xf] %v735_v21  ;;  %v737_v22 = vld [vmem:[%s6139_s29 + $0x8b0] sm:$0xf] }
  0xce   : > { %v739_v23 = vld [vmem:[%s6139_s29 + $0x8b8] sm:$0xf]  ;;  %v741_v24 = vld [vmem:[%s6139_s29 + $0x8c0] sm:$0xf]  ;;  %738 = vst [vmem:[%s6146_s30 + $0x458] sm:$0xf] %v737_v22 }
  0xcf   : > { %740 = vst [vmem:[%s6146_s30 + $0x45c] sm:$0xf] %v739_v23  ;;  %742 = vst [vmem:[%s6146_s30 + $0x460] sm:$0xf] %v741_v24  ;;  %v743_v25 = vld [vmem:[%s6139_s29 + $0x8c8] sm:$0xf] }
  0xd0   : > { %v745_v26 = vld [vmem:[%s6139_s29 + $0x8d0] sm:$0xf]  ;;  %v747_v27 = vld [vmem:[%s6139_s29 + $0x8d8] sm:$0xf]  ;;  %744 = vst [vmem:[%s6146_s30 + $0x464] sm:$0xf] %v743_v25 }
  0xd1   : > { %746 = vst [vmem:[%s6146_s30 + $0x468] sm:$0xf] %v745_v26  ;;  %748 = vst [vmem:[%s6146_s30 + $0x46c] sm:$0xf] %v747_v27  ;;  %v749_v28 = vld [vmem:[%s6139_s29 + $0x8e0] sm:$0xf] }
  0xd2   : > { %v751_v29 = vld [vmem:[%s6139_s29 + $0x8e8] sm:$0xf]  ;;  %v753_v30 = vld [vmem:[%s6139_s29 + $0x8f0] sm:$0xf]  ;;  %750 = vst [vmem:[%s6146_s30 + $0x470] sm:$0xf] %v749_v28 }
  0xd3   : > { %752 = vst [vmem:[%s6146_s30 + $0x474] sm:$0xf] %v751_v29  ;;  %754 = vst [vmem:[%s6146_s30 + $0x478] sm:$0xf] %v753_v30  ;;  %v755_v31 = vld [vmem:[%s6139_s29 + $0x8f8] sm:$0xf] }
  0xd4   : > { %756 = vst [vmem:[%s6146_s30 + $0x47c] sm:$0xf] %v755_v31 }
  0xd5 PF: > { %p4696_p7 = scmp.ge.s32.totalorder %s6071_s17, 1  ;;  %p1366_p8 = scmp.lt.s32.totalorder %s6071_s17, 3 }
  0xd7   : > { %p1367_p9 = pnand %p4696_p7, %p1366_p8 }
  0xd8   : > { %s1373_s5 = sand.u32 (!%p1367_p9), 1, %s6063_s15   ;;  %v5705_v32 = vld [vmem:[%s7630_s0 + $0x4] ss:$72 sps:$4 sm:$0xff] (!%p1367_p9)   ;;  %v5703_v51 = vld [vmem:[%s7630_s0] ss:$72 sps:$4 sm:$0xff] (!%p1367_p9)   ;;  %p1403_p10 = scmp.lt.s32.totalorder (!%p1367_p9), %s6114_s18, 1 }
  0xd9   : > { %1370 = sbr.rel (%p1367_p9) target bundleno = 828 (0x33c), region = 73  ;;  %v5708_v33 = vld [vmem:[%s7630_s0 + $0x244] ss:$72 sps:$4 sm:$0xff] (!%p1367_p9)   ;;  %3458 = vmatprep.mubr.bf16.mxu0 (!%p1367_p9), %v5705_v32  ;;  %v5706_v52 = vld [vmem:[%s7630_s0 + $0x240] ss:$72 sps:$4 sm:$0xff] (!%p1367_p9)   ;;  %s4697_s9 = sshll.u32 (!%p1367_p9), %s1373_s5, 6 }
  0xda   : > { %s5662_s6 = smul.u32 (!%p1367_p9), 1152, %s1373_s5  ;;  %3490 = vmatprep.mubr.bf16.mxu1 (!%p1367_p9), %v5708_v33  ;;  %v5717_v57 = vld [vmem:[%s7630_s0 + $0x94] ss:$72 sps:$4 sm:$0xff] (!%p1367_p9)   ;;  %v5721_v63 = vld [vmem:[%s7630_s0 + $0x90] ss:$72 sps:$4 sm:$0xff] (!%p1367_p9)   ;;  %s7588_s15 = scalar_lea.vmem (!%p1367_p9), [#allocation3], %s4697_s9 }
  0xdb   : > { %v5719_v59 = vld [vmem:[%s7630_s0 + $0x2d4] ss:$72 sps:$4 sm:$0xff] (!%p1367_p9)   ;;  %v5722_v0 = vld [vmem:[%s7630_s0 + $0x2d0] ss:$72 sps:$4 sm:$0xff] (!%p1367_p9)   ;;  %v5731_v6 = vld [vmem:[%s7630_s0 + $0x124] ss:$72 sps:$4 sm:$0xff] (!%p1367_p9)  }
  0xdc   : > { %s6730_s11 = scalar_lea.vmem (!%p1367_p9), [#allocation2], %s5662_s6  ;;  %v5733_v8 = vld [vmem:[%s7630_s0 + $0x364] ss:$72 sps:$4 sm:$0xff] (!%p1367_p9)   ;;  %v5735_v11 = vld [vmem:[%s7630_s0 + $0x120] ss:$72 sps:$4 sm:$0xff] (!%p1367_p9)  }
  0xdd   : > { %v5687_v34 = vld [vmem:[%s6730_s11 + $0x40] sm:$0xff] (!%p1367_p9)   ;;  %v5689_v36 = vld [vmem:[%s6730_s11 + $0x48] sm:$0xff] (!%p1367_p9)   ;;  %v5691_v38 = vld [vmem:[%s6730_s11 + $0x50] sm:$0xff] (!%p1367_p9)  }
  0xde   : > { %v5688_v35 = vld [vmem:[%s6730_s11] sm:$0xff] (!%p1367_p9)   ;;  %5069 = vmatprep.subr.bf16.mxu0 (!%p1367_p9), %v5687_v34  ;;  %5645 = vmatprep.subr.bf16.mxu1 (!%p1367_p9), %v5687_v34  ;;  %v5690_v37 = vld [vmem:[%s6730_s11 + $0x8] sm:$0xff] (!%p1367_p9)   ;;  %v5692_v39 = vld [vmem:[%s6730_s11 + $0x10] sm:$0xff] (!%p1367_p9)  }
  0xdf   : > { %5070 = vmatpush3.bf16.msra.mxu0 (!%p1367_p9), %v5688_v35  ;;  %5653 = vmatpush3.bf16.msra.mxu1 (!%p1367_p9), %v5688_v35  ;;  %v5693_v40 = vld [vmem:[%s6730_s11 + $0x58] sm:$0xff] (!%p1367_p9)   ;;  %v5695_v42 = vld [vmem:[%s6730_s11 + $0x60] sm:$0xff] (!%p1367_p9)   ;;  %v5697_v44 = vld [vmem:[%s6730_s11 + $0x68] sm:$0xff] (!%p1367_p9)  }
  0xe0   : > { %5071 = vmatprep.subr.bf16.mxu0 %v5689_v36  ;;  %5646 = vmatprep.subr.bf16.mxu1 %v5689_v36  ;;  %v5694_v41 = vld [vmem:[%s6730_s11 + $0x18] sm:$0xff]   ;;  %v5696_v43 = vld [vmem:[%s6730_s11 + $0x20] sm:$0xff]   ;;  %v5698_v45 = vld [vmem:[%s6730_s11 + $0x28] sm:$0xff]   ;;  %s1404_s27 = scalar_select %p1403_p10, %s6114_s18, 1 }
  0xe1   : > { %v5699_v46 = vld [vmem:[%s6730_s11 + $0x70] sm:$0xff]   ;;  %v5701_v48 = vld [vmem:[%s6730_s11 + $0x78] sm:$0xff]   ;;  %v5709_v50 = vld [vmem:[%s6730_s11 + $0xc0] sm:$0xff]   ;;  %s5003_s5 = sshll.u32 (%p6129_p5), %s6114_s18, 2 }
  0xe2   : > { %v5700_v47 = vld [vmem:[%s6730_s11 + $0x30] sm:$0xff]   ;;  %v5702_v49 = vld [vmem:[%s6730_s11 + $0x38] sm:$0xff]   ;;  %v5710_v53 = vld [vmem:[%s6730_s11 + $0x140] sm:$0xff]   ;;  %s1405_s30 = scalar_lea.vmem %s7632_s2, %s1404_s27  ;;  %s1408_s8 = scalar_lea.vmem %s7633_s3, %s1404_s27 }
  0xe3   : > { %5072 = vmatpush3.bf16.msra.mxu0 %v5690_v37  ;;  %5654 = vmatpush3.bf16.msra.mxu1 %v5690_v37  ;;  %v5711_v54 = vld [vmem:[%s6730_s11 + $0x80] sm:$0xff]   ;;  %v5713_v56 = vld [vmem:[%s6730_s11 + $0xc8] sm:$0xff]   ;;  %v5723_v62 = vld [vmem:[%s6730_s11 + $0xd0] sm:$0xff]   ;;  %s4517_s13 = scalar_lea.vmem (%p6129_p5), %s7634_s4, %s5003_s5 }
  0xe4   : > { %5073 = vmatprep.subr.bf16.mxu0 %v5691_v38  ;;  %5647 = vmatprep.subr.bf16.mxu1 %v5691_v38  ;;  %v5712_v55 = vld [vmem:[%s6730_s11 + $0x100] sm:$0xff]   ;;  %v5714_v58 = vld [vmem:[%s6730_s11 + $0x148] sm:$0xff]   ;;  %v5724_v1 = vld [vmem:[%s6730_s11 + $0x150] sm:$0xff]  }
  0xe5   : > { %v5715_v60 = vld [vmem:[%s6730_s11 + $0x88] sm:$0xff]   ;;  %v5725_v2 = vld [vmem:[%s6730_s11 + $0x90] sm:$0xff]   ;;  %v5727_v4 = vld [vmem:[%s6730_s11 + $0xd8] sm:$0xff]  }
  0xe6   : > { %v5716_v61 = vld [vmem:[%s6730_s11 + $0x108] sm:$0xff]   ;;  %v5726_v3 = vld [vmem:[%s6730_s11 + $0x110] sm:$0xff]   ;;  %v5728_v5 = vld [vmem:[%s6730_s11 + $0x158] sm:$0xff]  }
  0xe7   : > { %5074 = vmatpush3.bf16.msra.mxu0 %v5692_v39  ;;  %5655 = vmatpush3.bf16.msra.mxu1 %v5692_v39  ;;  %v5729_v7 = vld [vmem:[%s6730_s11 + $0x98] sm:$0xff]   ;;  %v5737_v10 = vld [vmem:[%s6730_s11 + $0xe0] sm:$0xff]   ;;  %v5741_v16 = vld [vmem:[%s6730_s11 + $0xe8] sm:$0xff]  }
  0xe8   : > { %5075 = vmatprep.subr.bf16.mxu0 %v5693_v40  ;;  %5648 = vmatprep.subr.bf16.mxu1 %v5693_v40  ;;  %v5730_v9 = vld [vmem:[%s6730_s11 + $0x118] sm:$0xff]   ;;  %v5736_v12 = vld [vmem:[%s7630_s0 + $0x360] ss:$72 sps:$4 sm:$0xff]   ;;  %v5751_v22 = vld [vmem:[%s6730_s11 + $0xf0] sm:$0xff]  }
  0xe9   : > { %v5738_v13 = vld [vmem:[%s6730_s11 + $0x160] sm:$0xff]   ;;  %v5742_v17 = vld [vmem:[%s6730_s11 + $0x168] sm:$0xff]   ;;  %v5745_v18 = vld [vmem:[%s7630_s0 + $0x1b4] ss:$72 sps:$4 sm:$0xff]  }
  0xea   : > { %v5739_v14 = vld [vmem:[%s6730_s11 + $0xa0] sm:$0xff]   ;;  %v5743_v19 = vld [vmem:[%s6730_s11 + $0xa8] sm:$0xff]   ;;  %v5747_v20 = vld [vmem:[%s7630_s0 + $0x3f4] ss:$72 sps:$4 sm:$0xff]  }
  0xeb   : > { %5076 = vmatpush3.bf16.msra.mxu0 %v5694_v41  ;;  %5656 = vmatpush3.bf16.msra.mxu1 %v5694_v41  ;;  %v5740_v15 = vld [vmem:[%s6730_s11 + $0x120] sm:$0xff]   ;;  %v5744_v21 = vld [vmem:[%s6730_s11 + $0x128] sm:$0xff]   ;;  %v5749_v23 = vld [vmem:[%s7630_s0 + $0x1b0] ss:$72 sps:$4 sm:$0xff]  }
  0xec   : > { %5077 = vmatprep.subr.bf16.mxu0 %v5695_v42  ;;  %5649 = vmatprep.subr.bf16.mxu1 %v5695_v42  ;;  %v5750_v24 = vld [vmem:[%s7630_s0 + $0x3f0] ss:$72 sps:$4 sm:$0xff]   ;;  %v5761_v30 = vld [vmem:[%s7630_s0 + $0xc] ss:$72 sps:$4 sm:$0xff]   ;;  %v5765_v34 = vld [vmem:[%s6730_s11 + $0x1c0] sm:$0xff]  }
  0xed   : > { %v5752_v25 = vld [vmem:[%s6730_s11 + $0x170] sm:$0xff]   ;;  %v5755_v28 = vld [vmem:[%s6730_s11 + $0xf8] sm:$0xff]   ;;  %v5767_v36 = vld [vmem:[%s6730_s11 + $0x240] sm:$0xff]  }
  0xee   : > { %v5753_v26 = vld [vmem:[%s6730_s11 + $0xb0] sm:$0xff]   ;;  %v5756_v29 = vld [vmem:[%s6730_s11 + $0x178] sm:$0xff]   ;;  %v5766_v38 = vld [vmem:[%s6730_s11 + $0x180] sm:$0xff]  }
  0xef   : > { %5078 = vmatpush3.bf16.msra.mxu0 %v5696_v43  ;;  %5657 = vmatpush3.bf16.msra.mxu1 %v5696_v43  ;;  %v5754_v27 = vld [vmem:[%s6730_s11 + $0x130] sm:$0xff]   ;;  %v5757_v31 = vld [vmem:[%s6730_s11 + $0xb8] sm:$0xff]   ;;  %v5768_v39 = vld [vmem:[%s6730_s11 + $0x200] sm:$0xff]  }
  0xf0   : > { %5079 = vmatprep.subr.bf16.mxu0 %v5697_v44  ;;  %5650 = vmatprep.subr.bf16.mxu1 %v5697_v44  ;;  %v5764_v32 = vld [vmem:[%s7630_s0 + $0x14] ss:$72 sps:$4 sm:$0xff]   ;;  %v5759_v35 = vld [vmem:[%s7630_s0 + $0x8] ss:$72 sps:$4 sm:$0xff]   ;;  %v5771_v41 = vld [vmem:[%s7630_s0 + $0xa4] ss:$72 sps:$4 sm:$0xff]  }
  0xf1   : > { %v5758_v33 = vld [vmem:[%s6730_s11 + $0x138] sm:$0xff]   ;;  %v5775_v42 = vld [vmem:[%s6730_s11 + $0x1c8] sm:$0xff]  }
  0xf2   : > { %v5762_v37 = vld [vmem:[%s7630_s0 + $0x10] ss:$72 sps:$4 sm:$0xff]   ;;  %v5769_v40 = vld [vmem:[%s7630_s0 + $0x9c] ss:$72 sps:$4 sm:$0xff]   ;;  %v5776_v43 = vld [vmem:[%s6730_s11 + $0x188] sm:$0xff]  }
  0xf3   : > { %5080 = vmatpush3.bf16.msra.mxu0 %v5698_v45  ;;  %5658 = vmatpush3.bf16.msra.mxu1 %v5698_v45  ;;  %v5777_v44 = vld [vmem:[%s6730_s11 + $0x248] sm:$0xff]  }
  0xf4   : > { %5081 = vmatprep.subr.bf16.mxu0 %v5699_v46  ;;  %5651 = vmatprep.subr.bf16.mxu1 %v5699_v46  ;;  %v5778_v45 = vld [vmem:[%s6730_s11 + $0x208] sm:$0xff]   ;;  %v5773_v46 = vld [vmem:[%s7630_s0 + $0x98] ss:$72 sps:$4 sm:$0xff]  }
  0xf7   : > { %5082 = vmatpush3.bf16.msra.mxu0 %v5700_v47  ;;  %5659 = vmatpush3.bf16.msra.mxu1 %v5700_v47  ;;  %v5774_v47 = vld [vmem:[%s7630_s0 + $0xa0] ss:$72 sps:$4 sm:$0xff]  }
  0xf8   : > { %5083 = vmatprep.subr.bf16.mxu0 %v5701_v48  ;;  %5652 = vmatprep.subr.bf16.mxu1 %v5701_v48  ;;  %v5779_v48 = vld [vmem:[%s7630_s0 + $0x12c] ss:$72 sps:$4 sm:$0xff]  }
  0xfb   : > { %5084 = vmatpush3.bf16.msra.mxu0 %v5702_v49  ;;  %5660 = vmatpush3.bf16.msra.mxu1 %v5702_v49  ;;  %v5781_v49 = vld [vmem:[%s7630_s0 + $0x134] ss:$72 sps:$4 sm:$0xff]  }
  0xfc   : > { %5133 = vmatprep.subr.bf16.mxu1 %v5709_v50  ;;  %5197 = vmatprep.subr.bf16.mxu0 %v5710_v53  ;;  %v5785_v50 = vld [vmem:[%s6730_s11 + $0x1d0] sm:$0xff]  }
  0xfd   : > { %v5788_v53 = vld [vmem:[%s6730_s11 + $0x210] sm:$0xff]  }
  0xfe   : > { %3459 = vmatmul.mubr.bf16.vlgmr.msra.gmra.mrb[0].mxu0 %v5703_v51  ;;  %3491 = vmatmul.mubr.bf16.vlgmr.msra.gmra.mrb[0].mxu1 %v5706_v52  ;;  %v5786_v51 = vld [vmem:[%s6730_s11 + $0x190] sm:$0xff]  }
  0xff   : > { %5134 = vmatpush3.bf16.msra.mxu1 %v5711_v54  ;;  %5198 = vmatpush3.bf16.msra.mxu0 %v5712_v55  ;;  %v5787_v52 = vld [vmem:[%s6730_s11 + $0x250] sm:$0xff]  }
 0x100   : > { %5135 = vmatprep.subr.bf16.mxu1 %v5713_v56  ;;  %5199 = vmatprep.subr.bf16.mxu0 %v5714_v58  ;;  %v5783_v54 = vld [vmem:[%s7630_s0 + $0x128] ss:$72 sps:$4 sm:$0xff]   ;;  %v5789_v56 = vld [vmem:[%s7630_s0 + $0x1bc] ss:$72 sps:$4 sm:$0xff]  }
 0x101   : > { %3466 = vmatprep.mubr.bf16.mxu0 %v5717_v57  ;;  %3498 = vmatprep.mubr.bf16.mxu1 %v5719_v59  ;;  %v5784_v55 = vld [vmem:[%s7630_s0 + $0x130] ss:$72 sps:$4 sm:$0xff]   ;;  %v5791_v57 = vld [vmem:[%s7630_s0 + $0x1c4] ss:$72 sps:$4 sm:$0xff]  }
 0x102   : > { %v5795_v58 = vld [vmem:[%s6730_s11 + $0x1d8] sm:$0xff]  }
 0x103   : > { %5136 = vmatpush3.bf16.msra.mxu1 %v5715_v60  ;;  %5200 = vmatpush3.bf16.msra.mxu0 %v5716_v61  ;;  %v5796_v59 = vld [vmem:[%s6730_s11 + $0x198] sm:$0xff]  }
 0x104   : > { %5137 = vmatprep.subr.bf16.mxu1 %v5723_v62  ;;  %5201 = vmatprep.subr.bf16.mxu0 %v5724_v1  ;;  %v5797_v60 = vld [vmem:[%s6730_s11 + $0x258] sm:$0xff]   ;;  %v5799_v1 = vld [vmem:[%s7630_s0 + $0x24c] ss:$72 sps:$4 sm:$0xff]  }
 0x105   : > { %v5798_v61 = vld [vmem:[%s6730_s11 + $0x218] sm:$0xff]  }
 0x106   : > { %3467 = vmatmul.mubr.bf16.gmra.mrb[4].mxu0 %v5721_v63  ;;  %3499 = vmatmul.mubr.bf16.gmra.mrb[4].mxu1 %v5722_v0  ;;  %v5793_v62 = vld [vmem:[%s7630_s0 + $0x1b8] ss:$72 sps:$4 sm:$0xff]  }
 0x107   : > { %5138 = vmatpush3.bf16.msra.mxu1 %v5725_v2  ;;  %5202 = vmatpush3.bf16.msra.mxu0 %v5726_v3  ;;  %v5794_v63 = vld [vmem:[%s7630_s0 + $0x1c0] ss:$72 sps:$4 sm:$0xff]   ;;  %v5801_v2 = vld [vmem:[%s7630_s0 + $0x254] ss:$72 sps:$4 sm:$0xff]  }
 0x108   : > { %5139 = vmatprep.subr.bf16.mxu1 %v5727_v4  ;;  %5203 = vmatprep.subr.bf16.mxu0 %v5728_v5  ;;  %v5805_v0 = vld [vmem:[%s6730_s11 + $0x1e0] sm:$0xff]  }
 0x109   : > { %3474 = vmatprep.mubr.bf16.mxu0 %v5731_v6  ;;  %3506 = vmatprep.mubr.bf16.mxu1 %v5733_v8  ;;  %v5806_v3 = vld [vmem:[%s6730_s11 + $0x1a0] sm:$0xff]   ;;  %v5815_v6 = vld [vmem:[%s6730_s11 + $0x1e8] sm:$0xff]   ;;  %v5804_v8 = vld [vmem:[%s7630_s0 + $0x250] ss:$72 sps:$4 sm:$0xff]  }
 0x10a   : > { %v5807_v4 = vld [vmem:[%s6730_s11 + $0x260] sm:$0xff]  }
 0x10b   : > { %5140 = vmatpush3.bf16.msra.mxu1 %v5729_v7  ;;  %5204 = vmatpush3.bf16.msra.mxu0 %v5730_v9  ;;  %v5808_v5 = vld [vmem:[%s6730_s11 + $0x220] sm:$0xff]   ;;  %v5803_v7 = vld [vmem:[%s7630_s0 + $0x248] ss:$72 sps:$4 sm:$0xff]  }
 0x10c   : > { %5141 = vmatprep.subr.bf16.mxu1 %v5737_v10  ;;  %5205 = vmatprep.subr.bf16.mxu0 %v5738_v13  ;;  %v5816_v9 = vld [vmem:[%s6730_s11 + $0x1a8] sm:$0xff]   ;;  %v5809_v10 = vld [vmem:[%s7630_s0 + $0x2dc] ss:$72 sps:$4 sm:$0xff]  }
 0x10d   : > { %v5811_v13 = vld [vmem:[%s7630_s0 + $0x2e4] ss:$72 sps:$4 sm:$0xff]  }
 0x10e   : > { %3475 = vmatmul.mubr.bf16.gmra.mrb[8].mxu0 %v5735_v11  ;;  %3507 = vmatmul.mubr.bf16.gmra.mrb[8].mxu1 %v5736_v12  ;;  %v5817_v11 = vld [vmem:[%s6730_s11 + $0x268] sm:$0xff]  }
 0x10f   : > { %5142 = vmatpush3.bf16.msra.mxu1 %v5739_v14  ;;  %5206 = vmatpush3.bf16.msra.mxu0 %v5740_v15  ;;  %v5818_v12 = vld [vmem:[%s6730_s11 + $0x228] sm:$0xff]   ;;  %v5825_v14 = vld [vmem:[%s6730_s11 + $0x1f0] sm:$0xff]  }
 0x110   : > { %5143 = vmatprep.subr.bf16.mxu1 %v5741_v16  ;;  %5207 = vmatprep.subr.bf16.mxu0 %v5742_v17  ;;  %v5826_v15 = vld [vmem:[%s6730_s11 + $0x1b0] sm:$0xff]   ;;  %v5813_v16 = vld [vmem:[%s7630_s0 + $0x2d8] ss:$72 sps:$4 sm:$0xff]  }
 0x111   : > { %3482 = vmatprep.mubr.bf16.mxu0 %v5745_v18  ;;  %3514 = vmatprep.mubr.bf16.mxu1 %v5747_v20  ;;  %v5827_v17 = vld [vmem:[%s6730_s11 + $0x270] sm:$0xff]  }
 0x112   : > { %v5828_v18 = vld [vmem:[%s6730_s11 + $0x230] sm:$0xff]  }
 0x113   : > { %5144 = vmatpush3.bf16.msra.mxu1 %v5743_v19  ;;  %5208 = vmatpush3.bf16.msra.mxu0 %v5744_v21  ;;  %v5814_v19 = vld [vmem:[%s7630_s0 + $0x2e0] ss:$72 sps:$4 sm:$0xff]   ;;  %v5819_v20 = vld [vmem:[%s7630_s0 + $0x36c] ss:$72 sps:$4 sm:$0xff]  }
 0x114   : > { %5145 = vmatprep.subr.bf16.mxu1 %v5751_v22  ;;  %5209 = vmatprep.subr.bf16.mxu0 %v5752_v25  ;;  %v5821_v21 = vld [vmem:[%s7630_s0 + $0x374] ss:$72 sps:$4 sm:$0xff]  }
 0x115   : > { %v5835_v22 = vld [vmem:[%s6730_s11 + $0x1f8] sm:$0xff]  }
 0x116   : > { %3483 = vmatmul.mubr.bf16.gmra.mrb[12].mxu0 %v5749_v23  ;;  %3515 = vmatmul.mubr.bf16.gmra.mrb[12].mxu1 %v5750_v24  ;;  %v5836_v23 = vld [vmem:[%s6730_s11 + $0x1b8] sm:$0xff]  }
 0x117   : > { %5146 = vmatpush3.bf16.msra.mxu1 %v5753_v26  ;;  %5210 = vmatpush3.bf16.msra.mxu0 %v5754_v27  ;;  %v5837_v24 = vld [vmem:[%s6730_s11 + $0x278] sm:$0xff]   ;;  %v5823_v26 = vld [vmem:[%s7630_s0 + $0x368] ss:$72 sps:$4 sm:$0xff]  }
 0x118   : > { %5147 = vmatprep.subr.bf16.mxu1 %v5755_v28  ;;  %5211 = vmatprep.subr.bf16.mxu0 %v5756_v29  ;;  %v5838_v25 = vld [vmem:[%s6730_s11 + $0x238] sm:$0xff]   ;;  %v5831_v29 = vld [vmem:[%s7630_s0 + $0x404] ss:$72 sps:$4 sm:$0xff]  }
 0x119   : > { %3555 = vmatprep.mubr.bf16.mxu1 %v5761_v30  ;;  %3652 = vmatprep.mubr.bf16.mxu0 %v5764_v32  ;;  %v5824_v27 = vld [vmem:[%s7630_s0 + $0x370] ss:$72 sps:$4 sm:$0xff]   ;;  %v5829_v28 = vld [vmem:[%s7630_s0 + $0x3fc] ss:$72 sps:$4 sm:$0xff]  }
 0x11a   : > { %v5845_v30 = vld [vmem:[%s6730_s11 + $0x2c0] sm:$0xff]  }
 0x11b   : > { %5148 = vmatpush3.bf16.msra.mxu1 %v5757_v31  ;;  %5212 = vmatpush3.bf16.msra.mxu0 %v5758_v33  ;;  %v5847_v31 = vld [vmem:[%s6730_s11 + $0x340] sm:$0xff]  }
 0x11c   : > { %5261 = vmatprep.subr.bf16.mxu1 %v5765_v34  ;;  %5325 = vmatprep.subr.bf16.mxu0 %v5767_v36  ;;  %v5833_v32 = vld [vmem:[%s7630_s0 + $0x3f8] ss:$72 sps:$4 sm:$0xff]   ;;  %v5841_v34 = vld [vmem:[%s7630_s0 + $0x1c] ss:$72 sps:$4 sm:$0xff]  }
 0x11d   : > { %v5834_v33 = vld [vmem:[%s7630_s0 + $0x400] ss:$72 sps:$4 sm:$0xff]  }
 0x11e   : > { %3556 = vmatmul.mubr.bf16.vlgmr.msra.gmra.mrb[16].mxu1 %v5759_v35  ;;  %3653 = vmatmul.mubr.bf16.vlgmr.msra.gmra.mrb[16].mxu0 %v5762_v37  ;;  %v5844_v35 = vld [vmem:[%s7630_s0 + $0x24] ss:$72 sps:$4 sm:$0xff]   ;;  %v5839_v36 = vld [vmem:[%s7630_s0 + $0x18] ss:$72 sps:$4 sm:$0xff]  }
 0x11f   : > { %5262 = vmatpush3.bf16.msra.mxu1 %v5766_v38  ;;  %5326 = vmatpush3.bf16.msra.mxu0 %v5768_v39  ;;  %v5842_v37 = vld [vmem:[%s7630_s0 + $0x20] ss:$72 sps:$4 sm:$0xff]  }
 0x120   : > { %3563 = vmatprep.mubr.bf16.mxu1 %v5769_v40  ;;  %3660 = vmatprep.mubr.bf16.mxu0 %v5771_v41  ;;  %v5846_v38 = vld [vmem:[%s6730_s11 + $0x280] sm:$0xff]   ;;  %v5849_v40 = vld [vmem:[%s7630_s0 + $0xac] ss:$72 sps:$4 sm:$0xff]  }
 0x121   : > { %5263 = vmatprep.subr.bf16.mxu1 %v5775_v42  ;;  %5327 = vmatprep.subr.bf16.mxu0 %v5777_v44  ;;  %v5848_v39 = vld [vmem:[%s6730_s11 + $0x300] sm:$0xff]   ;;  %v5851_v41 = vld [vmem:[%s7630_s0 + $0xb4] ss:$72 sps:$4 sm:$0xff]   ;;  %v5855_v42 = vld [vmem:[%s6730_s11 + $0x2c8] sm:$0xff]  }
 0x122   : > { %v5856_v44 = vld [vmem:[%s6730_s11 + $0x288] sm:$0xff]  }
 0x123   : > { %5264 = vmatpush3.bf16.msra.mxu1 %v5776_v43  ;;  %5328 = vmatpush3.bf16.msra.mxu0 %v5778_v45  ;;  %v5857_v43 = vld [vmem:[%s6730_s11 + $0x348] sm:$0xff]  }
 0x124   : > { %5265 = vmatprep.subr.bf16.mxu1 %v5785_v50  ;;  %5329 = vmatprep.subr.bf16.mxu0 %v5787_v52  ;;  %v5858_v45 = vld [vmem:[%s6730_s11 + $0x308] sm:$0xff]   ;;  %v5859_v50 = vld [vmem:[%s7630_s0 + $0x13c] ss:$72 sps:$4 sm:$0xff]   ;;  %v5866_v52 = vld [vmem:[%s6730_s11 + $0x290] sm:$0xff]  }
 0x126   : > { %3564 = vmatmul.mubr.bf16.gmra.mrb[20].mxu1 %v5773_v46  ;;  %3661 = vmatmul.mubr.bf16.gmra.mrb[20].mxu0 %v5774_v47  ;;  %v5865_v46 = vld [vmem:[%s6730_s11 + $0x2d0] sm:$0xff]  }
 0x127   : > { %3571 = vmatprep.mubr.bf16.mxu1 %v5779_v48  ;;  %3668 = vmatprep.mubr.bf16.mxu0 %v5781_v49  ;;  %v5853_v47 = vld [vmem:[%s7630_s0 + $0xa8] ss:$72 sps:$4 sm:$0xff]  }
 0x128   : > { %5266 = vmatpush3.bf16.msra.mxu1 %v5786_v51  ;;  %5330 = vmatpush3.bf16.msra.mxu0 %v5788_v53  ;;  %v5854_v48 = vld [vmem:[%s7630_s0 + $0xb0] ss:$72 sps:$4 sm:$0xff]   ;;  %v5861_v51 = vld [vmem:[%s7630_s0 + $0x144] ss:$72 sps:$4 sm:$0xff]  }
 0x129   : > { %5267 = vmatprep.subr.bf16.mxu1 %v5795_v58  ;;  %5331 = vmatprep.subr.bf16.mxu0 %v5797_v60  ;;  %v5867_v49 = vld [vmem:[%s6730_s11 + $0x350] sm:$0xff]   ;;  %v5863_v58 = vld [vmem:[%s7630_s0 + $0x138] ss:$72 sps:$4 sm:$0xff]  }
 0x12a   : > { %v5868_v53 = vld [vmem:[%s6730_s11 + $0x310] sm:$0xff]   ;;  %v5887_v60 = vld [vmem:[%s6730_s11 + $0x360] sm:$0xff]  }
 0x12c   : > { %5268 = vmatpush3.bf16.msra.mxu1 %v5796_v59  ;;  %5332 = vmatpush3.bf16.msra.mxu0 %v5798_v61  ;;  %v5885_v59 = vld [vmem:[%s6730_s11 + $0x2e0] sm:$0xff]  }
 0x12d   : > { %5269 = vmatprep.subr.bf16.mxu1 %v5805_v0  ;;  %5333 = vmatprep.subr.bf16.mxu0 %v5807_v4  ;;  %v5864_v61 = vld [vmem:[%s7630_s0 + $0x140] ss:$72 sps:$4 sm:$0xff]  }
 0x12e   : > { %3572 = vmatmul.mubr.bf16.gmra.mrb[24].mxu1 %v5783_v54  ;;  %3669 = vmatmul.mubr.bf16.gmra.mrb[24].mxu0 %v5784_v55  ;;  %v5875_v54 = vld [vmem:[%s6730_s11 + $0x2d8] sm:$0xff]   ;;  %v5886_v0 = vld [vmem:[%s6730_s11 + $0x2a0] sm:$0xff]   ;;  %v5896_v4 = vld [vmem:[%s6730_s11 + $0x2a8] sm:$0xff]  }
 0x12f   : > { %3579 = vmatprep.mubr.bf16.mxu1 %v5789_v56  ;;  %3676 = vmatprep.mubr.bf16.mxu0 %v5791_v57  ;;  %v5877_v55 = vld [vmem:[%s6730_s11 + $0x358] sm:$0xff]  }
 0x130   : > { %5270 = vmatpush3.bf16.msra.mxu1 %v5806_v3  ;;  %5334 = vmatpush3.bf16.msra.mxu0 %v5808_v5  ;;  %v5876_v56 = vld [vmem:[%s6730_s11 + $0x298] sm:$0xff]   ;;  %v5897_v3 = vld [vmem:[%s6730_s11 + $0x368] sm:$0xff]  }
 0x131   : > { %5271 = vmatprep.subr.bf16.mxu1 %v5815_v6  ;;  %5335 = vmatprep.subr.bf16.mxu0 %v5817_v11  ;;  %v5878_v57 = vld [vmem:[%s6730_s11 + $0x318] sm:$0xff]   ;;  %v5873_v5 = vld [vmem:[%s7630_s0 + $0x1c8] ss:$72 sps:$4 sm:$0xff]  }
 0x132   : > { %v5898_v6 = vld [vmem:[%s6730_s11 + $0x328] sm:$0xff]   ;;  %v5906_v11 = vld [vmem:[%s6730_s11 + $0x2b0] sm:$0xff]  }
 0x134   : > { %5272 = vmatpush3.bf16.msra.mxu1 %v5816_v9  ;;  %5336 = vmatpush3.bf16.msra.mxu0 %v5818_v12  ;;  %v5881_v9 = vld [vmem:[%s7630_s0 + $0x264] ss:$72 sps:$4 sm:$0xff]   ;;  %v5907_v12 = vld [vmem:[%s6730_s11 + $0x370] sm:$0xff]  }
 0x135   : > { %5273 = vmatprep.subr.bf16.mxu1 %v5825_v14  ;;  %5337 = vmatprep.subr.bf16.mxu0 %v5827_v17  ;;  %v5883_v14 = vld [vmem:[%s7630_s0 + $0x258] ss:$72 sps:$4 sm:$0xff]   ;;  %v5891_v17 = vld [vmem:[%s7630_s0 + $0x2f4] ss:$72 sps:$4 sm:$0xff]  }
 0x136   : > { %3580 = vmatmul.mubr.bf16.gmra.mrb[28].mxu1 %v5793_v62  ;;  %3677 = vmatmul.mubr.bf16.gmra.mrb[28].mxu0 %v5794_v63  ;;  %v5869_v62 = vld [vmem:[%s7630_s0 + $0x1cc] ss:$72 sps:$4 sm:$0xff]  }
 0x137   : > { %3587 = vmatprep.mubr.bf16.mxu1 %v5799_v1  ;;  %3684 = vmatprep.mubr.bf16.mxu0 %v5801_v2  ;;  %v5871_v63 = vld [vmem:[%s7630_s0 + $0x1d4] ss:$72 sps:$4 sm:$0xff]   ;;  %v5888_v1 = vld [vmem:[%s6730_s11 + $0x320] sm:$0xff]   ;;  %v5895_v2 = vld [vmem:[%s6730_s11 + $0x2e8] sm:$0xff]  }
 0x138   : > { %5274 = vmatpush3.bf16.msra.mxu1 %v5826_v15  ;;  %5338 = vmatpush3.bf16.msra.mxu0 %v5828_v18  ;;  %v5884_v15 = vld [vmem:[%s7630_s0 + $0x260] ss:$72 sps:$4 sm:$0xff]   ;;  %v5915_v18 = vld [vmem:[%s6730_s11 + $0x2f8] sm:$0xff]  }
 0x139   : > { %5275 = vmatprep.subr.bf16.mxu1 %v5835_v22  ;;  %5339 = vmatprep.subr.bf16.mxu0 %v5837_v24  ;;  %v5893_v22 = vld [vmem:[%s7630_s0 + $0x2e8] ss:$72 sps:$4 sm:$0xff]   ;;  %v5925_v24 = vld [vmem:[%s6730_s11 + $0x3c0] sm:$0xff]  }
 0x13c   : > { %5276 = vmatpush3.bf16.msra.mxu1 %v5836_v23  ;;  %5340 = vmatpush3.bf16.msra.mxu0 %v5838_v25  ;;  %v5894_v23 = vld [vmem:[%s7630_s0 + $0x2f0] ss:$72 sps:$4 sm:$0xff]   ;;  %v5899_v25 = vld [vmem:[%s7630_s0 + $0x37c] ss:$72 sps:$4 sm:$0xff]  }
 0x13d   : > { %5389 = vmatprep.subr.bf16.mxu1 %v5845_v30  ;;  %5453 = vmatprep.subr.bf16.mxu0 %v5847_v31  ;;  %v5909_v30 = vld [vmem:[%s7630_s0 + $0x40c] ss:$72 sps:$4 sm:$0xff]  }
 0x13e   : > { %3588 = vmatmul.mubr.bf16.gmra.mrb[32].mxu1 %v5803_v7  ;;  %3685 = vmatmul.mubr.bf16.gmra.mrb[32].mxu0 %v5804_v8  ;;  %v5874_v7 = vld [vmem:[%s7630_s0 + $0x1d0] ss:$72 sps:$4 sm:$0xff]   ;;  %v5879_v8 = vld [vmem:[%s7630_s0 + $0x25c] ss:$72 sps:$4 sm:$0xff]  }
 0x13f   : > { %3595 = vmatprep.mubr.bf16.mxu1 %v5809_v10  ;;  %3692 = vmatprep.mubr.bf16.mxu0 %v5811_v13  ;;  %v5905_v10 = vld [vmem:[%s6730_s11 + $0x2f0] sm:$0xff]  }
 0x140   : > { %v5908_v13 = vld [vmem:[%s6730_s11 + $0x330] sm:$0xff]  }
 0x141   : > { %v5911_v31 = vld [vmem:[%s7630_s0 + $0x414] ss:$72 sps:$4 sm:$0xff]  }
 0x146   : > { %3596 = vmatmul.mubr.bf16.gmra.mrb[36].mxu1 %v5813_v16  ;;  %3693 = vmatmul.mubr.bf16.gmra.mrb[36].mxu0 %v5814_v19  ;;  %v5889_v16 = vld [vmem:[%s7630_s0 + $0x2ec] ss:$72 sps:$4 sm:$0xff]   ;;  %v5916_v19 = vld [vmem:[%s6730_s11 + $0x2b8] sm:$0xff]  }
 0x147   : > { %3603 = vmatprep.mubr.bf16.mxu1 %v5819_v20  ;;  %3700 = vmatprep.mubr.bf16.mxu0 %v5821_v21  ;;  %v5917_v20 = vld [vmem:[%s6730_s11 + $0x378] sm:$0xff]  }
 0x148   : > { %v5918_v21 = vld [vmem:[%s6730_s11 + $0x338] sm:$0xff]  }
 0x14e   : > { %3604 = vmatmul.mubr.bf16.gmra.mrb[40].mxu1 %v5823_v26  ;;  %3701 = vmatmul.mubr.bf16.gmra.mrb[40].mxu0 %v5824_v27  ;;  %v5927_v26 = vld [vmem:[%s6730_s11 + $0x440] sm:$0xff]  }
 0x14f   : > { %3611 = vmatprep.mubr.bf16.mxu1 %v5829_v28  ;;  %3708 = vmatprep.mubr.bf16.mxu0 %v5831_v29  ;;  %v5901_v27 = vld [vmem:[%s7630_s0 + $0x384] ss:$72 sps:$4 sm:$0xff]   ;;  %v5903_v28 = vld [vmem:[%s7630_s0 + $0x378] ss:$72 sps:$4 sm:$0xff]  }
 0x150   : > { %v5904_v29 = vld [vmem:[%s7630_s0 + $0x380] ss:$72 sps:$4 sm:$0xff]  }
 0x156   : > { %3612 = vmatmul.mubr.bf16.gmra.mrb[44].mxu1 %v5833_v32  ;;  %3709 = vmatmul.mubr.bf16.gmra.mrb[44].mxu0 %v5834_v33  ;;  %v5913_v32 = vld [vmem:[%s7630_s0 + $0x408] ss:$72 sps:$4 sm:$0xff]  }
 0x157   : > { %3749 = vmatprep.mubr.bf16.mxu1 %v5841_v34  ;;  %3846 = vmatprep.mubr.bf16.mxu0 %v5844_v35  ;;  %v5914_v33 = vld [vmem:[%s7630_s0 + $0x410] ss:$72 sps:$4 sm:$0xff]   ;;  %v5921_v34 = vld [vmem:[%s7630_s0 + $0x2c] ss:$72 sps:$4 sm:$0xff]  }
 0x158   : > { %v5924_v35 = vld [vmem:[%s7630_s0 + $0x34] ss:$72 sps:$4 sm:$0xff]  }
 0x15e   : > { %3750 = vmatmul.mubr.bf16.vlgmr.msra.gmra.mrb[48].mxu1 %v5839_v36  ;;  %3847 = vmatmul.mubr.bf16.vlgmr.msra.gmra.mrb[48].mxu0 %v5842_v37  ;;  %v5919_v36 = vld [vmem:[%s7630_s0 + $0x28] ss:$72 sps:$4 sm:$0xff]  }
 0x15f   : > { %5390 = vmatpush3.bf16.msra.mxu1 %v5846_v38  ;;  %5454 = vmatpush3.bf16.msra.mxu0 %v5848_v39  ;;  %v5922_v37 = vld [vmem:[%s7630_s0 + $0x30] ss:$72 sps:$4 sm:$0xff]   ;;  %v5926_v38 = vld [vmem:[%s6730_s11 + $0x380] sm:$0xff]  }
 0x160   : > { %3757 = vmatprep.mubr.bf16.mxu1 %v5849_v40  ;;  %3854 = vmatprep.mubr.bf16.mxu0 %v5851_v41  ;;  %v5928_v39 = vld [vmem:[%s6730_s11 + $0x400] sm:$0xff]  }
 0x161   : > { %5391 = vmatprep.subr.bf16.mxu1 %v5855_v42  ;;  %5455 = vmatprep.subr.bf16.mxu0 %v5857_v43  ;;  %v5929_v40 = vld [vmem:[%s7630_s0 + $0xbc] ss:$72 sps:$4 sm:$0xff]   ;;  %v5935_v42 = vld [vmem:[%s6730_s11 + $0x3c8] sm:$0xff]  }
 0x162   : > { %v5931_v41 = vld [vmem:[%s7630_s0 + $0xc4] ss:$72 sps:$4 sm:$0xff]  }
 0x163   : > { %5392 = vmatpush3.bf16.msra.mxu1 %v5856_v44  ;;  %5456 = vmatpush3.bf16.msra.mxu0 %v5858_v45  ;;  %v5937_v43 = vld [vmem:[%s6730_s11 + $0x448] sm:$0xff]  }
 0x164   : > { %5393 = vmatprep.subr.bf16.mxu1 %v5865_v46  ;;  %5457 = vmatprep.subr.bf16.mxu0 %v5867_v49  ;;  %v5936_v44 = vld [vmem:[%s6730_s11 + $0x388] sm:$0xff]   ;;  %v5933_v46 = vld [vmem:[%s7630_s0 + $0xb8] ss:$72 sps:$4 sm:$0xff]   ;;  %v5947_v49 = vld [vmem:[%s6730_s11 + $0x450] sm:$0xff]  }
 0x165   : > { %v5938_v45 = vld [vmem:[%s6730_s11 + $0x408] sm:$0xff]  }
 0x166   : > { %3758 = vmatmul.mubr.bf16.gmra.mrb[52].mxu1 %v5853_v47  ;;  %3855 = vmatmul.mubr.bf16.gmra.mrb[52].mxu0 %v5854_v48  ;;  %v5934_v47 = vld [vmem:[%s7630_s0 + $0xc0] ss:$72 sps:$4 sm:$0xff]   ;;  %v5945_v48 = vld [vmem:[%s6730_s11 + $0x3d0] sm:$0xff]  }
 0x167   : > { %3765 = vmatprep.mubr.bf16.mxu1 %v5859_v50  ;;  %3862 = vmatprep.mubr.bf16.mxu0 %v5861_v51  ;;  %v5939_v50 = vld [vmem:[%s7630_s0 + $0x14c] ss:$72 sps:$4 sm:$0xff]  }
 0x168   : > { %5394 = vmatpush3.bf16.msra.mxu1 %v5866_v52  ;;  %5458 = vmatpush3.bf16.msra.mxu0 %v5868_v53  ;;  %v5941_v51 = vld [vmem:[%s7630_s0 + $0x154] ss:$72 sps:$4 sm:$0xff]  }
 0x169   : > { %5395 = vmatprep.subr.bf16.mxu1 %v5875_v54  ;;  %5459 = vmatprep.subr.bf16.mxu0 %v5877_v55  ;;  %v5946_v52 = vld [vmem:[%s6730_s11 + $0x390] sm:$0xff]   ;;  %v5955_v54 = vld [vmem:[%s6730_s11 + $0x3d8] sm:$0xff]  }
 0x16a   : > { %v5948_v53 = vld [vmem:[%s6730_s11 + $0x410] sm:$0xff]   ;;  %v5957_v55 = vld [vmem:[%s6730_s11 + $0x458] sm:$0xff]  }
 0x16c   : > { %5396 = vmatpush3.bf16.msra.mxu1 %v5876_v56  ;;  %5460 = vmatpush3.bf16.msra.mxu0 %v5878_v57  ;;  %v5956_v56 = vld [vmem:[%s6730_s11 + $0x398] sm:$0xff]  }
 0x16d   : > { %5397 = vmatprep.subr.bf16.mxu1 %v5885_v59  ;;  %5461 = vmatprep.subr.bf16.mxu0 %v5887_v60  ;;  %v5958_v57 = vld [vmem:[%s6730_s11 + $0x418] sm:$0xff]   ;;  %v5965_v60 = vld [vmem:[%s6730_s11 + $0x3e0] sm:$0xff]  }
 0x16e   : > { %3766 = vmatmul.mubr.bf16.gmra.mrb[56].mxu1 %v5863_v58  ;;  %3863 = vmatmul.mubr.bf16.gmra.mrb[56].mxu0 %v5864_v61  ;;  %v5943_v58 = vld [vmem:[%s7630_s0 + $0x148] ss:$72 sps:$4 sm:$0xff]   ;;  %v5949_v61 = vld [vmem:[%s7630_s0 + $0x1dc] ss:$72 sps:$4 sm:$0xff]  }
 0x16f   : > { %3773 = vmatprep.mubr.bf16.mxu1 %v5869_v62  ;;  %3870 = vmatprep.mubr.bf16.mxu0 %v5871_v63  ;;  %v5944_v59 = vld [vmem:[%s7630_s0 + $0x150] ss:$72 sps:$4 sm:$0xff]   ;;  %v5951_v62 = vld [vmem:[%s7630_s0 + $0x1e4] ss:$72 sps:$4 sm:$0xff]  }
 0x170   : > { %5398 = vmatpush3.bf16.msra.mxu1 %v5886_v0  ;;  %5462 = vmatpush3.bf16.msra.mxu0 %v5888_v1  ;;  %v5967_v63 = vld [vmem:[%s6730_s11 + $0x460] sm:$0xff]  }
 0x171   : > { %5399 = vmatprep.subr.bf16.mxu1 %v5895_v2  ;;  %5463 = vmatprep.subr.bf16.mxu0 %v5897_v3  ;;  %v5966_v0 = vld [vmem:[%s6730_s11 + $0x3a0] sm:$0xff]   ;;  %v5975_v2 = vld [vmem:[%s6730_s11 + $0x3e8] sm:$0xff]  }
 0x172   : > { %v5968_v1 = vld [vmem:[%s6730_s11 + $0x420] sm:$0xff]   ;;  %v5977_v3 = vld [vmem:[%s6730_s11 + $0x468] sm:$0xff]  }
 0x174   : > { %5400 = vmatpush3.bf16.msra.mxu1 %v5896_v4  ;;  %5464 = vmatpush3.bf16.msra.mxu0 %v5898_v6  ;;  %v5976_v4 = vld [vmem:[%s6730_s11 + $0x3a8] sm:$0xff]   ;;  %v5953_v6 = vld [vmem:[%s7630_s0 + $0x1d8] ss:$72 sps:$4 sm:$0xff]  }
 0x175   : > { %5401 = vmatprep.subr.bf16.mxu1 %v5905_v10  ;;  %5465 = vmatprep.subr.bf16.mxu0 %v5907_v12  ;;  %v5987_v10 = vld [vmem:[%s6730_s11 + $0x470] sm:$0xff]  }
 0x176   : > { %3774 = vmatmul.mubr.bf16.gmra.mrb[60].mxu1 %v5873_v5  ;;  %3871 = vmatmul.mubr.bf16.gmra.mrb[60].mxu0 %v5874_v7  ;;  %v5978_v5 = vld [vmem:[%s6730_s11 + $0x428] sm:$0xff]   ;;  %v5986_v12 = vld [vmem:[%s6730_s11 + $0x3b0] sm:$0xff]  }
 0x177   : > { %3781 = vmatprep.mubr.bf16.mxu1 %v5879_v8  ;;  %3878 = vmatprep.mubr.bf16.mxu0 %v5881_v9  ;;  %v5954_v7 = vld [vmem:[%s7630_s0 + $0x1e0] ss:$72 sps:$4 sm:$0xff]   ;;  %v5985_v8 = vld [vmem:[%s6730_s11 + $0x3f0] sm:$0xff]  }
 0x178   : > { %5402 = vmatpush3.bf16.msra.mxu1 %v5906_v11  ;;  %5466 = vmatpush3.bf16.msra.mxu0 %v5908_v13  ;;  %v5959_v9 = vld [vmem:[%s7630_s0 + $0x26c] ss:$72 sps:$4 sm:$0xff]  }
 0x179   : > { %5403 = vmatprep.subr.bf16.mxu1 %v5915_v18  ;;  %5467 = vmatprep.subr.bf16.mxu0 %v5917_v20  ;;  %v5961_v11 = vld [vmem:[%s7630_s0 + $0x274] ss:$72 sps:$4 sm:$0xff]   ;;  %v5963_v18 = vld [vmem:[%s7630_s0 + $0x268] ss:$72 sps:$4 sm:$0xff]  }
 0x17a   : > { %v5988_v13 = vld [vmem:[%s6730_s11 + $0x430] sm:$0xff]   ;;  %v5969_v20 = vld [vmem:[%s7630_s0 + $0x2fc] ss:$72 sps:$4 sm:$0xff]  }
 0x17c   : > { %5404 = vmatpush3.bf16.msra.mxu1 %v5916_v19  ;;  %5468 = vmatpush3.bf16.msra.mxu0 %v5918_v21  ;;  %v5964_v19 = vld [vmem:[%s7630_s0 + $0x270] ss:$72 sps:$4 sm:$0xff]   ;;  %v5971_v21 = vld [vmem:[%s7630_s0 + $0x304] ss:$72 sps:$4 sm:$0xff]  }
 0x17d   : > { %5517 = vmatprep.subr.bf16.mxu1 %v5925_v24  ;;  %5581 = vmatprep.subr.bf16.mxu0 %v5927_v26  ;;  %v5979_v24 = vld [vmem:[%s7630_s0 + $0x38c] ss:$72 sps:$4 sm:$0xff]   ;;  %v5983_v26 = vld [vmem:[%s7630_s0 + $0x388] ss:$72 sps:$4 sm:$0xff]  }
 0x17e   : > { %3782 = vmatmul.mubr.bf16.gmra.mrb[64].mxu1 %v5883_v14  ;;  %3879 = vmatmul.mubr.bf16.gmra.mrb[64].mxu0 %v5884_v15  ;;  %v5995_v14 = vld [vmem:[%s6730_s11 + $0x3f8] sm:$0xff]  }
 0x17f   : > { %3789 = vmatprep.mubr.bf16.mxu1 %v5889_v16  ;;  %3886 = vmatprep.mubr.bf16.mxu0 %v5891_v17  ;;  %v5997_v15 = vld [vmem:[%s6730_s11 + $0x478] sm:$0xff]  }
 0x180   : > { %v5996_v16 = vld [vmem:[%s6730_s11 + $0x3b8] sm:$0xff]  }
 0x181   : > { %v5998_v17 = vld [vmem:[%s6730_s11 + $0x438] sm:$0xff]  }
 0x186   : > { %3790 = vmatmul.mubr.bf16.gmra.mrb[68].mxu1 %v5893_v22  ;;  %3887 = vmatmul.mubr.bf16.gmra.mrb[68].mxu0 %v5894_v23  ;;  %v5973_v22 = vld [vmem:[%s7630_s0 + $0x2f8] ss:$72 sps:$4 sm:$0xff]  }
 0x187   : > { %3797 = vmatprep.mubr.bf16.mxu1 %v5899_v25  ;;  %3894 = vmatprep.mubr.bf16.mxu0 %v5901_v27  ;;  %v5974_v23 = vld [vmem:[%s7630_s0 + $0x300] ss:$72 sps:$4 sm:$0xff]   ;;  %v5981_v25 = vld [vmem:[%s7630_s0 + $0x394] ss:$72 sps:$4 sm:$0xff]   ;;  %v5984_v27 = vld [vmem:[%s7630_s0 + $0x390] ss:$72 sps:$4 sm:$0xff]  }
 0x18e   : > { %3798 = vmatmul.mubr.bf16.gmra.mrb[72].mxu1 %v5903_v28  ;;  %3895 = vmatmul.mubr.bf16.gmra.mrb[72].mxu0 %v5904_v29  ;;  %v5989_v28 = vld [vmem:[%s7630_s0 + $0x41c] ss:$72 sps:$4 sm:$0xff]  }
 0x18f   : > { %3805 = vmatprep.mubr.bf16.mxu1 %v5909_v30  ;;  %3902 = vmatprep.mubr.bf16.mxu0 %v5911_v31  ;;  %v5991_v29 = vld [vmem:[%s7630_s0 + $0x424] ss:$72 sps:$4 sm:$0xff]  }
 0x196   : > { %3806 = vmatmul.mubr.bf16.gmra.mrb[76].mxu1 %v5913_v32  ;;  %3903 = vmatmul.mubr.bf16.gmra.mrb[76].mxu0 %v5914_v33 }
 0x197   : > { %3943 = vmatprep.mubr.bf16.mxu1 %v5921_v34  ;;  %4040 = vmatprep.mubr.bf16.mxu0 %v5924_v35  ;;  %v5993_v34 = vld [vmem:[%s7630_s0 + $0x418] ss:$72 sps:$4 sm:$0xff]  }
 0x198   : > { %v5994_v35 = vld [vmem:[%s7630_s0 + $0x420] ss:$72 sps:$4 sm:$0xff]  }
 0x19e   : > { %3944 = vmatmul.mubr.bf16.vlgmr.msra.gmra.mrb[80].mxu1 %v5919_v36  ;;  %4041 = vmatmul.mubr.bf16.vlgmr.msra.gmra.mrb[80].mxu0 %v5922_v37 }
 0x19f   : > { %5518 = vmatpush3.bf16.msra.mxu1 %v5926_v38  ;;  %5582 = vmatpush3.bf16.msra.mxu0 %v5928_v39 }
 0x1a0   : > { %3951 = vmatprep.mubr.bf16.mxu1 %v5929_v40  ;;  %4048 = vmatprep.mubr.bf16.mxu0 %v5931_v41  ;;  %v6001_v40 = vld [vmem:[%s7630_s0 + $0x3c] ss:$72 sps:$4 sm:$0xff]  }
 0x1a1   : > { %5519 = vmatprep.subr.bf16.mxu1 %v5935_v42  ;;  %5583 = vmatprep.subr.bf16.mxu0 %v5937_v43  ;;  %v6004_v41 = vld [vmem:[%s7630_s0 + $0x44] ss:$72 sps:$4 sm:$0xff]  }
 0x1a3   : > { %5520 = vmatpush3.bf16.msra.mxu1 %v5936_v44  ;;  %5584 = vmatpush3.bf16.msra.mxu0 %v5938_v45 }
 0x1a4   : > { %5521 = vmatprep.subr.bf16.mxu1 %v5945_v48  ;;  %5585 = vmatprep.subr.bf16.mxu0 %v5947_v49 }
 0x1a6   : > { %3952 = vmatmul.mubr.bf16.gmra.mrb[84].mxu1 %v5933_v46  ;;  %4049 = vmatmul.mubr.bf16.gmra.mrb[84].mxu0 %v5934_v47 }
 0x1a7   : > { %3959 = vmatprep.mubr.bf16.mxu1 %v5939_v50  ;;  %4056 = vmatprep.mubr.bf16.mxu0 %v5941_v51  ;;  %v5999_v50 = vld [vmem:[%s7630_s0 + $0x38] ss:$72 sps:$4 sm:$0xff]  }
 0x1a8   : > { %5522 = vmatpush3.bf16.msra.mxu1 %v5946_v52  ;;  %5586 = vmatpush3.bf16.msra.mxu0 %v5948_v53  ;;  %v6002_v51 = vld [vmem:[%s7630_s0 + $0x40] ss:$72 sps:$4 sm:$0xff]  }
 0x1a9   : > { %5523 = vmatprep.subr.bf16.mxu1 %v5955_v54  ;;  %5587 = vmatprep.subr.bf16.mxu0 %v5957_v55 }
 0x1ac   : > { %5524 = vmatpush3.bf16.msra.mxu1 %v5956_v56  ;;  %5588 = vmatpush3.bf16.msra.mxu0 %v5958_v57  ;;  %v6005_v56 = vld [vmem:[%s7630_s0 + $0xcc] ss:$72 sps:$4 sm:$0xff]  }
 0x1ad   : > { %5525 = vmatprep.subr.bf16.mxu1 %v5965_v60  ;;  %5589 = vmatprep.subr.bf16.mxu0 %v5967_v63  ;;  %v6007_v57 = vld [vmem:[%s7630_s0 + $0xd4] ss:$72 sps:$4 sm:$0xff]  }
 0x1ae   : > { %3960 = vmatmul.mubr.bf16.gmra.mrb[88].mxu1 %v5943_v58  ;;  %4057 = vmatmul.mubr.bf16.gmra.mrb[88].mxu0 %v5944_v59 }
 0x1af   : > { %3967 = vmatprep.mubr.bf16.mxu1 %v5949_v61  ;;  %4064 = vmatprep.mubr.bf16.mxu0 %v5951_v62 }
 0x1b0   : > { %5526 = vmatpush3.bf16.msra.mxu1 %v5966_v0  ;;  %5590 = vmatpush3.bf16.msra.mxu0 %v5968_v1 }
 0x1b1   : > { %5527 = vmatprep.subr.bf16.mxu1 %v5975_v2  ;;  %5591 = vmatprep.subr.bf16.mxu0 %v5977_v3  ;;  %v6009_v2 = vld [vmem:[%s7630_s0 + $0xc8] ss:$72 sps:$4 sm:$0xff]  }
 0x1b2   : > { %v6010_v3 = vld [vmem:[%s7630_s0 + $0xd0] ss:$72 sps:$4 sm:$0xff]  }
 0x1b4   : > { %5528 = vmatpush3.bf16.msra.mxu1 %v5976_v4  ;;  %5592 = vmatpush3.bf16.msra.mxu0 %v5978_v5 }
 0x1b5   : > { %5529 = vmatprep.subr.bf16.mxu1 %v5985_v8  ;;  %5593 = vmatprep.subr.bf16.mxu0 %v5987_v10  ;;  %v6011_v8 = vld [vmem:[%s7630_s0 + $0x15c] ss:$72 sps:$4 sm:$0xff]  }
 0x1b6   : > { %3968 = vmatmul.mubr.bf16.gmra.mrb[92].mxu1 %v5953_v6  ;;  %4065 = vmatmul.mubr.bf16.gmra.mrb[92].mxu0 %v5954_v7 }
 0x1b7   : > { %3975 = vmatprep.mubr.bf16.mxu1 %v5959_v9  ;;  %4072 = vmatprep.mubr.bf16.mxu0 %v5961_v11  ;;  %v6013_v9 = vld [vmem:[%s7630_s0 + $0x164] ss:$72 sps:$4 sm:$0xff]  }
 0x1b8   : > { %5530 = vmatpush3.bf16.msra.mxu1 %v5986_v12  ;;  %5594 = vmatpush3.bf16.msra.mxu0 %v5988_v13 }
 0x1b9   : > { %5531 = vmatprep.subr.bf16.mxu1 %v5995_v14  ;;  %5595 = vmatprep.subr.bf16.mxu0 %v5997_v15 }
 0x1bc   : > { %5532 = vmatpush3.bf16.msra.mxu1 %v5996_v16  ;;  %5596 = vmatpush3.bf16.msra.mxu0 %v5998_v17 }
 0x1be   : > { %3976 = vmatmul.mubr.bf16.gmra.mrb[96].mxu1 %v5963_v18  ;;  %4073 = vmatmul.mubr.bf16.gmra.mrb[96].mxu0 %v5964_v19  ;;  %v6015_v18 = vld [vmem:[%s7630_s0 + $0x158] ss:$72 sps:$4 sm:$0xff]  }
 0x1bf   : > { %3983 = vmatprep.mubr.bf16.mxu1 %v5969_v20  ;;  %4080 = vmatprep.mubr.bf16.mxu0 %v5971_v21  ;;  %v6016_v19 = vld [vmem:[%s7630_s0 + $0x160] ss:$72 sps:$4 sm:$0xff]  }
 0x1c6   : > { %3984 = vmatmul.mubr.bf16.gmra.mrb[100].mxu1 %v5973_v22  ;;  %4081 = vmatmul.mubr.bf16.gmra.mrb[100].mxu0 %v5974_v23 }
 0x1c7   : > { %3991 = vmatprep.mubr.bf16.mxu1 %v5979_v24  ;;  %4088 = vmatprep.mubr.bf16.mxu0 %v5981_v25  ;;  %v6017_v24 = vld [vmem:[%s7630_s0 + $0x1ec] ss:$72 sps:$4 sm:$0xff]  }
 0x1c8   : > { %v6019_v25 = vld [vmem:[%s7630_s0 + $0x1f4] ss:$72 sps:$4 sm:$0xff]  }
 0x1ce   : > { %3992 = vmatmul.mubr.bf16.gmra.mrb[104].mxu1 %v5983_v26  ;;  %4089 = vmatmul.mubr.bf16.gmra.mrb[104].mxu0 %v5984_v27 }
 0x1cf   : > { %3999 = vmatprep.mubr.bf16.mxu1 %v5989_v28  ;;  %4096 = vmatprep.mubr.bf16.mxu0 %v5991_v29 }
 0x1d1   : > { %v5085_v30 = vpop.f32.mrb[0].mxu0  ;;  %v5109_v31 = vpop.f32.mrb[0].mxu1 }
 0x1d2   : > { %v5086_v32 = vpop.f32.mrb[1].mxu0  ;;  %v5110_v33 = vpop.f32.mrb[1].mxu1 }
 0x1d3   : > { %v7206_v36 = vadd.f32 %v5086_v32, %v5085_v30  ;;  %v7208_v37 = vadd.f32 %v5110_v33, %v5109_v31  ;;  %v5088_v38 = vpop.f32.mrb[2].mxu0  ;;  %v5112_v39 = vpop.f32.mrb[2].mxu1 }
 0x1d4   : > { %v5089_v42 = vpop.f32.mrb[3].mxu0  ;;  %v5113_v43 = vpop.f32.mrb[3].mxu1 }
 0x1d5   : > { %v7216_v44 = vadd.f32 %v5089_v42, %v5088_v38  ;;  %v7218_v45 = vadd.f32 %v5113_v43, %v5112_v39  ;;  %v6023_v42 = vld [vmem:[%s7630_s0 + $0x27c] ss:$72 sps:$4 sm:$0xff]  }
 0x1d6   : > { %4000 = vmatmul.mubr.bf16.gmra.mrb[108].mxu1 %v5993_v34  ;;  %4097 = vmatmul.mubr.bf16.gmra.mrb[108].mxu0 %v5994_v35  ;;  %v6021_v34 = vld [vmem:[%s7630_s0 + $0x1e8] ss:$72 sps:$4 sm:$0xff]   ;;  %v6025_v43 = vld [vmem:[%s7630_s0 + $0x284] ss:$72 sps:$4 sm:$0xff]  }
 0x1d7   : > { %4137 = vmatprep.mubr.bf16.mxu1 %v6001_v40  ;;  %4234 = vmatprep.mubr.bf16.mxu0 %v6004_v41  ;;  %v6022_v35 = vld [vmem:[%s7630_s0 + $0x1f0] ss:$72 sps:$4 sm:$0xff]  }
 0x1d9   : > { %v5091_v46 = vpop.f32.mrb[4].mxu0  ;;  %v5115_v47 = vpop.f32.mrb[4].mxu1 }
 0x1da   : > { %v5092_v48 = vpop.f32.mrb[5].mxu0  ;;  %v5116_v49 = vpop.f32.mrb[5].mxu1 }
 0x1db   : > { %v7226_v52 = vadd.f32 %v5092_v48, %v5091_v46  ;;  %v7228_v53 = vadd.f32 %v5116_v49, %v5115_v47  ;;  %v5094_v54 = vpop.f32.mrb[6].mxu0  ;;  %v5118_v55 = vpop.f32.mrb[6].mxu1 }
 0x1dc   : > { %v5095_v58 = vpop.f32.mrb[7].mxu0  ;;  %v5119_v59 = vpop.f32.mrb[7].mxu1 }
 0x1dd   : > { %v7236_v60 = vadd.f32 %v5095_v58, %v5094_v54  ;;  %v7238_v61 = vadd.f32 %v5119_v59, %v5118_v55 }
 0x1de   : > { %4138 = vmatmul.mubr.bf16.vlgmr.msra.gmra.mrb[112].mxu1 %v5999_v50  ;;  %4235 = vmatmul.mubr.bf16.vlgmr.msra.gmra.mrb[112].mxu0 %v6002_v51 }
 0x1df   : > { %4145 = vmatprep.mubr.bf16.mxu1 %v6005_v56  ;;  %4242 = vmatprep.mubr.bf16.mxu0 %v6007_v57 }
 0x1e1   : > { %v5097_v62 = vpop.f32.mrb[8].mxu0  ;;  %v5121_v63 = vpop.f32.mrb[8].mxu1 }
 0x1e2   : > { %v5098_v0 = vpop.f32.mrb[9].mxu0  ;;  %v5122_v1 = vpop.f32.mrb[9].mxu1 }
 0x1e3   : > { %v7246_v4 = vadd.f32 %v5098_v0, %v5097_v62  ;;  %v7248_v5 = vadd.f32 %v5122_v1, %v5121_v63  ;;  %v5100_v6 = vpop.f32.mrb[10].mxu0  ;;  %v5124_v7 = vpop.f32.mrb[10].mxu1  ;;  %v6028_v62 = vld [vmem:[%s7630_s0 + $0x280] ss:$72 sps:$4 sm:$0xff]  }
 0x1e4   : > { %v5101_v10 = vpop.f32.mrb[11].mxu0  ;;  %v5125_v11 = vpop.f32.mrb[11].mxu1 }
 0x1e5   : > { %v7256_v12 = vadd.f32 %v5101_v10, %v5100_v6  ;;  %v7258_v13 = vadd.f32 %v5125_v11, %v5124_v7 }
 0x1e6   : > { %4146 = vmatmul.mubr.bf16.gmra.mrb[116].mxu1 %v6009_v2  ;;  %4243 = vmatmul.mubr.bf16.gmra.mrb[116].mxu0 %v6010_v3  ;;  %v6029_v2 = vld [vmem:[%s7630_s0 + $0x30c] ss:$72 sps:$4 sm:$0xff]  }
 0x1e7   : > { %4153 = vmatprep.mubr.bf16.mxu1 %v6011_v8  ;;  %4250 = vmatprep.mubr.bf16.mxu0 %v6013_v9  ;;  %v6031_v3 = vld [vmem:[%s7630_s0 + $0x314] ss:$72 sps:$4 sm:$0xff]  }
 0x1e9   : > { %v5103_v14 = vpop.f32.mrb[12].mxu0  ;;  %v5127_v15 = vpop.f32.mrb[12].mxu1 }
 0x1ea   : > { %v5104_v16 = vpop.f32.mrb[13].mxu0  ;;  %v5128_v17 = vpop.f32.mrb[13].mxu1 }
 0x1eb   : > { %v7266_v20 = vadd.f32 %v5104_v16, %v5103_v14  ;;  %v7268_v21 = vadd.f32 %v5128_v17, %v5127_v15  ;;  %v5106_v22 = vpop.f32.mrb[14].mxu0  ;;  %v5130_v23 = vpop.f32.mrb[14].mxu1 }
 0x1ec   : > { %v5107_v26 = vpop.f32.mrb[15].mxu0  ;;  %v5131_v27 = vpop.f32.mrb[15].mxu1 }
 0x1ed   : > { %v7276_v28 = vadd.f32 %v5107_v26, %v5106_v22  ;;  %v7278_v29 = vadd.f32 %v5131_v27, %v5130_v23  ;;  %v6034_v22 = vld [vmem:[%s7630_s0 + $0x310] ss:$72 sps:$4 sm:$0xff]   ;;  %v6035_v26 = vld [vmem:[%s7630_s0 + $0x39c] ss:$72 sps:$4 sm:$0xff]  }
 0x1ee   : > { %4154 = vmatmul.mubr.bf16.gmra.mrb[120].mxu1 %v6015_v18  ;;  %4251 = vmatmul.mubr.bf16.gmra.mrb[120].mxu0 %v6016_v19  ;;  %v6037_v27 = vld [vmem:[%s7630_s0 + $0x3a4] ss:$72 sps:$4 sm:$0xff]  }
 0x1ef   : > { %4161 = vmatprep.mubr.bf16.mxu1 %v6017_v24  ;;  %4258 = vmatprep.mubr.bf16.mxu0 %v6019_v25 }
 0x1f1   : > { %v5149_v30 = vpop.f32.mrb[16].mxu1  ;;  %v5213_v31 = vpop.f32.mrb[16].mxu0 }
 0x1f2   : > { %v5150_v32 = vpop.f32.mrb[17].mxu1  ;;  %v5214_v33 = vpop.f32.mrb[17].mxu0 }
 0x1f3   : > { %v5151_v38 = vadd.f32 %v5150_v32, %v5149_v30  ;;  %v5215_v39 = vadd.f32 %v5214_v33, %v5213_v31  ;;  %v5152_v40 = vpop.f32.mrb[18].mxu1  ;;  %v5216_v41 = vpop.f32.mrb[18].mxu0 }
 0x1f4   : > { %v5153_v46 = vpop.f32.mrb[19].mxu1  ;;  %v5217_v47 = vpop.f32.mrb[19].mxu0 }
 0x1f5   : > { %v3558_v48 = vadd.f32 %v5151_v38, %v7206_v36  ;;  %v5154_v49 = vadd.f32 %v5153_v46, %v5152_v40  ;;  %v5218_v50 = vadd.f32 %v5217_v47, %v5216_v41  ;;  %v6027_v36 = vld [vmem:[%s7630_s0 + $0x278] ss:$72 sps:$4 sm:$0xff]  }
 0x1f6   : > { %4162 = vmatmul.mubr.bf16.gmra.mrb[124].mxu1 %v6021_v34  ;;  %4259 = vmatmul.mubr.bf16.gmra.mrb[124].mxu0 %v6022_v35  ;;  %v6040_v46 = vld [vmem:[%s7630_s0 + $0x3a0] ss:$72 sps:$4 sm:$0xff]  }
 0x1f7   : > { %v7293_v51 = vadd.f32 %v5215_v39, %v3558_v48  ;;  %v3561_v54 = vadd.f32 %v5154_v49, %v7216_v44  ;;  %4169 = vmatprep.mubr.bf16.mxu1 %v6023_v42  ;;  %4266 = vmatprep.mubr.bf16.mxu0 %v6025_v43 }
 0x1f9   : > { %v7296_v55 = vadd.f32 %v5218_v50, %v3561_v54  ;;  %v5155_v56 = vpop.f32.mrb[20].mxu1  ;;  %v5219_v57 = vpop.f32.mrb[20].mxu0  ;;  %v6041_v50 = vld [vmem:[%s7630_s0 + $0x42c] ss:$72 sps:$4 sm:$0xff]  }
 0x1fa   : > { %v5156_v58 = vpop.f32.mrb[21].mxu1  ;;  %v5220_v59 = vpop.f32.mrb[21].mxu0  ;;  %v6043_v54 = vld [vmem:[%s7630_s0 + $0x434] ss:$72 sps:$4 sm:$0xff]  }
 0x1fb   : > { %v5157_v63 = vadd.f32 %v5156_v58, %v5155_v56  ;;  %v5221_v0 = vadd.f32 %v5220_v59, %v5219_v57  ;;  %v5158_v1 = vpop.f32.mrb[22].mxu1  ;;  %v5222_v44 = vpop.f32.mrb[22].mxu0 }
 0x1fc   : > { %v5159_v6 = vpop.f32.mrb[23].mxu1  ;;  %v5223_v7 = vpop.f32.mrb[23].mxu0 }
 0x1fd   : > { %v3566_v8 = vadd.f32 %v5157_v63, %v7226_v52  ;;  %v5160_v9 = vadd.f32 %v5159_v6, %v5158_v1  ;;  %v5224_v10 = vadd.f32 %v5223_v7, %v5222_v44  ;;  %v6033_v52 = vld [vmem:[%s7630_s0 + $0x308] ss:$72 sps:$4 sm:$0xff]  }
 0x1fe   : > { %4170 = vmatmul.mubr.bf16.gmra.mrb[128].mxu1 %v6027_v36  ;;  %4267 = vmatmul.mubr.bf16.gmra.mrb[128].mxu0 %v6028_v62  ;;  %v6046_v6 = vld [vmem:[%s7630_s0 + $0x430] ss:$72 sps:$4 sm:$0xff]  }
 0x1ff   : > { %v7311_v11 = vadd.f32 %v5221_v0, %v3566_v8  ;;  %v3569_v14 = vadd.f32 %v5160_v9, %v7236_v60  ;;  %4177 = vmatprep.mubr.bf16.mxu1 %v6029_v2  ;;  %4274 = vmatprep.mubr.bf16.mxu0 %v6031_v3 }
 0x201   : > { %v7314_v15 = vadd.f32 %v5224_v10, %v3569_v14  ;;  %v5161_v16 = vpop.f32.mrb[24].mxu1  ;;  %v5225_v17 = vpop.f32.mrb[24].mxu0 }
 0x202   : > { %v5162_v18 = vpop.f32.mrb[25].mxu1  ;;  %v5226_v19 = vpop.f32.mrb[25].mxu0 }
 0x203   : > { %v5163_v23 = vadd.f32 %v5162_v18, %v5161_v16  ;;  %v5227_v24 = vadd.f32 %v5226_v19, %v5225_v17  ;;  %v5164_v25 = vpop.f32.mrb[26].mxu1  ;;  %v5228_v60 = vpop.f32.mrb[26].mxu0 }
 0x204   : > { %v5165_v30 = vpop.f32.mrb[27].mxu1  ;;  %v5229_v31 = vpop.f32.mrb[27].mxu0 }
 0x205   : > { %v3574_v32 = vadd.f32 %v5163_v23, %v7246_v4  ;;  %v5166_v33 = vadd.f32 %v5165_v30, %v5164_v25  ;;  %v5230_v34 = vadd.f32 %v5229_v31, %v5228_v60  ;;  %v6039_v4 = vld [vmem:[%s7630_s0 + $0x398] ss:$72 sps:$4 sm:$0xff]  }
 0x206   : > { %4178 = vmatmul.mubr.bf16.gmra.mrb[132].mxu1 %v6033_v52  ;;  %4275 = vmatmul.mubr.bf16.gmra.mrb[132].mxu0 %v6034_v22 }
 0x207   : > { %v7329_v35 = vadd.f32 %v5227_v24, %v3574_v32  ;;  %v3577_v38 = vadd.f32 %v5166_v33, %v7256_v12  ;;  %4185 = vmatprep.mubr.bf16.mxu1 %v6035_v26  ;;  %4282 = vmatprep.mubr.bf16.mxu0 %v6037_v27 }
 0x209   : > { %v7332_v39 = vadd.f32 %v5230_v34, %v3577_v38  ;;  %v5167_v40 = vpop.f32.mrb[28].mxu1  ;;  %v5231_v41 = vpop.f32.mrb[28].mxu0 }
 0x20a   : > { %v5168_v42 = vpop.f32.mrb[29].mxu1  ;;  %v5232_v43 = vpop.f32.mrb[29].mxu0 }
 0x20b   : > { %v5169_v47 = vadd.f32 %v5168_v42, %v5167_v40  ;;  %v5233_v48 = vadd.f32 %v5232_v43, %v5231_v41  ;;  %v5170_v49 = vpop.f32.mrb[30].mxu1  ;;  %v5234_v12 = vpop.f32.mrb[30].mxu0 }
 0x20c   : > { %v5171_v56 = vpop.f32.mrb[31].mxu1  ;;  %v5235_v57 = vpop.f32.mrb[31].mxu0 }
 0x20d   : > { %v3582_v58 = vadd.f32 %v5169_v47, %v7266_v20  ;;  %v5172_v59 = vadd.f32 %v5171_v56, %v5170_v49  ;;  %v5236_v36 = vadd.f32 %v5235_v57, %v5234_v12  ;;  %v6045_v20 = vld [vmem:[%s7630_s0 + $0x428] ss:$72 sps:$4 sm:$0xff]  }
 0x20e   : > { %4186 = vmatmul.mubr.bf16.gmra.mrb[136].mxu1 %v6039_v4  ;;  %4283 = vmatmul.mubr.bf16.gmra.mrb[136].mxu0 %v6040_v46 }
 0x20f   : > { %v7347_v62 = vadd.f32 %v5233_v48, %v3582_v58  ;;  %v3585_v63 = vadd.f32 %v5172_v59, %v7276_v28  ;;  %4193 = vmatprep.mubr.bf16.mxu1 %v6041_v50  ;;  %4290 = vmatprep.mubr.bf16.mxu0 %v6043_v54 }
 0x211   : > { %v7350_v0 = vadd.f32 %v5236_v36, %v3585_v63  ;;  %v5173_v1 = vpop.f32.mrb[32].mxu1  ;;  %v5237_v44 = vpop.f32.mrb[32].mxu0 }
 0x212   : > { %v5174_v2 = vpop.f32.mrb[33].mxu1  ;;  %v5238_v3 = vpop.f32.mrb[33].mxu0 }
 0x213   : > { %v5175_v7 = vadd.f32 %v5174_v2, %v5173_v1  ;;  %v5239_v8 = vadd.f32 %v5238_v3, %v5237_v44  ;;  %v5176_v9 = vpop.f32.mrb[34].mxu1  ;;  %v5240_v28 = vpop.f32.mrb[34].mxu0 }
 0x214   : > { %v5177_v10 = vpop.f32.mrb[35].mxu1  ;;  %v5241_v14 = vpop.f32.mrb[35].mxu0 }
 0x215   : > { %v3590_v16 = vadd.f32 %v5175_v7, %v7208_v37  ;;  %v5178_v17 = vadd.f32 %v5177_v10, %v5176_v9  ;;  %v5242_v18 = vadd.f32 %v5241_v14, %v5240_v28 }
 0x216   : > { %4194 = vmatmul.mubr.bf16.gmra.mrb[140].mxu1 %v6045_v20  ;;  %4291 = vmatmul.mubr.bf16.gmra.mrb[140].mxu0 %v6046_v6 }
 0x217   : > { %v7359_v19 = vadd.f32 %v5239_v8, %v3590_v16  ;;  %v3593_v52 = vadd.f32 %v5178_v17, %v7218_v45 }
 0x219   : > { %v7362_v22 = vadd.f32 %v5242_v18, %v3593_v52  ;;  %v5179_v23 = vpop.f32.mrb[36].mxu1  ;;  %v5243_v24 = vpop.f32.mrb[36].mxu0 }
 0x21a   : > { %v5180_v25 = vpop.f32.mrb[37].mxu1  ;;  %v5244_v60 = vpop.f32.mrb[37].mxu0 }
 0x21b   : > { %v5181_v26 = vadd.f32 %v5180_v25, %v5179_v23  ;;  %v5245_v27 = vadd.f32 %v5244_v60, %v5243_v24  ;;  %v5182_v30 = vpop.f32.mrb[38].mxu1  ;;  %v5246_v31 = vpop.f32.mrb[38].mxu0 }
 0x21c   : > { %v5183_v32 = vpop.f32.mrb[39].mxu1  ;;  %v5247_v37 = vpop.f32.mrb[39].mxu0 }
 0x21d   : > { %v3598_v33 = vadd.f32 %v5181_v26, %v7228_v53  ;;  %v5184_v34 = vadd.f32 %v5183_v32, %v5182_v30  ;;  %v5248_v38 = vadd.f32 %v5247_v37, %v5246_v31 }
 0x21f   : > { %v7365_v40 = vadd.f32 %v5245_v27, %v3598_v33  ;;  %v3601_v45 = vadd.f32 %v5184_v34, %v7238_v61 }
 0x221   : > { %v7368_v41 = vadd.f32 %v5248_v38, %v3601_v45  ;;  %v5185_v42 = vpop.f32.mrb[40].mxu1  ;;  %v5249_v43 = vpop.f32.mrb[40].mxu0 }
 0x222   : > { %v5186_v4 = vpop.f32.mrb[41].mxu1  ;;  %v5250_v46 = vpop.f32.mrb[41].mxu0 }
 0x223   : > { %v5187_v47 = vadd.f32 %v5186_v4, %v5185_v42  ;;  %v5251_v48 = vadd.f32 %v5250_v46, %v5249_v43  ;;  %v5188_v49 = vpop.f32.mrb[42].mxu1  ;;  %v5252_v12 = vpop.f32.mrb[42].mxu0 }
 0x224   : > { %v5189_v50 = vpop.f32.mrb[43].mxu1  ;;  %v5253_v54 = vpop.f32.mrb[43].mxu0 }
 0x225   : > { %v3606_v53 = vadd.f32 %v5187_v47, %v7248_v5  ;;  %v5190_v56 = vadd.f32 %v5189_v50, %v5188_v49  ;;  %v5254_v57 = vadd.f32 %v5253_v54, %v5252_v12 }
 0x227   : > { %v7371_v58 = vadd.f32 %v5251_v48, %v3606_v53  ;;  %v3609_v61 = vadd.f32 %v5190_v56, %v7258_v13 }
 0x229   : > { %v7374_v59 = vadd.f32 %v5254_v57, %v3609_v61  ;;  %v5191_v36 = vpop.f32.mrb[44].mxu1  ;;  %v5255_v63 = vpop.f32.mrb[44].mxu0 }
 0x22a   : > { %v5192_v1 = vpop.f32.mrb[45].mxu1  ;;  %v5256_v44 = vpop.f32.mrb[45].mxu0 }
 0x22b   : > { %v5193_v2 = vadd.f32 %v5192_v1, %v5191_v36  ;;  %v5257_v3 = vadd.f32 %v5256_v44, %v5255_v63  ;;  %v5194_v20 = vpop.f32.mrb[46].mxu1  ;;  %v5258_v6 = vpop.f32.mrb[46].mxu0 }
 0x22c   : > { %v5195_v7 = vpop.f32.mrb[47].mxu1  ;;  %v5259_v8 = vpop.f32.mrb[47].mxu0 }
 0x22d   : > { %v3614_v5 = vadd.f32 %v5193_v2, %v7268_v21  ;;  %v5196_v9 = vadd.f32 %v5195_v7, %v5194_v20  ;;  %v5260_v28 = vadd.f32 %v5259_v8, %v5258_v6 }
 0x22f   : > { %v7377_v10 = vadd.f32 %v5257_v3, %v3614_v5  ;;  %v3617_v13 = vadd.f32 %v5196_v9, %v7278_v29 }
 0x231   : > { %v7380_v14 = vadd.f32 %v5260_v28, %v3617_v13  ;;  %v5277_v16 = vpop.f32.mrb[48].mxu1  ;;  %v5341_v17 = vpop.f32.mrb[48].mxu0 }
 0x232   : > { %v5278_v18 = vpop.f32.mrb[49].mxu1  ;;  %v5342_v52 = vpop.f32.mrb[49].mxu0 }
 0x233   : > { %v5279_v23 = vadd.f32 %v5278_v18, %v5277_v16  ;;  %v5343_v24 = vadd.f32 %v5342_v52, %v5341_v17  ;;  %v5280_v25 = vpop.f32.mrb[50].mxu1  ;;  %v5344_v60 = vpop.f32.mrb[50].mxu0 }
 0x234   : > { %v5281_v26 = vpop.f32.mrb[51].mxu1  ;;  %v5345_v27 = vpop.f32.mrb[51].mxu0 }
 0x235   : > { %v3752_v21 = vadd.f32 %v5279_v23, %v7293_v51  ;;  %v5282_v30 = vadd.f32 %v5281_v26, %v5280_v25  ;;  %v5346_v31 = vadd.f32 %v5345_v27, %v5344_v60 }
 0x237   : > { %v7383_v32 = vadd.f32 %v5343_v24, %v3752_v21  ;;  %v3755_v29 = vadd.f32 %v5282_v30, %v7296_v55 }
 0x239   : > { %v7386_v37 = vadd.f32 %v5346_v31, %v3755_v29  ;;  %v5283_v33 = vpop.f32.mrb[52].mxu1  ;;  %v5347_v34 = vpop.f32.mrb[52].mxu0 }
 0x23a   : > { %v5284_v38 = vpop.f32.mrb[53].mxu1  ;;  %v5348_v45 = vpop.f32.mrb[53].mxu0 }
 0x23b   : > { %v5285_v42 = vadd.f32 %v5284_v38, %v5283_v33  ;;  %v5349_v43 = vadd.f32 %v5348_v45, %v5347_v34  ;;  %v5286_v4 = vpop.f32.mrb[54].mxu1  ;;  %v5350_v46 = vpop.f32.mrb[54].mxu0 }
 0x23c   : > { %v5287_v47 = vpop.f32.mrb[55].mxu1  ;;  %v5351_v48 = vpop.f32.mrb[55].mxu0 }
 0x23d   : > { %v3760_v51 = vadd.f32 %v5285_v42, %v7311_v11  ;;  %v5288_v49 = vadd.f32 %v5287_v47, %v5286_v4  ;;  %v5352_v12 = vadd.f32 %v5351_v48, %v5350_v46 }
 0x23f   : > { %v7389_v50 = vadd.f32 %v5349_v43, %v3760_v51  ;;  %v3763_v55 = vadd.f32 %v5288_v49, %v7314_v15 }
 0x241   : > { %v7392_v54 = vadd.f32 %v5352_v12, %v3763_v55  ;;  %v5289_v53 = vpop.f32.mrb[56].mxu1  ;;  %v5353_v56 = vpop.f32.mrb[56].mxu0 }
 0x242   : > { %v5290_v57 = vpop.f32.mrb[57].mxu1  ;;  %v5354_v61 = vpop.f32.mrb[57].mxu0 }
 0x243   : > { %v5291_v36 = vadd.f32 %v5290_v57, %v5289_v53  ;;  %v5355_v63 = vadd.f32 %v5354_v61, %v5353_v56  ;;  %v5292_v1 = vpop.f32.mrb[58].mxu1  ;;  %v5356_v44 = vpop.f32.mrb[58].mxu0 }
 0x244   : > { %v5293_v2 = vpop.f32.mrb[59].mxu1  ;;  %v5357_v3 = vpop.f32.mrb[59].mxu0 }
 0x245   : > { %v3768_v11 = vadd.f32 %v5291_v36, %v7329_v35  ;;  %v5294_v20 = vadd.f32 %v5293_v2, %v5292_v1  ;;  %v5358_v6 = vadd.f32 %v5357_v3, %v5356_v44 }
 0x247   : > { %v7395_v7 = vadd.f32 %v5355_v63, %v3768_v11  ;;  %v3771_v15 = vadd.f32 %v5294_v20, %v7332_v39 }
 0x249   : > { %v7398_v8 = vadd.f32 %v5358_v6, %v3771_v15  ;;  %v5295_v5 = vpop.f32.mrb[60].mxu1  ;;  %v5359_v9 = vpop.f32.mrb[60].mxu0 }
 0x24a   : > { %v5296_v28 = vpop.f32.mrb[61].mxu1  ;;  %v5360_v13 = vpop.f32.mrb[61].mxu0 }
 0x24b   : > { %v5297_v16 = vadd.f32 %v5296_v28, %v5295_v5  ;;  %v5361_v17 = vadd.f32 %v5360_v13, %v5359_v9  ;;  %v5298_v18 = vpop.f32.mrb[62].mxu1  ;;  %v5362_v52 = vpop.f32.mrb[62].mxu0 }
 0x24c   : > { %v5299_v23 = vpop.f32.mrb[63].mxu1  ;;  %v5363_v24 = vpop.f32.mrb[63].mxu0 }
 0x24d   : > { %v3776_v35 = vadd.f32 %v5297_v16, %v7347_v62  ;;  %v5300_v25 = vadd.f32 %v5299_v23, %v5298_v18  ;;  %v5364_v60 = vadd.f32 %v5363_v24, %v5362_v52 }
 0x24f   : > { %v7401_v26 = vadd.f32 %v5361_v17, %v3776_v35  ;;  %v3779_v39 = vadd.f32 %v5300_v25, %v7350_v0 }
 0x251   : > { %v7404_v27 = vadd.f32 %v5364_v60, %v3779_v39  ;;  %v5301_v21 = vpop.f32.mrb[64].mxu1  ;;  %v5365_v30 = vpop.f32.mrb[64].mxu0 }
 0x252   : > { %v5302_v31 = vpop.f32.mrb[65].mxu1  ;;  %v5366_v29 = vpop.f32.mrb[65].mxu0 }
 0x253   : > { %v5303_v33 = vadd.f32 %v5302_v31, %v5301_v21  ;;  %v5367_v34 = vadd.f32 %v5366_v29, %v5365_v30  ;;  %v5304_v38 = vpop.f32.mrb[66].mxu1  ;;  %v5368_v45 = vpop.f32.mrb[66].mxu0 }
 0x254   : > { %v5305_v42 = vpop.f32.mrb[67].mxu1  ;;  %v5369_v43 = vpop.f32.mrb[67].mxu0 }
 0x255   : > { %v3784_v62 = vadd.f32 %v5303_v33, %v7359_v19  ;;  %v5306_v4 = vadd.f32 %v5305_v42, %v5304_v38  ;;  %v5370_v46 = vadd.f32 %v5369_v43, %v5368_v45 }
 0x257   : > { %v7407_v47 = vadd.f32 %v5367_v34, %v3784_v62  ;;  %v3787_v0 = vadd.f32 %v5306_v4, %v7362_v22 }
 0x259   : > { %v7410_v48 = vadd.f32 %v5370_v46, %v3787_v0  ;;  %v5307_v51 = vpop.f32.mrb[68].mxu1  ;;  %v5371_v49 = vpop.f32.mrb[68].mxu0 }
 0x25a   : > { %v5308_v12 = vpop.f32.mrb[69].mxu1  ;;  %v5372_v55 = vpop.f32.mrb[69].mxu0 }
 0x25b   : > { %v5309_v53 = vadd.f32 %v5308_v12, %v5307_v51  ;;  %v5373_v56 = vadd.f32 %v5372_v55, %v5371_v49  ;;  %v5310_v57 = vpop.f32.mrb[70].mxu1  ;;  %v5374_v61 = vpop.f32.mrb[70].mxu0 }
 0x25c   : > { %v5311_v36 = vpop.f32.mrb[71].mxu1  ;;  %v5375_v63 = vpop.f32.mrb[71].mxu0 }
 0x25d   : > { %v3792_v19 = vadd.f32 %v5309_v53, %v7365_v40  ;;  %v5312_v1 = vadd.f32 %v5311_v36, %v5310_v57  ;;  %v5376_v44 = vadd.f32 %v5375_v63, %v5374_v61 }
 0x25f   : > { %v7413_v2 = vadd.f32 %v5373_v56, %v3792_v19  ;;  %v3795_v22 = vadd.f32 %v5312_v1, %v7368_v41 }
 0x261   : > { %v7416_v3 = vadd.f32 %v5376_v44, %v3795_v22  ;;  %v5313_v11 = vpop.f32.mrb[72].mxu1  ;;  %v5377_v20 = vpop.f32.mrb[72].mxu0 }
 0x262   : > { %v5314_v6 = vpop.f32.mrb[73].mxu1  ;;  %v5378_v15 = vpop.f32.mrb[73].mxu0 }
 0x263   : > { %v5315_v5 = vadd.f32 %v5314_v6, %v5313_v11  ;;  %v5379_v9 = vadd.f32 %v5378_v15, %v5377_v20  ;;  %v5316_v28 = vpop.f32.mrb[74].mxu1  ;;  %v5380_v13 = vpop.f32.mrb[74].mxu0 }
 0x264   : > { %v5317_v16 = vpop.f32.mrb[75].mxu1  ;;  %v5381_v17 = vpop.f32.mrb[75].mxu0 }
 0x265   : > { %v3800_v40 = vadd.f32 %v5315_v5, %v7371_v58  ;;  %v5318_v18 = vadd.f32 %v5317_v16, %v5316_v28  ;;  %v5382_v52 = vadd.f32 %v5381_v17, %v5380_v13 }
 0x267   : > { %v7419_v23 = vadd.f32 %v5379_v9, %v3800_v40  ;;  %v3803_v41 = vadd.f32 %v5318_v18, %v7374_v59 }
 0x269   : > { %v7422_v24 = vadd.f32 %v5382_v52, %v3803_v41  ;;  %v5319_v35 = vpop.f32.mrb[76].mxu1  ;;  %v5383_v25 = vpop.f32.mrb[76].mxu0 }
 0x26a   : > { %v5320_v60 = vpop.f32.mrb[77].mxu1  ;;  %v5384_v39 = vpop.f32.mrb[77].mxu0 }
 0x26b   : > { %v5321_v21 = vadd.f32 %v5320_v60, %v5319_v35  ;;  %v5385_v30 = vadd.f32 %v5384_v39, %v5383_v25  ;;  %v5322_v31 = vpop.f32.mrb[78].mxu1  ;;  %v5386_v29 = vpop.f32.mrb[78].mxu0 }
 0x26c   : > { %v5323_v33 = vpop.f32.mrb[79].mxu1  ;;  %v5387_v34 = vpop.f32.mrb[79].mxu0 }
 0x26d   : > { %v3808_v58 = vadd.f32 %v5321_v21, %v7377_v10  ;;  %v5324_v38 = vadd.f32 %v5323_v33, %v5322_v31  ;;  %v5388_v45 = vadd.f32 %v5387_v34, %v5386_v29 }
 0x26f   : > { %v7425_v42 = vadd.f32 %v5385_v30, %v3808_v58  ;;  %v3811_v59 = vadd.f32 %v5324_v38, %v7380_v14 }
 0x271   : > { %v7428_v43 = vadd.f32 %v5388_v45, %v3811_v59  ;;  %v5405_v62 = vpop.f32.mrb[80].mxu1  ;;  %v5469_v4 = vpop.f32.mrb[80].mxu0 }
 0x272   : > { %v5406_v46 = vpop.f32.mrb[81].mxu1  ;;  %v5470_v0 = vpop.f32.mrb[81].mxu0 }
 0x273   : > { %v5407_v51 = vadd.f32 %v5406_v46, %v5405_v62  ;;  %v5471_v49 = vadd.f32 %v5470_v0, %v5469_v4  ;;  %v5408_v12 = vpop.f32.mrb[82].mxu1  ;;  %v5472_v55 = vpop.f32.mrb[82].mxu0 }
 0x274   : > { %v5409_v53 = vpop.f32.mrb[83].mxu1  ;;  %v5473_v56 = vpop.f32.mrb[83].mxu0 }
 0x275   : > { %v3946_v10 = vadd.f32 %v5407_v51, %v7383_v32  ;;  %v5410_v57 = vadd.f32 %v5409_v53, %v5408_v12  ;;  %v5474_v61 = vadd.f32 %v5473_v56, %v5472_v55 }
 0x277   : > { %v7431_v36 = vadd.f32 %v5471_v49, %v3946_v10  ;;  %v3949_v14 = vadd.f32 %v5410_v57, %v7386_v37 }
 0x279   : > { %v7434_v63 = vadd.f32 %v5474_v61, %v3949_v14  ;;  %v5411_v19 = vpop.f32.mrb[84].mxu1  ;;  %v5475_v1 = vpop.f32.mrb[84].mxu0 }
 0x27a   : > { %v5412_v44 = vpop.f32.mrb[85].mxu1  ;;  %v5476_v22 = vpop.f32.mrb[85].mxu0 }
 0x27b   : > { %v5413_v11 = vadd.f32 %v5412_v44, %v5411_v19  ;;  %v5477_v20 = vadd.f32 %v5476_v22, %v5475_v1  ;;  %v5414_v6 = vpop.f32.mrb[86].mxu1  ;;  %v5478_v15 = vpop.f32.mrb[86].mxu0 }
 0x27c   : > { %v5415_v5 = vpop.f32.mrb[87].mxu1  ;;  %v5479_v9 = vpop.f32.mrb[87].mxu0 }
 0x27d   : > { %v3954_v32 = vadd.f32 %v5413_v11, %v7389_v50  ;;  %v5416_v28 = vadd.f32 %v5415_v5, %v5414_v6  ;;  %v5480_v13 = vadd.f32 %v5479_v9, %v5478_v15 }
 0x27f   : > { %v7437_v16 = vadd.f32 %v5477_v20, %v3954_v32  ;;  %v3957_v37 = vadd.f32 %v5416_v28, %v7392_v54 }
 0x281   : > { %v7440_v17 = vadd.f32 %v5480_v13, %v3957_v37  ;;  %v5417_v40 = vpop.f32.mrb[88].mxu1  ;;  %v5481_v18 = vpop.f32.mrb[88].mxu0 }
 0x282   : > { %v5418_v52 = vpop.f32.mrb[89].mxu1  ;;  %v5482_v41 = vpop.f32.mrb[89].mxu0 }
 0x283   : > { %v5419_v35 = vadd.f32 %v5418_v52, %v5417_v40  ;;  %v5483_v25 = vadd.f32 %v5482_v41, %v5481_v18  ;;  %v5420_v60 = vpop.f32.mrb[90].mxu1  ;;  %v5484_v39 = vpop.f32.mrb[90].mxu0 }
 0x284   : > { %v5421_v21 = vpop.f32.mrb[91].mxu1  ;;  %v5485_v30 = vpop.f32.mrb[91].mxu0 }
 0x285   : > { %v3962_v50 = vadd.f32 %v5419_v35, %v7395_v7  ;;  %v5422_v31 = vadd.f32 %v5421_v21, %v5420_v60  ;;  %v5486_v29 = vadd.f32 %v5485_v30, %v5484_v39 }
 0x287   : > { %v7443_v33 = vadd.f32 %v5483_v25, %v3962_v50  ;;  %v3965_v54 = vadd.f32 %v5422_v31, %v7398_v8 }
 0x289   : > { %v7446_v34 = vadd.f32 %v5486_v29, %v3965_v54  ;;  %v5423_v58 = vpop.f32.mrb[92].mxu1  ;;  %v5487_v38 = vpop.f32.mrb[92].mxu0 }
 0x28a   : > { %v5424_v45 = vpop.f32.mrb[93].mxu1  ;;  %v5488_v59 = vpop.f32.mrb[93].mxu0 }
 0x28b   : > { %v5425_v62 = vadd.f32 %v5424_v45, %v5423_v58  ;;  %v5489_v4 = vadd.f32 %v5488_v59, %v5487_v38  ;;  %v5426_v46 = vpop.f32.mrb[94].mxu1  ;;  %v5490_v0 = vpop.f32.mrb[94].mxu0 }
 0x28c   : > { %v5427_v51 = vpop.f32.mrb[95].mxu1  ;;  %v5491_v49 = vpop.f32.mrb[95].mxu0 }
 0x28d   : > { %v3970_v7 = vadd.f32 %v5425_v62, %v7401_v26  ;;  %v5428_v12 = vadd.f32 %v5427_v51, %v5426_v46  ;;  %v5492_v55 = vadd.f32 %v5491_v49, %v5490_v0 }
 0x28f   : > { %v7449_v53 = vadd.f32 %v5489_v4, %v3970_v7  ;;  %v3973_v8 = vadd.f32 %v5428_v12, %v7404_v27 }
 0x291   : > { %v7452_v56 = vadd.f32 %v5492_v55, %v3973_v8  ;;  %v5429_v10 = vpop.f32.mrb[96].mxu1  ;;  %v5493_v57 = vpop.f32.mrb[96].mxu0 }
 0x292   : > { %v5430_v61 = vpop.f32.mrb[97].mxu1  ;;  %v5494_v14 = vpop.f32.mrb[97].mxu0 }
 0x293   : > { %v5431_v19 = vadd.f32 %v5430_v61, %v5429_v10  ;;  %v5495_v1 = vadd.f32 %v5494_v14, %v5493_v57  ;;  %v5432_v44 = vpop.f32.mrb[98].mxu1  ;;  %v5496_v22 = vpop.f32.mrb[98].mxu0 }
 0x294   : > { %v5433_v11 = vpop.f32.mrb[99].mxu1  ;;  %v5497_v20 = vpop.f32.mrb[99].mxu0 }
 0x295   : > { %v3978_v26 = vadd.f32 %v5431_v19, %v7407_v47  ;;  %v5434_v6 = vadd.f32 %v5433_v11, %v5432_v44  ;;  %v5498_v15 = vadd.f32 %v5497_v20, %v5496_v22 }
 0x297   : > { %v7455_v5 = vadd.f32 %v5495_v1, %v3978_v26  ;;  %v3981_v27 = vadd.f32 %v5434_v6, %v7410_v48 }
 0x299   : > { %v7458_v9 = vadd.f32 %v5498_v15, %v3981_v27  ;;  %v5435_v32 = vpop.f32.mrb[100].mxu1  ;;  %v5499_v28 = vpop.f32.mrb[100].mxu0 }
 0x29a   : > { %v5436_v13 = vpop.f32.mrb[101].mxu1  ;;  %v5500_v37 = vpop.f32.mrb[101].mxu0 }
 0x29b   : > { %v5437_v40 = vadd.f32 %v5436_v13, %v5435_v32  ;;  %v5501_v18 = vadd.f32 %v5500_v37, %v5499_v28  ;;  %v5438_v52 = vpop.f32.mrb[102].mxu1  ;;  %v5502_v41 = vpop.f32.mrb[102].mxu0 }
 0x29c   : > { %v5439_v35 = vpop.f32.mrb[103].mxu1  ;;  %v5503_v25 = vpop.f32.mrb[103].mxu0 }
 0x29d   : > { %v3986_v47 = vadd.f32 %v5437_v40, %v7413_v2  ;;  %v5440_v60 = vadd.f32 %v5439_v35, %v5438_v52  ;;  %v5504_v39 = vadd.f32 %v5503_v25, %v5502_v41 }
 0x29f   : > { %v7461_v21 = vadd.f32 %v5501_v18, %v3986_v47  ;;  %v3989_v48 = vadd.f32 %v5440_v60, %v7416_v3 }
 0x2a1   : > { %v7464_v30 = vadd.f32 %v5504_v39, %v3989_v48  ;;  %v5441_v50 = vpop.f32.mrb[104].mxu1  ;;  %v5505_v31 = vpop.f32.mrb[104].mxu0 }
 0x2a2   : > { %v5442_v29 = vpop.f32.mrb[105].mxu1  ;;  %v5506_v54 = vpop.f32.mrb[105].mxu0 }
 0x2a3   : > { %v5443_v58 = vadd.f32 %v5442_v29, %v5441_v50  ;;  %v5507_v38 = vadd.f32 %v5506_v54, %v5505_v31  ;;  %v5444_v45 = vpop.f32.mrb[106].mxu1  ;;  %v5508_v59 = vpop.f32.mrb[106].mxu0 }
 0x2a4   : > { %v5445_v62 = vpop.f32.mrb[107].mxu1  ;;  %v5509_v4 = vpop.f32.mrb[107].mxu0 }
 0x2a5   : > { %v3994_v2 = vadd.f32 %v5443_v58, %v7419_v23  ;;  %v5446_v46 = vadd.f32 %v5445_v62, %v5444_v45  ;;  %v5510_v0 = vadd.f32 %v5509_v4, %v5508_v59 }
 0x2a7   : > { %v7467_v51 = vadd.f32 %v5507_v38, %v3994_v2  ;;  %v3997_v3 = vadd.f32 %v5446_v46, %v7422_v24 }
 0x2a9   : > { %v7470_v49 = vadd.f32 %v5510_v0, %v3997_v3  ;;  %v5447_v7 = vpop.f32.mrb[108].mxu1  ;;  %v5511_v12 = vpop.f32.mrb[108].mxu0 }
 0x2aa   : > { %v5448_v55 = vpop.f32.mrb[109].mxu1  ;;  %v5512_v8 = vpop.f32.mrb[109].mxu0 }
 0x2ab   : > { %v5449_v10 = vadd.f32 %v5448_v55, %v5447_v7  ;;  %v5513_v57 = vadd.f32 %v5512_v8, %v5511_v12  ;;  %v5450_v61 = vpop.f32.mrb[110].mxu1  ;;  %v5514_v14 = vpop.f32.mrb[110].mxu0 }
 0x2ac   : > { %v5451_v19 = vpop.f32.mrb[111].mxu1  ;;  %v5515_v1 = vpop.f32.mrb[111].mxu0 }
 0x2ad   : > { %v4002_v23 = vadd.f32 %v5449_v10, %v7425_v42  ;;  %v5452_v44 = vadd.f32 %v5451_v19, %v5450_v61  ;;  %v5516_v22 = vadd.f32 %v5515_v1, %v5514_v14 }
 0x2af   : > { %v7473_v11 = vadd.f32 %v5513_v57, %v4002_v23  ;;  %v4005_v24 = vadd.f32 %v5452_v44, %v7428_v43 }
 0x2b1   : > { %v7476_v20 = vadd.f32 %v5516_v22, %v4005_v24  ;;  %v5533_v26 = vpop.f32.mrb[112].mxu1  ;;  %v5597_v6 = vpop.f32.mrb[112].mxu0 }
 0x2b2   : > { %v5534_v15 = vpop.f32.mrb[113].mxu1  ;;  %v5598_v27 = vpop.f32.mrb[113].mxu0 }
 0x2b3   : > { %v5535_v32 = vadd.f32 %v5534_v15, %v5533_v26  ;;  %v5599_v28 = vadd.f32 %v5598_v27, %v5597_v6  ;;  %v5536_v13 = vpop.f32.mrb[114].mxu1  ;;  %v5600_v37 = vpop.f32.mrb[114].mxu0 }
 0x2b4   : > { %v5537_v40 = vpop.f32.mrb[115].mxu1  ;;  %v5601_v18 = vpop.f32.mrb[115].mxu0 }
 0x2b5   : > { %v4140_v42 = vadd.f32 %v5535_v32, %v7431_v36  ;;  %v5538_v52 = vadd.f32 %v5537_v40, %v5536_v13  ;;  %v5602_v41 = vadd.f32 %v5601_v18, %v5600_v37 }
 0x2b7   : > { %v7479_v35 = vadd.f32 %v5599_v28, %v4140_v42  ;;  %v4143_v43 = vadd.f32 %v5538_v52, %v7434_v63 }
 0x2b9   : > { %v7482_v25 = vadd.f32 %v5602_v41, %v4143_v43  ;;  %v5539_v47 = vpop.f32.mrb[116].mxu1  ;;  %v5603_v60 = vpop.f32.mrb[116].mxu0  ;;  %v4320_v2 = vmul.f32 %v7479_v35, %v7479_v35 }
 0x2ba   : > { %v5540_v39 = vpop.f32.mrb[117].mxu1  ;;  %v5604_v48 = vpop.f32.mrb[117].mxu0 }
 0x2bb   : > { %v5541_v50 = vadd.f32 %v5540_v39, %v5539_v47  ;;  %v5605_v31 = vadd.f32 %v5604_v48, %v5603_v60  ;;  %v5542_v29 = vpop.f32.mrb[118].mxu1  ;;  %v5606_v54 = vpop.f32.mrb[118].mxu0  ;;  %v4321_v62 = vmul.f32 %v7482_v25, %v7482_v25  ;;  %v4299_v46 = vadd.f32 %v7482_v25, %v7479_v35 }
 0x2bc   : > { %v5543_v58 = vpop.f32.mrb[119].mxu1  ;;  %v5607_v38 = vpop.f32.mrb[119].mxu0 }
 0x2bd   : > { %v4148_v36 = vadd.f32 %v5541_v50, %v7437_v16  ;;  %v5544_v45 = vadd.f32 %v5543_v58, %v5542_v29  ;;  %v5608_v59 = vadd.f32 %v5607_v38, %v5606_v54  ;;  %v4336_v12 = vadd.f32 %v4321_v62, %v4320_v2 }
 0x2bf   : > { %v7487_v63 = vadd.f32 %v5605_v31, %v4148_v36  ;;  %v4151_v4 = vadd.f32 %v5544_v45, %v7440_v17 }
 0x2c1   : > { %v4322_v0 = vmul.f32 %v7487_v63, %v7487_v63  ;;  %v7496_v3 = vadd.f32 %v5608_v59, %v4151_v4  ;;  %v5545_v16 = vpop.f32.mrb[120].mxu1  ;;  %v5609_v7 = vpop.f32.mrb[120].mxu0  ;;  %v4300_v10 = vadd.f32 %v4299_v46, %v7487_v63 }
 0x2c2   : > { %v5546_v55 = vpop.f32.mrb[121].mxu1  ;;  %v5610_v8 = vpop.f32.mrb[121].mxu0 }
 0x2c3   : > { %v5547_v57 = vadd.f32 %v5546_v55, %v5545_v16  ;;  %v5548_v17 = vpop.f32.mrb[122].mxu1  ;;  %v5612_v61 = vpop.f32.mrb[122].mxu0  ;;  %v4337_v14 = vadd.f32 %v4336_v12, %v4322_v0  ;;  %v5611_v19 = vadd.f32 %v5610_v8, %v5609_v7  ;;  %v4323_v44 = vmul.f32 %v7496_v3, %v7496_v3 }
 0x2c4   : > { %v5549_v1 = vpop.f32.mrb[123].mxu1  ;;  %v5613_v23 = vpop.f32.mrb[123].mxu0  ;;  %v4301_v6 = vadd.f32 %v4300_v10, %v7496_v3 }
 0x2c5   : > { %v4156_v22 = vadd.f32 %v5547_v57, %v7443_v33  ;;  %v5550_v24 = vadd.f32 %v5549_v1, %v5548_v17  ;;  %v5614_v26 = vadd.f32 %v5613_v23, %v5612_v61  ;;  %v4338_v32 = vadd.f32 %v4337_v14, %v4323_v44 }
 0x2c7   : > { %v7503_v15 = vadd.f32 %v5611_v19, %v4156_v22  ;;  %v4159_v27 = vadd.f32 %v5550_v24, %v7446_v34 }
 0x2c9   : > { %v4302_v28 = vadd.f32 %v4301_v6, %v7503_v15  ;;  %v4324_v13 = vmul.f32 %v7503_v15, %v7503_v15  ;;  %v7509_v37 = vadd.f32 %v5614_v26, %v4159_v27  ;;  %v5551_v40 = vpop.f32.mrb[124].mxu1  ;;  %v5615_v18 = vpop.f32.mrb[124].mxu0 }
 0x2ca   : > { %v5552_v42 = vpop.f32.mrb[125].mxu1  ;;  %v5616_v33 = vpop.f32.mrb[125].mxu0 }
 0x2cb   : > { %v4339_v52 = vadd.f32 %v4338_v32, %v4324_v13  ;;  %v4303_v41 = vadd.f32 %v4302_v28, %v7509_v37  ;;  %v4325_v43 = vmul.f32 %v7509_v37, %v7509_v37  ;;  %v5553_v47 = vadd.f32 %v5552_v42, %v5551_v40  ;;  %v5554_v34 = vpop.f32.mrb[126].mxu1  ;;  %v5618_v60 = vpop.f32.mrb[126].mxu0 }
 0x2cc   : > { %v5617_v39 = vadd.f32 %v5616_v33, %v5615_v18  ;;  %v5555_v48 = vpop.f32.mrb[127].mxu1  ;;  %v5619_v50 = vpop.f32.mrb[127].mxu0 }
 0x2cd   : > { %v4340_v31 = vadd.f32 %v4339_v52, %v4325_v43  ;;  %v4164_v29 = vadd.f32 %v5553_v47, %v7449_v53  ;;  %v5556_v54 = vadd.f32 %v5555_v48, %v5554_v34  ;;  %v5620_v58 = vadd.f32 %v5619_v50, %v5618_v60 }
 0x2cf   : > { %v7515_v38 = vadd.f32 %v5617_v39, %v4164_v29  ;;  %v4167_v36 = vadd.f32 %v5556_v54, %v7452_v56 }
 0x2d1   : > { %v4304_v45 = vadd.f32 %v4303_v41, %v7515_v38  ;;  %v4326_v59 = vmul.f32 %v7515_v38, %v7515_v38  ;;  %v7521_v62 = vadd.f32 %v5620_v58, %v4167_v36  ;;  %v5557_v4 = vpop.f32.mrb[128].mxu1  ;;  %v5621_v2 = vpop.f32.mrb[128].mxu0 }
 0x2d2   : > { %v5558_v46 = vpop.f32.mrb[129].mxu1  ;;  %v5622_v0 = vpop.f32.mrb[129].mxu0 }
 0x2d3   : > { %v4341_v16 = vadd.f32 %v4340_v31, %v4326_v59  ;;  %v4305_v53 = vadd.f32 %v4304_v45, %v7521_v62  ;;  %v4327_v7 = vmul.f32 %v7521_v62, %v7521_v62  ;;  %v5559_v12 = vadd.f32 %v5558_v46, %v5557_v4  ;;  %v5560_v55 = vpop.f32.mrb[130].mxu1  ;;  %v5624_v56 = vpop.f32.mrb[130].mxu0 }
 0x2d4   : > { %v5623_v8 = vadd.f32 %v5622_v0, %v5621_v2  ;;  %v5561_v10 = vpop.f32.mrb[131].mxu1  ;;  %v5625_v57 = vpop.f32.mrb[131].mxu0 }
 0x2d5   : > { %v4342_v17 = vadd.f32 %v4341_v16, %v4327_v7  ;;  %v4172_v61 = vadd.f32 %v5559_v12, %v7455_v5  ;;  %v5562_v14 = vadd.f32 %v5561_v10, %v5560_v55  ;;  %v5626_v19 = vadd.f32 %v5625_v57, %v5624_v56 }
 0x2d7   : > { %v7527_v1 = vadd.f32 %v5623_v8, %v4172_v61  ;;  %v4175_v23 = vadd.f32 %v5562_v14, %v7458_v9 }
 0x2d9   : > { %v4306_v44 = vadd.f32 %v4305_v53, %v7527_v1  ;;  %v4328_v22 = vmul.f32 %v7527_v1, %v7527_v1  ;;  %v7533_v24 = vadd.f32 %v5626_v19, %v4175_v23  ;;  %v5563_v26 = vpop.f32.mrb[132].mxu1  ;;  %v5627_v6 = vpop.f32.mrb[132].mxu0 }
 0x2da   : > { %v5564_v27 = vpop.f32.mrb[133].mxu1  ;;  %v5628_v32 = vpop.f32.mrb[133].mxu0 }
 0x2db   : > { %v4343_v28 = vadd.f32 %v4342_v17, %v4328_v22  ;;  %v4307_v5 = vadd.f32 %v4306_v44, %v7533_v24  ;;  %v4329_v13 = vmul.f32 %v7533_v24, %v7533_v24  ;;  %v5565_v40 = vadd.f32 %v5564_v27, %v5563_v26  ;;  %v5566_v18 = vpop.f32.mrb[134].mxu1  ;;  %v5630_v9 = vpop.f32.mrb[134].mxu0 }
 0x2dc   : > { %v5629_v42 = vadd.f32 %v5628_v32, %v5627_v6  ;;  %v5567_v33 = vpop.f32.mrb[135].mxu1  ;;  %v5631_v52 = vpop.f32.mrb[135].mxu0 }
 0x2dd   : > { %v4344_v41 = vadd.f32 %v4343_v28, %v4329_v13  ;;  %v4180_v43 = vadd.f32 %v5565_v40, %v7461_v21  ;;  %v5568_v47 = vadd.f32 %v5567_v33, %v5566_v18  ;;  %v5632_v34 = vadd.f32 %v5631_v52, %v5630_v9 }
 0x2df   : > { %v7539_v60 = vadd.f32 %v5629_v42, %v4180_v43  ;;  %v4183_v39 = vadd.f32 %v5568_v47, %v7464_v30 }
 0x2e1   : > { %v4308_v48 = vadd.f32 %v4307_v5, %v7539_v60  ;;  %v4330_v50 = vmul.f32 %v7539_v60, %v7539_v60  ;;  %v7545_v31 = vadd.f32 %v5632_v34, %v4183_v39  ;;  %v5569_v29 = vpop.f32.mrb[136].mxu1  ;;  %v5633_v54 = vpop.f32.mrb[136].mxu0 }
 0x2e2   : > { %v5570_v58 = vpop.f32.mrb[137].mxu1  ;;  %v5634_v36 = vpop.f32.mrb[137].mxu0 }
 0x2e3   : > { %v4345_v45 = vadd.f32 %v4344_v41, %v4330_v50  ;;  %v4309_v21 = vadd.f32 %v4308_v48, %v7545_v31  ;;  %v4331_v59 = vmul.f32 %v7545_v31, %v7545_v31  ;;  %v5571_v4 = vadd.f32 %v5570_v58, %v5569_v29  ;;  %v5572_v2 = vpop.f32.mrb[138].mxu1  ;;  %v5636_v30 = vpop.f32.mrb[138].mxu0 }
 0x2e4   : > { %v5635_v46 = vadd.f32 %v5634_v36, %v5633_v54  ;;  %v5573_v0 = vpop.f32.mrb[139].mxu1  ;;  %v5637_v16 = vpop.f32.mrb[139].mxu0 }
 0x2e5   : > { %v4346_v53 = vadd.f32 %v4345_v45, %v4331_v59  ;;  %v4188_v7 = vadd.f32 %v5571_v4, %v7467_v51  ;;  %v5574_v12 = vadd.f32 %v5573_v0, %v5572_v2  ;;  %v5638_v55 = vadd.f32 %v5637_v16, %v5636_v30 }
 0x2e7   : > { %v7551_v56 = vadd.f32 %v5635_v46, %v4188_v7  ;;  %v4191_v8 = vadd.f32 %v5574_v12, %v7470_v49  ;;  %v4370_v7 = vlaneseq }
 0x2e9   : > { %v4310_v10 = vadd.f32 %v4309_v21, %v7551_v56  ;;  %v4332_v57 = vmul.f32 %v7551_v56, %v7551_v56  ;;  %v7557_v17 = vadd.f32 %v5638_v55, %v4191_v8  ;;  %v5575_v61 = vpop.f32.mrb[140].mxu1  ;;  %v5639_v14 = vpop.f32.mrb[140].mxu0  ;;  %v4371_v12 = vshrl.u32 %v4370_v7, 7  ;;  %v4362_v55 = vld [vmem:[%s1405_s30] sm:$0x1] }
 0x2ea   : > { %v5576_v19 = vpop.f32.mrb[141].mxu1  ;;  %v5640_v23 = vpop.f32.mrb[141].mxu0 }
 0x2eb   : > { %v4347_v44 = vadd.f32 %v4346_v53, %v4332_v57  ;;  %v4311_v51 = vadd.f32 %v4310_v10, %v7557_v17  ;;  %v4333_v22 = vmul.f32 %v7557_v17, %v7557_v17  ;;  %v5577_v26 = vadd.f32 %v5576_v19, %v5575_v61  ;;  %v5578_v6 = vpop.f32.mrb[142].mxu1  ;;  %v5642_v49 = vpop.f32.mrb[142].mxu0  ;;  %v4366_v61 = vld [vmem:[%s1408_s8] sm:$0x1] }
 0x2ec   : > { %v5641_v27 = vadd.f32 %v5640_v23, %v5639_v14  ;;  %v5579_v32 = vpop.f32.mrb[143].mxu1  ;;  %v5643_v28 = vpop.f32.mrb[143].mxu0  ;;  %v4372_v8 = vsub.s32 0, %v4371_v12 }
 0x2ed   : > { %v4348_v5 = vadd.f32 %v4347_v44, %v4333_v22  ;;  %v4196_v13 = vadd.f32 %v5577_v26, %v7473_v11  ;;  %v5580_v40 = vadd.f32 %v5579_v32, %v5578_v6  ;;  %v5644_v18 = vadd.f32 %v5643_v28, %v5642_v49 }
 0x2ef   : > { %v4293_v9 = vadd.f32 %v5641_v27, %v4196_v13  ;;  %v4199_v42 = vadd.f32 %v5580_v40, %v7476_v20 }
 0x2f1   : > { %v4312_v33 = vadd.f32 %v4311_v51, %v4293_v9  ;;  %v4334_v52 = vmul.f32 %v4293_v9, %v4293_v9  ;;  %v4296_v41 = vadd.f32 %v5644_v18, %v4199_v42 }
 0x2f3   : > { %v4349_v43 = vadd.f32 %v4348_v5, %v4334_v52  ;;  %v4313_v47 = vadd.f32 %v4312_v33, %v4296_v41  ;;  %v4335_v34 = vmul.f32 %v4296_v41, %v4296_v41 }
 0x2f5   : > { %v4314_v39 = vrot.slane %v4313_v47, 4  ;;  %v4350_v48 = vadd.f32 %v4349_v43, %v4335_v34 }
 0x2f7   : > { %v4315_v50 = vadd.f32 %v4314_v39, %v4313_v47  ;;  %v4351_v29 = vrot.slane %v4350_v48, 4 }
 0x2f9   : > { %v4316_v54 = vrot.slane %v4315_v50, 2  ;;  %v4352_v58 = vadd.f32 %v4351_v29, %v4350_v48 }
 0x2fb   : > { %v4317_v11 = vadd.f32 %v4316_v54, %v4315_v50  ;;  %v4353_v36 = vrot.slane %v4352_v58, 2 }
 0x2fd   : > { %v4318_v45 = vrot.slane %v4317_v11, 1  ;;  %v4354_v21 = vadd.f32 %v4353_v36, %v4352_v58 }
 0x2ff   : > { %v4319_v59 = vadd.f32 %v4318_v45, %v4317_v11  ;;  %v4355_v20 = vrot.slane %v4354_v21, 1 }
 0x301   : > { %v4356_v4 = vadd.f32 %v4355_v20, %v4354_v21  ;;  %v4357_v2 = vmul.f32 0.0078125, %v4319_v59 }
 0x303   : > { %v4358_v30 = vmul.f32 0.0078125, %v4356_v4  ;;  %v4359_v46 = vmul.f32 %v4357_v2, %v4357_v2 }
 0x305   : > { %v4360_v0 = vsub.f32 %v4358_v30, %v4359_v46 }
 0x307   : > { %v4361_v16 = vmax.f32 %v4360_v0, 0.0 }
 0x309   : > { %v4363_v53 = vadd.f32 1e-05, %v4361_v16 }
 0x30b   : > { %6047 = vrsqrt.f32 %v4363_v53 }
 0x315   : > { %v6048_v10 = vpop.eup %6047 }
 0x316   : > { %v4365_v57 = vmul.f32 %v6048_v10, %v4362_v55 }
 0x318   : > { %v4367_v14 = vmul.f32 %v4365_v57, %v4357_v2  ;;  %v4373_v19 = vrot.slane %v4365_v57, %v4372_v8 }
 0x31a   : > { %v4368_v23 = vsub.f32 %v4366_v61, %v4367_v14  ;;  %v4375_v44 = vmul.f32 %v4373_v19, %v7479_v35  ;;  %v4376_v51 = vmul.f32 %v4373_v19, %v7482_v25  ;;  %v4379_v22 = vmul.f32 %v4373_v19, %v7503_v15 }
 0x31b   : > { %v4380_v26 = vmul.f32 %v4373_v19, %v7509_v37  ;;  %v4381_v6 = vmul.f32 %v4373_v19, %v7515_v38  ;;  %v4382_v49 = vmul.f32 %v4373_v19, %v7521_v62  ;;  %v4383_v27 = vmul.f32 %v4373_v19, %v7527_v1 }
 0x31c   : > { %v4384_v32 = vmul.f32 %v4373_v19, %v7533_v24  ;;  %v4385_v28 = vmul.f32 %v4373_v19, %v7539_v60  ;;  %v4386_v5 = vmul.f32 %v4373_v19, %v7545_v31  ;;  %v4387_v35 = vmul.f32 %v4373_v19, %v7551_v56 }
 0x31d   : > { %v4388_v25 = vmul.f32 %v4373_v19, %v7557_v17  ;;  %v4389_v13 = vmul.f32 %v4373_v19, %v4293_v9  ;;  %v4377_v15 = vmul.f32 %v4373_v19, %v7487_v63  ;;  %v4378_v37 = vmul.f32 %v4373_v19, %v7496_v3 }
 0x31e   : > { %v4390_v38 = vmul.f32 %v4373_v19, %v4296_v41  ;;  %v4395_v40 = vrot.slane %v4368_v23, %v4372_v8 }
 0x320   : > { %v4397_v62 = vadd.f32 %v4395_v40, %v4375_v44  ;;  %v4398_v1 = vadd.f32 %v4395_v40, %v4376_v51  ;;  %v4399_v18 = vadd.f32 %v4395_v40, %v4377_v15  ;;  %v4400_v24 = vadd.f32 %v4395_v40, %v4378_v37 }
 0x321   : > { %v4401_v42 = vadd.f32 %v4395_v40, %v4379_v22  ;;  %v4402_v60 = vadd.f32 %v4395_v40, %v4380_v26  ;;  %v4403_v33 = vadd.f32 %v4395_v40, %v4381_v6  ;;  %v4404_v31 = vadd.f32 %v4395_v40, %v4382_v49 }
 0x322   : > { %v4405_v52 = vadd.f32 %v4395_v40, %v4383_v27  ;;  %v4406_v56 = vadd.f32 %v4395_v40, %v4384_v32  ;;  %v4407_v43 = vadd.f32 %v4395_v40, %v4385_v28  ;;  %v4408_v17 = vadd.f32 %v4395_v40, %v4386_v5 }
 0x323   : > { %v4409_v9 = vadd.f32 %v4395_v40, %v4387_v35  ;;  %v4410_v47 = vadd.f32 %v4395_v40, %v4388_v25  ;;  %v4411_v63 = vadd.f32 %v4395_v40, %v4389_v13  ;;  %v4412_v34 = vadd.f32 %v4395_v40, %v4390_v38 }
 0x324   : > { %v4413_v3 = vmax.f32 %v4397_v62, 0.0  ;;  %v4414_v41 = vmax.f32 %v4398_v1, 0.0  ;;  %v4415_v39 = vmax.f32 %v4399_v18, 0.0  ;;  %v4416_v48 = vmax.f32 %v4400_v24, 0.0 }
 0x325   : > { %v4417_v50 = vmax.f32 %v4401_v42, 0.0  ;;  %v4418_v29 = vmax.f32 %v4402_v60, 0.0  ;;  %v4419_v54 = vmax.f32 %v4403_v33, 0.0  ;;  %v4420_v58 = vmax.f32 %v4404_v31, 0.0 }
 0x326   : > { %v4421_v11 = vmax.f32 %v4405_v52, 0.0  ;;  %v4422_v36 = vmax.f32 %v4406_v56, 0.0  ;;  %v4423_v45 = vmax.f32 %v4407_v43, 0.0  ;;  %v4424_v21 = vmax.f32 %v4408_v17, 0.0 }
 0x327   : > { %v4425_v59 = vmax.f32 %v4409_v9, 0.0  ;;  %v4426_v20 = vmax.f32 %v4410_v47, 0.0  ;;  %v4427_v4 = vmax.f32 %v4411_v63, 0.0  ;;  %v4428_v2 = vmax.f32 %v4412_v34, 0.0  ;;  %4515 = sbr.rel (!%p6129_p5) target bundleno = 828 (0x33c), region = 81 }
 0x328   : > { %v5025_v30 = vpack.c.bf16 %v4414_v41, %v4413_v3  ;;  %v5030_v46 = vpack.c.bf16 %v4416_v48, %v4415_v39  ;;  %v5035_v0 = vpack.c.bf16 %v4418_v29, %v4417_v50  ;;  %v5040_v16 = vpack.c.bf16 %v4420_v58, %v4419_v54 }
 0x329   : > { %v5045_v53 = vpack.c.bf16 %v4422_v36, %v4421_v11  ;;  %v5050_v7 = vpack.c.bf16 %v4424_v21, %v4423_v45  ;;  %v5055_v12 = vpack.c.bf16 %v4426_v20, %v4425_v59  ;;  %v5060_v55 = vpack.c.bf16 %v4428_v2, %v4427_v4 }
 0x32a   : > { %5026 = vst [vmem:[%s7588_s15] sm:$0xff] %v5025_v30   ;;  %5062 = vst [vmem:[%s7588_s15 + $0x8] sm:$0xff] %v5030_v46  }
 0x32b   : > { %5063 = vst [vmem:[%s7588_s15 + $0x10] sm:$0xff] %v5035_v0   ;;  %5064 = vst [vmem:[%s7588_s15 + $0x18] sm:$0xff] %v5040_v16  }
 0x32c   : > { %5065 = vst [vmem:[%s7588_s15 + $0x20] sm:$0xff] %v5045_v53   ;;  %5066 = vst [vmem:[%s7588_s15 + $0x28] sm:$0xff] %v5050_v7  }
 0x32d   : > { %5067 = vst [vmem:[%s7588_s15 + $0x30] sm:$0xff] %v5055_v12   ;;  %5068 = vst [vmem:[%s7588_s15 + $0x38] sm:$0xff] %v5060_v55  }
 0x331   : > { %v4533_v8 = vld [vmem:[%s7588_s15] sm:$0xf]  ;;  %v4535_v10 = vld [vmem:[%s7588_s15 + $0x4] sm:$0xf]  ;;  %v4537_v57 = vld [vmem:[%s7588_s15 + $0x8] sm:$0xf] }
 0x332   : > { %v4539_v61 = vld [vmem:[%s7588_s15 + $0xc] sm:$0xf]  ;;  %v4541_v14 = vld [vmem:[%s7588_s15 + $0x10] sm:$0xf]  ;;  %4534 = vst [vmem:[%s4517_s13] sm:$0xf] %v4533_v8 }
 0x333   : > { %4536 = vst [vmem:[%s4517_s13 + $0x8] sm:$0xf] %v4535_v10  ;;  %4538 = vst [vmem:[%s4517_s13 + $0x10] sm:$0xf] %v4537_v57  ;;  %v4543_v19 = vld [vmem:[%s7588_s15 + $0x14] sm:$0xf] }
 0x334   : > { %4540 = vst [vmem:[%s4517_s13 + $0x18] sm:$0xf] %v4539_v61  ;;  %4542 = vst [vmem:[%s4517_s13 + $0x20] sm:$0xf] %v4541_v14  ;;  %v4545_v23 = vld [vmem:[%s7588_s15 + $0x18] sm:$0xf] }
 0x335   : > { %v4547_v44 = vld [vmem:[%s7588_s15 + $0x1c] sm:$0xf]  ;;  %4544 = vst [vmem:[%s4517_s13 + $0x28] sm:$0xf] %v4543_v19  ;;  %4546 = vst [vmem:[%s4517_s13 + $0x30] sm:$0xf] %v4545_v23 }
 0x336   : > { %4548 = vst [vmem:[%s4517_s13 + $0x38] sm:$0xf] %v4547_v44  ;;  %v4549_v51 = vld [vmem:[%s7588_s15 + $0x20] sm:$0xf]  ;;  %v4551_v22 = vld [vmem:[%s7588_s15 + $0x24] sm:$0xf] }
 0x337   : > { %v4553_v26 = vld [vmem:[%s7588_s15 + $0x28] sm:$0xf]  ;;  %4550 = vst [vmem:[%s4517_s13 + $0x40] sm:$0xf] %v4549_v51  ;;  %4552 = vst [vmem:[%s4517_s13 + $0x48] sm:$0xf] %v4551_v22 }
 0x338   : > { %4554 = vst [vmem:[%s4517_s13 + $0x50] sm:$0xf] %v4553_v26  ;;  %v4555_v6 = vld [vmem:[%s7588_s15 + $0x2c] sm:$0xf]  ;;  %v4557_v49 = vld [vmem:[%s7588_s15 + $0x30] sm:$0xf] }
 0x339   : > { %v4559_v27 = vld [vmem:[%s7588_s15 + $0x34] sm:$0xf]  ;;  %4556 = vst [vmem:[%s4517_s13 + $0x58] sm:$0xf] %v4555_v6  ;;  %4558 = vst [vmem:[%s4517_s13 + $0x60] sm:$0xf] %v4557_v49 }
 0x33a   : > { %4560 = vst [vmem:[%s4517_s13 + $0x68] sm:$0xf] %v4559_v27  ;;  %v4561_v32 = vld [vmem:[%s7588_s15 + $0x38] sm:$0xf]  ;;  %v4563_v28 = vld [vmem:[%s7588_s15 + $0x3c] sm:$0xf] }
 0x33b   : > { %4562 = vst [vmem:[%s4517_s13 + $0x70] sm:$0xf] %v4561_v32  ;;  %4564 = vst [vmem:[%s4517_s13 + $0x78] sm:$0xf] %v4563_v28 }
 0x33c PF: > { %p11_p11 = scmp.ge.s32.totalorder %s6117_s19, 4   ;;  %s7636_s15 = smov %s6067_s16 }
 0x33d   : > { %s7637_s16 = smov %s6127_s22  ;;  %s7638_s17 = smov %s6117_s19 }
 0x33e   :  { %13 = sbr.rel (!%p11_p11) target bundleno = 2 (0x2), region = 159 }

// kernel: policy_value_forward.17
= control target key start
LH: loop header
LB: loop body
LE: loop exit
PB: predicated region body
PF: predicated region fallthrough
CT: control target
= control target key end

     0   :  { %v297_v0 = vmov 0.0|0.0   ;;  %vm298_vm0 = vmmov 0   ;;  %v299_v4 = vmov 0.0   ;;  %vm38_vm1 = vcmask 523264   ;;  %s392_s1 = inlined_call_operand.vmem [shape: f32[64,64], index: 1, kind: input, shape index: {}]   ;;  %s393_s3 = inlined_call_operand.vmem [shape: f32[64,1], index: 3, kind: input, shape index: {}]   ;;  %s394_s0 = inlined_call_operand.vmem [shape: f32[2,64], index: 0, kind: input, shape index: {}]   ;;  %s395_s4 = inlined_call_operand.<no memory space> [shape: f32[1,1], index: 4, kind: input, shape index: {}]   ;;  %s396_s2 = inlined_call_operand.vmem [shape: f32[1,64], index: 2, kind: input, shape index: {}]   ;;  %s397_s5 = inlined_call_operand.vmem [shape: f32[2,1], index: 5, kind: output, shape index: {}]  }
   0x1   :  { %268 = vmatprep.subr.bf16.mxu0 %v297_v0  ;;  %v23_v1 = vld [vmem:[%s392_s1] sm:$0xff]  ;;  %v24_v2 = vld [vmem:[%s392_s1 + $0x8] sm:$0xff]  ;;  %v25_v3 = vld [vmem:[%s392_s1 + $0x10] sm:$0xff]  ;;  %246 = vmatprep.mubr.msk.f32.mxu0 %vm298_vm0, %v299_v4  ;;  %v10_v27 = vstv %s395_s4  ;;  %vm202_vm2 = vcmask 1024  }
   0x2   :  { %v269_v5 = vpack.c.bf16 %v24_v2, %v23_v1  ;;  %v26_v6 = vld [vmem:[%s392_s1 + $0x18] sm:$0xff]  ;;  %280 = vmatprep.subr.bf16.mxu1 %v297_v0  ;;  %265 = vmatprep.mubr.msk.f32.mxu1 %vm298_vm0, %v299_v4  ;;  %v113_v8 = vld [vmem:[%s393_s3] sm:$0xff]  ;;  %v114_v9 = vld [vmem:[%s393_s3 + $0x8] sm:$0xff]  ;;  %11 = vst [vmem:[#allocation2] sm:$0x1] %v10_v27 }
   0x3   :  { %v272_v7 = vpack.c.bf16 %v26_v6, %v25_v3  ;;  %v115_v10 = vld [vmem:[%s393_s3 + $0x10] sm:$0xff]  ;;  %v27_v11 = vld [vmem:[%s392_s1 + $0x20] sm:$0xff]  ;;  %v28_v12 = vld [vmem:[%s392_s1 + $0x28] sm:$0xff]  ;;  %v281_v13 = vpack.c.bf16 %v114_v9, %v113_v8 }
   0x4   :  { %270 = vmatpush3.bf16.msra.mxu0 %v269_v5  ;;  %v116_v14 = vld [vmem:[%s393_s3 + $0x18] sm:$0xff]  ;;  %v275_v16 = vpack.c.bf16 %v28_v12, %v27_v11  ;;  %v117_v17 = vld [vmem:[%s393_s3 + $0x20] sm:$0xff]  ;;  %v118_v18 = vld [vmem:[%s393_s3 + $0x28] sm:$0xff] }
   0x5   :  { %271 = vmatprep.subr.bf16.mxu0 %v297_v0  ;;  %282 = vmatpush3.bf16.msra.mxu1 %v281_v13  ;;  %v284_v15 = vpack.c.bf16 %v116_v14, %v115_v10  ;;  %v29_v19 = vld [vmem:[%s392_s1 + $0x30] sm:$0xff]  ;;  %v30_v20 = vld [vmem:[%s392_s1 + $0x38] sm:$0xff]  ;;  %v287_v21 = vpack.c.bf16 %v118_v18, %v117_v17  ;;  %v22_v23 = vld [vmem:[%s394_s0] sm:$0x3] }
   0x6   :  { %283 = vmatprep.subr.bf16.mxu1 %v297_v0  ;;  %v278_v22 = vpack.c.bf16 %v30_v20, %v29_v19  ;;  %v119_v24 = vld [vmem:[%s393_s3 + $0x30] sm:$0xff]  ;;  %v120_v25 = vld [vmem:[%s393_s3 + $0x38] sm:$0xff]  ;;  %v208_v28 = vld [vmem:[%s396_s2] ss:$0 sm:$0xff] }
   0x7   :  { %v290_v26 = vpack.c.bf16 %v120_v25, %v119_v24 }
   0x8   :  { %273 = vmatpush3.bf16.msra.mxu0 %v272_v7 }
   0x9   :  { %274 = vmatprep.subr.bf16.mxu0 %v297_v0  ;;  %285 = vmatpush3.bf16.msra.mxu1 %v284_v15  ;;  %v210_v33 = vld [vmem:[#allocation2] ss:$0 sm:$0xff] }
   0xa   :  { %286 = vmatprep.subr.bf16.mxu1 %v297_v0 }
   0xc   :  { %276 = vmatpush3.bf16.msra.mxu0 %v275_v16 }
   0xd   :  { %277 = vmatprep.subr.bf16.mxu0 %v297_v0  ;;  %288 = vmatpush3.bf16.msra.mxu1 %v287_v21 }
   0xe   :  { %289 = vmatprep.subr.bf16.mxu1 %v297_v0 }
  0x10   :  { %279 = vmatpush3.bf16.msra.mxu0 %v278_v22 }
  0x11   :  { %291 = vmatpush3.bf16.msra.mxu1 %v290_v26 }
  0x13   :  { %247 = vmatmul.mubr.msk.f32.vlgmr.msra.gmra.mrb[0].mxu0 %vm38_vm1, %v22_v23 }
  0xe6   :  { %v108_v29 = vpop.f32.mrb[0].mxu0 }
  0xe7   :  { %v109_v30 = vadd.f32 %v208_v28, %v108_v29  ;;  %v248_v31 = vpop.f32.mrb[1].mxu0 }
  0xe9   :  { %v112_v32 = vmax.f32 %v109_v30, 0.0 }
  0xeb   :  { %266 = vmatmul.mubr.msk.f32.vlgmr.msra.gmra.mrb[0].mxu1 %vm38_vm1, %v112_v32 }
 0x1be   :  { %v197_v34 = vpop.f32.mrb[0].mxu1 }
 0x1bf   :  { %v198_v35 = vadd.f32 %v210_v33, %v197_v34  ;;  %v267_v36 = vpop.f32.mrb[1].mxu1 }
 0x1c1   :  { %295 = vtanh.f32 %v198_v35 }
 0x1cb   :  { %v296_v37 = vpop.eup %295 }
 0x1cc   :  { %203 = vst.msk [vmem:[%s397_s5] sm:$0x3] %vm202_vm2, %v296_v37 }

</bundles_post_ra>
